<compile_context>
chip_gen: v7x
topology: tpu7x:2x2x1
jax: 0.10.0
libtpu: 0.0.40
codegen_flags: <defaults>
</compile_context>

<pallas_src>
import functools

import jax
import jax.numpy as jnp
from jax.experimental import pallas as pl
from jax.experimental.pallas import tpu as pltpu


def _round_up(x, m):
    return (x + m - 1) // m * m


def _sigmoid(x):
    # one transcendental (tanh) instead of exp + divide
    return 0.5 * jnp.tanh(0.5 * x) + 0.5


# ---------------------------------------------------------------------------
# LSTM kernel: 2 layers, time-chunked grid, hoisted layer-0 projection,
# layer-1 projection fused into the recurrent matmul (K = 2*Hp)
# ---------------------------------------------------------------------------
def lstm_chunk_kernel(x_ref,                       # (Tc, TB, Hp) bf16 time-major chunk
                      wih0_ref, whh0_ref, b0_ref,  # (Hp,4Hp) bf16, (Hp,4Hp) bf16, (1,4Hp) f32
                      w1_ref, b1_ref,              # (2Hp,4Hp) bf16 stacked [W_ih1;W_hh1], (1,4Hp) f32
                      hn_ref, cn_ref,              # (2, TB, Hp) f32 outputs (resident carry)
                      pre_ref,                     # scratch: (Tc*TB, 4Hp) bf16
                      *, seq_len, mask_tail):
    Tc, TB, Hp = x_ref.shape
    H4 = 4 * Hp

    # zero-init carried state at the first time chunk of each batch tile
    @pl.when(pl.program_id(1) == 0)
    def _init():
        hn_ref[...] = jnp.zeros_like(hn_ref)
        cn_ref[...] = jnp.zeros_like(cn_ref)

    def gates(g, c):
        i_g = _sigmoid(g[:, 0 * Hp:1 * Hp])      # 128-lane aligned slices
        f_g = _sigmoid(g[:, 1 * Hp:2 * Hp])
        g_g = jnp.tanh(g[:, 2 * Hp:3 * Hp])
        o_g = _sigmoid(g[:, 3 * Hp:4 * Hp])
        c_new = f_g * c + i_g * g_g              # f32 cell state
        h_new = o_g * jnp.tanh(c_new)
        return h_new, c_new

    # ---- layer 0: hoist input projection + bias over the whole chunk (one MXU op)
    x_flat = x_ref[...].reshape(Tc * TB, Hp)
    pre0 = (jnp.dot(x_flat, wih0_ref[...], preferred_element_type=jnp.float32)
            + b0_ref[...])
    pre_ref[...] = pre0.astype(jnp.bfloat16)

    # loop-invariant broadcast of layer-1 bias (hoisted out of the recurrence)
    b1_full = jnp.broadcast_to(b1_ref[...], (TB, H4))

    chunk_base = pl.program_id(1) * Tc

    def step(t, carry):
        h0, c0, h1, c1 = carry                   # h* bf16, c* f32
        base = pl.multiple_of(t * TB, TB)
        pre0_t = pre_ref[pl.ds(base, TB), :].astype(jnp.float32)

        # layer 0 recurrence (K = Hp), f32 accumulation
        g0 = pre0_t + jnp.dot(h0, whh0_ref[...], preferred_element_type=jnp.float32)
        h0n_f, c0n = gates(g0, c0)
        h0n = h0n_f.astype(jnp.bfloat16)

        # layer 1: input + recurrent projection fused (K = 2*Hp fills the MXU)
        inp1 = jnp.concatenate([h0n, h1], axis=1)
        g1 = jnp.dot(inp1, w1_ref[...], preferred_element_type=jnp.float32) + b1_full
        h1n_f, c1n = gates(g1, c1)
        h1n = h1n_f.astype(jnp.bfloat16)

        if mask_tail:                            # static flag: only when T was padded
            valid = (chunk_base + t) < seq_len
            h0n = jnp.where(valid, h0n, h0)
            c0n = jnp.where(valid, c0n, c0)
            h1n = jnp.where(valid, h1n, h1)
            c1n = jnp.where(valid, c1n, c1)
        return h0n, c0n, h1n, c1n

    init = (hn_ref[0].astype(jnp.bfloat16), cn_ref[0],
            hn_ref[1].astype(jnp.bfloat16), cn_ref[1])
    unroll = Tc if Tc <= 16 else 8
    h0, c0, h1, c1 = jax.lax.fori_loop(0, Tc, step, init, unroll=unroll)

    hn_ref[0] = h0.astype(jnp.float32)
    cn_ref[0] = c0
    hn_ref[1] = h1.astype(jnp.float32)
    cn_ref[1] = c1


# ---------------------------------------------------------------------------
# fc kernel: lane-dense tiled matmul over the (padded) vocab dimension
# ---------------------------------------------------------------------------
def fc_kernel(h_ref, w_ref, b_ref, o_ref):
    o_ref[...] = (jnp.dot(h_ref[...], w_ref[...], preferred_element_type=jnp.float32)
                  + b_ref[...])


# ---------------------------------------------------------------------------
# parameter prep helpers (pure glue)
# ---------------------------------------------------------------------------
def _prep_gate_weight(w, H, Hp):
    # torch layout (4H, H) with gate blocks [i,f,g,o] -> (Hp, 4*Hp), each gate
    # block on a 128-lane boundary, bf16, zero-padded.
    w4 = w.reshape(4, H, H)
    w4 = jnp.pad(w4, ((0, 0), (0, Hp - H), (0, Hp - H)))   # (4, out_p, in_p)
    w4 = jnp.transpose(w4, (2, 0, 1))                      # (in_p, 4, out_p)
    return w4.reshape(Hp, 4 * Hp).astype(jnp.bfloat16)


def _prep_gate_bias(b_ih, b_hh, H, Hp):
    b = (b_ih + b_hh).reshape(4, H)
    b = jnp.pad(b, ((0, 0), (0, Hp - H)))
    return b.reshape(1, 4 * Hp).astype(jnp.float32)


# ---------------------------------------------------------------------------
# wrapper
# ---------------------------------------------------------------------------
def lstm_language_model(x_ids, params, *, chunk_t=64, max_batch_tile=128):
    """x_ids: (B, T) int32 token ids.  Returns (logits, (h_n, c_n))."""
    emb = params["embedding"]
    B, T = x_ids.shape
    V, H = emb.shape

    Hp = _round_up(H, 128)
    Vp = _round_up(V, 128)

    # batch tile: multiple of 16 (bf16 sublane tile); batch padded so tb | Bp.
    # TODO(synk): on v7x choose tb <= Bp/2 for large B so the 'parallel' batch
    # axis actually spans both TensorCores.
    tb = min(_round_up(max_batch_tile, 16), _round_up(B, 16))
    Bp = _round_up(B, tb)

    # generation-aware VMEM budget
    try:
        vmem_cap = int(pltpu.get_tpu_info().vmem_capacity_bytes)
    except Exception:
        vmem_cap = 128 * 1024 * 1024

    def _est(tc_, wbuf):
        w = (Hp * 4 * Hp * 2 + 2 * Hp * 4 * Hp) * 2 * wbuf  # wih0+whh0 and stacked w1 (bf16)
        b = 2 * 8 * 4 * Hp * 4 * 2                           # biases (padded sublanes)
        x = 2 * tc_ * tb * Hp * 2                             # x chunk bf16, double-buffered
        o = 2 * 2 * 2 * tb * Hp * 4                           # hn/cn f32 output blocks
        s = tc_ * tb * 4 * Hp * 2                             # bf16 pre-gate scratch
        return w + b + x + o + s

    # time chunk: shrink to fit a conservative slice of VMEM, then pad T and
    # mask the tail timesteps inside the kernel (no tc=1 cliff for odd T).
    tc = max(1, min(chunk_t, T))
    budget = int(0.45 * vmem_cap)
    while _est(tc, 1) > budget and tc > 8:
        tc = max(8, tc // 2)
    Tp = _round_up(T, tc)
    mask_tail = Tp != T

    # glue: bf16 embedding gather straight into time-major layout, then pad.
    # TODO(synk): fuse gather+pad into a Pallas kernel (scalar-prefetched ids +
    # pl.Element row DMA) to drop one HBM round-trip over B*T*H.
    x_tm = jnp.take(emb.astype(jnp.bfloat16), x_ids.T, axis=0)     # (T, B, H)
    x_tm = jnp.pad(x_tm, ((0, Tp - T), (0, Bp - B), (0, Hp - H)))

    wih0 = _prep_gate_weight(params["w_ih_l0"], H, Hp)
    whh0 = _prep_gate_weight(params["w_hh_l0"], H, Hp)
    b0 = _prep_gate_bias(params["b_ih_l0"], params["b_hh_l0"], H, Hp)
    # stacked layer-1 weights: rows [0:Hp] multiply h0_t, rows [Hp:2Hp] h1_{t-1}
    w1 = jnp.concatenate([_prep_gate_weight(params["w_ih_l1"], H, Hp),
                          _prep_gate_weight(params["w_hh_l1"], H, Hp)], axis=0)
    b1 = _prep_gate_bias(params["b_ih_l1"], params["b_hh_l1"], H, Hp)

    kernel = functools.partial(lstm_chunk_kernel, seq_len=T, mask_tail=mask_tail)

    def run_lstm(single_buffer_weights):
        def const_spec(shape):
            idx = lambda b_, t_: (0,) * len(shape)
            if single_buffer_weights:
                try:
                    return pl.BlockSpec(shape, idx, pipeline_mode=pl.Buffered(1))
                except TypeError:
                    pass
            return pl.BlockSpec(shape, idx)

        vmem_limit = int(min(int(0.8 * vmem_cap),
                             max(2 * _est(tc, 1 if single_buffer_weights else 2),
                                 32 * 1024 * 1024)))
        return pl.pallas_call(
            kernel,
            out_shape=(jax.ShapeDtypeStruct((2, Bp, Hp), jnp.float32),
                       jax.ShapeDtypeStruct((2, Bp, Hp), jnp.float32)),
            grid_spec=pltpu.PrefetchScalarGridSpec(
                num_scalar_prefetch=0,
                grid=(Bp // tb, Tp // tc),
                in_specs=[
                    pl.BlockSpec((tc, tb, Hp), lambda b_, t_: (t_, b_, 0)),   # x chunk
                    const_spec((Hp, 4 * Hp)),        # wih0
                    const_spec((Hp, 4 * Hp)),        # whh0
                    const_spec((1, 4 * Hp)),         # b0
                    const_spec((2 * Hp, 4 * Hp)),    # stacked [W_ih1; W_hh1]
                    const_spec((1, 4 * Hp)),         # b1
                ],
                out_specs=(
                    pl.BlockSpec((2, tb, Hp), lambda b_, t_: (0, b_, 0)),     # h_n
                    pl.BlockSpec((2, tb, Hp), lambda b_, t_: (0, b_, 0)),     # c_n
                ),
                scratch_shapes=[
                    pltpu.VMEM((tc * tb, 4 * Hp), jnp.bfloat16),              # pre-gates
                ],
            ),
            compiler_params=pltpu.CompilerParams(
                dimension_semantics=("parallel", "arbitrary"),
                vmem_limit_bytes=vmem_limit),
        )(x_tm, wih0, whh0, b0, w1, b1)

    try:
        hn_p, cn_p = run_lstm(True)
    except Exception:
        # pl.Buffered(1) unsupported on this jax version/backend -> default buffering
        hn_p, cn_p = run_lstm(False)

    # fc on the last-timestep output of the top layer (separate tiled kernel so
    # vocab size never touches the LSTM kernel's VMEM budget).
    wfc = jnp.pad(params["fc_w"], ((0, Vp - V), (0, Hp - H))).T.astype(jnp.bfloat16)
    bfc = jnp.pad(params["fc_b"], (0, Vp - V)).reshape(1, Vp).astype(jnp.float32)
    h_last = hn_p[1].astype(jnp.bfloat16)                              # (Bp, Hp)

    tv = next(t for t in (2048, 1024, 512, 256, 128) if Vp % t == 0)

    def run_fc(stream_buffers):
        w_spec = pl.BlockSpec((Hp, tv), lambda j: (0, j))
        if stream_buffers:
            try:
                w_spec = pl.BlockSpec((Hp, tv), lambda j: (0, j),
                                      pipeline_mode=pl.Buffered(3))
            except TypeError:
                pass
        return pl.pallas_call(
            fc_kernel,
            out_shape=jax.ShapeDtypeStruct((Bp, Vp), jnp.float32),
            grid_spec=pltpu.PrefetchScalarGridSpec(
                num_scalar_prefetch=0,
                grid=(Vp // tv,),
                in_specs=[
                    pl.BlockSpec((Bp, Hp), lambda j: (0, 0)),
                    w_spec,
                    pl.BlockSpec((1, tv), lambda j: (0, j)),
                ],
                out_specs=pl.BlockSpec((Bp, tv), lambda j: (0, j)),
            ),
            compiler_params=pltpu.CompilerParams(
                dimension_semantics=("parallel",)),
        )(h_last, wfc, bfc)

    try:
        logits_p = run_fc(True)
    except Exception:
        logits_p = run_fc(False)

    logits = logits_p[:B, :V]
    h_n = hn_p[:, :B, :H]
    c_n = cn_p[:, :B, :H]
    return logits, (h_n, c_n)


# ---------------------------------------------------------------------------
# params + pure-JAX f32 reference (PyTorch semantics)
# ---------------------------------------------------------------------------
def init_params(key, vocab_size, hidden_size):
    H, V = hidden_size, vocab_size
    ks = jax.random.split(key, 12)
    s = 0.1
    return {
        "embedding": s * jax.random.normal(ks[0], (V, H), jnp.float32),
        "w_ih_l0": s * jax.random.normal(ks[1], (4 * H, H), jnp.float32),
        "w_hh_l0": s * jax.random.normal(ks[2], (4 * H, H), jnp.float32),
        "b_ih_l0": s * jax.random.normal(ks[3], (4 * H,), jnp.float32),
        "b_hh_l0": s * jax.random.normal(ks[4], (4 * H,), jnp.float32),
        "w_ih_l1": s * jax.random.normal(ks[5], (4 * H, H), jnp.float32),
        "w_hh_l1": s * jax.random.normal(ks[6], (4 * H, H), jnp.float32),
        "b_ih_l1": s * jax.random.normal(ks[7], (4 * H,), jnp.float32),
        "b_hh_l1": s * jax.random.normal(ks[8], (4 * H,), jnp.float32),
        "fc_w": s * jax.random.normal(ks[9], (V, H), jnp.float32),
        "fc_b": s * jax.random.normal(ks[10], (V,), jnp.float32),
    }


def reference_forward(x_ids, params):
    emb = params["embedding"]
    x = emb[x_ids].astype(jnp.float32)        # (B, T, H)
    B, T, H = x.shape

    def cell(x_t, h, c, wih, whh, bih, bhh):
        g = x_t @ wih.T + h @ whh.T + bih + bhh
        i = jax.nn.sigmoid(g[:, :H])
        f = jax.nn.sigmoid(g[:, H:2 * H])
        gg = jnp.tanh(g[:, 2 * H:3 * H])
        o = jax.nn.sigmoid(g[:, 3 * H:])
        c = f * c + i * gg
        h = o * jnp.tanh(c)
        return h, c

    h0 = c0 = h1 = c1 = jnp.zeros((B, H), jnp.float32)
    for t in range(T):
        x_t = x[:, t, :]
        h0, c0 = cell(x_t, h0, c0, params["w_ih_l0"], params["w_hh_l0"],
                      params["b_ih_l0"], params["b_hh_l0"])
        h1, c1 = cell(h0, h1, c1, params["w_ih_l1"], params["w_hh_l1"],
                      params["b_ih_l1"], params["b_hh_l1"])
    logits = h1 @ params["fc_w"].T + params["fc_b"]
    return logits, (jnp.stack([h0, h1]), jnp.stack([c0, c1]))


if __name__ == "__main__":
    batch, seq_len = 2, 8
    hidden_size = 32      # small demo size; exercises the 128-lane padding path
    vocab_size = 16
    num_layers = 2        # fixed to 2 in the kernel (matches the module)

    key = jax.random.PRNGKey(0)
    k_param, k_tok = jax.random.split(key)
    params = init_params(k_param, vocab_size, hidden_size)
    x_ids = jax.random.randint(k_tok, (batch, seq_len), 0, vocab_size, dtype=jnp.int32)

    ref_logits, (ref_h, ref_c) = reference_forward(x_ids, params)

    # chunk_t=4 with T=8 exercises the multi-chunk recurrent-state carry.
    logits, (h_n, c_n) = lstm_language_model(x_ids, params, chunk_t=4)
    jax.block_until_ready((logits, h_n, c_n))

    assert logits.shape == (batch, vocab_size)
    assert h_n.shape == (num_layers, batch, hidden_size)
    assert c_n.shape == (num_layers, batch, hidden_size)
    # bf16 matmul inputs -> looser tolerance than pure f32
    assert jnp.allclose(logits, ref_logits, atol=2e-2, rtol=2e-2)
    assert jnp.allclose(h_n, ref_h, atol=2e-2, rtol=2e-2)
    assert jnp.allclose(c_n, ref_c, atol=2e-2, rtol=2e-2)

    # chunk_t=3 with T=8 exercises the padded-tail time-masking path.
    logits2, (h2, c2) = lstm_language_model(x_ids, params, chunk_t=3)
    jax.block_until_ready((logits2, h2, c2))
    assert jnp.allclose(logits2, ref_logits, atol=2e-2, rtol=2e-2)
    assert jnp.allclose(h2, ref_h, atol=2e-2, rtol=2e-2)
    assert jnp.allclose(c2, ref_c, atol=2e-2, rtol=2e-2)

    print("KERNEL_OK")
</pallas_src>

<mosaic_0001>
module attributes {stable_mosaic.version = 11 : i64} {
  func.func @lstm_chunk_kernel(%arg0: i32, %arg1: i32, %arg2: memref<4x16x128xbf16, #tpu.memory_space<vmem>>, %arg3: memref<128x512xbf16, #tpu.memory_space<vmem>>, %arg4: memref<128x512xbf16, #tpu.memory_space<vmem>>, %arg5: memref<1x512xf32, #tpu.memory_space<vmem>>, %arg6: memref<256x512xbf16, #tpu.memory_space<vmem>>, %arg7: memref<1x512xf32, #tpu.memory_space<vmem>>, %arg8: memref<2x16x128xf32, #tpu.memory_space<vmem>>, %arg9: memref<2x16x128xf32, #tpu.memory_space<vmem>>, %arg10: memref<64x512xbf16, #tpu.memory_space<vmem>>) attributes {dimension_semantics = [#tpu.dimension_semantics<parallel>, #tpu.dimension_semantics<arbitrary>], iteration_bounds = array<i64: 1, 2>, scalar_prefetch = 0 : i64, scratch_operands = 1 : i64, tpu.core_type = #tpu.core_type<tc>, window_params = [{transform_indices = @transform_0, window_bounds = array<i64: 4, 16, 128>}, {pipeline_mode = #tpu.pipeline_mode<synchronous>, transform_indices = @transform_1, window_bounds = array<i64: 128, 512>}, {pipeline_mode = #tpu.pipeline_mode<synchronous>, transform_indices = @transform_2, window_bounds = array<i64: 128, 512>}, {pipeline_mode = #tpu.pipeline_mode<synchronous>, transform_indices = @transform_3, window_bounds = array<i64: 1, 512>}, {pipeline_mode = #tpu.pipeline_mode<synchronous>, transform_indices = @transform_4, window_bounds = array<i64: 256, 512>}, {pipeline_mode = #tpu.pipeline_mode<synchronous>, transform_indices = @transform_5, window_bounds = array<i64: 1, 512>}, {transform_indices = @transform_6, window_bounds = array<i64: 2, 16, 128>}, {transform_indices = @transform_7, window_bounds = array<i64: 2, 16, 128>}]} {
    %c0_i32 = arith.constant 0 : i32
    %0 = arith.cmpi eq, %arg1, %c0_i32 : i32
    %1 = arith.extui %0 : i1 to i32
    %c0_i32_0 = arith.constant 0 : i32
    %2 = arith.cmpi ne, %1, %c0_i32_0 : i32
    scf.if %2 {
      %cst_138 = arith.constant 0.000000e+00 : f32
      %343 = vector.broadcast %cst_138 : f32 to vector<2x16x128xf32>
      %c0_139 = arith.constant 0 : index
      %c0_140 = arith.constant 0 : index
      %c0_141 = arith.constant 0 : index
      %344 = vector.load %arg8[%c0_139, %c0_140, %c0_141] : memref<2x16x128xf32, #tpu.memory_space<vmem>>, vector<2x16x128xf32>
      tpu.vector_store %arg8[%c0_139, %c0_140, %c0_141], %343 {strides = array<i32>} : memref<2x16x128xf32, #tpu.memory_space<vmem>>, vector<2x16x128xf32>,
      %cst_142 = arith.constant 0.000000e+00 : f32
      %345 = vector.broadcast %cst_142 : f32 to vector<2x16x128xf32>
      %c0_143 = arith.constant 0 : index
      %c0_144 = arith.constant 0 : index
      %c0_145 = arith.constant 0 : index
      %346 = vector.load %arg9[%c0_143, %c0_144, %c0_145] : memref<2x16x128xf32, #tpu.memory_space<vmem>>, vector<2x16x128xf32>
      tpu.vector_store %arg9[%c0_143, %c0_144, %c0_145], %345 {strides = array<i32>} : memref<2x16x128xf32, #tpu.memory_space<vmem>>, vector<2x16x128xf32>,
    } else {
    }
    %c0 = arith.constant 0 : index
    %c0_1 = arith.constant 0 : index
    %c0_2 = arith.constant 0 : index
    %3 = vector.load %arg2[%c0, %c0_1, %c0_2] : memref<4x16x128xbf16, #tpu.memory_space<vmem>>, vector<4x16x128xbf16>
    %4 = vector.shape_cast %3 : vector<4x16x128xbf16> to vector<64x128xbf16>
    %c0_3 = arith.constant 0 : index
    %c0_4 = arith.constant 0 : index
    %5 = vector.load %arg3[%c0_3, %c0_4] : memref<128x512xbf16, #tpu.memory_space<vmem>>, vector<128x512xbf16>
    %cst = arith.constant dense<0.000000e+00> : vector<64x512xf32>
    %6 = tpu.matmul %4, %5, %cst {dimension_numbers = #tpu.dot_dimension_numbers<[1], [0], [0], [1], [0, 0, 1, 1], [], []>} : vector<64x128xbf16>, vector<128x512xbf16>, vector<64x512xf32> -> vector<64x512xf32>
    %c0_5 = arith.constant 0 : index
    %c0_6 = arith.constant 0 : index
    %7 = vector.load %arg5[%c0_5, %c0_6] : memref<1x512xf32, #tpu.memory_space<vmem>>, vector<1x512xf32>
    %8 = vector.broadcast %7 : vector<1x512xf32> to vector<64x512xf32>
    %9 = arith.addf %6, %8 : vector<64x512xf32>
    %10 = arith.truncf %9 : vector<64x512xf32> to vector<64x512xbf16>
    %c0_7 = arith.constant 0 : index
    %c0_8 = arith.constant 0 : index
    %11 = vector.load %arg10[%c0_7, %c0_8] : memref<64x512xbf16, #tpu.memory_space<vmem>>, vector<64x512xbf16>
    tpu.vector_store %arg10[%c0_7, %c0_8], %10 {strides = array<i32>} : memref<64x512xbf16, #tpu.memory_space<vmem>>, vector<64x512xbf16>,
    %c0_9 = arith.constant 0 : index
    %c0_10 = arith.constant 0 : index
    %12 = vector.load %arg7[%c0_9, %c0_10] : memref<1x512xf32, #tpu.memory_space<vmem>>, vector<1x512xf32>
    %13 = vector.shape_cast %12 : vector<1x512xf32> to vector<1x512xf32>
    %14 = vector.broadcast %13 : vector<1x512xf32> to vector<16x512xf32>
    %c0_11 = arith.constant 0 : index
    %c0_12 = arith.constant 0 : index
    %c0_13 = arith.constant 0 : index
    %15 = vector.load %arg8[%c0_11, %c0_12, %c0_13] : memref<2x16x128xf32, #tpu.memory_space<vmem>>, vector<1x16x128xf32>
    %16 = vector.shape_cast %15 : vector<1x16x128xf32> to vector<16x128xf32>
    %17 = arith.truncf %16 : vector<16x128xf32> to vector<16x128xbf16>
    %c0_14 = arith.constant 0 : index
    %c0_15 = arith.constant 0 : index
    %c0_16 = arith.constant 0 : index
    %18 = vector.load %arg9[%c0_14, %c0_15, %c0_16] : memref<2x16x128xf32, #tpu.memory_space<vmem>>, vector<1x16x128xf32>
    %19 = vector.shape_cast %18 : vector<1x16x128xf32> to vector<16x128xf32>
    %c1 = arith.constant 1 : index
    %c0_17 = arith.constant 0 : index
    %c0_18 = arith.constant 0 : index
    %20 = vector.load %arg8[%c1, %c0_17, %c0_18] : memref<2x16x128xf32, #tpu.memory_space<vmem>>, vector<1x16x128xf32>
    %21 = vector.shape_cast %20 : vector<1x16x128xf32> to vector<16x128xf32>
    %22 = arith.truncf %21 : vector<16x128xf32> to vector<16x128xbf16>
    %c1_19 = arith.constant 1 : index
    %c0_20 = arith.constant 0 : index
    %c0_21 = arith.constant 0 : index
    %23 = vector.load %arg9[%c1_19, %c0_20, %c0_21] : memref<2x16x128xf32, #tpu.memory_space<vmem>>, vector<1x16x128xf32>
    %24 = vector.shape_cast %23 : vector<1x16x128xf32> to vector<16x128xf32>
    %c0_i32_22 = arith.constant 0 : i32
    %c16_i32 = arith.constant 16 : i32
    %25 = arith.muli %c0_i32_22, %c16_i32 : i32
    %26 = tpu.assume_multiple %25, 16 : i32
    %27 = arith.index_cast %26 : i32 to index
    %c0_23 = arith.constant 0 : index
    %28 = vector.load %arg10[%27, %c0_23] : memref<64x512xbf16, #tpu.memory_space<vmem>>, vector<16x512xbf16>
    %29 = arith.extf %28 : vector<16x512xbf16> to vector<16x512xf32>
    %c0_24 = arith.constant 0 : index
    %c0_25 = arith.constant 0 : index
    %30 = vector.load %arg4[%c0_24, %c0_25] : memref<128x512xbf16, #tpu.memory_space<vmem>>, vector<128x512xbf16>
    %cst_26 = arith.constant dense<0.000000e+00> : vector<16x512xf32>
    %31 = tpu.matmul %17, %30, %cst_26 {dimension_numbers = #tpu.dot_dimension_numbers<[1], [0], [0], [1], [0, 0, 1, 1], [], []>} : vector<16x128xbf16>, vector<128x512xbf16>, vector<16x512xf32> -> vector<16x512xf32>
    %32 = arith.addf %29, %31 : vector<16x512xf32>
    %33 = vector.extract_strided_slice %32 {offsets = [0, 0], sizes = [16, 128], strides = [1, 1]} : vector<16x512xf32> to vector<16x128xf32>
    %cst_27 = arith.constant 5.000000e-01 : f32
    %34 = vector.broadcast %cst_27 : f32 to vector<16x128xf32>
    %35 = arith.mulf %34, %33 : vector<16x128xf32>
    %36 = math.tanh %35 : vector<16x128xf32>
    %cst_28 = arith.constant 5.000000e-01 : f32
    %37 = vector.broadcast %cst_28 : f32 to vector<16x128xf32>
    %38 = arith.mulf %37, %36 : vector<16x128xf32>
    %cst_29 = arith.constant 5.000000e-01 : f32
    %39 = vector.broadcast %cst_29 : f32 to vector<16x128xf32>
    %40 = arith.addf %38, %39 : vector<16x128xf32>
    %41 = vector.extract_strided_slice %32 {offsets = [0, 128], sizes = [16, 128], strides = [1, 1]} : vector<16x512xf32> to vector<16x128xf32>
    %cst_30 = arith.constant 5.000000e-01 : f32
    %42 = vector.broadcast %cst_30 : f32 to vector<16x128xf32>
    %43 = arith.mulf %42, %41 : vector<16x128xf32>
    %44 = math.tanh %43 : vector<16x128xf32>
    %cst_31 = arith.constant 5.000000e-01 : f32
    %45 = vector.broadcast %cst_31 : f32 to vector<16x128xf32>
    %46 = arith.mulf %45, %44 : vector<16x128xf32>
    %cst_32 = arith.constant 5.000000e-01 : f32
    %47 = vector.broadcast %cst_32 : f32 to vector<16x128xf32>
    %48 = arith.addf %46, %47 : vector<16x128xf32>
    %49 = vector.extract_strided_slice %32 {offsets = [0, 256], sizes = [16, 128], strides = [1, 1]} : vector<16x512xf32> to vector<16x128xf32>
    %50 = math.tanh %49 : vector<16x128xf32>
    %51 = vector.extract_strided_slice %32 {offsets = [0, 384], sizes = [16, 128], strides = [1, 1]} : vector<16x512xf32> to vector<16x128xf32>
    %cst_33 = arith.constant 5.000000e-01 : f32
    %52 = vector.broadcast %cst_33 : f32 to vector<16x128xf32>
    %53 = arith.mulf %52, %51 : vector<16x128xf32>
    %54 = math.tanh %53 : vector<16x128xf32>
    %cst_34 = arith.constant 5.000000e-01 : f32
    %55 = vector.broadcast %cst_34 : f32 to vector<16x128xf32>
    %56 = arith.mulf %55, %54 : vector<16x128xf32>
    %cst_35 = arith.constant 5.000000e-01 : f32
    %57 = vector.broadcast %cst_35 : f32 to vector<16x128xf32>
    %58 = arith.addf %56, %57 : vector<16x128xf32>
    %59 = arith.mulf %48, %19 : vector<16x128xf32>
    %60 = arith.mulf %40, %50 : vector<16x128xf32>
    %61 = arith.addf %59, %60 : vector<16x128xf32>
    %62 = math.tanh %61 : vector<16x128xf32>
    %63 = arith.mulf %58, %62 : vector<16x128xf32>
    %64 = arith.truncf %63 : vector<16x128xf32> to vector<16x128xbf16>
    %65 = tpu.concatenate %64, %22 in 1 : vector<16x128xbf16>, vector<16x128xbf16> -> vector<16x256xbf16>
    %c0_36 = arith.constant 0 : index
    %c0_37 = arith.constant 0 : index
    %66 = vector.load %arg6[%c0_36, %c0_37] : memref<256x512xbf16, #tpu.memory_space<vmem>>, vector<256x512xbf16>
    %cst_38 = arith.constant dense<0.000000e+00> : vector<16x512xf32>
    %67 = tpu.matmul %65, %66, %cst_38 {dimension_numbers = #tpu.dot_dimension_numbers<[1], [0], [0], [1], [0, 0, 1, 1], [], []>} : vector<16x256xbf16>, vector<256x512xbf16>, vector<16x512xf32> -> vector<16x512xf32>
    %68 = arith.addf %67, %14 : vector<16x512xf32>
    %69 = vector.extract_strided_slice %68 {offsets = [0, 0], sizes = [16, 128], strides = [1, 1]} : vector<16x512xf32> to vector<16x128xf32>
    %cst_39 = arith.constant 5.000000e-01 : f32
    %70 = vector.broadcast %cst_39 : f32 to vector<16x128xf32>
    %71 = arith.mulf %70, %69 : vector<16x128xf32>
    %72 = math.tanh %71 : vector<16x128xf32>
    %cst_40 = arith.constant 5.000000e-01 : f32
    %73 = vector.broadcast %cst_40 : f32 to vector<16x128xf32>
    %74 = arith.mulf %73, %72 : vector<16x128xf32>
    %cst_41 = arith.constant 5.000000e-01 : f32
    %75 = vector.broadcast %cst_41 : f32 to vector<16x128xf32>
    %76 = arith.addf %74, %75 : vector<16x128xf32>
    %77 = vector.extract_strided_slice %68 {offsets = [0, 128], sizes = [16, 128], strides = [1, 1]} : vector<16x512xf32> to vector<16x128xf32>
    %cst_42 = arith.constant 5.000000e-01 : f32
    %78 = vector.broadcast %cst_42 : f32 to vector<16x128xf32>
    %79 = arith.mulf %78, %77 : vector<16x128xf32>
    %80 = math.tanh %79 : vector<16x128xf32>
    %cst_43 = arith.constant 5.000000e-01 : f32
    %81 = vector.broadcast %cst_43 : f32 to vector<16x128xf32>
    %82 = arith.mulf %81, %80 : vector<16x128xf32>
    %cst_44 = arith.constant 5.000000e-01 : f32
    %83 = vector.broadcast %cst_44 : f32 to vector<16x128xf32>
    %84 = arith.addf %82, %83 : vector<16x128xf32>
    %85 = vector.extract_strided_slice %68 {offsets = [0, 256], sizes = [16, 128], strides = [1, 1]} : vector<16x512xf32> to vector<16x128xf32>
    %86 = math.tanh %85 : vector<16x128xf32>
    %87 = vector.extract_strided_slice %68 {offsets = [0, 384], sizes = [16, 128], strides = [1, 1]} : vector<16x512xf32> to vector<16x128xf32>
    %cst_45 = arith.constant 5.000000e-01 : f32
    %88 = vector.broadcast %cst_45 : f32 to vector<16x128xf32>
    %89 = arith.mulf %88, %87 : vector<16x128xf32>
    %90 = math.tanh %89 : vector<16x128xf32>
    %cst_46 = arith.constant 5.000000e-01 : f32
    %91 = vector.broadcast %cst_46 : f32 to vector<16x128xf32>
    %92 = arith.mulf %91, %90 : vector<16x128xf32>
    %cst_47 = arith.constant 5.000000e-01 : f32
    %93 = vector.broadcast %cst_47 : f32 to vector<16x128xf32>
    %94 = arith.addf %92, %93 : vector<16x128xf32>
    %95 = arith.mulf %84, %24 : vector<16x128xf32>
    %96 = arith.mulf %76, %86 : vector<16x128xf32>
    %97 = arith.addf %95, %96 : vector<16x128xf32>
    %98 = math.tanh %97 : vector<16x128xf32>
    %99 = arith.mulf %94, %98 : vector<16x128xf32>
    %100 = arith.truncf %99 : vector<16x128xf32> to vector<16x128xbf16>
    %c1_i32 = arith.constant 1 : i32
    %c16_i32_48 = arith.constant 16 : i32
    %101 = arith.muli %c1_i32, %c16_i32_48 : i32
    %102 = tpu.assume_multiple %101, 16 : i32
    %103 = arith.index_cast %102 : i32 to index
    %c0_49 = arith.constant 0 : index
    %104 = vector.load %arg10[%103, %c0_49] : memref<64x512xbf16, #tpu.memory_space<vmem>>, vector<16x512xbf16>
    %105 = arith.extf %104 : vector<16x512xbf16> to vector<16x512xf32>
    %c0_50 = arith.constant 0 : index
    %c0_51 = arith.constant 0 : index
    %106 = vector.load %arg4[%c0_50, %c0_51] : memref<128x512xbf16, #tpu.memory_space<vmem>>, vector<128x512xbf16>
    %cst_52 = arith.constant dense<0.000000e+00> : vector<16x512xf32>
    %107 = tpu.matmul %64, %106, %cst_52 {dimension_numbers = #tpu.dot_dimension_numbers<[1], [0], [0], [1], [0, 0, 1, 1], [], []>} : vector<16x128xbf16>, vector<128x512xbf16>, vector<16x512xf32> -> vector<16x512xf32>
    %108 = arith.addf %105, %107 : vector<16x512xf32>
    %109 = vector.extract_strided_slice %108 {offsets = [0, 0], sizes = [16, 128], strides = [1, 1]} : vector<16x512xf32> to vector<16x128xf32>
    %cst_53 = arith.constant 5.000000e-01 : f32
    %110 = vector.broadcast %cst_53 : f32 to vector<16x128xf32>
    %111 = arith.mulf %110, %109 : vector<16x128xf32>
    %112 = math.tanh %111 : vector<16x128xf32>
    %cst_54 = arith.constant 5.000000e-01 : f32
    %113 = vector.broadcast %cst_54 : f32 to vector<16x128xf32>
    %114 = arith.mulf %113, %112 : vector<16x128xf32>
    %cst_55 = arith.constant 5.000000e-01 : f32
    %115 = vector.broadcast %cst_55 : f32 to vector<16x128xf32>
    %116 = arith.addf %114, %115 : vector<16x128xf32>
    %117 = vector.extract_strided_slice %108 {offsets = [0, 128], sizes = [16, 128], strides = [1, 1]} : vector<16x512xf32> to vector<16x128xf32>
    %cst_56 = arith.constant 5.000000e-01 : f32
    %118 = vector.broadcast %cst_56 : f32 to vector<16x128xf32>
    %119 = arith.mulf %118, %117 : vector<16x128xf32>
    %120 = math.tanh %119 : vector<16x128xf32>
    %cst_57 = arith.constant 5.000000e-01 : f32
    %121 = vector.broadcast %cst_57 : f32 to vector<16x128xf32>
    %122 = arith.mulf %121, %120 : vector<16x128xf32>
    %cst_58 = arith.constant 5.000000e-01 : f32
    %123 = vector.broadcast %cst_58 : f32 to vector<16x128xf32>
    %124 = arith.addf %122, %123 : vector<16x128xf32>
    %125 = vector.extract_strided_slice %108 {offsets = [0, 256], sizes = [16, 128], strides = [1, 1]} : vector<16x512xf32> to vector<16x128xf32>
    %126 = math.tanh %125 : vector<16x128xf32>
    %127 = vector.extract_strided_slice %108 {offsets = [0, 384], sizes = [16, 128], strides = [1, 1]} : vector<16x512xf32> to vector<16x128xf32>
    %cst_59 = arith.constant 5.000000e-01 : f32
    %128 = vector.broadcast %cst_59 : f32 to vector<16x128xf32>
    %129 = arith.mulf %128, %127 : vector<16x128xf32>
    %130 = math.tanh %129 : vector<16x128xf32>
    %cst_60 = arith.constant 5.000000e-01 : f32
    %131 = vector.broadcast %cst_60 : f32 to vector<16x128xf32>
    %132 = arith.mulf %131, %130 : vector<16x128xf32>
    %cst_61 = arith.constant 5.000000e-01 : f32
    %133 = vector.broadcast %cst_61 : f32 to vector<16x128xf32>
    %134 = arith.addf %132, %133 : vector<16x128xf32>
    %135 = arith.mulf %124, %61 : vector<16x128xf32>
    %136 = arith.mulf %116, %126 : vector<16x128xf32>
    %137 = arith.addf %135, %136 : vector<16x128xf32>
    %138 = math.tanh %137 : vector<16x128xf32>
    %139 = arith.mulf %134, %138 : vector<16x128xf32>
    %140 = arith.truncf %139 : vector<16x128xf32> to vector<16x128xbf16>
    %141 = tpu.concatenate %140, %100 in 1 : vector<16x128xbf16>, vector<16x128xbf16> -> vector<16x256xbf16>
    %c0_62 = arith.constant 0 : index
    %c0_63 = arith.constant 0 : index
    %142 = vector.load %arg6[%c0_62, %c0_63] : memref<256x512xbf16, #tpu.memory_space<vmem>>, vector<256x512xbf16>
    %cst_64 = arith.constant dense<0.000000e+00> : vector<16x512xf32>
    %143 = tpu.matmul %141, %142, %cst_64 {dimension_numbers = #tpu.dot_dimension_numbers<[1], [0], [0], [1], [0, 0, 1, 1], [], []>} : vector<16x256xbf16>, vector<256x512xbf16>, vector<16x512xf32> -> vector<16x512xf32>
    %144 = arith.addf %143, %14 : vector<16x512xf32>
    %145 = vector.extract_strided_slice %144 {offsets = [0, 0], sizes = [16, 128], strides = [1, 1]} : vector<16x512xf32> to vector<16x128xf32>
    %cst_65 = arith.constant 5.000000e-01 : f32
    %146 = vector.broadcast %cst_65 : f32 to vector<16x128xf32>
    %147 = arith.mulf %146, %145 : vector<16x128xf32>
    %148 = math.tanh %147 : vector<16x128xf32>
    %cst_66 = arith.constant 5.000000e-01 : f32
    %149 = vector.broadcast %cst_66 : f32 to vector<16x128xf32>
    %150 = arith.mulf %149, %148 : vector<16x128xf32>
    %cst_67 = arith.constant 5.000000e-01 : f32
    %151 = vector.broadcast %cst_67 : f32 to vector<16x128xf32>
    %152 = arith.addf %150, %151 : vector<16x128xf32>
    %153 = vector.extract_strided_slice %144 {offsets = [0, 128], sizes = [16, 128], strides = [1, 1]} : vector<16x512xf32> to vector<16x128xf32>
    %cst_68 = arith.constant 5.000000e-01 : f32
    %154 = vector.broadcast %cst_68 : f32 to vector<16x128xf32>
    %155 = arith.mulf %154, %153 : vector<16x128xf32>
    %156 = math.tanh %155 : vector<16x128xf32>
    %cst_69 = arith.constant 5.000000e-01 : f32
    %157 = vector.broadcast %cst_69 : f32 to vector<16x128xf32>
    %158 = arith.mulf %157, %156 : vector<16x128xf32>
    %cst_70 = arith.constant 5.000000e-01 : f32
    %159 = vector.broadcast %cst_70 : f32 to vector<16x128xf32>
    %160 = arith.addf %158, %159 : vector<16x128xf32>
    %161 = vector.extract_strided_slice %144 {offsets = [0, 256], sizes = [16, 128], strides = [1, 1]} : vector<16x512xf32> to vector<16x128xf32>
    %162 = math.tanh %161 : vector<16x128xf32>
    %163 = vector.extract_strided_slice %144 {offsets = [0, 384], sizes = [16, 128], strides = [1, 1]} : vector<16x512xf32> to vector<16x128xf32>
    %cst_71 = arith.constant 5.000000e-01 : f32
    %164 = vector.broadcast %cst_71 : f32 to vector<16x128xf32>
    %165 = arith.mulf %164, %163 : vector<16x128xf32>
    %166 = math.tanh %165 : vector<16x128xf32>
    %cst_72 = arith.constant 5.000000e-01 : f32
    %167 = vector.broadcast %cst_72 : f32 to vector<16x128xf32>
    %168 = arith.mulf %167, %166 : vector<16x128xf32>
    %cst_73 = arith.constant 5.000000e-01 : f32
    %169 = vector.broadcast %cst_73 : f32 to vector<16x128xf32>
    %170 = arith.addf %168, %169 : vector<16x128xf32>
    %171 = arith.mulf %160, %97 : vector<16x128xf32>
    %172 = arith.mulf %152, %162 : vector<16x128xf32>
    %173 = arith.addf %171, %172 : vector<16x128xf32>
    %174 = math.tanh %173 : vector<16x128xf32>
    %175 = arith.mulf %170, %174 : vector<16x128xf32>
    %176 = arith.truncf %175 : vector<16x128xf32> to vector<16x128xbf16>
    %c2_i32 = arith.constant 2 : i32
    %c16_i32_74 = arith.constant 16 : i32
    %177 = arith.muli %c2_i32, %c16_i32_74 : i32
    %178 = tpu.assume_multiple %177, 16 : i32
    %179 = arith.index_cast %178 : i32 to index
    %c0_75 = arith.constant 0 : index
    %180 = vector.load %arg10[%179, %c0_75] : memref<64x512xbf16, #tpu.memory_space<vmem>>, vector<16x512xbf16>
    %181 = arith.extf %180 : vector<16x512xbf16> to vector<16x512xf32>
    %c0_76 = arith.constant 0 : index
    %c0_77 = arith.constant 0 : index
    %182 = vector.load %arg4[%c0_76, %c0_77] : memref<128x512xbf16, #tpu.memory_space<vmem>>, vector<128x512xbf16>
    %cst_78 = arith.constant dense<0.000000e+00> : vector<16x512xf32>
    %183 = tpu.matmul %140, %182, %cst_78 {dimension_numbers = #tpu.dot_dimension_numbers<[1], [0], [0], [1], [0, 0, 1, 1], [], []>} : vector<16x128xbf16>, vector<128x512xbf16>, vector<16x512xf32> -> vector<16x512xf32>
    %184 = arith.addf %181, %183 : vector<16x512xf32>
    %185 = vector.extract_strided_slice %184 {offsets = [0, 0], sizes = [16, 128], strides = [1, 1]} : vector<16x512xf32> to vector<16x128xf32>
    %cst_79 = arith.constant 5.000000e-01 : f32
    %186 = vector.broadcast %cst_79 : f32 to vector<16x128xf32>
    %187 = arith.mulf %186, %185 : vector<16x128xf32>
    %188 = math.tanh %187 : vector<16x128xf32>
    %cst_80 = arith.constant 5.000000e-01 : f32
    %189 = vector.broadcast %cst_80 : f32 to vector<16x128xf32>
    %190 = arith.mulf %189, %188 : vector<16x128xf32>
    %cst_81 = arith.constant 5.000000e-01 : f32
    %191 = vector.broadcast %cst_81 : f32 to vector<16x128xf32>
    %192 = arith.addf %190, %191 : vector<16x128xf32>
    %193 = vector.extract_strided_slice %184 {offsets = [0, 128], sizes = [16, 128], strides = [1, 1]} : vector<16x512xf32> to vector<16x128xf32>
    %cst_82 = arith.constant 5.000000e-01 : f32
    %194 = vector.broadcast %cst_82 : f32 to vector<16x128xf32>
    %195 = arith.mulf %194, %193 : vector<16x128xf32>
    %196 = math.tanh %195 : vector<16x128xf32>
    %cst_83 = arith.constant 5.000000e-01 : f32
    %197 = vector.broadcast %cst_83 : f32 to vector<16x128xf32>
    %198 = arith.mulf %197, %196 : vector<16x128xf32>
    %cst_84 = arith.constant 5.000000e-01 : f32
    %199 = vector.broadcast %cst_84 : f32 to vector<16x128xf32>
    %200 = arith.addf %198, %199 : vector<16x128xf32>
    %201 = vector.extract_strided_slice %184 {offsets = [0, 256], sizes = [16, 128], strides = [1, 1]} : vector<16x512xf32> to vector<16x128xf32>
    %202 = math.tanh %201 : vector<16x128xf32>
    %203 = vector.extract_strided_slice %184 {offsets = [0, 384], sizes = [16, 128], strides = [1, 1]} : vector<16x512xf32> to vector<16x128xf32>
    %cst_85 = arith.constant 5.000000e-01 : f32
    %204 = vector.broadcast %cst_85 : f32 to vector<16x128xf32>
    %205 = arith.mulf %204, %203 : vector<16x128xf32>
    %206 = math.tanh %205 : vector<16x128xf32>
    %cst_86 = arith.constant 5.000000e-01 : f32
    %207 = vector.broadcast %cst_86 : f32 to vector<16x128xf32>
    %208 = arith.mulf %207, %206 : vector<16x128xf32>
    %cst_87 = arith.constant 5.000000e-01 : f32
    %209 = vector.broadcast %cst_87 : f32 to vector<16x128xf32>
    %210 = arith.addf %208, %209 : vector<16x128xf32>
    %211 = arith.mulf %200, %137 : vector<16x128xf32>
    %212 = arith.mulf %192, %202 : vector<16x128xf32>
    %213 = arith.addf %211, %212 : vector<16x128xf32>
    %214 = math.tanh %213 : vector<16x128xf32>
    %215 = arith.mulf %210, %214 : vector<16x128xf32>
    %216 = arith.truncf %215 : vector<16x128xf32> to vector<16x128xbf16>
    %217 = tpu.concatenate %216, %176 in 1 : vector<16x128xbf16>, vector<16x128xbf16> -> vector<16x256xbf16>
    %c0_88 = arith.constant 0 : index
    %c0_89 = arith.constant 0 : index
    %218 = vector.load %arg6[%c0_88, %c0_89] : memref<256x512xbf16, #tpu.memory_space<vmem>>, vector<256x512xbf16>
    %cst_90 = arith.constant dense<0.000000e+00> : vector<16x512xf32>
    %219 = tpu.matmul %217, %218, %cst_90 {dimension_numbers = #tpu.dot_dimension_numbers<[1], [0], [0], [1], [0, 0, 1, 1], [], []>} : vector<16x256xbf16>, vector<256x512xbf16>, vector<16x512xf32> -> vector<16x512xf32>
    %220 = arith.addf %219, %14 : vector<16x512xf32>
    %221 = vector.extract_strided_slice %220 {offsets = [0, 0], sizes = [16, 128], strides = [1, 1]} : vector<16x512xf32> to vector<16x128xf32>
    %cst_91 = arith.constant 5.000000e-01 : f32
    %222 = vector.broadcast %cst_91 : f32 to vector<16x128xf32>
    %223 = arith.mulf %222, %221 : vector<16x128xf32>
    %224 = math.tanh %223 : vector<16x128xf32>
    %cst_92 = arith.constant 5.000000e-01 : f32
    %225 = vector.broadcast %cst_92 : f32 to vector<16x128xf32>
    %226 = arith.mulf %225, %224 : vector<16x128xf32>
    %cst_93 = arith.constant 5.000000e-01 : f32
    %227 = vector.broadcast %cst_93 : f32 to vector<16x128xf32>
    %228 = arith.addf %226, %227 : vector<16x128xf32>
    %229 = vector.extract_strided_slice %220 {offsets = [0, 128], sizes = [16, 128], strides = [1, 1]} : vector<16x512xf32> to vector<16x128xf32>
    %cst_94 = arith.constant 5.000000e-01 : f32
    %230 = vector.broadcast %cst_94 : f32 to vector<16x128xf32>
    %231 = arith.mulf %230, %229 : vector<16x128xf32>
    %232 = math.tanh %231 : vector<16x128xf32>
    %cst_95 = arith.constant 5.000000e-01 : f32
    %233 = vector.broadcast %cst_95 : f32 to vector<16x128xf32>
    %234 = arith.mulf %233, %232 : vector<16x128xf32>
    %cst_96 = arith.constant 5.000000e-01 : f32
    %235 = vector.broadcast %cst_96 : f32 to vector<16x128xf32>
    %236 = arith.addf %234, %235 : vector<16x128xf32>
    %237 = vector.extract_strided_slice %220 {offsets = [0, 256], sizes = [16, 128], strides = [1, 1]} : vector<16x512xf32> to vector<16x128xf32>
    %238 = math.tanh %237 : vector<16x128xf32>
    %239 = vector.extract_strided_slice %220 {offsets = [0, 384], sizes = [16, 128], strides = [1, 1]} : vector<16x512xf32> to vector<16x128xf32>
    %cst_97 = arith.constant 5.000000e-01 : f32
    %240 = vector.broadcast %cst_97 : f32 to vector<16x128xf32>
    %241 = arith.mulf %240, %239 : vector<16x128xf32>
    %242 = math.tanh %241 : vector<16x128xf32>
    %cst_98 = arith.constant 5.000000e-01 : f32
    %243 = vector.broadcast %cst_98 : f32 to vector<16x128xf32>
    %244 = arith.mulf %243, %242 : vector<16x128xf32>
    %cst_99 = arith.constant 5.000000e-01 : f32
    %245 = vector.broadcast %cst_99 : f32 to vector<16x128xf32>
    %246 = arith.addf %244, %245 : vector<16x128xf32>
    %247 = arith.mulf %236, %173 : vector<16x128xf32>
    %248 = arith.mulf %228, %238 : vector<16x128xf32>
    %249 = arith.addf %247, %248 : vector<16x128xf32>
    %250 = math.tanh %249 : vector<16x128xf32>
    %251 = arith.mulf %246, %250 : vector<16x128xf32>
    %252 = arith.truncf %251 : vector<16x128xf32> to vector<16x128xbf16>
    %c3_i32 = arith.constant 3 : i32
    %c16_i32_100 = arith.constant 16 : i32
    %253 = arith.muli %c3_i32, %c16_i32_100 : i32
    %254 = tpu.assume_multiple %253, 16 : i32
    %255 = arith.index_cast %254 : i32 to index
    %c0_101 = arith.constant 0 : index
    %256 = vector.load %arg10[%255, %c0_101] : memref<64x512xbf16, #tpu.memory_space<vmem>>, vector<16x512xbf16>
    %257 = arith.extf %256 : vector<16x512xbf16> to vector<16x512xf32>
    %c0_102 = arith.constant 0 : index
    %c0_103 = arith.constant 0 : index
    %258 = vector.load %arg4[%c0_102, %c0_103] : memref<128x512xbf16, #tpu.memory_space<vmem>>, vector<128x512xbf16>
    %cst_104 = arith.constant dense<0.000000e+00> : vector<16x512xf32>
    %259 = tpu.matmul %216, %258, %cst_104 {dimension_numbers = #tpu.dot_dimension_numbers<[1], [0], [0], [1], [0, 0, 1, 1], [], []>} : vector<16x128xbf16>, vector<128x512xbf16>, vector<16x512xf32> -> vector<16x512xf32>
    %260 = arith.addf %257, %259 : vector<16x512xf32>
    %261 = vector.extract_strided_slice %260 {offsets = [0, 0], sizes = [16, 128], strides = [1, 1]} : vector<16x512xf32> to vector<16x128xf32>
    %cst_105 = arith.constant 5.000000e-01 : f32
    %262 = vector.broadcast %cst_105 : f32 to vector<16x128xf32>
    %263 = arith.mulf %262, %261 : vector<16x128xf32>
    %264 = math.tanh %263 : vector<16x128xf32>
    %cst_106 = arith.constant 5.000000e-01 : f32
    %265 = vector.broadcast %cst_106 : f32 to vector<16x128xf32>
    %266 = arith.mulf %265, %264 : vector<16x128xf32>
    %cst_107 = arith.constant 5.000000e-01 : f32
    %267 = vector.broadcast %cst_107 : f32 to vector<16x128xf32>
    %268 = arith.addf %266, %267 : vector<16x128xf32>
    %269 = vector.extract_strided_slice %260 {offsets = [0, 128], sizes = [16, 128], strides = [1, 1]} : vector<16x512xf32> to vector<16x128xf32>
    %cst_108 = arith.constant 5.000000e-01 : f32
    %270 = vector.broadcast %cst_108 : f32 to vector<16x128xf32>
    %271 = arith.mulf %270, %269 : vector<16x128xf32>
    %272 = math.tanh %271 : vector<16x128xf32>
    %cst_109 = arith.constant 5.000000e-01 : f32
    %273 = vector.broadcast %cst_109 : f32 to vector<16x128xf32>
    %274 = arith.mulf %273, %272 : vector<16x128xf32>
    %cst_110 = arith.constant 5.000000e-01 : f32
    %275 = vector.broadcast %cst_110 : f32 to vector<16x128xf32>
    %276 = arith.addf %274, %275 : vector<16x128xf32>
    %277 = vector.extract_strided_slice %260 {offsets = [0, 256], sizes = [16, 128], strides = [1, 1]} : vector<16x512xf32> to vector<16x128xf32>
    %278 = math.tanh %277 : vector<16x128xf32>
    %279 = vector.extract_strided_slice %260 {offsets = [0, 384], sizes = [16, 128], strides = [1, 1]} : vector<16x512xf32> to vector<16x128xf32>
    %cst_111 = arith.constant 5.000000e-01 : f32
    %280 = vector.broadcast %cst_111 : f32 to vector<16x128xf32>
    %281 = arith.mulf %280, %279 : vector<16x128xf32>
    %282 = math.tanh %281 : vector<16x128xf32>
    %cst_112 = arith.constant 5.000000e-01 : f32
    %283 = vector.broadcast %cst_112 : f32 to vector<16x128xf32>
    %284 = arith.mulf %283, %282 : vector<16x128xf32>
    %cst_113 = arith.constant 5.000000e-01 : f32
    %285 = vector.broadcast %cst_113 : f32 to vector<16x128xf32>
    %286 = arith.addf %284, %285 : vector<16x128xf32>
    %287 = arith.mulf %276, %213 : vector<16x128xf32>
    %288 = arith.mulf %268, %278 : vector<16x128xf32>
    %289 = arith.addf %287, %288 : vector<16x128xf32>
    %290 = math.tanh %289 : vector<16x128xf32>
    %291 = arith.mulf %286, %290 : vector<16x128xf32>
    %292 = arith.truncf %291 : vector<16x128xf32> to vector<16x128xbf16>
    %293 = tpu.concatenate %292, %252 in 1 : vector<16x128xbf16>, vector<16x128xbf16> -> vector<16x256xbf16>
    %c0_114 = arith.constant 0 : index
    %c0_115 = arith.constant 0 : index
    %294 = vector.load %arg6[%c0_114, %c0_115] : memref<256x512xbf16, #tpu.memory_space<vmem>>, vector<256x512xbf16>
    %cst_116 = arith.constant dense<0.000000e+00> : vector<16x512xf32>
    %295 = tpu.matmul %293, %294, %cst_116 {dimension_numbers = #tpu.dot_dimension_numbers<[1], [0], [0], [1], [0, 0, 1, 1], [], []>} : vector<16x256xbf16>, vector<256x512xbf16>, vector<16x512xf32> -> vector<16x512xf32>
    %296 = arith.addf %295, %14 : vector<16x512xf32>
    %297 = vector.extract_strided_slice %296 {offsets = [0, 0], sizes = [16, 128], strides = [1, 1]} : vector<16x512xf32> to vector<16x128xf32>
    %cst_117 = arith.constant 5.000000e-01 : f32
    %298 = vector.broadcast %cst_117 : f32 to vector<16x128xf32>
    %299 = arith.mulf %298, %297 : vector<16x128xf32>
    %300 = math.tanh %299 : vector<16x128xf32>
    %cst_118 = arith.constant 5.000000e-01 : f32
    %301 = vector.broadcast %cst_118 : f32 to vector<16x128xf32>
    %302 = arith.mulf %301, %300 : vector<16x128xf32>
    %cst_119 = arith.constant 5.000000e-01 : f32
    %303 = vector.broadcast %cst_119 : f32 to vector<16x128xf32>
    %304 = arith.addf %302, %303 : vector<16x128xf32>
    %305 = vector.extract_strided_slice %296 {offsets = [0, 128], sizes = [16, 128], strides = [1, 1]} : vector<16x512xf32> to vector<16x128xf32>
    %cst_120 = arith.constant 5.000000e-01 : f32
    %306 = vector.broadcast %cst_120 : f32 to vector<16x128xf32>
    %307 = arith.mulf %306, %305 : vector<16x128xf32>
    %308 = math.tanh %307 : vector<16x128xf32>
    %cst_121 = arith.constant 5.000000e-01 : f32
    %309 = vector.broadcast %cst_121 : f32 to vector<16x128xf32>
    %310 = arith.mulf %309, %308 : vector<16x128xf32>
    %cst_122 = arith.constant 5.000000e-01 : f32
    %311 = vector.broadcast %cst_122 : f32 to vector<16x128xf32>
    %312 = arith.addf %310, %311 : vector<16x128xf32>
    %313 = vector.extract_strided_slice %296 {offsets = [0, 256], sizes = [16, 128], strides = [1, 1]} : vector<16x512xf32> to vector<16x128xf32>
    %314 = math.tanh %313 : vector<16x128xf32>
    %315 = vector.extract_strided_slice %296 {offsets = [0, 384], sizes = [16, 128], strides = [1, 1]} : vector<16x512xf32> to vector<16x128xf32>
    %cst_123 = arith.constant 5.000000e-01 : f32
    %316 = vector.broadcast %cst_123 : f32 to vector<16x128xf32>
    %317 = arith.mulf %316, %315 : vector<16x128xf32>
    %318 = math.tanh %317 : vector<16x128xf32>
    %cst_124 = arith.constant 5.000000e-01 : f32
    %319 = vector.broadcast %cst_124 : f32 to vector<16x128xf32>
    %320 = arith.mulf %319, %318 : vector<16x128xf32>
    %cst_125 = arith.constant 5.000000e-01 : f32
    %321 = vector.broadcast %cst_125 : f32 to vector<16x128xf32>
    %322 = arith.addf %320, %321 : vector<16x128xf32>
    %323 = arith.mulf %312, %249 : vector<16x128xf32>
    %324 = arith.mulf %304, %314 : vector<16x128xf32>
    %325 = arith.addf %323, %324 : vector<16x128xf32>
    %326 = math.tanh %325 : vector<16x128xf32>
    %327 = arith.mulf %322, %326 : vector<16x128xf32>
    %328 = arith.truncf %327 : vector<16x128xf32> to vector<16x128xbf16>
    %c4_i32 = arith.constant 4 : i32
    %329 = arith.extf %292 : vector<16x128xbf16> to vector<16x128xf32>
    %c0_126 = arith.constant 0 : index
    %c0_127 = arith.constant 0 : index
    %c0_128 = arith.constant 0 : index
    %330 = vector.load %arg8[%c0_126, %c0_127, %c0_128] : memref<2x16x128xf32, #tpu.memory_space<vmem>>, vector<1x16x128xf32>
    %331 = vector.shape_cast %330 : vector<1x16x128xf32> to vector<16x128xf32>
    %332 = vector.shape_cast %329 : vector<16x128xf32> to vector<1x16x128xf32>
    tpu.vector_store %arg8[%c0_126, %c0_127, %c0_128], %332 {strides = array<i32>} : memref<2x16x128xf32, #tpu.memory_space<vmem>>, vector<1x16x128xf32>,
    %c0_129 = arith.constant 0 : index
    %c0_130 = arith.constant 0 : index
    %c0_131 = arith.constant 0 : index
    %333 = vector.load %arg9[%c0_129, %c0_130, %c0_131] : memref<2x16x128xf32, #tpu.memory_space<vmem>>, vector<1x16x128xf32>
    %334 = vector.shape_cast %333 : vector<1x16x128xf32> to vector<16x128xf32>
    %335 = vector.shape_cast %289 : vector<16x128xf32> to vector<1x16x128xf32>
    tpu.vector_store %arg9[%c0_129, %c0_130, %c0_131], %335 {strides = array<i32>} : memref<2x16x128xf32, #tpu.memory_space<vmem>>, vector<1x16x128xf32>,
    %336 = arith.extf %328 : vector<16x128xbf16> to vector<16x128xf32>
    %c1_132 = arith.constant 1 : index
    %c0_133 = arith.constant 0 : index
    %c0_134 = arith.constant 0 : index
    %337 = vector.load %arg8[%c1_132, %c0_133, %c0_134] : memref<2x16x128xf32, #tpu.memory_space<vmem>>, vector<1x16x128xf32>
    %338 = vector.shape_cast %337 : vector<1x16x128xf32> to vector<16x128xf32>
    %339 = vector.shape_cast %336 : vector<16x128xf32> to vector<1x16x128xf32>
    tpu.vector_store %arg8[%c1_132, %c0_133, %c0_134], %339 {strides = array<i32>} : memref<2x16x128xf32, #tpu.memory_space<vmem>>, vector<1x16x128xf32>,
    %c1_135 = arith.constant 1 : index
    %c0_136 = arith.constant 0 : index
    %c0_137 = arith.constant 0 : index
    %340 = vector.load %arg9[%c1_135, %c0_136, %c0_137] : memref<2x16x128xf32, #tpu.memory_space<vmem>>, vector<1x16x128xf32>
    %341 = vector.shape_cast %340 : vector<1x16x128xf32> to vector<16x128xf32>
    %342 = vector.shape_cast %325 : vector<16x128xf32> to vector<1x16x128xf32>
    tpu.vector_store %arg9[%c1_135, %c0_136, %c0_137], %342 {strides = array<i32>} : memref<2x16x128xf32, #tpu.memory_space<vmem>>, vector<1x16x128xf32>,
    return
  }
  func.func @transform_0(%arg0: i32, %arg1: i32) -> (i32, i32, i32) {
    %c0_i32 = arith.constant 0 : i32
    %c0_i32_0 = arith.constant 0 : i32
    return %arg1, %arg0, %c0_i32 : i32, i32, i32
  }
  func.func @transform_1(%arg0: i32, %arg1: i32) -> (i32, i32) {
    %c0_i32 = arith.constant 0 : i32
    %c0_i32_0 = arith.constant 0 : i32
    %c0_i32_1 = arith.constant 0 : i32
    return %c0_i32, %c0_i32_0 : i32, i32
  }
  func.func @transform_2(%arg0: i32, %arg1: i32) -> (i32, i32) {
    %c0_i32 = arith.constant 0 : i32
    %c0_i32_0 = arith.constant 0 : i32
    %c0_i32_1 = arith.constant 0 : i32
    return %c0_i32, %c0_i32_0 : i32, i32
  }
  func.func @transform_3(%arg0: i32, %arg1: i32) -> (i32, i32) {
    %c0_i32 = arith.constant 0 : i32
    %c0_i32_0 = arith.constant 0 : i32
    %c0_i32_1 = arith.constant 0 : i32
    return %c0_i32, %c0_i32_0 : i32, i32
  }
  func.func @transform_4(%arg0: i32, %arg1: i32) -> (i32, i32) {
    %c0_i32 = arith.constant 0 : i32
    %c0_i32_0 = arith.constant 0 : i32
    %c0_i32_1 = arith.constant 0 : i32
    return %c0_i32, %c0_i32_0 : i32, i32
  }
  func.func @transform_5(%arg0: i32, %arg1: i32) -> (i32, i32) {
    %c0_i32 = arith.constant 0 : i32
    %c0_i32_0 = arith.constant 0 : i32
    %c0_i32_1 = arith.constant 0 : i32
    return %c0_i32, %c0_i32_0 : i32, i32
  }
  func.func @transform_6(%arg0: i32, %arg1: i32) -> (i32, i32, i32) {
    %c0_i32 = arith.constant 0 : i32
    %c0_i32_0 = arith.constant 0 : i32
    %c0_i32_1 = arith.constant 0 : i32
    return %c0_i32, %arg0, %c0_i32_0 : i32, i32, i32
  }
  func.func @transform_7(%arg0: i32, %arg1: i32) -> (i32, i32, i32) {
    %c0_i32 = arith.constant 0 : i32
    %c0_i32_0 = arith.constant 0 : i32
    %c0_i32_1 = arith.constant 0 : i32
    return %c0_i32, %arg0, %c0_i32_0 : i32, i32, i32
  }
}

module attributes {stable_mosaic.version = 11 : i64} {
  func.func @lstm_chunk_kernel(%arg0: i32, %arg1: i32, %arg2: memref<4x16x128xbf16, #tpu.memory_space<vmem>>, %arg3: memref<128x512xbf16, #tpu.memory_space<vmem>>, %arg4: memref<128x512xbf16, #tpu.memory_space<vmem>>, %arg5: memref<1x512xf32, #tpu.memory_space<vmem>>, %arg6: memref<256x512xbf16, #tpu.memory_space<vmem>>, %arg7: memref<1x512xf32, #tpu.memory_space<vmem>>, %arg8: memref<2x16x128xf32, #tpu.memory_space<vmem>>, %arg9: memref<2x16x128xf32, #tpu.memory_space<vmem>>, %arg10: memref<64x512xbf16, #tpu.memory_space<vmem>>) attributes {dimension_semantics = [#tpu.dimension_semantics<parallel>, #tpu.dimension_semantics<arbitrary>], iteration_bounds = array<i64: 1, 2>, scalar_prefetch = 0 : i64, scratch_operands = 1 : i64, tpu.core_type = #tpu.core_type<tc>, window_params = [{transform_indices = @transform_0, window_bounds = array<i64: 4, 16, 128>}, {pipeline_mode = #tpu.pipeline_mode<synchronous>, transform_indices = @transform_1, window_bounds = array<i64: 128, 512>}, {pipeline_mode = #tpu.pipeline_mode<synchronous>, transform_indices = @transform_2, window_bounds = array<i64: 128, 512>}, {pipeline_mode = #tpu.pipeline_mode<synchronous>, transform_indices = @transform_3, window_bounds = array<i64: 1, 512>}, {pipeline_mode = #tpu.pipeline_mode<synchronous>, transform_indices = @transform_4, window_bounds = array<i64: 256, 512>}, {pipeline_mode = #tpu.pipeline_mode<synchronous>, transform_indices = @transform_5, window_bounds = array<i64: 1, 512>}, {transform_indices = @transform_6, window_bounds = array<i64: 2, 16, 128>}, {transform_indices = @transform_7, window_bounds = array<i64: 2, 16, 128>}]} {
    %c0_i32 = arith.constant 0 : i32
    %0 = arith.cmpi eq, %arg1, %c0_i32 : i32
    %1 = arith.extui %0 : i1 to i32
    %c0_i32_0 = arith.constant 0 : i32
    %2 = arith.cmpi ne, %1, %c0_i32_0 : i32
    scf.if %2 {
      %cst_138 = arith.constant 0.000000e+00 : f32
      %343 = vector.broadcast %cst_138 : f32 to vector<2x16x128xf32>
      %c0_139 = arith.constant 0 : index
      %c0_140 = arith.constant 0 : index
      %c0_141 = arith.constant 0 : index
      %344 = vector.load %arg8[%c0_139, %c0_140, %c0_141] : memref<2x16x128xf32, #tpu.memory_space<vmem>>, vector<2x16x128xf32>
      tpu.vector_store %arg8[%c0_139, %c0_140, %c0_141], %343 {strides = array<i32>} : memref<2x16x128xf32, #tpu.memory_space<vmem>>, vector<2x16x128xf32>,
      %cst_142 = arith.constant 0.000000e+00 : f32
      %345 = vector.broadcast %cst_142 : f32 to vector<2x16x128xf32>
      %c0_143 = arith.constant 0 : index
      %c0_144 = arith.constant 0 : index
      %c0_145 = arith.constant 0 : index
      %346 = vector.load %arg9[%c0_143, %c0_144, %c0_145] : memref<2x16x128xf32, #tpu.memory_space<vmem>>, vector<2x16x128xf32>
      tpu.vector_store %arg9[%c0_143, %c0_144, %c0_145], %345 {strides = array<i32>} : memref<2x16x128xf32, #tpu.memory_space<vmem>>, vector<2x16x128xf32>,
    } else {
    }
    %c0 = arith.constant 0 : index
    %c0_1 = arith.constant 0 : index
    %c0_2 = arith.constant 0 : index
    %3 = vector.load %arg2[%c0, %c0_1, %c0_2] : memref<4x16x128xbf16, #tpu.memory_space<vmem>>, vector<4x16x128xbf16>
    %4 = vector.shape_cast %3 : vector<4x16x128xbf16> to vector<64x128xbf16>
    %c0_3 = arith.constant 0 : index
    %c0_4 = arith.constant 0 : index
    %5 = vector.load %arg3[%c0_3, %c0_4] : memref<128x512xbf16, #tpu.memory_space<vmem>>, vector<128x512xbf16>
    %cst = arith.constant dense<0.000000e+00> : vector<64x512xf32>
    %6 = tpu.matmul %4, %5, %cst {dimension_numbers = #tpu.dot_dimension_numbers<[1], [0], [0], [1], [0, 0, 1, 1], [], []>} : vector<64x128xbf16>, vector<128x512xbf16>, vector<64x512xf32> -> vector<64x512xf32>
    %c0_5 = arith.constant 0 : index
    %c0_6 = arith.constant 0 : index
    %7 = vector.load %arg5[%c0_5, %c0_6] : memref<1x512xf32, #tpu.memory_space<vmem>>, vector<1x512xf32>
    %8 = vector.broadcast %7 : vector<1x512xf32> to vector<64x512xf32>
    %9 = arith.addf %6, %8 : vector<64x512xf32>
    %10 = arith.truncf %9 : vector<64x512xf32> to vector<64x512xbf16>
    %c0_7 = arith.constant 0 : index
    %c0_8 = arith.constant 0 : index
    %11 = vector.load %arg10[%c0_7, %c0_8] : memref<64x512xbf16, #tpu.memory_space<vmem>>, vector<64x512xbf16>
    tpu.vector_store %arg10[%c0_7, %c0_8], %10 {strides = array<i32>} : memref<64x512xbf16, #tpu.memory_space<vmem>>, vector<64x512xbf16>,
    %c0_9 = arith.constant 0 : index
    %c0_10 = arith.constant 0 : index
    %12 = vector.load %arg7[%c0_9, %c0_10] : memref<1x512xf32, #tpu.memory_space<vmem>>, vector<1x512xf32>
    %13 = vector.shape_cast %12 : vector<1x512xf32> to vector<1x512xf32>
    %14 = vector.broadcast %13 : vector<1x512xf32> to vector<16x512xf32>
    %c0_11 = arith.constant 0 : index
    %c0_12 = arith.constant 0 : index
    %c0_13 = arith.constant 0 : index
    %15 = vector.load %arg8[%c0_11, %c0_12, %c0_13] : memref<2x16x128xf32, #tpu.memory_space<vmem>>, vector<1x16x128xf32>
    %16 = vector.shape_cast %15 : vector<1x16x128xf32> to vector<16x128xf32>
    %17 = arith.truncf %16 : vector<16x128xf32> to vector<16x128xbf16>
    %c0_14 = arith.constant 0 : index
    %c0_15 = arith.constant 0 : index
    %c0_16 = arith.constant 0 : index
    %18 = vector.load %arg9[%c0_14, %c0_15, %c0_16] : memref<2x16x128xf32, #tpu.memory_space<vmem>>, vector<1x16x128xf32>
    %19 = vector.shape_cast %18 : vector<1x16x128xf32> to vector<16x128xf32>
    %c1 = arith.constant 1 : index
    %c0_17 = arith.constant 0 : index
    %c0_18 = arith.constant 0 : index
    %20 = vector.load %arg8[%c1, %c0_17, %c0_18] : memref<2x16x128xf32, #tpu.memory_space<vmem>>, vector<1x16x128xf32>
    %21 = vector.shape_cast %20 : vector<1x16x128xf32> to vector<16x128xf32>
    %22 = arith.truncf %21 : vector<16x128xf32> to vector<16x128xbf16>
    %c1_19 = arith.constant 1 : index
    %c0_20 = arith.constant 0 : index
    %c0_21 = arith.constant 0 : index
    %23 = vector.load %arg9[%c1_19, %c0_20, %c0_21] : memref<2x16x128xf32, #tpu.memory_space<vmem>>, vector<1x16x128xf32>
    %24 = vector.shape_cast %23 : vector<1x16x128xf32> to vector<16x128xf32>
    %c0_i32_22 = arith.constant 0 : i32
    %c16_i32 = arith.constant 16 : i32
    %25 = arith.muli %c0_i32_22, %c16_i32 : i32
    %26 = tpu.assume_multiple %25, 16 : i32
    %27 = arith.index_cast %26 : i32 to index
    %c0_23 = arith.constant 0 : index
    %28 = vector.load %arg10[%27, %c0_23] : memref<64x512xbf16, #tpu.memory_space<vmem>>, vector<16x512xbf16>
    %29 = arith.extf %28 : vector<16x512xbf16> to vector<16x512xf32>
    %c0_24 = arith.constant 0 : index
    %c0_25 = arith.constant 0 : index
    %30 = vector.load %arg4[%c0_24, %c0_25] : memref<128x512xbf16, #tpu.memory_space<vmem>>, vector<128x512xbf16>
    %cst_26 = arith.constant dense<0.000000e+00> : vector<16x512xf32>
    %31 = tpu.matmul %17, %30, %cst_26 {dimension_numbers = #tpu.dot_dimension_numbers<[1], [0], [0], [1], [0, 0, 1, 1], [], []>} : vector<16x128xbf16>, vector<128x512xbf16>, vector<16x512xf32> -> vector<16x512xf32>
    %32 = arith.addf %29, %31 : vector<16x512xf32>
    %33 = vector.extract_strided_slice %32 {offsets = [0, 0], sizes = [16, 128], strides = [1, 1]} : vector<16x512xf32> to vector<16x128xf32>
    %cst_27 = arith.constant 5.000000e-01 : f32
    %34 = vector.broadcast %cst_27 : f32 to vector<16x128xf32>
    %35 = arith.mulf %34, %33 : vector<16x128xf32>
    %36 = math.tanh %35 : vector<16x128xf32>
    %cst_28 = arith.constant 5.000000e-01 : f32
    %37 = vector.broadcast %cst_28 : f32 to vector<16x128xf32>
    %38 = arith.mulf %37, %36 : vector<16x128xf32>
    %cst_29 = arith.constant 5.000000e-01 : f32
    %39 = vector.broadcast %cst_29 : f32 to vector<16x128xf32>
    %40 = arith.addf %38, %39 : vector<16x128xf32>
    %41 = vector.extract_strided_slice %32 {offsets = [0, 128], sizes = [16, 128], strides = [1, 1]} : vector<16x512xf32> to vector<16x128xf32>
    %cst_30 = arith.constant 5.000000e-01 : f32
    %42 = vector.broadcast %cst_30 : f32 to vector<16x128xf32>
    %43 = arith.mulf %42, %41 : vector<16x128xf32>
    %44 = math.tanh %43 : vector<16x128xf32>
    %cst_31 = arith.constant 5.000000e-01 : f32
    %45 = vector.broadcast %cst_31 : f32 to vector<16x128xf32>
    %46 = arith.mulf %45, %44 : vector<16x128xf32>
    %cst_32 = arith.constant 5.000000e-01 : f32
    %47 = vector.broadcast %cst_32 : f32 to vector<16x128xf32>
    %48 = arith.addf %46, %47 : vector<16x128xf32>
    %49 = vector.extract_strided_slice %32 {offsets = [0, 256], sizes = [16, 128], strides = [1, 1]} : vector<16x512xf32> to vector<16x128xf32>
    %50 = math.tanh %49 : vector<16x128xf32>
    %51 = vector.extract_strided_slice %32 {offsets = [0, 384], sizes = [16, 128], strides = [1, 1]} : vector<16x512xf32> to vector<16x128xf32>
    %cst_33 = arith.constant 5.000000e-01 : f32
    %52 = vector.broadcast %cst_33 : f32 to vector<16x128xf32>
    %53 = arith.mulf %52, %51 : vector<16x128xf32>
    %54 = math.tanh %53 : vector<16x128xf32>
    %cst_34 = arith.constant 5.000000e-01 : f32
    %55 = vector.broadcast %cst_34 : f32 to vector<16x128xf32>
    %56 = arith.mulf %55, %54 : vector<16x128xf32>
    %cst_35 = arith.constant 5.000000e-01 : f32
    %57 = vector.broadcast %cst_35 : f32 to vector<16x128xf32>
    %58 = arith.addf %56, %57 : vector<16x128xf32>
    %59 = arith.mulf %48, %19 : vector<16x128xf32>
    %60 = arith.mulf %40, %50 : vector<16x128xf32>
    %61 = arith.addf %59, %60 : vector<16x128xf32>
    %62 = math.tanh %61 : vector<16x128xf32>
    %63 = arith.mulf %58, %62 : vector<16x128xf32>
    %64 = arith.truncf %63 : vector<16x128xf32> to vector<16x128xbf16>
    %65 = tpu.concatenate %64, %22 in 1 : vector<16x128xbf16>, vector<16x128xbf16> -> vector<16x256xbf16>
    %c0_36 = arith.constant 0 : index
    %c0_37 = arith.constant 0 : index
    %66 = vector.load %arg6[%c0_36, %c0_37] : memref<256x512xbf16, #tpu.memory_space<vmem>>, vector<256x512xbf16>
    %cst_38 = arith.constant dense<0.000000e+00> : vector<16x512xf32>
    %67 = tpu.matmul %65, %66, %cst_38 {dimension_numbers = #tpu.dot_dimension_numbers<[1], [0], [0], [1], [0, 0, 1, 1], [], []>} : vector<16x256xbf16>, vector<256x512xbf16>, vector<16x512xf32> -> vector<16x512xf32>
    %68 = arith.addf %67, %14 : vector<16x512xf32>
    %69 = vector.extract_strided_slice %68 {offsets = [0, 0], sizes = [16, 128], strides = [1, 1]} : vector<16x512xf32> to vector<16x128xf32>
    %cst_39 = arith.constant 5.000000e-01 : f32
    %70 = vector.broadcast %cst_39 : f32 to vector<16x128xf32>
    %71 = arith.mulf %70, %69 : vector<16x128xf32>
    %72 = math.tanh %71 : vector<16x128xf32>
    %cst_40 = arith.constant 5.000000e-01 : f32
    %73 = vector.broadcast %cst_40 : f32 to vector<16x128xf32>
    %74 = arith.mulf %73, %72 : vector<16x128xf32>
    %cst_41 = arith.constant 5.000000e-01 : f32
    %75 = vector.broadcast %cst_41 : f32 to vector<16x128xf32>
    %76 = arith.addf %74, %75 : vector<16x128xf32>
    %77 = vector.extract_strided_slice %68 {offsets = [0, 128], sizes = [16, 128], strides = [1, 1]} : vector<16x512xf32> to vector<16x128xf32>
    %cst_42 = arith.constant 5.000000e-01 : f32
    %78 = vector.broadcast %cst_42 : f32 to vector<16x128xf32>
    %79 = arith.mulf %78, %77 : vector<16x128xf32>
    %80 = math.tanh %79 : vector<16x128xf32>
    %cst_43 = arith.constant 5.000000e-01 : f32
    %81 = vector.broadcast %cst_43 : f32 to vector<16x128xf32>
    %82 = arith.mulf %81, %80 : vector<16x128xf32>
    %cst_44 = arith.constant 5.000000e-01 : f32
    %83 = vector.broadcast %cst_44 : f32 to vector<16x128xf32>
    %84 = arith.addf %82, %83 : vector<16x128xf32>
    %85 = vector.extract_strided_slice %68 {offsets = [0, 256], sizes = [16, 128], strides = [1, 1]} : vector<16x512xf32> to vector<16x128xf32>
    %86 = math.tanh %85 : vector<16x128xf32>
    %87 = vector.extract_strided_slice %68 {offsets = [0, 384], sizes = [16, 128], strides = [1, 1]} : vector<16x512xf32> to vector<16x128xf32>
    %cst_45 = arith.constant 5.000000e-01 : f32
    %88 = vector.broadcast %cst_45 : f32 to vector<16x128xf32>
    %89 = arith.mulf %88, %87 : vector<16x128xf32>
    %90 = math.tanh %89 : vector<16x128xf32>
    %cst_46 = arith.constant 5.000000e-01 : f32
    %91 = vector.broadcast %cst_46 : f32 to vector<16x128xf32>
    %92 = arith.mulf %91, %90 : vector<16x128xf32>
    %cst_47 = arith.constant 5.000000e-01 : f32
    %93 = vector.broadcast %cst_47 : f32 to vector<16x128xf32>
    %94 = arith.addf %92, %93 : vector<16x128xf32>
    %95 = arith.mulf %84, %24 : vector<16x128xf32>
    %96 = arith.mulf %76, %86 : vector<16x128xf32>
    %97 = arith.addf %95, %96 : vector<16x128xf32>
    %98 = math.tanh %97 : vector<16x128xf32>
    %99 = arith.mulf %94, %98 : vector<16x128xf32>
    %100 = arith.truncf %99 : vector<16x128xf32> to vector<16x128xbf16>
    %c1_i32 = arith.constant 1 : i32
    %c16_i32_48 = arith.constant 16 : i32
    %101 = arith.muli %c1_i32, %c16_i32_48 : i32
    %102 = tpu.assume_multiple %101, 16 : i32
    %103 = arith.index_cast %102 : i32 to index
    %c0_49 = arith.constant 0 : index
    %104 = vector.load %arg10[%103, %c0_49] : memref<64x512xbf16, #tpu.memory_space<vmem>>, vector<16x512xbf16>
    %105 = arith.extf %104 : vector<16x512xbf16> to vector<16x512xf32>
    %c0_50 = arith.constant 0 : index
    %c0_51 = arith.constant 0 : index
    %106 = vector.load %arg4[%c0_50, %c0_51] : memref<128x512xbf16, #tpu.memory_space<vmem>>, vector<128x512xbf16>
    %cst_52 = arith.constant dense<0.000000e+00> : vector<16x512xf32>
    %107 = tpu.matmul %64, %106, %cst_52 {dimension_numbers = #tpu.dot_dimension_numbers<[1], [0], [0], [1], [0, 0, 1, 1], [], []>} : vector<16x128xbf16>, vector<128x512xbf16>, vector<16x512xf32> -> vector<16x512xf32>
    %108 = arith.addf %105, %107 : vector<16x512xf32>
    %109 = vector.extract_strided_slice %108 {offsets = [0, 0], sizes = [16, 128], strides = [1, 1]} : vector<16x512xf32> to vector<16x128xf32>
    %cst_53 = arith.constant 5.000000e-01 : f32
    %110 = vector.broadcast %cst_53 : f32 to vector<16x128xf32>
    %111 = arith.mulf %110, %109 : vector<16x128xf32>
    %112 = math.tanh %111 : vector<16x128xf32>
    %cst_54 = arith.constant 5.000000e-01 : f32
    %113 = vector.broadcast %cst_54 : f32 to vector<16x128xf32>
    %114 = arith.mulf %113, %112 : vector<16x128xf32>
    %cst_55 = arith.constant 5.000000e-01 : f32
    %115 = vector.broadcast %cst_55 : f32 to vector<16x128xf32>
    %116 = arith.addf %114, %115 : vector<16x128xf32>
    %117 = vector.extract_strided_slice %108 {offsets = [0, 128], sizes = [16, 128], strides = [1, 1]} : vector<16x512xf32> to vector<16x128xf32>
    %cst_56 = arith.constant 5.000000e-01 : f32
    %118 = vector.broadcast %cst_56 : f32 to vector<16x128xf32>
    %119 = arith.mulf %118, %117 : vector<16x128xf32>
    %120 = math.tanh %119 : vector<16x128xf32>
    %cst_57 = arith.constant 5.000000e-01 : f32
    %121 = vector.broadcast %cst_57 : f32 to vector<16x128xf32>
    %122 = arith.mulf %121, %120 : vector<16x128xf32>
    %cst_58 = arith.constant 5.000000e-01 : f32
    %123 = vector.broadcast %cst_58 : f32 to vector<16x128xf32>
    %124 = arith.addf %122, %123 : vector<16x128xf32>
    %125 = vector.extract_strided_slice %108 {offsets = [0, 256], sizes = [16, 128], strides = [1, 1]} : vector<16x512xf32> to vector<16x128xf32>
    %126 = math.tanh %125 : vector<16x128xf32>
    %127 = vector.extract_strided_slice %108 {offsets = [0, 384], sizes = [16, 128], strides = [1, 1]} : vector<16x512xf32> to vector<16x128xf32>
    %cst_59 = arith.constant 5.000000e-01 : f32
    %128 = vector.broadcast %cst_59 : f32 to vector<16x128xf32>
    %129 = arith.mulf %128, %127 : vector<16x128xf32>
    %130 = math.tanh %129 : vector<16x128xf32>
    %cst_60 = arith.constant 5.000000e-01 : f32
    %131 = vector.broadcast %cst_60 : f32 to vector<16x128xf32>
    %132 = arith.mulf %131, %130 : vector<16x128xf32>
    %cst_61 = arith.constant 5.000000e-01 : f32
    %133 = vector.broadcast %cst_61 : f32 to vector<16x128xf32>
    %134 = arith.addf %132, %133 : vector<16x128xf32>
    %135 = arith.mulf %124, %61 : vector<16x128xf32>
    %136 = arith.mulf %116, %126 : vector<16x128xf32>
    %137 = arith.addf %135, %136 : vector<16x128xf32>
    %138 = math.tanh %137 : vector<16x128xf32>
    %139 = arith.mulf %134, %138 : vector<16x128xf32>
    %140 = arith.truncf %139 : vector<16x128xf32> to vector<16x128xbf16>
    %141 = tpu.concatenate %140, %100 in 1 : vector<16x128xbf16>, vector<16x128xbf16> -> vector<16x256xbf16>
    %c0_62 = arith.constant 0 : index
    %c0_63 = arith.constant 0 : index
    %142 = vector.load %arg6[%c0_62, %c0_63] : memref<256x512xbf16, #tpu.memory_space<vmem>>, vector<256x512xbf16>
    %cst_64 = arith.constant dense<0.000000e+00> : vector<16x512xf32>
    %143 = tpu.matmul %141, %142, %cst_64 {dimension_numbers = #tpu.dot_dimension_numbers<[1], [0], [0], [1], [0, 0, 1, 1], [], []>} : vector<16x256xbf16>, vector<256x512xbf16>, vector<16x512xf32> -> vector<16x512xf32>
    %144 = arith.addf %143, %14 : vector<16x512xf32>
    %145 = vector.extract_strided_slice %144 {offsets = [0, 0], sizes = [16, 128], strides = [1, 1]} : vector<16x512xf32> to vector<16x128xf32>
    %cst_65 = arith.constant 5.000000e-01 : f32
    %146 = vector.broadcast %cst_65 : f32 to vector<16x128xf32>
    %147 = arith.mulf %146, %145 : vector<16x128xf32>
    %148 = math.tanh %147 : vector<16x128xf32>
    %cst_66 = arith.constant 5.000000e-01 : f32
    %149 = vector.broadcast %cst_66 : f32 to vector<16x128xf32>
    %150 = arith.mulf %149, %148 : vector<16x128xf32>
    %cst_67 = arith.constant 5.000000e-01 : f32
    %151 = vector.broadcast %cst_67 : f32 to vector<16x128xf32>
    %152 = arith.addf %150, %151 : vector<16x128xf32>
    %153 = vector.extract_strided_slice %144 {offsets = [0, 128], sizes = [16, 128], strides = [1, 1]} : vector<16x512xf32> to vector<16x128xf32>
    %cst_68 = arith.constant 5.000000e-01 : f32
    %154 = vector.broadcast %cst_68 : f32 to vector<16x128xf32>
    %155 = arith.mulf %154, %153 : vector<16x128xf32>
    %156 = math.tanh %155 : vector<16x128xf32>
    %cst_69 = arith.constant 5.000000e-01 : f32
    %157 = vector.broadcast %cst_69 : f32 to vector<16x128xf32>
    %158 = arith.mulf %157, %156 : vector<16x128xf32>
    %cst_70 = arith.constant 5.000000e-01 : f32
    %159 = vector.broadcast %cst_70 : f32 to vector<16x128xf32>
    %160 = arith.addf %158, %159 : vector<16x128xf32>
    %161 = vector.extract_strided_slice %144 {offsets = [0, 256], sizes = [16, 128], strides = [1, 1]} : vector<16x512xf32> to vector<16x128xf32>
    %162 = math.tanh %161 : vector<16x128xf32>
    %163 = vector.extract_strided_slice %144 {offsets = [0, 384], sizes = [16, 128], strides = [1, 1]} : vector<16x512xf32> to vector<16x128xf32>
    %cst_71 = arith.constant 5.000000e-01 : f32
    %164 = vector.broadcast %cst_71 : f32 to vector<16x128xf32>
    %165 = arith.mulf %164, %163 : vector<16x128xf32>
    %166 = math.tanh %165 : vector<16x128xf32>
    %cst_72 = arith.constant 5.000000e-01 : f32
    %167 = vector.broadcast %cst_72 : f32 to vector<16x128xf32>
    %168 = arith.mulf %167, %166 : vector<16x128xf32>
    %cst_73 = arith.constant 5.000000e-01 : f32
    %169 = vector.broadcast %cst_73 : f32 to vector<16x128xf32>
    %170 = arith.addf %168, %169 : vector<16x128xf32>
    %171 = arith.mulf %160, %97 : vector<16x128xf32>
    %172 = arith.mulf %152, %162 : vector<16x128xf32>
    %173 = arith.addf %171, %172 : vector<16x128xf32>
    %174 = math.tanh %173 : vector<16x128xf32>
    %175 = arith.mulf %170, %174 : vector<16x128xf32>
    %176 = arith.truncf %175 : vector<16x128xf32> to vector<16x128xbf16>
    %c2_i32 = arith.constant 2 : i32
    %c16_i32_74 = arith.constant 16 : i32
    %177 = arith.muli %c2_i32, %c16_i32_74 : i32
    %178 = tpu.assume_multiple %177, 16 : i32
    %179 = arith.index_cast %178 : i32 to index
    %c0_75 = arith.constant 0 : index
    %180 = vector.load %arg10[%179, %c0_75] : memref<64x512xbf16, #tpu.memory_space<vmem>>, vector<16x512xbf16>
    %181 = arith.extf %180 : vector<16x512xbf16> to vector<16x512xf32>
    %c0_76 = arith.constant 0 : index
    %c0_77 = arith.constant 0 : index
    %182 = vector.load %arg4[%c0_76, %c0_77] : memref<128x512xbf16, #tpu.memory_space<vmem>>, vector<128x512xbf16>
    %cst_78 = arith.constant dense<0.000000e+00> : vector<16x512xf32>
    %183 = tpu.matmul %140, %182, %cst_78 {dimension_numbers = #tpu.dot_dimension_numbers<[1], [0], [0], [1], [0, 0, 1, 1], [], []>} : vector<16x128xbf16>, vector<128x512xbf16>, vector<16x512xf32> -> vector<16x512xf32>
    %184 = arith.addf %181, %183 : vector<16x512xf32>
    %185 = vector.extract_strided_slice %184 {offsets = [0, 0], sizes = [16, 128], strides = [1, 1]} : vector<16x512xf32> to vector<16x128xf32>
    %cst_79 = arith.constant 5.000000e-01 : f32
    %186 = vector.broadcast %cst_79 : f32 to vector<16x128xf32>
    %187 = arith.mulf %186, %185 : vector<16x128xf32>
    %188 = math.tanh %187 : vector<16x128xf32>
    %cst_80 = arith.constant 5.000000e-01 : f32
    %189 = vector.broadcast %cst_80 : f32 to vector<16x128xf32>
    %190 = arith.mulf %189, %188 : vector<16x128xf32>
    %cst_81 = arith.constant 5.000000e-01 : f32
    %191 = vector.broadcast %cst_81 : f32 to vector<16x128xf32>
    %192 = arith.addf %190, %191 : vector<16x128xf32>
    %193 = vector.extract_strided_slice %184 {offsets = [0, 128], sizes = [16, 128], strides = [1, 1]} : vector<16x512xf32> to vector<16x128xf32>
    %cst_82 = arith.constant 5.000000e-01 : f32
    %194 = vector.broadcast %cst_82 : f32 to vector<16x128xf32>
    %195 = arith.mulf %194, %193 : vector<16x128xf32>
    %196 = math.tanh %195 : vector<16x128xf32>
    %cst_83 = arith.constant 5.000000e-01 : f32
    %197 = vector.broadcast %cst_83 : f32 to vector<16x128xf32>
    %198 = arith.mulf %197, %196 : vector<16x128xf32>
    %cst_84 = arith.constant 5.000000e-01 : f32
    %199 = vector.broadcast %cst_84 : f32 to vector<16x128xf32>
    %200 = arith.addf %198, %199 : vector<16x128xf32>
    %201 = vector.extract_strided_slice %184 {offsets = [0, 256], sizes = [16, 128], strides = [1, 1]} : vector<16x512xf32> to vector<16x128xf32>
    %202 = math.tanh %201 : vector<16x128xf32>
    %203 = vector.extract_strided_slice %184 {offsets = [0, 384], sizes = [16, 128], strides = [1, 1]} : vector<16x512xf32> to vector<16x128xf32>
    %cst_85 = arith.constant 5.000000e-01 : f32
    %204 = vector.broadcast %cst_85 : f32 to vector<16x128xf32>
    %205 = arith.mulf %204, %203 : vector<16x128xf32>
    %206 = math.tanh %205 : vector<16x128xf32>
    %cst_86 = arith.constant 5.000000e-01 : f32
    %207 = vector.broadcast %cst_86 : f32 to vector<16x128xf32>
    %208 = arith.mulf %207, %206 : vector<16x128xf32>
    %cst_87 = arith.constant 5.000000e-01 : f32
    %209 = vector.broadcast %cst_87 : f32 to vector<16x128xf32>
    %210 = arith.addf %208, %209 : vector<16x128xf32>
    %211 = arith.mulf %200, %137 : vector<16x128xf32>
    %212 = arith.mulf %192, %202 : vector<16x128xf32>
    %213 = arith.addf %211, %212 : vector<16x128xf32>
    %214 = math.tanh %213 : vector<16x128xf32>
    %215 = arith.mulf %210, %214 : vector<16x128xf32>
    %216 = arith.truncf %215 : vector<16x128xf32> to vector<16x128xbf16>
    %217 = tpu.concatenate %216, %176 in 1 : vector<16x128xbf16>, vector<16x128xbf16> -> vector<16x256xbf16>
    %c0_88 = arith.constant 0 : index
    %c0_89 = arith.constant 0 : index
    %218 = vector.load %arg6[%c0_88, %c0_89] : memref<256x512xbf16, #tpu.memory_space<vmem>>, vector<256x512xbf16>
    %cst_90 = arith.constant dense<0.000000e+00> : vector<16x512xf32>
    %219 = tpu.matmul %217, %218, %cst_90 {dimension_numbers = #tpu.dot_dimension_numbers<[1], [0], [0], [1], [0, 0, 1, 1], [], []>} : vector<16x256xbf16>, vector<256x512xbf16>, vector<16x512xf32> -> vector<16x512xf32>
    %220 = arith.addf %219, %14 : vector<16x512xf32>
    %221 = vector.extract_strided_slice %220 {offsets = [0, 0], sizes = [16, 128], strides = [1, 1]} : vector<16x512xf32> to vector<16x128xf32>
    %cst_91 = arith.constant 5.000000e-01 : f32
    %222 = vector.broadcast %cst_91 : f32 to vector<16x128xf32>
    %223 = arith.mulf %222, %221 : vector<16x128xf32>
    %224 = math.tanh %223 : vector<16x128xf32>
    %cst_92 = arith.constant 5.000000e-01 : f32
    %225 = vector.broadcast %cst_92 : f32 to vector<16x128xf32>
    %226 = arith.mulf %225, %224 : vector<16x128xf32>
    %cst_93 = arith.constant 5.000000e-01 : f32
    %227 = vector.broadcast %cst_93 : f32 to vector<16x128xf32>
    %228 = arith.addf %226, %227 : vector<16x128xf32>
    %229 = vector.extract_strided_slice %220 {offsets = [0, 128], sizes = [16, 128], strides = [1, 1]} : vector<16x512xf32> to vector<16x128xf32>
    %cst_94 = arith.constant 5.000000e-01 : f32
    %230 = vector.broadcast %cst_94 : f32 to vector<16x128xf32>
    %231 = arith.mulf %230, %229 : vector<16x128xf32>
    %232 = math.tanh %231 : vector<16x128xf32>
    %cst_95 = arith.constant 5.000000e-01 : f32
    %233 = vector.broadcast %cst_95 : f32 to vector<16x128xf32>
    %234 = arith.mulf %233, %232 : vector<16x128xf32>
    %cst_96 = arith.constant 5.000000e-01 : f32
    %235 = vector.broadcast %cst_96 : f32 to vector<16x128xf32>
    %236 = arith.addf %234, %235 : vector<16x128xf32>
    %237 = vector.extract_strided_slice %220 {offsets = [0, 256], sizes = [16, 128], strides = [1, 1]} : vector<16x512xf32> to vector<16x128xf32>
    %238 = math.tanh %237 : vector<16x128xf32>
    %239 = vector.extract_strided_slice %220 {offsets = [0, 384], sizes = [16, 128], strides = [1, 1]} : vector<16x512xf32> to vector<16x128xf32>
    %cst_97 = arith.constant 5.000000e-01 : f32
    %240 = vector.broadcast %cst_97 : f32 to vector<16x128xf32>
    %241 = arith.mulf %240, %239 : vector<16x128xf32>
    %242 = math.tanh %241 : vector<16x128xf32>
    %cst_98 = arith.constant 5.000000e-01 : f32
    %243 = vector.broadcast %cst_98 : f32 to vector<16x128xf32>
    %244 = arith.mulf %243, %242 : vector<16x128xf32>
    %cst_99 = arith.constant 5.000000e-01 : f32
    %245 = vector.broadcast %cst_99 : f32 to vector<16x128xf32>
    %246 = arith.addf %244, %245 : vector<16x128xf32>
    %247 = arith.mulf %236, %173 : vector<16x128xf32>
    %248 = arith.mulf %228, %238 : vector<16x128xf32>
    %249 = arith.addf %247, %248 : vector<16x128xf32>
    %250 = math.tanh %249 : vector<16x128xf32>
    %251 = arith.mulf %246, %250 : vector<16x128xf32>
    %252 = arith.truncf %251 : vector<16x128xf32> to vector<16x128xbf16>
    %c3_i32 = arith.constant 3 : i32
    %c16_i32_100 = arith.constant 16 : i32
    %253 = arith.muli %c3_i32, %c16_i32_100 : i32
    %254 = tpu.assume_multiple %253, 16 : i32
    %255 = arith.index_cast %254 : i32 to index
    %c0_101 = arith.constant 0 : index
    %256 = vector.load %arg10[%255, %c0_101] : memref<64x512xbf16, #tpu.memory_space<vmem>>, vector<16x512xbf16>
    %257 = arith.extf %256 : vector<16x512xbf16> to vector<16x512xf32>
    %c0_102 = arith.constant 0 : index
    %c0_103 = arith.constant 0 : index
    %258 = vector.load %arg4[%c0_102, %c0_103] : memref<128x512xbf16, #tpu.memory_space<vmem>>, vector<128x512xbf16>
    %cst_104 = arith.constant dense<0.000000e+00> : vector<16x512xf32>
    %259 = tpu.matmul %216, %258, %cst_104 {dimension_numbers = #tpu.dot_dimension_numbers<[1], [0], [0], [1], [0, 0, 1, 1], [], []>} : vector<16x128xbf16>, vector<128x512xbf16>, vector<16x512xf32> -> vector<16x512xf32>
    %260 = arith.addf %257, %259 : vector<16x512xf32>
    %261 = vector.extract_strided_slice %260 {offsets = [0, 0], sizes = [16, 128], strides = [1, 1]} : vector<16x512xf32> to vector<16x128xf32>
    %cst_105 = arith.constant 5.000000e-01 : f32
    %262 = vector.broadcast %cst_105 : f32 to vector<16x128xf32>
    %263 = arith.mulf %262, %261 : vector<16x128xf32>
    %264 = math.tanh %263 : vector<16x128xf32>
    %cst_106 = arith.constant 5.000000e-01 : f32
    %265 = vector.broadcast %cst_106 : f32 to vector<16x128xf32>
    %266 = arith.mulf %265, %264 : vector<16x128xf32>
    %cst_107 = arith.constant 5.000000e-01 : f32
    %267 = vector.broadcast %cst_107 : f32 to vector<16x128xf32>
    %268 = arith.addf %266, %267 : vector<16x128xf32>
    %269 = vector.extract_strided_slice %260 {offsets = [0, 128], sizes = [16, 128], strides = [1, 1]} : vector<16x512xf32> to vector<16x128xf32>
    %cst_108 = arith.constant 5.000000e-01 : f32
    %270 = vector.broadcast %cst_108 : f32 to vector<16x128xf32>
    %271 = arith.mulf %270, %269 : vector<16x128xf32>
    %272 = math.tanh %271 : vector<16x128xf32>
    %cst_109 = arith.constant 5.000000e-01 : f32
    %273 = vector.broadcast %cst_109 : f32 to vector<16x128xf32>
    %274 = arith.mulf %273, %272 : vector<16x128xf32>
    %cst_110 = arith.constant 5.000000e-01 : f32
    %275 = vector.broadcast %cst_110 : f32 to vector<16x128xf32>
    %276 = arith.addf %274, %275 : vector<16x128xf32>
    %277 = vector.extract_strided_slice %260 {offsets = [0, 256], sizes = [16, 128], strides = [1, 1]} : vector<16x512xf32> to vector<16x128xf32>
    %278 = math.tanh %277 : vector<16x128xf32>
    %279 = vector.extract_strided_slice %260 {offsets = [0, 384], sizes = [16, 128], strides = [1, 1]} : vector<16x512xf32> to vector<16x128xf32>
    %cst_111 = arith.constant 5.000000e-01 : f32
    %280 = vector.broadcast %cst_111 : f32 to vector<16x128xf32>
    %281 = arith.mulf %280, %279 : vector<16x128xf32>
    %282 = math.tanh %281 : vector<16x128xf32>
    %cst_112 = arith.constant 5.000000e-01 : f32
    %283 = vector.broadcast %cst_112 : f32 to vector<16x128xf32>
    %284 = arith.mulf %283, %282 : vector<16x128xf32>
    %cst_113 = arith.constant 5.000000e-01 : f32
    %285 = vector.broadcast %cst_113 : f32 to vector<16x128xf32>
    %286 = arith.addf %284, %285 : vector<16x128xf32>
    %287 = arith.mulf %276, %213 : vector<16x128xf32>
    %288 = arith.mulf %268, %278 : vector<16x128xf32>
    %289 = arith.addf %287, %288 : vector<16x128xf32>
    %290 = math.tanh %289 : vector<16x128xf32>
    %291 = arith.mulf %286, %290 : vector<16x128xf32>
    %292 = arith.truncf %291 : vector<16x128xf32> to vector<16x128xbf16>
    %293 = tpu.concatenate %292, %252 in 1 : vector<16x128xbf16>, vector<16x128xbf16> -> vector<16x256xbf16>
    %c0_114 = arith.constant 0 : index
    %c0_115 = arith.constant 0 : index
    %294 = vector.load %arg6[%c0_114, %c0_115] : memref<256x512xbf16, #tpu.memory_space<vmem>>, vector<256x512xbf16>
    %cst_116 = arith.constant dense<0.000000e+00> : vector<16x512xf32>
    %295 = tpu.matmul %293, %294, %cst_116 {dimension_numbers = #tpu.dot_dimension_numbers<[1], [0], [0], [1], [0, 0, 1, 1], [], []>} : vector<16x256xbf16>, vector<256x512xbf16>, vector<16x512xf32> -> vector<16x512xf32>
    %296 = arith.addf %295, %14 : vector<16x512xf32>
    %297 = vector.extract_strided_slice %296 {offsets = [0, 0], sizes = [16, 128], strides = [1, 1]} : vector<16x512xf32> to vector<16x128xf32>
    %cst_117 = arith.constant 5.000000e-01 : f32
    %298 = vector.broadcast %cst_117 : f32 to vector<16x128xf32>
    %299 = arith.mulf %298, %297 : vector<16x128xf32>
    %300 = math.tanh %299 : vector<16x128xf32>
    %cst_118 = arith.constant 5.000000e-01 : f32
    %301 = vector.broadcast %cst_118 : f32 to vector<16x128xf32>
    %302 = arith.mulf %301, %300 : vector<16x128xf32>
    %cst_119 = arith.constant 5.000000e-01 : f32
    %303 = vector.broadcast %cst_119 : f32 to vector<16x128xf32>
    %304 = arith.addf %302, %303 : vector<16x128xf32>
    %305 = vector.extract_strided_slice %296 {offsets = [0, 128], sizes = [16, 128], strides = [1, 1]} : vector<16x512xf32> to vector<16x128xf32>
    %cst_120 = arith.constant 5.000000e-01 : f32
    %306 = vector.broadcast %cst_120 : f32 to vector<16x128xf32>
    %307 = arith.mulf %306, %305 : vector<16x128xf32>
    %308 = math.tanh %307 : vector<16x128xf32>
    %cst_121 = arith.constant 5.000000e-01 : f32
    %309 = vector.broadcast %cst_121 : f32 to vector<16x128xf32>
    %310 = arith.mulf %309, %308 : vector<16x128xf32>
    %cst_122 = arith.constant 5.000000e-01 : f32
    %311 = vector.broadcast %cst_122 : f32 to vector<16x128xf32>
    %312 = arith.addf %310, %311 : vector<16x128xf32>
    %313 = vector.extract_strided_slice %296 {offsets = [0, 256], sizes = [16, 128], strides = [1, 1]} : vector<16x512xf32> to vector<16x128xf32>
    %314 = math.tanh %313 : vector<16x128xf32>
    %315 = vector.extract_strided_slice %296 {offsets = [0, 384], sizes = [16, 128], strides = [1, 1]} : vector<16x512xf32> to vector<16x128xf32>
    %cst_123 = arith.constant 5.000000e-01 : f32
    %316 = vector.broadcast %cst_123 : f32 to vector<16x128xf32>
    %317 = arith.mulf %316, %315 : vector<16x128xf32>
    %318 = math.tanh %317 : vector<16x128xf32>
    %cst_124 = arith.constant 5.000000e-01 : f32
    %319 = vector.broadcast %cst_124 : f32 to vector<16x128xf32>
    %320 = arith.mulf %319, %318 : vector<16x128xf32>
    %cst_125 = arith.constant 5.000000e-01 : f32
    %321 = vector.broadcast %cst_125 : f32 to vector<16x128xf32>
    %322 = arith.addf %320, %321 : vector<16x128xf32>
    %323 = arith.mulf %312, %249 : vector<16x128xf32>
    %324 = arith.mulf %304, %314 : vector<16x128xf32>
    %325 = arith.addf %323, %324 : vector<16x128xf32>
    %326 = math.tanh %325 : vector<16x128xf32>
    %327 = arith.mulf %322, %326 : vector<16x128xf32>
    %328 = arith.truncf %327 : vector<16x128xf32> to vector<16x128xbf16>
    %c4_i32 = arith.constant 4 : i32
    %329 = arith.extf %292 : vector<16x128xbf16> to vector<16x128xf32>
    %c0_126 = arith.constant 0 : index
    %c0_127 = arith.constant 0 : index
    %c0_128 = arith.constant 0 : index
    %330 = vector.load %arg8[%c0_126, %c0_127, %c0_128] : memref<2x16x128xf32, #tpu.memory_space<vmem>>, vector<1x16x128xf32>
    %331 = vector.shape_cast %330 : vector<1x16x128xf32> to vector<16x128xf32>
    %332 = vector.shape_cast %329 : vector<16x128xf32> to vector<1x16x128xf32>
    tpu.vector_store %arg8[%c0_126, %c0_127, %c0_128], %332 {strides = array<i32>} : memref<2x16x128xf32, #tpu.memory_space<vmem>>, vector<1x16x128xf32>,
    %c0_129 = arith.constant 0 : index
    %c0_130 = arith.constant 0 : index
    %c0_131 = arith.constant 0 : index
    %333 = vector.load %arg9[%c0_129, %c0_130, %c0_131] : memref<2x16x128xf32, #tpu.memory_space<vmem>>, vector<1x16x128xf32>
    %334 = vector.shape_cast %333 : vector<1x16x128xf32> to vector<16x128xf32>
    %335 = vector.shape_cast %289 : vector<16x128xf32> to vector<1x16x128xf32>
    tpu.vector_store %arg9[%c0_129, %c0_130, %c0_131], %335 {strides = array<i32>} : memref<2x16x128xf32, #tpu.memory_space<vmem>>, vector<1x16x128xf32>,
    %336 = arith.extf %328 : vector<16x128xbf16> to vector<16x128xf32>
    %c1_132 = arith.constant 1 : index
    %c0_133 = arith.constant 0 : index
    %c0_134 = arith.constant 0 : index
    %337 = vector.load %arg8[%c1_132, %c0_133, %c0_134] : memref<2x16x128xf32, #tpu.memory_space<vmem>>, vector<1x16x128xf32>
    %338 = vector.shape_cast %337 : vector<1x16x128xf32> to vector<16x128xf32>
    %339 = vector.shape_cast %336 : vector<16x128xf32> to vector<1x16x128xf32>
    tpu.vector_store %arg8[%c1_132, %c0_133, %c0_134], %339 {strides = array<i32>} : memref<2x16x128xf32, #tpu.memory_space<vmem>>, vector<1x16x128xf32>,
    %c1_135 = arith.constant 1 : index
    %c0_136 = arith.constant 0 : index
    %c0_137 = arith.constant 0 : index
    %340 = vector.load %arg9[%c1_135, %c0_136, %c0_137] : memref<2x16x128xf32, #tpu.memory_space<vmem>>, vector<1x16x128xf32>
    %341 = vector.shape_cast %340 : vector<1x16x128xf32> to vector<16x128xf32>
    %342 = vector.shape_cast %325 : vector<16x128xf32> to vector<1x16x128xf32>
    tpu.vector_store %arg9[%c1_135, %c0_136, %c0_137], %342 {strides = array<i32>} : memref<2x16x128xf32, #tpu.memory_space<vmem>>, vector<1x16x128xf32>,
    return
  }
  func.func @transform_0(%arg0: i32, %arg1: i32) -> (i32, i32, i32) {
    %c0_i32 = arith.constant 0 : i32
    %c0_i32_0 = arith.constant 0 : i32
    return %arg1, %arg0, %c0_i32 : i32, i32, i32
  }
  func.func @transform_1(%arg0: i32, %arg1: i32) -> (i32, i32) {
    %c0_i32 = arith.constant 0 : i32
    %c0_i32_0 = arith.constant 0 : i32
    %c0_i32_1 = arith.constant 0 : i32
    return %c0_i32, %c0_i32_0 : i32, i32
  }
  func.func @transform_2(%arg0: i32, %arg1: i32) -> (i32, i32) {
    %c0_i32 = arith.constant 0 : i32
    %c0_i32_0 = arith.constant 0 : i32
    %c0_i32_1 = arith.constant 0 : i32
    return %c0_i32, %c0_i32_0 : i32, i32
  }
  func.func @transform_3(%arg0: i32, %arg1: i32) -> (i32, i32) {
    %c0_i32 = arith.constant 0 : i32
    %c0_i32_0 = arith.constant 0 : i32
    %c0_i32_1 = arith.constant 0 : i32
    return %c0_i32, %c0_i32_0 : i32, i32
  }
  func.func @transform_4(%arg0: i32, %arg1: i32) -> (i32, i32) {
    %c0_i32 = arith.constant 0 : i32
    %c0_i32_0 = arith.constant 0 : i32
    %c0_i32_1 = arith.constant 0 : i32
    return %c0_i32, %c0_i32_0 : i32, i32
  }
  func.func @transform_5(%arg0: i32, %arg1: i32) -> (i32, i32) {
    %c0_i32 = arith.constant 0 : i32
    %c0_i32_0 = arith.constant 0 : i32
    %c0_i32_1 = arith.constant 0 : i32
    return %c0_i32, %c0_i32_0 : i32, i32
  }
  func.func @transform_6(%arg0: i32, %arg1: i32) -> (i32, i32, i32) {
    %c0_i32 = arith.constant 0 : i32
    %c0_i32_0 = arith.constant 0 : i32
    %c0_i32_1 = arith.constant 0 : i32
    return %c0_i32, %arg0, %c0_i32_0 : i32, i32, i32
  }
  func.func @transform_7(%arg0: i32, %arg1: i32) -> (i32, i32, i32) {
    %c0_i32 = arith.constant 0 : i32
    %c0_i32_0 = arith.constant 0 : i32
    %c0_i32_1 = arith.constant 0 : i32
    return %c0_i32, %arg0, %c0_i32_0 : i32, i32, i32
  }
}

</mosaic_0001>

<bundles_post_ra>
// kernel: tpu_custom_call.1
= control target key start
LH: loop header
LB: loop body
LE: loop exit
PB: predicated region body
PF: predicated region fallthrough
CT: control target
= control target key end

     0   :  { %s4939_s0 = inlined_call_operand.hbm [shape: bf16[8,16,128], index: 0, kind: input, shape index: {}]   ;;  %s4940_s1 = inlined_call_operand.hbm [shape: bf16[128,512], index: 1, kind: input, shape index: {}]   ;;  %s4941_s2 = inlined_call_operand.hbm [shape: bf16[128,512], index: 2, kind: input, shape index: {}]   ;;  %s4942_s3 = inlined_call_operand.vmem [shape: f32[1,512], index: 3, kind: input, shape index: {}]   ;;  %s4943_s4 = inlined_call_operand.hbm [shape: bf16[256,512], index: 4, kind: input, shape index: {}]   ;;  %s4944_s5 = inlined_call_operand.vmem [shape: f32[1,512], index: 5, kind: input, shape index: {}]   ;;  %s4945_s6 = inlined_call_operand.hbm [shape: f32[2,16,128], index: 6, kind: output, shape index: {0}]   ;;  %s4946_s7 = inlined_call_operand.hbm [shape: f32[2,16,128], index: 7, kind: output, shape index: {1}]  }
   0x1   :  { %5103 = sst [smem:[#allocation94_spill]] %s4945_s6 }
   0x2   :  { %13 = vsyncpa [#allocation4], 0 }
   0x3   :  { %15 = vsyncpa [#allocation4 + $0x1], 0 }
   0x4   :  { %16 = vsyncpa [#allocation7], 0 }
   0x5   :  { %17 = vsyncpa [#allocation10], 0 }
   0x6   :  { %18 = vsyncpa [#allocation5], 0 }
   0x7   :  { %19 = vsyncpa [#allocation13], 0  ;;  %s3635_s24 = smov 0   ;;  %s3637_s25 = smov 0  }
   0x8   :  { %s3639_s26 = smov 0   ;;  %s3641_s27 = smov 0  }
   0x9   :  { %s3643_s28 = smov 0   ;;  %s3645_s29 = smov 0  }
   0xa LB: > { %s4949_s30 = sadd.s32 4294967295, %s3579_s29   ;;  %p59_p0 = scmp.ne.s32.totalorder %s3563_s25, %s3559_s24  ;;  %s3579_s29 = sphi %s3645_s29, %s25_s29   ;;  %s3575_s28 = sphi %s3643_s28, %s5403_s28   ;;  %s3571_s27 = sphi %s3641_s27, %s5402_s27   ;;  %s3567_s26 = sphi %s3639_s26, %s5401_s26   ;;  %s3563_s25 = sphi %s3637_s25, %s5400_s25   ;;  %s3559_s24 = sphi %s3635_s24, %s5399_s24  }
   0xb   : > { %p3667_p1 = scmp.eq.s32.totalorder %s4949_s30, 0  ;;  %p2632_p2 = scmp.ge.s32.totalorder %s3579_s29, 1 }
   0xc   : > { %p227_p3 = scmp.lt.s32.totalorder %s3579_s29, 3  ;;  %s3581_s11 = smov [#allocation6]  }
   0xd   : > { %s5104_s8 = scalar_select %p3667_p1, 1, 0 }
   0xe   : > { %p3675_p4 = por %p3667_p1, %p59_p0  ;;  %p3679_p5 = pnand %p2632_p2, %p227_p3 }
   0xf   : > { %s239_s12 = sshll.u32 %s3581_s11, 4  ;;  %s3582_s14 = smov [#allocation8]   ;;  %s3683_s12 = int_to_ptr.vmem [resolvable:$true] %s239_s12 }
  0x10   : > { %s5105_s9 = scalar_select %p3675_p4, 1, 0 }
  0x11   : > { %s5106_s10 = scalar_select %p3679_p5, 1, 0 }
  0x12   : > { %p2809_p6 = pneg %p3679_p5  ;;  %s252_s15 = sshll.u32 %s3582_s14, 4  ;;  %s3693_s15 = int_to_ptr.vmem [resolvable:$true] %s252_s15 }
  0x13   : > { %s3583_s16 = smov [#allocation9]   ;;  %s3347_s20 = scalar_lea.hbm %s4940_s1, 4096 }
  0x14   : > { %p3689_p7 = pnand %p2809_p6, %p3667_p1  ;;  %s3695_s17 = sshll.u32 %s3583_s16, 4  ;;  %s269_s17 = int_to_ptr.vmem [resolvable:$true] %s3695_s17 }
  0x15   : > { %p3348_p8 = scmp.ne.s32.totalorder %s4940_s1, %s3347_s20  ;;  %p3354_p12 = scmp.lt.u32.totalorder %s3347_s20, %s4940_s1 }
  0x16   : > { %p3705_p9 = pneg %p3689_p7 }
  0x18   : > { %p3350_p10 = pnand %p3705_p9, %p3348_p8 }
  0x1a   : > { %p3351_p11 = pneg %p3350_p10 }
  0x1c   : > { %p3356_p13 = pnand %p3354_p12, %p3351_p11 }
  0x1e   : > { %3359 = shalt.err (!%p3356_p13)
}
  0x1f   : > { %s3360_s14 = scalar_lea.vmem %s3683_s12, 4096  ;;  %p3368_p6 = scmp.lt.s32.totalorder %s3683_s12, %s3683_s12 }
  0x20   : > { %p3361_p0 = scmp.ne.s32.totalorder %s3683_s12, %s3360_s14  ;;  %p3369_p1 = scmp.lt.s32.totalorder %s3360_s14, %s3360_s14 }
  0x22   : > { %p3363_p2 = pnand %p3361_p0, %p3705_p9  ;;  %p3370_p8 = por %p3369_p1, %p3368_p6 }
  0x24   : > { %p3364_p3 = pneg %p3363_p2 }
  0x26   : > { %p3371_p10 = pnand %p3370_p8, %p3364_p3 }
  0x28   : > { %3374 = shalt.err (!%p3371_p10)
}
  0x29   : > { %s3584_s16 = smov 256   ;;  %s3585_s18 = smov 16  }
  0x2a   : > { %2812 = dma.hbm_to_vmem [thread:$0]  (!%p3689_p7), %s4940_s1, 4096, %s3683_s12, [#allocation7], %s3584_s16, %s3584_s16, %s3585_s18  }
  0x2b   : > { %s3375_s24 = scalar_lea.hbm %s4941_s2, 4096 }
  0x2c   : > { %p3376_p1 = scmp.ne.s32.totalorder %s4941_s2, %s3375_s24  ;;  %p3382_p13 = scmp.lt.u32.totalorder %s3375_s24, %s4941_s2 }
  0x2e   : > { %p3378_p11 = pnand %p3376_p1, %p3705_p9 }
  0x30   : > { %p3379_p12 = pneg %p3378_p11 }
  0x32   : > { %p3384_p0 = pnand %p3382_p13, %p3379_p12 }
  0x34   : > { %3387 = shalt.err (!%p3384_p0)
}
  0x35   : > { %s3388_s12 = scalar_lea.vmem %s3693_s15, 4096  ;;  %p3396_p8 = scmp.lt.s32.totalorder %s3693_s15, %s3693_s15 }
  0x36   : > { %p3389_p2 = scmp.ne.s32.totalorder %s3693_s15, %s3388_s12  ;;  %p3397_p10 = scmp.lt.s32.totalorder %s3388_s12, %s3388_s12 }
  0x38   : > { %p3391_p3 = pnand %p3389_p2, %p3705_p9  ;;  %p3398_p1 = por %p3397_p10, %p3396_p8 }
  0x3a   : > { %p3392_p6 = pneg %p3391_p3 }
  0x3c   : > { %p3399_p11 = pnand %p3398_p1, %p3392_p6 }
  0x3e   : > { %3402 = shalt.err (!%p3399_p11)
}
  0x3f   : > { %2815 = dma.hbm_to_vmem [thread:$0]  (!%p3689_p7), %s4941_s2, 4096, %s3693_s15, [#allocation7], %s3584_s16, %s3584_s16, %s3585_s18  }
  0x40   : > { %s3403_s21 = scalar_lea.hbm %s4943_s4, 8192 }
  0x41   : > { %p3404_p12 = scmp.ne.s32.totalorder %s4943_s4, %s3403_s21  ;;  %p3410_p2 = scmp.lt.u32.totalorder %s3403_s21, %s4943_s4 }
  0x43   : > { %p3406_p13 = pnand %p3404_p12, %p3705_p9 }
  0x45   : > { %p3407_p0 = pneg %p3406_p13 }
  0x47   : > { %p3412_p3 = pnand %p3410_p2, %p3407_p0 }
  0x49   : > { %3415 = shalt.err (!%p3412_p3)
}
  0x4a   : > { %s3416_s12 = scalar_lea.vmem %s269_s17, 8192  ;;  %p3424_p1 = scmp.lt.s32.totalorder %s269_s17, %s269_s17 }
  0x4b   : > { %p3417_p6 = scmp.ne.s32.totalorder %s269_s17, %s3416_s12  ;;  %p3425_p11 = scmp.lt.s32.totalorder %s3416_s12, %s3416_s12 }
  0x4d   : > { %p3419_p8 = pnand %p3417_p6, %p3705_p9  ;;  %p3426_p4 = por %p3425_p11, %p3424_p1 }
  0x4f   : > { %p3420_p10 = pneg %p3419_p8 }
  0x51   : > { %p3427_p5 = pnand %p3426_p4, %p3420_p10 }
  0x53   : > { %3430 = shalt.err (!%p3427_p5)
}
  0x54   : > { %2818 = dma.hbm_to_vmem [thread:$0]  (!%p3689_p7), %s4943_s4, 8192, %s269_s17, [#allocation10], %s3584_s16, %s3584_s16, %s3585_s18  }
  0x55   : > { %s46_s23 = sadd.s32 1, %s3567_s26  ;;  %s34_s30 = sadd.s32 1, %s3575_s28 }
  0x56   : > { %p53_p4 = scmp.ne.s32.totalorder %s3567_s26, %s3563_s25  ;;  %p35_p5 = scmp.ge.s32.totalorder %s34_s30, 2 }
  0x57   : > { %p54_p9 = scmp.eq.s32.totalorder %s3579_s29, 0  ;;  %p2826_p12 = scmp.lt.s32.totalorder %s3579_s29, 2 }
  0x58   : > { %s285_s13 = sand.u32 1, %s3567_s26   ;;  %s5405_s30 = smov (%p35_p5, %s34_s30), 0 }
  0x59   : > { %p55_p13 = por %p54_p9, %p53_p4  ;;  %s41_s19 = ssub.s32 %s3575_s28, %s5405_s30 }
  0x5a   : > { %s2637_s20 = sshll.u32 %s285_s13, 5  ;;  %p44_p0 = scmp.eq.s32.totalorder %s41_s19, 0 }
  0x5b   : > { %s2786_s21 = sshll.u32 %s3575_s28, 9  ;;  %s289_s22 = scalar_lea.vmem [#allocation3], %s2637_s20 }
  0x5c   : > { %s299_s24 = sshll.u32 %s289_s22, 4  ;;  %s3795_s11 = scalar_lea.hbm %s4939_s0, %s2786_s21  ;;  %s3797_s24 = int_to_ptr.vmem [resolvable:$true] %s299_s24 }
  0x5d   : > { %s3790_s17 = scalar_select %p44_p0, %s3567_s26, %s46_s23  }
  0x5e   : > { %p3801_p7 = pnand %p2826_p12, %p55_p13  ;;  %s3805_s12 = scalar_lea.sflag [#allocation4], %s285_s13 }
  0x5f   : > { %s3431_s15 = scalar_lea.hbm %s3795_s11, 512  ;;  %s3436_s19 = scalar_lea.hbm %s4939_s0, 1024 }
  0x60   : > { %p3432_p2 = scmp.ne.s32.totalorder %s3795_s11, %s3431_s15  ;;  %p3433_p3 = pneg %p3801_p7 }
  0x61   : > { %p3437_p10 = scmp.lt.u32.totalorder %s3795_s11, %s4939_s0  ;;  %p3438_p1 = scmp.lt.u32.totalorder %s3436_s19, %s3431_s15 }
  0x62   : > { %p3434_p6 = pnand %p3433_p3, %p3432_p2  ;;  %p3440_p4 = scmp.lt.u32.totalorder %s3431_s15, %s3795_s11 }
  0x63   : > { %p3439_p11 = por %p3438_p1, %p3437_p10 }
  0x64   : > { %p3435_p8 = pneg %p3434_p6 }
  0x65   : > { %p3441_p5 = por %p3440_p4, %p3439_p11 }
  0x67   : > { %p3442_p9 = pnand %p3441_p5, %p3435_p8 }
  0x69   : > { %3445 = shalt.err (!%p3442_p9)
}
  0x6a   : > { %s3446_s13 = scalar_lea.vmem %s3797_s24, 512  ;;  %s3586_s22 = smov [#allocation3]  }
  0x6b   : > { %p3447_p12 = scmp.ne.s32.totalorder %s3797_s24, %s3446_s13  ;;  %s3451_s16 = sshll.u32 %s3586_s22, 4  ;;  %s3452_s16 = int_to_ptr.vmem [resolvable:$false] %s3451_s16 }
  0x6c   : > { %s3453_s18 = scalar_lea.vmem %s3452_s16, 1024  ;;  %p3454_p2 = scmp.lt.s32.totalorder %s3797_s24, %s3452_s16 }
  0x6d   : > { %p3449_p13 = pnand %p3447_p12, %p3433_p3  ;;  %p3455_p6 = scmp.lt.s32.totalorder %s3453_s18, %s3446_s13 }
  0x6f   : > { %p3450_p0 = pneg %p3449_p13  ;;  %p3456_p10 = por %p3455_p6, %p3454_p2 }
  0x71   : > { %p3457_p1 = pnand %p3456_p10, %p3450_p0 }
  0x73   : > { %3460 = shalt.err (!%p3457_p1)
}
  0x74   : > { %s3587_s15 = smov 64   ;;  %s3588_s6 = smov 4  }
  0x75   : > { %2822 = dma.hbm_to_vmem [thread:$0]  (!%p3801_p7), %s3795_s11, 512, %s3797_s24, %s3805_s12, %s3587_s15, %s3587_s15, %s3588_s6  }
  0x76   : > { %p5110_p3 = scmp.ne.s32.totalorder %s5106_s10, 0 }
  0x78   : > { %311 = sbr.rel (%p5110_p3) target bundleno = 1609 (0x649), region = 44 }
  0x7f   : > { %s313_s23 = sand.u32 1, %s3563_s25   ;;  %p5111_p8 = scmp.ne.s32.totalorder %s5105_s9, 0 }
  0x80   : > { %s2642_s19 = sshll.u32 %s313_s23, 5  ;;  %s314_s20 = scalar_lea.sflag [#allocation4], %s313_s23 }
  0x81   : > { %s3836_s21 = scalar_lea.vmem [#allocation3], %s2642_s19 }
  0x82   : > { %3538 = dma.done.wait (%p5111_p8), %s314_s20, 512  }
  0x83   : > { %3540 = vsyncadd (%p5111_p8), %s314_s20, 4294966784  ;;  %p5112_p11 = scmp.ne.s32.totalorder %s5104_s8, 0 }
  0x85   : > { %3542 = dma.done.wait (%p5112_p11), [#allocation7], 8192  }
  0x86   : > { %3544 = vsyncadd (%p5112_p11), [#allocation7], 4294959104 }
  0x87   : > { %3546 = dma.done.wait (%p5112_p11), [#allocation10], 8192  }
  0x88   : > { %3548 = vsyncadd (%p5112_p11), [#allocation10], 4294959104  ;;  %p2646_p7 = scmp.ne.s32.totalorder %s3571_s27, 0 }
  0x89   : > { %v3589_v0 = vmov (!%p2646_p7), 0.0  }
  0x8a   : > { %363 = sbr.rel (%p2646_p7) target bundleno = 145 (0x91), region = 64  ;;  %364 = vst [vmem:[#allocation11] sm:$0xff] (!%p2646_p7), %v3589_v0  ;;  %365 = vst [vmem:[#allocation11 + $0x8] sm:$0xff] (!%p2646_p7), %v3589_v0 }
  0x8b   : > { %366 = vst [vmem:[#allocation11 + $0x10] sm:$0xff] (!%p2646_p7), %v3589_v0  ;;  %367 = vst [vmem:[#allocation11 + $0x18] sm:$0xff] (!%p2646_p7), %v3589_v0 }
  0x8c   : > { %368 = vst [vmem:[#allocation12] sm:$0xff] (!%p2646_p7), %v3589_v0  ;;  %369 = vst [vmem:[#allocation12 + $0x8] sm:$0xff] (!%p2646_p7), %v3589_v0 }
  0x8d   : > { %370 = vst [vmem:[#allocation12 + $0x10] sm:$0xff] (!%p2646_p7), %v3589_v0  ;;  %371 = vst [vmem:[#allocation12 + $0x18] sm:$0xff] (!%p2646_p7), %v3589_v0 }
  0x91 PF: > { %v2895_v1 = vld [vmem:[#allocation6 + $0x4] ss:$16 sps:$4 sm:$0xff]   ;;  %v2897_v2 = vld [vmem:[#allocation6 + $0xc] ss:$16 sps:$4 sm:$0xff]   ;;  %v4953_v3 = vmov 0   ;;  %s3591_s24 = smov [#allocation12]  }
  0x92   : > { %650 = vmatprep.mubr.bf16.mxu0 %v4953_v3  ;;  %723 = vmatprep.mubr.bf16.mxu1 %v4953_v3  ;;  %v2899_v4 = vld [vmem:[#allocation6] ss:$16 sps:$4 sm:$0xff]   ;;  %v2900_v5 = vld [vmem:[#allocation6 + $0x8] ss:$16 sps:$4 sm:$0xff]   ;;  %v2901_v6 = vld [vmem:[#allocation6 + $0x24] ss:$16 sps:$4 sm:$0xff]  }
  0x93   : > { %618 = vmatprep.subr.bf16.mxu0 %v2895_v1  ;;  %691 = vmatprep.subr.bf16.mxu1 %v2897_v2  ;;  %v2903_v7 = vld [vmem:[#allocation6 + $0x2c] ss:$16 sps:$4 sm:$0xff]   ;;  %v2905_v8 = vld [vmem:[#allocation6 + $0x20] ss:$16 sps:$4 sm:$0xff]   ;;  %v2906_v9 = vld [vmem:[#allocation6 + $0x28] ss:$16 sps:$4 sm:$0xff]  }
  0x94   : > { %619 = vmatpush1.bf16.msra.mxu0 %v2899_v4  ;;  %692 = vmatpush1.bf16.msra.mxu1 %v2900_v5  ;;  %v2907_v10 = vld [vmem:[#allocation6 + $0x44] ss:$16 sps:$4 sm:$0xff]   ;;  %v2909_v11 = vld [vmem:[#allocation6 + $0x4c] ss:$16 sps:$4 sm:$0xff]   ;;  %v2911_v12 = vld [vmem:[#allocation6 + $0x40] ss:$16 sps:$4 sm:$0xff]  }
  0x95   : > { %620 = vmatprep.subr.bf16.mxu0 %v2901_v6  ;;  %693 = vmatprep.subr.bf16.mxu1 %v2903_v7  ;;  %v2912_v13 = vld [vmem:[#allocation6 + $0x48] ss:$16 sps:$4 sm:$0xff]   ;;  %v2913_v14 = vld [vmem:[#allocation6 + $0x64] ss:$16 sps:$4 sm:$0xff]   ;;  %v2915_v15 = vld [vmem:[#allocation6 + $0x6c] ss:$16 sps:$4 sm:$0xff]  }
  0x96   : > { %v2917_v16 = vld [vmem:[#allocation6 + $0x60] ss:$16 sps:$4 sm:$0xff]   ;;  %v2918_v17 = vld [vmem:[#allocation6 + $0x68] ss:$16 sps:$4 sm:$0xff]   ;;  %v2919_v18 = vld [vmem:[#allocation6 + $0x84] ss:$16 sps:$4 sm:$0xff]  }
  0x97   : > { %v2921_v19 = vld [vmem:[#allocation6 + $0x8c] ss:$16 sps:$4 sm:$0xff]   ;;  %v2923_v20 = vld [vmem:[#allocation6 + $0x80] ss:$16 sps:$4 sm:$0xff]   ;;  %v2924_v21 = vld [vmem:[#allocation6 + $0x88] ss:$16 sps:$4 sm:$0xff]  }
  0x98   : > { %621 = vmatpush1.bf16.msra.mxu0 %v2905_v8  ;;  %694 = vmatpush1.bf16.msra.mxu1 %v2906_v9  ;;  %v2925_v22 = vld [vmem:[#allocation6 + $0xa4] ss:$16 sps:$4 sm:$0xff]   ;;  %v2927_v23 = vld [vmem:[#allocation6 + $0xac] ss:$16 sps:$4 sm:$0xff]   ;;  %v2929_v24 = vld [vmem:[#allocation6 + $0xa0] ss:$16 sps:$4 sm:$0xff]  }
  0x99   : > { %622 = vmatprep.subr.bf16.mxu0 %v2907_v10  ;;  %695 = vmatprep.subr.bf16.mxu1 %v2909_v11  ;;  %v2930_v25 = vld [vmem:[#allocation6 + $0xa8] ss:$16 sps:$4 sm:$0xff]   ;;  %v2931_v26 = vld [vmem:[#allocation6 + $0xc4] ss:$16 sps:$4 sm:$0xff]   ;;  %v2933_v27 = vld [vmem:[#allocation6 + $0xcc] ss:$16 sps:$4 sm:$0xff]  }
  0x9a   : > { %v2935_v28 = vld [vmem:[#allocation6 + $0xc0] ss:$16 sps:$4 sm:$0xff]   ;;  %v2936_v29 = vld [vmem:[#allocation6 + $0xc8] ss:$16 sps:$4 sm:$0xff]   ;;  %v2937_v30 = vld [vmem:[#allocation6 + $0xe4] ss:$16 sps:$4 sm:$0xff]  }
  0x9b   : > { %v2939_v31 = vld [vmem:[#allocation6 + $0xec] ss:$16 sps:$4 sm:$0xff]   ;;  %v2941_v32 = vld [vmem:[#allocation6 + $0xe0] ss:$16 sps:$4 sm:$0xff]   ;;  %v2942_v33 = vld [vmem:[#allocation6 + $0xe8] ss:$16 sps:$4 sm:$0xff]  }
  0x9c   : > { %623 = vmatpush1.bf16.msra.mxu0 %v2911_v12  ;;  %696 = vmatpush1.bf16.msra.mxu1 %v2912_v13  ;;  %v3853_v34 = vld [vmem:[#allocation8 + $0x4] ss:$16 sps:$4 sm:$0xff]   ;;  %v3855_v35 = vld [vmem:[#allocation8 + $0xc] ss:$16 sps:$4 sm:$0xff]   ;;  %v3858_v37 = vld [vmem:[#allocation8] ss:$16 sps:$4 sm:$0xff]  }
  0x9d   : > { %624 = vmatprep.subr.bf16.mxu0 %v2913_v14  ;;  %697 = vmatprep.subr.bf16.mxu1 %v2915_v15  ;;  %v2943_v36 = vld [vmem:[%s3836_s21] sm:$0xff]   ;;  %v3860_v38 = vld [vmem:[#allocation8 + $0x8] ss:$16 sps:$4 sm:$0xff]   ;;  %v3866_v40 = vld [vmem:[#allocation8 + $0x2c] ss:$16 sps:$4 sm:$0xff]   ;;  %s2519_s11 = sshll.u32 %s3591_s24, 4  ;;  %s2520_s11 = int_to_ptr.vmem [resolvable:$true] %s2519_s11 }
  0x9e   : > { %v3864_v39 = vld [vmem:[#allocation8 + $0x24] ss:$16 sps:$4 sm:$0xff]   ;;  %v3868_v41 = vld [vmem:[#allocation8 + $0x20] ss:$16 sps:$4 sm:$0xff]   ;;  %v3872_v42 = vld [vmem:[#allocation8 + $0x28] ss:$16 sps:$4 sm:$0xff]   ;;  %p3468_p13 = scmp.lt.s32.totalorder %s2520_s11, %s2520_s11 }
  0x9f   : > { %v3876_v43 = vld [vmem:[#allocation8 + $0x44] ss:$16 sps:$4 sm:$0xff]   ;;  %v3878_v44 = vld [vmem:[#allocation8 + $0x4c] ss:$16 sps:$4 sm:$0xff]   ;;  %v3883_v46 = vld [vmem:[#allocation8 + $0x40] ss:$16 sps:$4 sm:$0xff]  }
  0xa0   : > { %625 = vmatpush1.bf16.msra.mxu0 %v2917_v16  ;;  %698 = vmatpush1.bf16.msra.mxu1 %v2918_v17  ;;  %v2956_v45 = vld [vmem:[%s3836_s21 + $0x8] sm:$0xff]   ;;  %v3889_v48 = vld [vmem:[#allocation8 + $0x64] ss:$16 sps:$4 sm:$0xff]   ;;  %v3895_v50 = vld [vmem:[#allocation8 + $0x60] ss:$16 sps:$4 sm:$0xff]   ;;  %s5396_s14 = sadd.s32 4294967295, %s3579_s29  }
  0xa1   : > { %626 = vmatprep.subr.bf16.mxu0 %v2919_v18  ;;  %699 = vmatprep.subr.bf16.mxu1 %v2921_v19  ;;  %v3885_v47 = vld [vmem:[#allocation8 + $0x48] ss:$16 sps:$4 sm:$0xff]   ;;  %v3893_v49 = vld [vmem:[#allocation8 + $0x6c] ss:$16 sps:$4 sm:$0xff]   ;;  %v3901_v52 = vld [vmem:[#allocation8 + $0x84] ss:$16 sps:$4 sm:$0xff]  }
  0xa2   : > { %v3897_v51 = vld [vmem:[#allocation8 + $0x68] ss:$16 sps:$4 sm:$0xff]   ;;  %v3905_v53 = vld [vmem:[#allocation8 + $0x8c] ss:$16 sps:$4 sm:$0xff]   ;;  %v2969_v54 = vld [vmem:[%s3836_s21 + $0x10] sm:$0xff]   ;;  %p4867_p4 = scmp.eq.s32.totalorder %s5396_s14, 1 }
  0xa3   : > { %v3910_v55 = vld [vmem:[#allocation8 + $0x80] ss:$16 sps:$4 sm:$0xff]   ;;  %v3912_v56 = vld [vmem:[#allocation8 + $0x88] ss:$16 sps:$4 sm:$0xff]   ;;  %v3914_v57 = vld [vmem:[#allocation8 + $0xa4] ss:$16 sps:$4 sm:$0xff]  }
  0xa4   : > { %627 = vmatpush1.bf16.msra.mxu0 %v2923_v20  ;;  %700 = vmatpush1.bf16.msra.mxu1 %v2924_v21  ;;  %v3916_v58 = vld [vmem:[#allocation8 + $0xac] ss:$16 sps:$4 sm:$0xff]   ;;  %v3922_v59 = vld [vmem:[#allocation8 + $0xa0] ss:$16 sps:$4 sm:$0xff]   ;;  %v3924_v60 = vld [vmem:[#allocation8 + $0xa8] ss:$16 sps:$4 sm:$0xff]  }
  0xa5   : > { %628 = vmatprep.subr.bf16.mxu0 %v2925_v22  ;;  %701 = vmatprep.subr.bf16.mxu1 %v2927_v23  ;;  %v3926_v61 = vld [vmem:[#allocation8 + $0xc4] ss:$16 sps:$4 sm:$0xff]   ;;  %v3928_v62 = vld [vmem:[#allocation8 + $0xcc] ss:$16 sps:$4 sm:$0xff]   ;;  %v3937_v0 = vld [vmem:[#allocation8 + $0xc0] ss:$16 sps:$4 sm:$0xff]  }
  0xa6   : > { %v2982_v63 = vld [vmem:[%s3836_s21 + $0x18] sm:$0xff]   ;;  %v3941_v2 = vld [vmem:[#allocation8 + $0xe4] ss:$16 sps:$4 sm:$0xff]   ;;  %v3949_v5 = vld [vmem:[#allocation8 + $0xe0] ss:$16 sps:$4 sm:$0xff]   ;;  %s3461_s13 = scalar_lea.vmem %s2520_s11, 512 }
  0xa7   : > { %v3939_v1 = vld [vmem:[#allocation8 + $0xc8] ss:$16 sps:$4 sm:$0xff]   ;;  %v3943_v4 = vld [vmem:[#allocation8 + $0xec] ss:$16 sps:$4 sm:$0xff]   ;;  %v818_v7 = vld [vmem:[#allocation11] sm:$0xff]  ;;  %p3462_p5 = scmp.ne.s32.totalorder %s2520_s11, %s3461_s13  ;;  %p3469_p0 = scmp.lt.s32.totalorder %s3461_s13, %s3461_s13 }
  0xa8   : > { %629 = vmatpush1.bf16.msra.mxu0 %v2929_v24  ;;  %702 = vmatpush1.bf16.msra.mxu1 %v2930_v25  ;;  %v3951_v6 = vld [vmem:[#allocation8 + $0xe8] ss:$16 sps:$4 sm:$0xff]   ;;  %v3961_v10 = vld [vmem:[#allocation9 + $0x4] ss:$16 sps:$4 sm:$0xff]   ;;  %v3963_v11 = vld [vmem:[#allocation9 + $0xc] ss:$16 sps:$4 sm:$0xff]  }
  0xa9   : > { %630 = vmatprep.subr.bf16.mxu0 %v2931_v26  ;;  %703 = vmatprep.subr.bf16.mxu1 %v2933_v27  ;;  %v819_v8 = vld [vmem:[#allocation11 + $0x8] sm:$0xff]  ;;  %v3965_v12 = vld [vmem:[#allocation9] ss:$16 sps:$4 sm:$0xff]   ;;  %v3973_v14 = vld [vmem:[#allocation9 + $0x24] ss:$16 sps:$4 sm:$0xff]   ;;  %p3463_p9 = pnand %p3462_p5, %p4867_p4  ;;  %p3470_p2 = por %p3469_p0, %p3468_p13 }
  0xaa   : > { %v820_v9 = vpack.c.bf16 %v819_v8, %v818_v7  ;;  %v3967_v13 = vld [vmem:[#allocation9 + $0x8] ss:$16 sps:$4 sm:$0xff]   ;;  %v3975_v15 = vld [vmem:[#allocation9 + $0x2c] ss:$16 sps:$4 sm:$0xff]   ;;  %v3977_v16 = vld [vmem:[#allocation9 + $0x20] ss:$16 sps:$4 sm:$0xff]  }
  0xab   : > { %5113 = vst [vmem:[#allocation19_spill] sm:$0xff] %v3975_v15  ;;  %5114 = vst [vmem:[#allocation20_spill] sm:$0xff] %v3977_v16  ;;  %v3979_v17 = vld [vmem:[#allocation9 + $0x28] ss:$16 sps:$4 sm:$0xff]   ;;  %v3985_v18 = vld [vmem:[#allocation9 + $0x44] ss:$16 sps:$4 sm:$0xff]   ;;  %p3464_p12 = pneg %p3463_p9 }
  0xac   : > { %631 = vmatpush1.bf16.msra.mxu0 %v2935_v28  ;;  %704 = vmatpush1.bf16.msra.mxu1 %v2936_v29  ;;  %5115 = vst [vmem:[#allocation21_spill] sm:$0xff] %v3979_v17  ;;  %5116 = vst [vmem:[#allocation22_spill] sm:$0xff] %v3985_v18  ;;  %v3987_v19 = vld [vmem:[#allocation9 + $0x4c] ss:$16 sps:$4 sm:$0xff]   ;;  %v3989_v20 = vld [vmem:[#allocation9 + $0x40] ss:$16 sps:$4 sm:$0xff]  }
  0xad   : > { %632 = vmatprep.subr.bf16.mxu0 %v2937_v30  ;;  %705 = vmatprep.subr.bf16.mxu1 %v2939_v31  ;;  %5117 = vst [vmem:[#allocation23_spill] sm:$0xff] %v3987_v19  ;;  %5118 = vst [vmem:[#allocation24_spill] sm:$0xff] %v3989_v20  ;;  %v3991_v21 = vld [vmem:[#allocation9 + $0x48] ss:$16 sps:$4 sm:$0xff]   ;;  %v3997_v22 = vld [vmem:[#allocation9 + $0x64] ss:$16 sps:$4 sm:$0xff]   ;;  %p3471_p6 = pnand %p3470_p2, %p3464_p12 }
  0xae   : > { %5119 = vst [vmem:[#allocation25_spill] sm:$0xff] %v3991_v21  ;;  %5120 = vst [vmem:[#allocation26_spill] sm:$0xff] %v3997_v22  ;;  %v3999_v23 = vld [vmem:[#allocation9 + $0x6c] ss:$16 sps:$4 sm:$0xff]   ;;  %v4001_v24 = vld [vmem:[#allocation9 + $0x60] ss:$16 sps:$4 sm:$0xff]  }
  0xaf   : > { %5121 = vst [vmem:[#allocation27_spill] sm:$0xff] %v3999_v23  ;;  %5122 = vst [vmem:[#allocation28_spill] sm:$0xff] %v4001_v24  ;;  %v4003_v25 = vld [vmem:[#allocation9 + $0x68] ss:$16 sps:$4 sm:$0xff]   ;;  %v4009_v26 = vld [vmem:[#allocation9 + $0x84] ss:$16 sps:$4 sm:$0xff]  }
  0xb0   : > { %633 = vmatpush1.bf16.msra.mxu0 %v2941_v32  ;;  %706 = vmatpush1.bf16.msra.mxu1 %v2942_v33  ;;  %5123 = vst [vmem:[#allocation29_spill] sm:$0xff] %v4003_v25  ;;  %5124 = vst [vmem:[#allocation30_spill] sm:$0xff] %v4009_v26  ;;  %v4011_v27 = vld [vmem:[#allocation9 + $0x8c] ss:$16 sps:$4 sm:$0xff]   ;;  %v4013_v28 = vld [vmem:[#allocation9 + $0x80] ss:$16 sps:$4 sm:$0xff]  }
  0xb1   : > { %1037 = vmatprep.subr.bf16.mxu0 %v3853_v34  ;;  %1080 = vmatprep.subr.bf16.mxu1 %v3855_v35  ;;  %5125 = vst [vmem:[#allocation31_spill] sm:$0xff] %v4011_v27  ;;  %5126 = vst [vmem:[#allocation32_spill] sm:$0xff] %v4013_v28  ;;  %v4015_v29 = vld [vmem:[#allocation9 + $0x88] ss:$16 sps:$4 sm:$0xff]   ;;  %v4021_v30 = vld [vmem:[#allocation9 + $0xa4] ss:$16 sps:$4 sm:$0xff]  }
  0xb2   : > { %5127 = vst [vmem:[#allocation33_spill] sm:$0xff] %v4015_v29  ;;  %5128 = vst [vmem:[#allocation34_spill] sm:$0xff] %v4021_v30  ;;  %v4023_v31 = vld [vmem:[#allocation9 + $0xac] ss:$16 sps:$4 sm:$0xff]   ;;  %v4025_v32 = vld [vmem:[#allocation9 + $0xa0] ss:$16 sps:$4 sm:$0xff]  }
  0xb3   : > { %651 = vmatmul.mubr.bf16.vlgmr.msra.gmra.mrb[0].mxu0 %v2943_v36  ;;  %724 = vmatmul.mubr.bf16.vlgmr.msra.gmra.mrb[0].mxu1 %v2943_v36  ;;  %5129 = vst [vmem:[#allocation35_spill] sm:$0xff] %v4023_v31  ;;  %5130 = vst [vmem:[#allocation36_spill] sm:$0xff] %v4025_v32  ;;  %v4027_v33 = vld [vmem:[#allocation9 + $0xa8] ss:$16 sps:$4 sm:$0xff]   ;;  %v4033_v36 = vld [vmem:[#allocation9 + $0xc4] ss:$16 sps:$4 sm:$0xff]  }
  0xb4   : > { %1038 = vmatpush1.bf16.msra.mxu0 %v3858_v37  ;;  %1081 = vmatpush1.bf16.msra.mxu1 %v3860_v38  ;;  %5131 = vst [vmem:[#allocation37_spill] sm:$0xff] %v4027_v33  ;;  %5132 = vst [vmem:[#allocation38_spill] sm:$0xff] %v4033_v36  ;;  %v4045_v7 = vld [vmem:[#allocation9 + $0xe4] ss:$16 sps:$4 sm:$0xff]   ;;  %v4047_v8 = vld [vmem:[#allocation9 + $0xec] ss:$16 sps:$4 sm:$0xff]  }
  0xb5   : > { %1039 = vmatprep.subr.bf16.mxu0 %v3864_v39  ;;  %1082 = vmatprep.subr.bf16.mxu1 %v3866_v40  ;;  %5136 = vst [vmem:[#allocation42_spill] sm:$0xff] %v4045_v7  ;;  %5137 = vst [vmem:[#allocation43_spill] sm:$0xff] %v4047_v8 }
  0xb6   : > { %660 = vmatprep.mubr.bf16.mxu0 %v4953_v3  ;;  %733 = vmatprep.mubr.bf16.mxu1 %v4953_v3 }
  0xb8   : > { %1040 = vmatpush1.bf16.msra.mxu0 %v3868_v41  ;;  %1083 = vmatpush1.bf16.msra.mxu1 %v3872_v42 }
  0xb9   : > { %1041 = vmatprep.subr.bf16.mxu0 %v3876_v43  ;;  %1084 = vmatprep.subr.bf16.mxu1 %v3878_v44 }
  0xbb   : > { %661 = vmatmul.mubr.bf16.gmra.mrb[4].mxu0 %v2956_v45  ;;  %734 = vmatmul.mubr.bf16.gmra.mrb[4].mxu1 %v2956_v45  ;;  %v4035_v45 = vld [vmem:[#allocation9 + $0xcc] ss:$16 sps:$4 sm:$0xff]  }
  0xbc   : > { %1042 = vmatpush1.bf16.msra.mxu0 %v3883_v46  ;;  %1085 = vmatpush1.bf16.msra.mxu1 %v3885_v47  ;;  %5133 = vst [vmem:[#allocation39_spill] sm:$0xff] %v4035_v45 }
  0xbd   : > { %1043 = vmatprep.subr.bf16.mxu0 %v3889_v48  ;;  %1086 = vmatprep.subr.bf16.mxu1 %v3893_v49 }
  0xbe   : > { %670 = vmatprep.mubr.bf16.mxu0 %v4953_v3  ;;  %743 = vmatprep.mubr.bf16.mxu1 %v4953_v3 }
  0xc0   : > { %1044 = vmatpush1.bf16.msra.mxu0 %v3895_v50  ;;  %1087 = vmatpush1.bf16.msra.mxu1 %v3897_v51 }
  0xc1   : > { %1045 = vmatprep.subr.bf16.mxu0 %v3901_v52  ;;  %1088 = vmatprep.subr.bf16.mxu1 %v3905_v53 }
  0xc3   : > { %671 = vmatmul.mubr.bf16.gmra.mrb[8].mxu0 %v2969_v54  ;;  %744 = vmatmul.mubr.bf16.gmra.mrb[8].mxu1 %v2969_v54  ;;  %v4039_v54 = vld [vmem:[#allocation9 + $0xc0] ss:$16 sps:$4 sm:$0xff]  }
  0xc4   : > { %1046 = vmatpush1.bf16.msra.mxu0 %v3910_v55  ;;  %1089 = vmatpush1.bf16.msra.mxu1 %v3912_v56  ;;  %5134 = vst [vmem:[#allocation40_spill] sm:$0xff] %v4039_v54 }
  0xc5   : > { %1047 = vmatprep.subr.bf16.mxu0 %v3914_v57  ;;  %1090 = vmatprep.subr.bf16.mxu1 %v3916_v58 }
  0xc6   : > { %680 = vmatprep.mubr.bf16.mxu0 %v4953_v3  ;;  %753 = vmatprep.mubr.bf16.mxu1 %v4953_v3 }
  0xc8   : > { %1048 = vmatpush1.bf16.msra.mxu0 %v3922_v59  ;;  %1091 = vmatpush1.bf16.msra.mxu1 %v3924_v60 }
  0xc9   : > { %1049 = vmatprep.subr.bf16.mxu0 %v3926_v61  ;;  %1092 = vmatprep.subr.bf16.mxu1 %v3928_v62 }
  0xcb   : > { %681 = vmatmul.mubr.bf16.gmra.mrb[12].mxu0 %v2982_v63  ;;  %754 = vmatmul.mubr.bf16.gmra.mrb[12].mxu1 %v2982_v63  ;;  %v4041_v63 = vld [vmem:[#allocation9 + $0xc8] ss:$16 sps:$4 sm:$0xff]  }
  0xcc   : > { %1050 = vmatpush1.bf16.msra.mxu0 %v3937_v0  ;;  %1093 = vmatpush1.bf16.msra.mxu1 %v3939_v1  ;;  %5135 = vst [vmem:[#allocation41_spill] sm:$0xff] %v4041_v63 }
  0xcd   : > { %1051 = vmatprep.subr.bf16.mxu0 %v3941_v2  ;;  %1094 = vmatprep.subr.bf16.mxu1 %v3943_v4 }
  0xce   : > { %1069 = vmatprep.mubr.bf16.mxu0 %v4953_v3  ;;  %1112 = vmatprep.mubr.bf16.mxu1 %v4953_v3  ;;  %v4051_v3 = vld [vmem:[#allocation9 + $0xe8] ss:$16 sps:$4 sm:$0xff]  }
  0xcf   : > { %5139 = vst [vmem:[#allocation45_spill] sm:$0xff] %v4051_v3 }
  0xd0   : > { %1052 = vmatpush1.bf16.msra.mxu0 %v3949_v5  ;;  %1095 = vmatpush1.bf16.msra.mxu1 %v3951_v6 }
  0xd1   : > { %1552 = vmatprep.subr.bf16.mxu0 %v3961_v10  ;;  %1595 = vmatprep.subr.bf16.mxu1 %v3963_v11 }
  0xd3   : > { %1070 = vmatmul.mubr.bf16.vlgmr.msra.gmra.mrb[16].mxu0 %v820_v9  ;;  %1113 = vmatmul.mubr.bf16.vlgmr.msra.gmra.mrb[16].mxu1 %v820_v9  ;;  %v4049_v9 = vld [vmem:[#allocation9 + $0xe0] ss:$16 sps:$4 sm:$0xff]  }
  0xd4   : > { %1553 = vmatpush1.bf16.msra.mxu0 %v3965_v12  ;;  %1596 = vmatpush1.bf16.msra.mxu1 %v3967_v13  ;;  %5138 = vst [vmem:[#allocation44_spill] sm:$0xff] %v4049_v9 }
  0xd5   : > { %1554 = vmatprep.subr.bf16.mxu0 %v3973_v14  ;;  %1597 = vmatprep.subr.bf16.mxu1 %v3975_v15 }
  0xd8   : > { %1555 = vmatpush1.bf16.msra.mxu0 %v3977_v16  ;;  %1598 = vmatpush1.bf16.msra.mxu1 %v3979_v17 }
  0xd9   : > { %1556 = vmatprep.subr.bf16.mxu0 %v3985_v18  ;;  %1599 = vmatprep.subr.bf16.mxu1 %v3987_v19 }
  0xdc   : > { %1557 = vmatpush1.bf16.msra.mxu0 %v3989_v20  ;;  %1600 = vmatpush1.bf16.msra.mxu1 %v3991_v21 }
  0xdd   : > { %1558 = vmatprep.subr.bf16.mxu0 %v3997_v22  ;;  %1601 = vmatprep.subr.bf16.mxu1 %v3999_v23 }
  0xe0   : > { %1559 = vmatpush1.bf16.msra.mxu0 %v4001_v24  ;;  %1602 = vmatpush1.bf16.msra.mxu1 %v4003_v25 }
  0xe1   : > { %1560 = vmatprep.subr.bf16.mxu0 %v4009_v26  ;;  %1603 = vmatprep.subr.bf16.mxu1 %v4011_v27 }
  0xe4   : > { %1561 = vmatpush1.bf16.msra.mxu0 %v4013_v28  ;;  %1604 = vmatpush1.bf16.msra.mxu1 %v4015_v29 }
  0xe5   : > { %1562 = vmatprep.subr.bf16.mxu0 %v4021_v30  ;;  %1605 = vmatprep.subr.bf16.mxu1 %v4023_v31 }
  0xe8   : > { %1563 = vmatpush1.bf16.msra.mxu0 %v4025_v32  ;;  %1606 = vmatpush1.bf16.msra.mxu1 %v4027_v33  ;;  %v824_v33 = vld [vmem:[#allocation11 + $0x10] sm:$0xff] }
  0xe9   : > { %1564 = vmatprep.subr.bf16.mxu0 %v4033_v36  ;;  %1607 = vmatprep.subr.bf16.mxu1 %v4035_v45  ;;  %v4057_v45 = vld [vmem:[#allocation9 + $0x104] ss:$16 sps:$4 sm:$0xff]   ;;  %v4063_v36 = vld [vmem:[#allocation9 + $0x108] ss:$16 sps:$4 sm:$0xff]  }
  0xea   : > { %5140 = vst [vmem:[#allocation46_spill] sm:$0xff] %v4057_v45  ;;  %5143 = vst [vmem:[#allocation49_spill] sm:$0xff] %v4063_v36 }
  0xec   : > { %1565 = vmatpush1.bf16.msra.mxu0 %v4039_v54  ;;  %1608 = vmatpush1.bf16.msra.mxu1 %v4041_v63  ;;  %v4059_v54 = vld [vmem:[#allocation9 + $0x10c] ss:$16 sps:$4 sm:$0xff]   ;;  %v4061_v63 = vld [vmem:[#allocation9 + $0x100] ss:$16 sps:$4 sm:$0xff]  }
  0xed   : > { %1566 = vmatprep.subr.bf16.mxu0 %v4045_v7  ;;  %1609 = vmatprep.subr.bf16.mxu1 %v4047_v8  ;;  %5141 = vst [vmem:[#allocation47_spill] sm:$0xff] %v4059_v54  ;;  %5142 = vst [vmem:[#allocation48_spill] sm:$0xff] %v4061_v63  ;;  %v4069_v8 = vld [vmem:[#allocation9 + $0x124] ss:$16 sps:$4 sm:$0xff]   ;;  %v4075_v7 = vld [vmem:[#allocation9 + $0x128] ss:$16 sps:$4 sm:$0xff]  }
  0xee   : > { %5144 = vst [vmem:[#allocation50_spill] sm:$0xff] %v4069_v8  ;;  %5147 = vst [vmem:[#allocation53_spill] sm:$0xff] %v4075_v7 }
  0xf0   : > { %1567 = vmatpush1.bf16.msra.mxu0 %v4049_v9  ;;  %1610 = vmatpush1.bf16.msra.mxu1 %v4051_v3  ;;  %v4071_v9 = vld [vmem:[#allocation9 + $0x12c] ss:$16 sps:$4 sm:$0xff]   ;;  %v4073_v3 = vld [vmem:[#allocation9 + $0x120] ss:$16 sps:$4 sm:$0xff]  }
  0xf1   : > { %1568 = vmatprep.subr.bf16.mxu0 %v4057_v45  ;;  %1611 = vmatprep.subr.bf16.mxu1 %v4059_v54  ;;  %5145 = vst [vmem:[#allocation51_spill] sm:$0xff] %v4071_v9  ;;  %5146 = vst [vmem:[#allocation52_spill] sm:$0xff] %v4073_v3  ;;  %v4081_v54 = vld [vmem:[#allocation9 + $0x144] ss:$16 sps:$4 sm:$0xff]   ;;  %v4087_v45 = vld [vmem:[#allocation9 + $0x148] ss:$16 sps:$4 sm:$0xff]  }
  0xf2   : > { %5148 = vst [vmem:[#allocation54_spill] sm:$0xff] %v4081_v54  ;;  %5151 = vst [vmem:[#allocation57_spill] sm:$0xff] %v4087_v45 }
  0xf4   : > { %1569 = vmatpush1.bf16.msra.mxu0 %v4061_v63  ;;  %1612 = vmatpush1.bf16.msra.mxu1 %v4063_v36  ;;  %v4083_v63 = vld [vmem:[#allocation9 + $0x14c] ss:$16 sps:$4 sm:$0xff]   ;;  %v4085_v36 = vld [vmem:[#allocation9 + $0x140] ss:$16 sps:$4 sm:$0xff]  }
  0xf5   : > { %1570 = vmatprep.subr.bf16.mxu0 %v4069_v8  ;;  %1613 = vmatprep.subr.bf16.mxu1 %v4071_v9  ;;  %5149 = vst [vmem:[#allocation55_spill] sm:$0xff] %v4083_v63  ;;  %5150 = vst [vmem:[#allocation56_spill] sm:$0xff] %v4085_v36  ;;  %v4093_v9 = vld [vmem:[#allocation9 + $0x164] ss:$16 sps:$4 sm:$0xff]   ;;  %v4099_v8 = vld [vmem:[#allocation9 + $0x168] ss:$16 sps:$4 sm:$0xff]  }
  0xf6   : > { %5152 = vst [vmem:[#allocation58_spill] sm:$0xff] %v4093_v9  ;;  %5155 = vst [vmem:[#allocation61_spill] sm:$0xff] %v4099_v8 }
  0xf8   : > { %1571 = vmatpush1.bf16.msra.mxu0 %v4073_v3  ;;  %1614 = vmatpush1.bf16.msra.mxu1 %v4075_v7  ;;  %v4095_v3 = vld [vmem:[#allocation9 + $0x16c] ss:$16 sps:$4 sm:$0xff]   ;;  %v4097_v7 = vld [vmem:[#allocation9 + $0x160] ss:$16 sps:$4 sm:$0xff]  }
  0xf9   : > { %1572 = vmatprep.subr.bf16.mxu0 %v4081_v54  ;;  %1615 = vmatprep.subr.bf16.mxu1 %v4083_v63  ;;  %5153 = vst [vmem:[#allocation59_spill] sm:$0xff] %v4095_v3  ;;  %5154 = vst [vmem:[#allocation60_spill] sm:$0xff] %v4097_v7  ;;  %v4105_v63 = vld [vmem:[#allocation9 + $0x184] ss:$16 sps:$4 sm:$0xff]   ;;  %v4111_v54 = vld [vmem:[#allocation9 + $0x188] ss:$16 sps:$4 sm:$0xff]  }
  0xfa   : > { %5156 = vst [vmem:[#allocation62_spill] sm:$0xff] %v4105_v63  ;;  %5159 = vst [vmem:[#allocation65_spill] sm:$0xff] %v4111_v54 }
  0xfc   : > { %1573 = vmatpush1.bf16.msra.mxu0 %v4085_v36  ;;  %1616 = vmatpush1.bf16.msra.mxu1 %v4087_v45  ;;  %v4107_v36 = vld [vmem:[#allocation9 + $0x18c] ss:$16 sps:$4 sm:$0xff]   ;;  %v4109_v45 = vld [vmem:[#allocation9 + $0x180] ss:$16 sps:$4 sm:$0xff]  }
  0xfd   : > { %1574 = vmatprep.subr.bf16.mxu0 %v4093_v9  ;;  %1617 = vmatprep.subr.bf16.mxu1 %v4095_v3  ;;  %5157 = vst [vmem:[#allocation63_spill] sm:$0xff] %v4107_v36  ;;  %5158 = vst [vmem:[#allocation64_spill] sm:$0xff] %v4109_v45  ;;  %v4117_v3 = vld [vmem:[#allocation9 + $0x1a4] ss:$16 sps:$4 sm:$0xff]   ;;  %v4123_v9 = vld [vmem:[#allocation9 + $0x1a8] ss:$16 sps:$4 sm:$0xff]  }
  0xfe   : > { %5160 = vst [vmem:[#allocation66_spill] sm:$0xff] %v4117_v3  ;;  %5163 = vst [vmem:[#allocation69_spill] sm:$0xff] %v4123_v9 }
 0x100   : > { %1575 = vmatpush1.bf16.msra.mxu0 %v4097_v7  ;;  %1618 = vmatpush1.bf16.msra.mxu1 %v4099_v8  ;;  %v4119_v7 = vld [vmem:[#allocation9 + $0x1ac] ss:$16 sps:$4 sm:$0xff]   ;;  %v4121_v8 = vld [vmem:[#allocation9 + $0x1a0] ss:$16 sps:$4 sm:$0xff]  }
 0x101   : > { %1576 = vmatprep.subr.bf16.mxu0 %v4105_v63  ;;  %1619 = vmatprep.subr.bf16.mxu1 %v4107_v36  ;;  %5161 = vst [vmem:[#allocation67_spill] sm:$0xff] %v4119_v7  ;;  %5162 = vst [vmem:[#allocation68_spill] sm:$0xff] %v4121_v8  ;;  %v4129_v36 = vld [vmem:[#allocation9 + $0x1c4] ss:$16 sps:$4 sm:$0xff]   ;;  %v4135_v63 = vld [vmem:[#allocation9 + $0x1c8] ss:$16 sps:$4 sm:$0xff]  }
 0x102   : > { %5164 = vst [vmem:[#allocation70_spill] sm:$0xff] %v4129_v36  ;;  %5167 = vst [vmem:[#allocation73_spill] sm:$0xff] %v4135_v63 }
 0x104   : > { %1577 = vmatpush1.bf16.msra.mxu0 %v4109_v45  ;;  %1620 = vmatpush1.bf16.msra.mxu1 %v4111_v54  ;;  %v4131_v45 = vld [vmem:[#allocation9 + $0x1cc] ss:$16 sps:$4 sm:$0xff]   ;;  %v4133_v54 = vld [vmem:[#allocation9 + $0x1c0] ss:$16 sps:$4 sm:$0xff]  }
 0x105   : > { %1578 = vmatprep.subr.bf16.mxu0 %v4117_v3  ;;  %1621 = vmatprep.subr.bf16.mxu1 %v4119_v7  ;;  %5165 = vst [vmem:[#allocation71_spill] sm:$0xff] %v4131_v45  ;;  %5166 = vst [vmem:[#allocation72_spill] sm:$0xff] %v4133_v54  ;;  %v4141_v7 = vld [vmem:[#allocation9 + $0x1e4] ss:$16 sps:$4 sm:$0xff]   ;;  %v4147_v3 = vld [vmem:[#allocation9 + $0x1e8] ss:$16 sps:$4 sm:$0xff]  }
 0x106   : > { %5168 = vst [vmem:[#allocation74_spill] sm:$0xff] %v4141_v7  ;;  %5171 = vst [vmem:[#allocation77_spill] sm:$0xff] %v4147_v3 }
 0x108   : > { %1579 = vmatpush1.bf16.msra.mxu0 %v4121_v8  ;;  %1622 = vmatpush1.bf16.msra.mxu1 %v4123_v9  ;;  %v4143_v8 = vld [vmem:[#allocation9 + $0x1ec] ss:$16 sps:$4 sm:$0xff]   ;;  %v4145_v9 = vld [vmem:[#allocation9 + $0x1e0] ss:$16 sps:$4 sm:$0xff]  }
 0x109   : > { %1580 = vmatprep.subr.bf16.mxu0 %v4129_v36  ;;  %1623 = vmatprep.subr.bf16.mxu1 %v4131_v45  ;;  %5169 = vst [vmem:[#allocation75_spill] sm:$0xff] %v4143_v8  ;;  %5170 = vst [vmem:[#allocation76_spill] sm:$0xff] %v4145_v9  ;;  %v825_v36 = vld [vmem:[#allocation11 + $0x18] sm:$0xff] }
 0x10c   : > { %1581 = vmatpush1.bf16.msra.mxu0 %v4133_v54  ;;  %1624 = vmatpush1.bf16.msra.mxu1 %v4135_v63  ;;  %v826_v54 = vpack.c.bf16 %v825_v36, %v824_v33  ;;  %v414_v63 = vlaneseq }
 0x10d   : > { %1582 = vmatprep.subr.bf16.mxu0 %v4141_v7  ;;  %1625 = vmatprep.subr.bf16.mxu1 %v4143_v8 }
 0x10e   : > { %1584 = vmatprep.mubr.bf16.mxu0 %v826_v54  ;;  %1627 = vmatprep.mubr.bf16.mxu1 %v826_v54  ;;  %v4155_v45 = vshrl.u32 %v414_v63, 7 }
 0x110   : > { %1583 = vmatpush1.bf16.msra.mxu0 %v4145_v9  ;;  %1626 = vmatpush1.bf16.msra.mxu1 %v4147_v3  ;;  %5172 = vst [vmem:[#allocation78_spill] sm:$0xff] %v4155_v45  ;;  %v5000_v32 = vsub.s32 2, %v4155_v45  ;;  %v5003_v7 = vsub.s32 3, %v4155_v45  ;;  %v5005_v8 = vsub.s32 0, %v4155_v45  ;;  %v412_v3 = vld [vmem:[%s4942_s3] sm:$0xf] }
 0x111   : > { %1690 = vmatprep.subr.bf16.mxu0 %v3853_v34  ;;  %1733 = vmatprep.subr.bf16.mxu1 %v3855_v35  ;;  %v5008_v33 = vsub.s32 1, %v4155_v45 }
 0x112   : > { %v4166_v34 = vrot.slane %v412_v3, %v5000_v32  ;;  %v4170_v35 = vrot.slane %v412_v3, %v5003_v7  ;;  %v4174_v36 = vrot.slane %v412_v3, %v5005_v8 }
 0x113   : > { %v4178_v63 = vrot.slane %v412_v3, %v5008_v33 }
 0x186   : > { %v652_v54 = vpop.f32.mrb[0].mxu0  ;;  %v725_v9 = vpop.f32.mrb[0].mxu1 }
 0x187   : > { %v654_v31 = vpop.f32.mrb[1].mxu0  ;;  %v726_v30 = vadd.f32 %v725_v9, %v4166_v34  ;;  %v727_v29 = vpop.f32.mrb[1].mxu1  ;;  %v653_v7 = vadd.f32 %v652_v54, %v4174_v36 }
 0x188   : > { %v656_v32 = vpop.f32.mrb[2].mxu0  ;;  %v728_v28 = vadd.f32 %v727_v29, %v4170_v35  ;;  %v729_v27 = vpop.f32.mrb[2].mxu1  ;;  %v655_v3 = vadd.f32 %v654_v31, %v4178_v63 }
 0x189   : > { %v657_v26 = vadd.f32 %v656_v32, %v4174_v36  ;;  %v658_v8 = vpop.f32.mrb[3].mxu0  ;;  %v730_v25 = vadd.f32 %v729_v27, %v4166_v34  ;;  %v731_v24 = vpop.f32.mrb[3].mxu1 }
 0x18a   : > { %v659_v33 = vadd.f32 %v658_v8, %v4178_v63  ;;  %v732_v45 = vadd.f32 %v731_v24, %v4170_v35 }
 0x18b   : > { %v4188_v9 = vpack.c.bf16 %v657_v26, %v653_v7  ;;  %v4190_v23 = vpack.c.bf16 %v730_v25, %v726_v30 }
 0x18c   : > { %v4192_v29 = vpack.c.bf16 %v659_v33, %v655_v3  ;;  %v4194_v22 = vpack.c.bf16 %v732_v45, %v728_v28 }
 0x18e   : > { %v662_v54 = vpop.f32.mrb[4].mxu0  ;;  %v735_v32 = vpop.f32.mrb[4].mxu1 }
 0x18f   : > { %v663_v21 = vadd.f32 %v662_v54, %v4174_v36  ;;  %v664_v27 = vpop.f32.mrb[5].mxu0  ;;  %v736_v20 = vadd.f32 %v735_v32, %v4166_v34  ;;  %v737_v31 = vpop.f32.mrb[5].mxu1 }
 0x190   : > { %v665_v8 = vadd.f32 %v664_v27, %v4178_v63  ;;  %v666_v19 = vpop.f32.mrb[6].mxu0  ;;  %v738_v24 = vadd.f32 %v737_v31, %v4170_v35  ;;  %v739_v26 = vpop.f32.mrb[6].mxu1 }
 0x191   : > { %v667_v25 = vadd.f32 %v666_v19, %v4174_v36  ;;  %v668_v30 = vpop.f32.mrb[7].mxu0  ;;  %v740_v28 = vadd.f32 %v739_v26, %v4166_v34  ;;  %v741_v45 = vpop.f32.mrb[7].mxu1 }
 0x192   : > { %v669_v7 = vadd.f32 %v668_v30, %v4178_v63  ;;  %v742_v33 = vadd.f32 %v741_v45, %v4170_v35 }
 0x193   : > { %v4204_v3 = vpack.c.bf16 %v667_v25, %v663_v21  ;;  %v4206_v54 = vpack.c.bf16 %v740_v28, %v736_v20 }
 0x194   : > { %v4208_v32 = vpack.c.bf16 %v669_v7, %v665_v8  ;;  %v4210_v27 = vpack.c.bf16 %v742_v33, %v738_v24 }
 0x195   : > { %5173 = vst [vmem:[#allocation79_spill] sm:$0xff] %v4204_v3  ;;  %5174 = vst [vmem:[#allocation80_spill] sm:$0xff] %v4206_v54 }
 0x196   : > { %5175 = vst [vmem:[#allocation81_spill] sm:$0xff] %v4208_v32  ;;  %5176 = vst [vmem:[#allocation82_spill] sm:$0xff] %v4210_v27  ;;  %v672_v31 = vpop.f32.mrb[8].mxu0  ;;  %v745_v18 = vpop.f32.mrb[8].mxu1 }
 0x197   : > { %v673_v19 = vadd.f32 %v672_v31, %v4174_v36  ;;  %v674_v17 = vpop.f32.mrb[9].mxu0  ;;  %v746_v26 = vadd.f32 %v745_v18, %v4166_v34  ;;  %v747_v16 = vpop.f32.mrb[9].mxu1 }
 0x198   : > { %v675_v30 = vadd.f32 %v674_v17, %v4178_v63  ;;  %v676_v15 = vpop.f32.mrb[10].mxu0  ;;  %v748_v21 = vadd.f32 %v747_v16, %v4170_v35  ;;  %v749_v25 = vpop.f32.mrb[10].mxu1 }
 0x199   : > { %v677_v20 = vadd.f32 %v676_v15, %v4174_v36  ;;  %v678_v8 = vpop.f32.mrb[11].mxu0  ;;  %v750_v24 = vadd.f32 %v749_v25, %v4166_v34  ;;  %v751_v28 = vpop.f32.mrb[11].mxu1 }
 0x19a   : > { %v679_v45 = vadd.f32 %v678_v8, %v4178_v63  ;;  %v752_v7 = vadd.f32 %v751_v28, %v4170_v35 }
 0x19b   : > { %v4220_v33 = vpack.c.bf16 %v677_v20, %v673_v19  ;;  %v4222_v18 = vpack.c.bf16 %v750_v24, %v746_v26 }
 0x19c   : > { %v4224_v31 = vpack.c.bf16 %v679_v45, %v675_v30  ;;  %v4226_v17 = vpack.c.bf16 %v752_v7, %v748_v21 }
 0x19e   : > { %5177 = vst [vmem:[#allocation83_spill] sm:$0xff] %v4226_v17  ;;  %v682_v16 = vpop.f32.mrb[12].mxu0  ;;  %v755_v27 = vpop.f32.mrb[12].mxu1 }
 0x19f   : > { %v683_v15 = vadd.f32 %v682_v16, %v4174_v36  ;;  %v684_v32 = vpop.f32.mrb[13].mxu0  ;;  %v756_v25 = vadd.f32 %v755_v27, %v4166_v34  ;;  %v757_v54 = vpop.f32.mrb[13].mxu1 }
 0x1a0   : > { %v685_v8 = vadd.f32 %v684_v32, %v4178_v63  ;;  %v686_v3 = vpop.f32.mrb[14].mxu0  ;;  %v758_v19 = vadd.f32 %v757_v54, %v4170_v35  ;;  %v759_v20 = vpop.f32.mrb[14].mxu1  ;;  %v837_v54 = vunpack.c.l.bf16 %v4188_v9 }
 0x1a1   : > { %v687_v26 = vadd.f32 %v686_v3, %v4174_v36  ;;  %v688_v30 = vpop.f32.mrb[15].mxu0  ;;  %v760_v21 = vadd.f32 %v759_v20, %v4166_v34  ;;  %v761_v24 = vpop.f32.mrb[15].mxu1  ;;  %v839_v36 = vunpack.c.l.bf16 %v4190_v23  ;;  %v838_v34 = vunpack.c.l.bf16 %v4192_v29 }
 0x1a2   : > { %v689_v28 = vadd.f32 %v688_v30, %v4178_v63  ;;  %v762_v45 = vadd.f32 %v761_v24, %v4170_v35  ;;  %v840_v63 = vunpack.c.l.bf16 %v4194_v22 }
 0x1a3   : > { %v4236_v7 = vpack.c.bf16 %v687_v26, %v683_v15  ;;  %v4238_v27 = vpack.c.bf16 %v760_v21, %v756_v25  ;;  %v841_v25 = vunpack.c.h.bf16 %v4188_v9 }
 0x1a4   : > { %v4240_v16 = vpack.c.bf16 %v689_v28, %v685_v8  ;;  %v4242_v32 = vpack.c.bf16 %v762_v45, %v758_v19  ;;  %v843_v8 = vunpack.c.h.bf16 %v4190_v23  ;;  %v842_v28 = vunpack.c.h.bf16 %v4192_v29 }
 0x1a5   : > { %5178 = vst [vmem:[#allocation84_spill] sm:$0xff] %v4236_v7  ;;  %5179 = vst [vmem:[#allocation85_spill] sm:$0xff] %v4238_v27  ;;  %v844_v45 = vunpack.c.h.bf16 %v4194_v22 }
 0x1a6   : > { %5180 = vst [vmem:[#allocation86_spill] sm:$0xff] %v4240_v16  ;;  %5181 = vst [vmem:[#allocation87_spill] sm:$0xff] %v4242_v32  ;;  %v1071_v3 = vpop.f32.mrb[16].mxu0  ;;  %v1114_v17 = vpop.f32.mrb[16].mxu1 }
 0x1a7   : > { %v1123_v20 = vadd.f32 %v1071_v3, %v837_v54  ;;  %v1125_v35 = vadd.f32 %v1114_v17, %v839_v36  ;;  %v1073_v15 = vpop.f32.mrb[17].mxu0  ;;  %v1116_v26 = vpop.f32.mrb[17].mxu1 }
 0x1a8   : > { %v1124_v19 = vadd.f32 %v1073_v15, %v838_v34  ;;  %v1126_v30 = vadd.f32 %v1116_v26, %v840_v63  ;;  %v1075_v21 = vpop.f32.mrb[18].mxu0  ;;  %v1118_v24 = vpop.f32.mrb[18].mxu1 }
 0x1a9   : > { %v1131_v32 = vmul.f32 0.5, %v1123_v20  ;;  %v1127_v16 = vadd.f32 %v1075_v21, %v841_v25  ;;  %v1129_v27 = vadd.f32 %v1118_v24, %v843_v8  ;;  %v1077_v7 = vpop.f32.mrb[19].mxu0  ;;  %v1120_v54 = vpop.f32.mrb[19].mxu1  ;;  %v821_v8 = vld [vmem:[#allocation12] sm:$0xff] }
 0x1aa   : > { %v1139_v17 = vmul.f32 0.5, %v1124_v19  ;;  %v1128_v36 = vadd.f32 %v1077_v7, %v842_v28  ;;  %v1130_v3 = vadd.f32 %v1120_v54, %v844_v45  ;;  %v1149_v22 = vmul.f32 0.5, %v1126_v30  ;;  %v822_v45 = vld [vmem:[#allocation12 + $0x8] sm:$0xff] }
 0x1ab   : > { %3091 = vtanh.f32 %v1131_v32  ;;  %v1132_v9 = vmul.f32 0.5, %v1127_v16 }
 0x1ac   : > { %3093 = vtanh.f32 %v1139_v17  ;;  %v1140_v23 = vmul.f32 0.5, %v1128_v36  ;;  %v1150_v15 = vmul.f32 0.5, %v1130_v3 }
 0x1ad   : > { %3095 = vtanh.f32 %v1132_v9 }
 0x1ae   : > { %3097 = vtanh.f32 %v1125_v35 }
 0x1af   : > { %3099 = vtanh.f32 %v1140_v23 }
 0x1b0   : > { %3101 = vtanh.f32 %v1129_v27 }
 0x1b1   : > { %3103 = vtanh.f32 %v1149_v22 }
 0x1b2   : > { %3105 = vtanh.f32 %v1150_v15 }
 0x1b5   : > { %v3092_v34 = vpop.eup %3091 }
 0x1b6   : > { %v3094_v29 = vpop.eup %3093  ;;  %v1135_v63 = vmul.f32 0.5, %v3092_v34 }
 0x1b7   : > { %v1143_v20 = vmul.f32 0.5, %v3094_v29  ;;  %v3096_v26 = vpop.eup %3095 }
 0x1b8   : > { %v1137_v25 = vadd.f32 0.5, %v1135_v63  ;;  %v3098_v19 = vpop.eup %3097  ;;  %v1136_v21 = vmul.f32 0.5, %v3096_v26 }
 0x1b9   : > { %v1145_v7 = vadd.f32 0.5, %v1143_v20  ;;  %v3100_v32 = vpop.eup %3099 }
 0x1ba   : > { %v1159_v16 = vmul.f32 %v3098_v19, %v1137_v25  ;;  %v1138_v28 = vadd.f32 0.5, %v1136_v21  ;;  %v1144_v35 = vmul.f32 0.5, %v3100_v32  ;;  %v3102_v27 = vpop.eup %3101  ;;  %v5182_v19 = vmov 0   ;;  %v5219_v21 = vld [vmem:[#allocation55_spill] sm:$0xff]  ;;  %v5220_v32 = vld [vmem:[#allocation56_spill] sm:$0xff] }
 0x1bb   : > { %v1157_v24 = vmul.f32 %v1145_v7, %v821_v8  ;;  %v3104_v9 = vpop.eup %3103  ;;  %v5218_v7 = vld [vmem:[#allocation54_spill] sm:$0xff] }
 0x1bc   : > { %v1146_v30 = vadd.f32 0.5, %v1144_v35  ;;  %v1160_v17 = vmul.f32 %v3102_v27, %v1138_v28  ;;  %v3106_v23 = vpop.eup %3105  ;;  %v1153_v34 = vmul.f32 0.5, %v3104_v9  ;;  %v5223_v28 = vld [vmem:[#allocation59_spill] sm:$0xff]  ;;  %v5224_v35 = vld [vmem:[#allocation60_spill] sm:$0xff]  ;;  %v5225_v27 = vld [vmem:[#allocation61_spill] sm:$0xff] }
 0x1bd   : > { %v4252_v54 = vadd.f32 %v1159_v16, %v1157_v24  ;;  %v1154_v29 = vmul.f32 0.5, %v3106_v23  ;;  %v5221_v16 = vld [vmem:[#allocation57_spill] sm:$0xff]  ;;  %v5222_v24 = vld [vmem:[#allocation58_spill] sm:$0xff]  ;;  %v5231_v23 = vld [vmem:[#allocation67_spill] sm:$0xff] }
 0x1be   : > { %v1158_v36 = vmul.f32 %v1146_v30, %v822_v45  ;;  %v1155_v22 = vadd.f32 0.5, %v1153_v34  ;;  %v5226_v45 = vld [vmem:[#allocation62_spill] sm:$0xff]  ;;  %v5227_v30 = vld [vmem:[#allocation63_spill] sm:$0xff]  ;;  %v5232_v34 = vld [vmem:[#allocation68_spill] sm:$0xff] }
 0x1bf   : > { %3107 = vtanh.f32 %v4252_v54  ;;  %v1156_v20 = vadd.f32 0.5, %v1154_v29  ;;  %v5230_v9 = vld [vmem:[#allocation66_spill] sm:$0xff]  ;;  %v5233_v29 = vld [vmem:[#allocation69_spill] sm:$0xff] }
 0x1c0   : > { %v4255_v3 = vadd.f32 %v1160_v17, %v1158_v36  ;;  %v5228_v17 = vld [vmem:[#allocation64_spill] sm:$0xff]  ;;  %v5229_v36 = vld [vmem:[#allocation65_spill] sm:$0xff] }
 0x1c2   : > { %3109 = vtanh.f32 %v4255_v3 }
 0x1c9   : > { %v3108_v63 = vpop.eup %3107 }
 0x1ca   : > { %v1165_v26 = vmul.f32 %v3108_v63, %v1155_v22  ;;  %v5234_v63 = vld [vmem:[#allocation70_spill] sm:$0xff]  ;;  %v5235_v22 = vld [vmem:[#allocation71_spill] sm:$0xff] }
 0x1cc   : > { %v3110_v15 = vpop.eup %3109 }
 0x1cd   : > { %v1166_v25 = vmul.f32 %v3110_v15, %v1156_v20  ;;  %v5236_v20 = vld [vmem:[#allocation72_spill] sm:$0xff]  ;;  %v5237_v15 = vld [vmem:[#allocation73_spill] sm:$0xff] }
 0x1cf   : > { %v1167_v8 = vpack.c.bf16 %v1166_v25, %v1165_v26  ;;  %v5238_v26 = vld [vmem:[#allocation74_spill] sm:$0xff]  ;;  %v5239_v25 = vld [vmem:[#allocation75_spill] sm:$0xff] }
 0x1d1   : > { %1585 = vmatmul.mubr.bf16.vlgmr.msra.gmra.mrb[20].mxu0 %v1167_v8  ;;  %1628 = vmatmul.mubr.bf16.vlgmr.msra.gmra.mrb[20].mxu1 %v1167_v8 }
 0x1d2   : > { %1691 = vmatpush1.bf16.msra.mxu0 %v3858_v37  ;;  %1734 = vmatpush1.bf16.msra.mxu1 %v3860_v38  ;;  %v5183_v37 = vld [vmem:[#allocation19_spill] sm:$0xff]  ;;  %v5184_v38 = vld [vmem:[#allocation20_spill] sm:$0xff] }
 0x1d3   : > { %1692 = vmatprep.subr.bf16.mxu0 %v3864_v39  ;;  %1735 = vmatprep.subr.bf16.mxu1 %v3866_v40  ;;  %v5185_v39 = vld [vmem:[#allocation21_spill] sm:$0xff]  ;;  %v5186_v40 = vld [vmem:[#allocation22_spill] sm:$0xff] }
 0x1d4   : > { %1722 = vmatprep.mubr.bf16.mxu0 %v5182_v19  ;;  %1765 = vmatprep.mubr.bf16.mxu1 %v5182_v19 }
 0x1d6   : > { %1693 = vmatpush1.bf16.msra.mxu0 %v3868_v41  ;;  %1736 = vmatpush1.bf16.msra.mxu1 %v3872_v42  ;;  %v5187_v41 = vld [vmem:[#allocation23_spill] sm:$0xff]  ;;  %v5188_v42 = vld [vmem:[#allocation24_spill] sm:$0xff] }
 0x1d7   : > { %1694 = vmatprep.subr.bf16.mxu0 %v3876_v43  ;;  %1737 = vmatprep.subr.bf16.mxu1 %v3878_v44  ;;  %v5189_v43 = vld [vmem:[#allocation25_spill] sm:$0xff]  ;;  %v5190_v44 = vld [vmem:[#allocation26_spill] sm:$0xff] }
 0x1da   : > { %1695 = vmatpush1.bf16.msra.mxu0 %v3883_v46  ;;  %1738 = vmatpush1.bf16.msra.mxu1 %v3885_v47  ;;  %v5191_v46 = vld [vmem:[#allocation27_spill] sm:$0xff]  ;;  %v5192_v47 = vld [vmem:[#allocation28_spill] sm:$0xff] }
 0x1db   : > { %1696 = vmatprep.subr.bf16.mxu0 %v3889_v48  ;;  %1739 = vmatprep.subr.bf16.mxu1 %v3893_v49  ;;  %v5193_v48 = vld [vmem:[#allocation29_spill] sm:$0xff]  ;;  %v5194_v49 = vld [vmem:[#allocation30_spill] sm:$0xff] }
 0x1de   : > { %1697 = vmatpush1.bf16.msra.mxu0 %v3895_v50  ;;  %1740 = vmatpush1.bf16.msra.mxu1 %v3897_v51  ;;  %v5195_v50 = vld [vmem:[#allocation31_spill] sm:$0xff]  ;;  %v5196_v51 = vld [vmem:[#allocation32_spill] sm:$0xff] }
 0x1df   : > { %1698 = vmatprep.subr.bf16.mxu0 %v3901_v52  ;;  %1741 = vmatprep.subr.bf16.mxu1 %v3905_v53  ;;  %v5197_v52 = vld [vmem:[#allocation33_spill] sm:$0xff]  ;;  %v5198_v53 = vld [vmem:[#allocation34_spill] sm:$0xff] }
 0x1e2   : > { %1699 = vmatpush1.bf16.msra.mxu0 %v3910_v55  ;;  %1742 = vmatpush1.bf16.msra.mxu1 %v3912_v56  ;;  %v5199_v55 = vld [vmem:[#allocation35_spill] sm:$0xff]  ;;  %v5200_v56 = vld [vmem:[#allocation36_spill] sm:$0xff] }
 0x1e3   : > { %1700 = vmatprep.subr.bf16.mxu0 %v3914_v57  ;;  %1743 = vmatprep.subr.bf16.mxu1 %v3916_v58  ;;  %v5201_v57 = vld [vmem:[#allocation37_spill] sm:$0xff]  ;;  %v5202_v58 = vld [vmem:[#allocation38_spill] sm:$0xff] }
 0x1e6   : > { %1701 = vmatpush1.bf16.msra.mxu0 %v3922_v59  ;;  %1744 = vmatpush1.bf16.msra.mxu1 %v3924_v60  ;;  %v5203_v59 = vld [vmem:[#allocation39_spill] sm:$0xff]  ;;  %v5204_v60 = vld [vmem:[#allocation40_spill] sm:$0xff] }
 0x1e7   : > { %1702 = vmatprep.subr.bf16.mxu0 %v3926_v61  ;;  %1745 = vmatprep.subr.bf16.mxu1 %v3928_v62  ;;  %v5205_v61 = vld [vmem:[#allocation41_spill] sm:$0xff]  ;;  %v5206_v62 = vld [vmem:[#allocation42_spill] sm:$0xff] }
 0x1ea   : > { %1703 = vmatpush1.bf16.msra.mxu0 %v3937_v0  ;;  %1746 = vmatpush1.bf16.msra.mxu1 %v3939_v1  ;;  %v5207_v0 = vld [vmem:[#allocation43_spill] sm:$0xff]  ;;  %v5208_v1 = vld [vmem:[#allocation44_spill] sm:$0xff] }
 0x1eb   : > { %1704 = vmatprep.subr.bf16.mxu0 %v3941_v2  ;;  %1747 = vmatprep.subr.bf16.mxu1 %v3943_v4  ;;  %v5209_v2 = vld [vmem:[#allocation45_spill] sm:$0xff]  ;;  %v5210_v4 = vld [vmem:[#allocation46_spill] sm:$0xff] }
 0x1ee   : > { %1705 = vmatpush1.bf16.msra.mxu0 %v3949_v5  ;;  %1748 = vmatpush1.bf16.msra.mxu1 %v3951_v6  ;;  %v5211_v5 = vld [vmem:[#allocation47_spill] sm:$0xff]  ;;  %v5212_v6 = vld [vmem:[#allocation48_spill] sm:$0xff] }
 0x1ef   : > { %1821 = vmatprep.subr.bf16.mxu0 %v3961_v10  ;;  %1864 = vmatprep.subr.bf16.mxu1 %v3963_v11  ;;  %v5213_v10 = vld [vmem:[#allocation49_spill] sm:$0xff]  ;;  %v5214_v11 = vld [vmem:[#allocation50_spill] sm:$0xff] }
 0x1f1   : > { %1723 = vmatmul.mubr.bf16.vlgmr.msra.gmra.mrb[24].mxu0 %v1167_v8  ;;  %1766 = vmatmul.mubr.bf16.vlgmr.msra.gmra.mrb[24].mxu1 %v1167_v8  ;;  %v5240_v8 = vld [vmem:[#allocation76_spill] sm:$0xff] }
 0x1f2   : > { %1822 = vmatpush1.bf16.msra.mxu0 %v3965_v12  ;;  %1865 = vmatpush1.bf16.msra.mxu1 %v3967_v13  ;;  %v5215_v12 = vld [vmem:[#allocation51_spill] sm:$0xff]  ;;  %v5216_v13 = vld [vmem:[#allocation52_spill] sm:$0xff] }
 0x1f3   : > { %1823 = vmatprep.subr.bf16.mxu0 %v3973_v14  ;;  %1866 = vmatprep.subr.bf16.mxu1 %v5183_v37  ;;  %v5217_v14 = vld [vmem:[#allocation53_spill] sm:$0xff] }
 0x1f4   : > { %v5241_v37 = vld [vmem:[#allocation77_spill] sm:$0xff] }
 0x1f6   : > { %1824 = vmatpush1.bf16.msra.mxu0 %v5184_v38  ;;  %1867 = vmatpush1.bf16.msra.mxu1 %v5185_v39  ;;  %v4354_v38 = vld [vmem:[#allocation8 + $0x4] ss:$16 sps:$4 sm:$0xff]   ;;  %v4357_v39 = vld [vmem:[#allocation8 + $0xc] ss:$16 sps:$4 sm:$0xff]  }
 0x1f7   : > { %1825 = vmatprep.subr.bf16.mxu0 %v5186_v40  ;;  %1868 = vmatprep.subr.bf16.mxu1 %v5187_v41  ;;  %v796_v40 = vld [vmem:[%s4944_s5] sm:$0xf]  ;;  %v5242_v41 = vld [vmem:[#allocation78_spill] sm:$0xff] }
 0x1fa   : > { %1826 = vmatpush1.bf16.msra.mxu0 %v5188_v42  ;;  %1869 = vmatpush1.bf16.msra.mxu1 %v5189_v43  ;;  %v5243_v42 = vsub.s32 0, %v5242_v41 }
 0x1fb   : > { %1827 = vmatprep.subr.bf16.mxu0 %v5190_v44  ;;  %1870 = vmatprep.subr.bf16.mxu1 %v5191_v46  ;;  %v5245_v44 = vsub.s32 1, %v5242_v41 }
 0x1fc   : > { %v4365_v43 = vrot.slane %v796_v40, %v5243_v42  ;;  %v5252_v42 = vld [vmem:[#allocation80_spill] sm:$0xff] }
 0x1fd   : > { %v4369_v46 = vrot.slane %v796_v40, %v5245_v44  ;;  %v1684_v44 = vunpack.c.l.bf16 %v5252_v42 }
 0x1fe   : > { %1828 = vmatpush1.bf16.msra.mxu0 %v5192_v47  ;;  %1871 = vmatpush1.bf16.msra.mxu1 %v5193_v48  ;;  %5244 = vst [vmem:[#allocation19_spill] sm:$0xff] %v4365_v43 }
 0x1ff   : > { %1829 = vmatprep.subr.bf16.mxu0 %v5194_v49  ;;  %1872 = vmatprep.subr.bf16.mxu1 %v5195_v50  ;;  %5246 = vst [vmem:[#allocation20_spill] sm:$0xff] %v4369_v46  ;;  %v5247_v50 = vsub.s32 2, %v5242_v41 }
 0x202   : > { %1830 = vmatpush1.bf16.msra.mxu0 %v5196_v51  ;;  %1873 = vmatpush1.bf16.msra.mxu1 %v5197_v52  ;;  %v4374_v51 = vrot.slane %v796_v40, %v5247_v50 }
 0x203   : > { %1831 = vmatprep.subr.bf16.mxu0 %v5198_v53  ;;  %1874 = vmatprep.subr.bf16.mxu1 %v5199_v55 }
 0x204   : > { %5248 = vst [vmem:[#allocation21_spill] sm:$0xff] %v4374_v51 }
 0x206   : > { %1832 = vmatpush1.bf16.msra.mxu0 %v5200_v56  ;;  %1875 = vmatpush1.bf16.msra.mxu1 %v5201_v57 }
 0x207   : > { %1833 = vmatprep.subr.bf16.mxu0 %v5202_v58  ;;  %1876 = vmatprep.subr.bf16.mxu1 %v5203_v59 }
 0x20a   : > { %1834 = vmatpush1.bf16.msra.mxu0 %v5204_v60  ;;  %1877 = vmatpush1.bf16.msra.mxu1 %v5205_v61 }
 0x20b   : > { %1835 = vmatprep.subr.bf16.mxu0 %v5206_v62  ;;  %1878 = vmatprep.subr.bf16.mxu1 %v5207_v0 }
 0x20e   : > { %1836 = vmatpush1.bf16.msra.mxu0 %v5208_v1  ;;  %1879 = vmatpush1.bf16.msra.mxu1 %v5209_v2 }
 0x20f   : > { %1837 = vmatprep.subr.bf16.mxu0 %v5210_v4  ;;  %1880 = vmatprep.subr.bf16.mxu1 %v5211_v5  ;;  %v5249_v5 = vsub.s32 3, %v5242_v41 }
 0x212   : > { %1838 = vmatpush1.bf16.msra.mxu0 %v5212_v6  ;;  %1881 = vmatpush1.bf16.msra.mxu1 %v5213_v10  ;;  %v4382_v6 = vrot.slane %v796_v40, %v5249_v5  ;;  %v5251_v40 = vld [vmem:[#allocation79_spill] sm:$0xff] }
 0x213   : > { %1839 = vmatprep.subr.bf16.mxu0 %v5214_v11  ;;  %1882 = vmatprep.subr.bf16.mxu1 %v5215_v12  ;;  %v1682_v41 = vunpack.c.l.bf16 %v5251_v40 }
 0x214   : > { %5250 = vst [vmem:[#allocation22_spill] sm:$0xff] %v4382_v6 }
 0x216   : > { %1840 = vmatpush1.bf16.msra.mxu0 %v5216_v13  ;;  %1883 = vmatpush1.bf16.msra.mxu1 %v5217_v14 }
 0x217   : > { %1841 = vmatprep.subr.bf16.mxu0 %v5218_v7  ;;  %1884 = vmatprep.subr.bf16.mxu1 %v5219_v21 }
 0x21a   : > { %1842 = vmatpush1.bf16.msra.mxu0 %v5220_v32  ;;  %1885 = vmatpush1.bf16.msra.mxu1 %v5221_v16 }
 0x21b   : > { %1843 = vmatprep.subr.bf16.mxu0 %v5222_v24  ;;  %1886 = vmatprep.subr.bf16.mxu1 %v5223_v28 }
 0x21e   : > { %1844 = vmatpush1.bf16.msra.mxu0 %v5224_v35  ;;  %1887 = vmatpush1.bf16.msra.mxu1 %v5225_v27  ;;  %v828_v35 = vld [vmem:[#allocation12 + $0x10] sm:$0xff] }
 0x21f   : > { %1845 = vmatprep.subr.bf16.mxu0 %v5226_v45  ;;  %1888 = vmatprep.subr.bf16.mxu1 %v5227_v30 }
 0x222   : > { %1846 = vmatpush1.bf16.msra.mxu0 %v5228_v17  ;;  %1889 = vmatpush1.bf16.msra.mxu1 %v5229_v36 }
 0x223   : > { %1847 = vmatprep.subr.bf16.mxu0 %v5230_v9  ;;  %1890 = vmatprep.subr.bf16.mxu1 %v5231_v23 }
 0x226   : > { %1848 = vmatpush1.bf16.msra.mxu0 %v5232_v34  ;;  %1891 = vmatpush1.bf16.msra.mxu1 %v5233_v29 }
 0x227   : > { %1849 = vmatprep.subr.bf16.mxu0 %v5234_v63  ;;  %1892 = vmatprep.subr.bf16.mxu1 %v5235_v22  ;;  %v829_v63 = vld [vmem:[#allocation12 + $0x18] sm:$0xff] }
 0x22a   : > { %1850 = vmatpush1.bf16.msra.mxu0 %v5236_v20  ;;  %1893 = vmatpush1.bf16.msra.mxu1 %v5237_v15 }
 0x22b   : > { %1851 = vmatprep.subr.bf16.mxu0 %v5238_v26  ;;  %1894 = vmatprep.subr.bf16.mxu1 %v5239_v25 }
 0x22e   : > { %1852 = vmatpush1.bf16.msra.mxu0 %v5240_v8  ;;  %1895 = vmatpush1.bf16.msra.mxu1 %v5241_v37 }
 0x22f   : > { %1959 = vmatprep.subr.bf16.mxu0 %v4354_v38  ;;  %2002 = vmatprep.subr.bf16.mxu1 %v4357_v39 }
 0x2a4   : > { %v1586_v47 = vpop.f32.mrb[20].mxu0  ;;  %v1629_v48 = vpop.f32.mrb[20].mxu1 }
 0x2a5   : > { %v1587_v49 = vadd.f32 %v1586_v47, %v4365_v43  ;;  %v1588_v52 = vpop.f32.mrb[21].mxu0  ;;  %v1631_v53 = vpop.f32.mrb[21].mxu1  ;;  %v1630_v1 = vadd.f32 %v1629_v48, %v4374_v51 }
 0x2a6   : > { %v1589_v55 = vadd.f32 %v1588_v52, %v4369_v46  ;;  %v1590_v56 = vpop.f32.mrb[22].mxu0  ;;  %v1633_v57 = vpop.f32.mrb[22].mxu1  ;;  %v1632_v11 = vadd.f32 %v1631_v53, %v4382_v6  ;;  %v5254_v52 = vld [vmem:[#allocation82_spill] sm:$0xff] }
 0x2a7   : > { %v1638_v58 = vmul.f32 0.5, %v1587_v49  ;;  %v1591_v59 = vadd.f32 %v1590_v56, %v4365_v43  ;;  %v1592_v60 = vpop.f32.mrb[23].mxu0  ;;  %v1635_v61 = vpop.f32.mrb[23].mxu1  ;;  %v1634_v10 = vadd.f32 %v1633_v57, %v4374_v51  ;;  %v5253_v49 = vld [vmem:[#allocation81_spill] sm:$0xff]  ;;  %v1685_v53 = vunpack.c.l.bf16 %v5254_v52 }
 0x2a8   : > { %v1646_v62 = vmul.f32 0.5, %v1589_v55  ;;  %v1593_v0 = vadd.f32 %v1592_v60, %v4369_v46  ;;  %v1636_v12 = vadd.f32 %v1635_v61, %v4382_v6  ;;  %v1656_v21 = vmul.f32 0.5, %v1632_v11 }
 0x2a9   : > { %3111 = vtanh.f32 %v1638_v58  ;;  %v1639_v2 = vmul.f32 0.5, %v1591_v59  ;;  %v1683_v50 = vunpack.c.l.bf16 %v5253_v49  ;;  %v1686_v55 = vunpack.c.h.bf16 %v5251_v40 }
 0x2aa   : > { %3113 = vtanh.f32 %v1646_v62  ;;  %v1647_v4 = vmul.f32 0.5, %v1593_v0  ;;  %v1657_v16 = vmul.f32 0.5, %v1636_v12  ;;  %v1688_v56 = vunpack.c.h.bf16 %v5252_v42 }
 0x2ab   : > { %3115 = vtanh.f32 %v1639_v2  ;;  %v1687_v61 = vunpack.c.h.bf16 %v5253_v49  ;;  %v1689_v62 = vunpack.c.h.bf16 %v5254_v52 }
 0x2ac   : > { %3117 = vtanh.f32 %v1630_v1 }
 0x2ad   : > { %3119 = vtanh.f32 %v1647_v4 }
 0x2ae   : > { %3121 = vtanh.f32 %v1634_v10 }
 0x2af   : > { %3123 = vtanh.f32 %v1656_v21 }
 0x2b0   : > { %3125 = vtanh.f32 %v1657_v16 }
 0x2b3   : > { %v3112_v13 = vpop.eup %3111 }
 0x2b4   : > { %v3114_v14 = vpop.eup %3113  ;;  %v1642_v7 = vmul.f32 0.5, %v3112_v13 }
 0x2b5   : > { %v1650_v32 = vmul.f32 0.5, %v3114_v14  ;;  %v3116_v24 = vpop.eup %3115 }
 0x2b6   : > { %v1644_v28 = vadd.f32 0.5, %v1642_v7  ;;  %v3118_v27 = vpop.eup %3117  ;;  %v1643_v30 = vmul.f32 0.5, %v3116_v24 }
 0x2b7   : > { %v1652_v45 = vadd.f32 0.5, %v1650_v32  ;;  %v3120_v17 = vpop.eup %3119 }
 0x2b8   : > { %v1666_v36 = vmul.f32 %v3118_v27, %v1644_v28  ;;  %v1645_v23 = vadd.f32 0.5, %v1643_v30  ;;  %v1651_v34 = vmul.f32 0.5, %v3120_v17  ;;  %v3122_v29 = vpop.eup %3121 }
 0x2b9   : > { %v1664_v9 = vmul.f32 %v1652_v45, %v828_v35  ;;  %v3124_v8 = vpop.eup %3123 }
 0x2ba   : > { %v1653_v20 = vadd.f32 0.5, %v1651_v34  ;;  %v1667_v15 = vmul.f32 %v3122_v29, %v1645_v23  ;;  %v3126_v37 = vpop.eup %3125  ;;  %v1660_v0 = vmul.f32 0.5, %v3124_v8 }
 0x2bb   : > { %v4387_v22 = vadd.f32 %v1666_v36, %v1664_v9  ;;  %v1661_v1 = vmul.f32 0.5, %v3126_v37 }
 0x2bc   : > { %v1665_v26 = vmul.f32 %v1653_v20, %v829_v63  ;;  %v1662_v35 = vadd.f32 0.5, %v1660_v0 }
 0x2bd   : > { %3127 = vtanh.f32 %v4387_v22  ;;  %v1663_v27 = vadd.f32 0.5, %v1661_v1 }
 0x2be   : > { %v4390_v25 = vadd.f32 %v1667_v15, %v1665_v26 }
 0x2c0   : > { %3129 = vtanh.f32 %v4390_v25 }
 0x2c4   : > { %v1724_v47 = vpop.f32.mrb[24].mxu0  ;;  %v1767_v48 = vpop.f32.mrb[24].mxu1 }
 0x2c5   : > { %v1776_v57 = vadd.f32 %v1724_v47, %v1682_v41  ;;  %v1778_v58 = vadd.f32 %v1767_v48, %v1684_v44  ;;  %v1726_v59 = vpop.f32.mrb[25].mxu0  ;;  %v1769_v60 = vpop.f32.mrb[25].mxu1 }
 0x2c6   : > { %v1777_v2 = vadd.f32 %v1726_v59, %v1683_v50  ;;  %v1779_v4 = vadd.f32 %v1769_v60, %v1685_v53  ;;  %v1728_v5 = vpop.f32.mrb[26].mxu0  ;;  %v1771_v10 = vpop.f32.mrb[26].mxu1 }
 0x2c7   : > { %v1784_v11 = vmul.f32 0.5, %v1776_v57  ;;  %v1780_v12 = vadd.f32 %v1728_v5, %v1686_v55  ;;  %v1782_v13 = vadd.f32 %v1771_v10, %v1688_v56  ;;  %v1730_v14 = vpop.f32.mrb[27].mxu0  ;;  %v1773_v7 = vpop.f32.mrb[27].mxu1  ;;  %v4416_v10 = vld [vmem:[#allocation8 + $0x8] ss:$16 sps:$4 sm:$0xff]  }
 0x2c8   : > { %v1792_v21 = vmul.f32 0.5, %v1777_v2  ;;  %v1781_v32 = vadd.f32 %v1730_v14, %v1687_v61  ;;  %v1783_v16 = vadd.f32 %v1773_v7, %v1689_v62  ;;  %v3128_v24 = vpop.eup %3127  ;;  %v1802_v63 = vmul.f32 0.5, %v1779_v4  ;;  %v4430_v14 = vld [vmem:[#allocation8 + $0x28] ss:$16 sps:$4 sm:$0xff]   ;;  %v4433_v7 = vld [vmem:[#allocation8 + $0x44] ss:$16 sps:$4 sm:$0xff]  }
 0x2c9   : > { %3131 = vtanh.f32 %v1784_v11  ;;  %v1785_v28 = vmul.f32 0.5, %v1780_v12  ;;  %v1672_v17 = vmul.f32 %v3128_v24, %v1662_v35  ;;  %v4419_v11 = vld [vmem:[#allocation8 + $0x24] ss:$16 sps:$4 sm:$0xff]   ;;  %v4422_v12 = vld [vmem:[#allocation8 + $0x2c] ss:$16 sps:$4 sm:$0xff]  }
 0x2ca   : > { %3133 = vtanh.f32 %v1792_v21  ;;  %v1793_v45 = vmul.f32 0.5, %v1781_v32  ;;  %v3130_v30 = vpop.eup %3129  ;;  %v1803_v15 = vmul.f32 0.5, %v1783_v16  ;;  %v4436_v21 = vld [vmem:[#allocation8 + $0x4c] ss:$16 sps:$4 sm:$0xff]   ;;  %v4439_v32 = vld [vmem:[#allocation8 + $0x40] ss:$16 sps:$4 sm:$0xff]  }
 0x2cb   : > { %3135 = vtanh.f32 %v1785_v28  ;;  %v1673_v36 = vmul.f32 %v3130_v30, %v1663_v27  ;;  %v4442_v16 = vld [vmem:[#allocation8 + $0x48] ss:$16 sps:$4 sm:$0xff]   ;;  %v4445_v24 = vld [vmem:[#allocation8 + $0x64] ss:$16 sps:$4 sm:$0xff]   ;;  %v4448_v28 = vld [vmem:[#allocation8 + $0x6c] ss:$16 sps:$4 sm:$0xff]  }
 0x2cc   : > { %3137 = vtanh.f32 %v1778_v58  ;;  %v4451_v35 = vld [vmem:[#allocation8 + $0x60] ss:$16 sps:$4 sm:$0xff]   ;;  %v4454_v27 = vld [vmem:[#allocation8 + $0x68] ss:$16 sps:$4 sm:$0xff]   ;;  %v4460_v30 = vld [vmem:[#allocation8 + $0x8c] ss:$16 sps:$4 sm:$0xff]  }
 0x2cd   : > { %3139 = vtanh.f32 %v1793_v45  ;;  %v1674_v9 = vpack.c.bf16 %v1673_v36, %v1672_v17  ;;  %v4457_v45 = vld [vmem:[#allocation8 + $0x84] ss:$16 sps:$4 sm:$0xff]   ;;  %v4463_v17 = vld [vmem:[#allocation8 + $0x80] ss:$16 sps:$4 sm:$0xff]   ;;  %v4466_v36 = vld [vmem:[#allocation8 + $0x88] ss:$16 sps:$4 sm:$0xff]  }
 0x2ce   : > { %3141 = vtanh.f32 %v1782_v13  ;;  %v4427_v13 = vld [vmem:[#allocation8 + $0x20] ss:$16 sps:$4 sm:$0xff]  }
 0x2cf   : > { %1853 = vmatprep.mubr.bf16.mxu0 %v1674_v9  ;;  %1896 = vmatprep.mubr.bf16.mxu1 %v1674_v9  ;;  %3143 = vtanh.f32 %v1802_v63  ;;  %v4469_v9 = vld [vmem:[#allocation8 + $0xa4] ss:$16 sps:$4 sm:$0xff]  }
 0x2d0   : > { %3145 = vtanh.f32 %v1803_v15  ;;  %v4481_v63 = vld [vmem:[#allocation8 + $0xc4] ss:$16 sps:$4 sm:$0xff]   ;;  %v4487_v15 = vld [vmem:[#allocation8 + $0xc0] ss:$16 sps:$4 sm:$0xff]  }
 0x2d3   : > { %v3132_v23 = vpop.eup %3131 }
 0x2d4   : > { %v3134_v34 = vpop.eup %3133  ;;  %v1788_v29 = vmul.f32 0.5, %v3132_v23  ;;  %v4472_v23 = vld [vmem:[#allocation8 + $0xac] ss:$16 sps:$4 sm:$0xff]  }
 0x2d5   : > { %v1796_v20 = vmul.f32 0.5, %v3134_v34  ;;  %v3136_v26 = vpop.eup %3135  ;;  %v4475_v34 = vld [vmem:[#allocation8 + $0xa0] ss:$16 sps:$4 sm:$0xff]  }
 0x2d6   : > { %v1790_v8 = vadd.f32 0.5, %v1788_v29  ;;  %v3138_v37 = vpop.eup %3137  ;;  %v1789_v41 = vmul.f32 0.5, %v3136_v26  ;;  %v4478_v29 = vld [vmem:[#allocation8 + $0xa8] ss:$16 sps:$4 sm:$0xff]  }
 0x2d7   : > { %v1798_v40 = vadd.f32 0.5, %v1796_v20  ;;  %v3140_v42 = vpop.eup %3139  ;;  %v4484_v20 = vld [vmem:[#allocation8 + $0xcc] ss:$16 sps:$4 sm:$0xff]   ;;  %v4490_v26 = vld [vmem:[#allocation8 + $0xc8] ss:$16 sps:$4 sm:$0xff]  }
 0x2d8   : > { %v1812_v44 = vmul.f32 %v3138_v37, %v1790_v8  ;;  %v1791_v48 = vadd.f32 0.5, %v1789_v41  ;;  %v1797_v49 = vmul.f32 0.5, %v3140_v42  ;;  %v3142_v50 = vpop.eup %3141  ;;  %v4493_v8 = vld [vmem:[#allocation8 + $0xe4] ss:$16 sps:$4 sm:$0xff]   ;;  %v4496_v37 = vld [vmem:[#allocation8 + $0xec] ss:$16 sps:$4 sm:$0xff]  }
 0x2d9   : > { %v1810_v47 = vmul.f32 %v1798_v40, %v4252_v54  ;;  %v3144_v58 = vpop.eup %3143  ;;  %v4499_v40 = vld [vmem:[#allocation8 + $0xe0] ss:$16 sps:$4 sm:$0xff]   ;;  %v4502_v41 = vld [vmem:[#allocation8 + $0xe8] ss:$16 sps:$4 sm:$0xff]   ;;  %v4505_v42 = vld [vmem:[#allocation9 + $0x4] ss:$16 sps:$4 sm:$0xff]  }
 0x2da   : > { %v1799_v53 = vadd.f32 0.5, %v1797_v49  ;;  %v1813_v55 = vmul.f32 %v3142_v50, %v1791_v48  ;;  %v3146_v59 = vpop.eup %3145  ;;  %v1806_v60 = vmul.f32 0.5, %v3144_v58  ;;  %5255 = vst [vmem:[#allocation23_spill] sm:$0xff] %v4505_v42  ;;  %v4516_v48 = vld [vmem:[#allocation9 + $0x8] ss:$16 sps:$4 sm:$0xff]  }
 0x2db   : > { %v4402_v52 = vadd.f32 %v1812_v44, %v1810_v47  ;;  %v1807_v54 = vmul.f32 0.5, %v3146_v59  ;;  %v4508_v44 = vld [vmem:[#allocation9 + $0xc] ss:$16 sps:$4 sm:$0xff]   ;;  %v4513_v47 = vld [vmem:[#allocation9] ss:$16 sps:$4 sm:$0xff]   ;;  %5258 = vst [vmem:[#allocation26_spill] sm:$0xff] %v4516_v48 }
 0x2dc   : > { %v1811_v56 = vmul.f32 %v1799_v53, %v4255_v3  ;;  %v1808_v62 = vadd.f32 0.5, %v1806_v60  ;;  %v4413_v3 = vld [vmem:[#allocation8] ss:$16 sps:$4 sm:$0xff]   ;;  %5256 = vst [vmem:[#allocation24_spill] sm:$0xff] %v4508_v44  ;;  %5257 = vst [vmem:[#allocation25_spill] sm:$0xff] %v4513_v47 }
 0x2dd   : > { %3147 = vtanh.f32 %v4402_v52  ;;  %v1809_v0 = vadd.f32 0.5, %v1807_v54  ;;  %v4519_v49 = vld [vmem:[#allocation9 + $0x24] ss:$16 sps:$4 sm:$0xff]   ;;  %v4522_v50 = vld [vmem:[#allocation9 + $0x2c] ss:$16 sps:$4 sm:$0xff]  }
 0x2de   : > { %v4406_v57 = vadd.f32 %v1813_v55, %v1811_v56  ;;  %5259 = vst [vmem:[#allocation27_spill] sm:$0xff] %v4519_v49  ;;  %5260 = vst [vmem:[#allocation28_spill] sm:$0xff] %v4522_v50  ;;  %v4525_v53 = vld [vmem:[#allocation9 + $0x20] ss:$16 sps:$4 sm:$0xff]   ;;  %v4528_v55 = vld [vmem:[#allocation9 + $0x28] ss:$16 sps:$4 sm:$0xff]  }
 0x2df   : > { %5261 = vst [vmem:[#allocation29_spill] sm:$0xff] %v4525_v53  ;;  %5262 = vst [vmem:[#allocation30_spill] sm:$0xff] %v4528_v55  ;;  %v4531_v56 = vld [vmem:[#allocation9 + $0x44] ss:$16 sps:$4 sm:$0xff]   ;;  %v4534_v58 = vld [vmem:[#allocation9 + $0x4c] ss:$16 sps:$4 sm:$0xff]  }
 0x2e0   : > { %3149 = vtanh.f32 %v4406_v57  ;;  %5263 = vst [vmem:[#allocation31_spill] sm:$0xff] %v4531_v56  ;;  %5264 = vst [vmem:[#allocation32_spill] sm:$0xff] %v4534_v58  ;;  %v4537_v59 = vld [vmem:[#allocation9 + $0x40] ss:$16 sps:$4 sm:$0xff]   ;;  %v4540_v60 = vld [vmem:[#allocation9 + $0x48] ss:$16 sps:$4 sm:$0xff]  }
 0x2e1   : > { %5265 = vst [vmem:[#allocation33_spill] sm:$0xff] %v4537_v59  ;;  %5266 = vst [vmem:[#allocation34_spill] sm:$0xff] %v4540_v60  ;;  %v4543_v54 = vld [vmem:[#allocation9 + $0x64] ss:$16 sps:$4 sm:$0xff]  }
 0x2e2   : > { %5267 = vst [vmem:[#allocation35_spill] sm:$0xff] %v4543_v54 }
 0x2e7   : > { %v3148_v61 = vpop.eup %3147 }
 0x2e8   : > { %v1818_v2 = vmul.f32 %v3148_v61, %v1808_v62  ;;  %v4546_v61 = vld [vmem:[#allocation9 + $0x6c] ss:$16 sps:$4 sm:$0xff]   ;;  %v4549_v62 = vld [vmem:[#allocation9 + $0x60] ss:$16 sps:$4 sm:$0xff]  }
 0x2e9   : > { %5268 = vst [vmem:[#allocation36_spill] sm:$0xff] %v4546_v61  ;;  %5269 = vst [vmem:[#allocation37_spill] sm:$0xff] %v4549_v62 }
 0x2ea   : > { %v3150_v1 = vpop.eup %3149 }
 0x2eb   : > { %v1819_v4 = vmul.f32 %v3150_v1, %v1809_v0  ;;  %v4552_v0 = vld [vmem:[#allocation9 + $0x68] ss:$16 sps:$4 sm:$0xff]   ;;  %v4555_v1 = vld [vmem:[#allocation9 + $0x84] ss:$16 sps:$4 sm:$0xff]  }
 0x2ec   : > { %5270 = vst [vmem:[#allocation38_spill] sm:$0xff] %v4552_v0  ;;  %5271 = vst [vmem:[#allocation39_spill] sm:$0xff] %v4555_v1 }
 0x2ed   : > { %v4409_v5 = vpack.c.bf16 %v1819_v4, %v1818_v2  ;;  %v4558_v2 = vld [vmem:[#allocation9 + $0x8c] ss:$16 sps:$4 sm:$0xff]   ;;  %v4561_v4 = vld [vmem:[#allocation9 + $0x80] ss:$16 sps:$4 sm:$0xff]  }
 0x2ee   : > { %5272 = vst [vmem:[#allocation40_spill] sm:$0xff] %v4558_v2  ;;  %5273 = vst [vmem:[#allocation41_spill] sm:$0xff] %v4561_v4 }
 0x2ef   : > { %1854 = vmatmul.mubr.bf16.vlgmr.msra.gmra.mrb[28].mxu0 %v4409_v5  ;;  %1897 = vmatmul.mubr.bf16.vlgmr.msra.gmra.mrb[28].mxu1 %v4409_v5 }
 0x2f0   : > { %1960 = vmatpush1.bf16.msra.mxu0 %v4413_v3  ;;  %2003 = vmatpush1.bf16.msra.mxu1 %v4416_v10 }
 0x2f1   : > { %1961 = vmatprep.subr.bf16.mxu0 %v4419_v11  ;;  %2004 = vmatprep.subr.bf16.mxu1 %v4422_v12 }
 0x2f2   : > { %1991 = vmatprep.mubr.bf16.mxu0 %v5182_v19  ;;  %2034 = vmatprep.mubr.bf16.mxu1 %v5182_v19 }
 0x2f4   : > { %1962 = vmatpush1.bf16.msra.mxu0 %v4427_v13  ;;  %2005 = vmatpush1.bf16.msra.mxu1 %v4430_v14 }
 0x2f5   : > { %1963 = vmatprep.subr.bf16.mxu0 %v4433_v7  ;;  %2006 = vmatprep.subr.bf16.mxu1 %v4436_v21 }
 0x2f8   : > { %1964 = vmatpush1.bf16.msra.mxu0 %v4439_v32  ;;  %2007 = vmatpush1.bf16.msra.mxu1 %v4442_v16 }
 0x2f9   : > { %1965 = vmatprep.subr.bf16.mxu0 %v4445_v24  ;;  %2008 = vmatprep.subr.bf16.mxu1 %v4448_v28 }
 0x2fc   : > { %1966 = vmatpush1.bf16.msra.mxu0 %v4451_v35  ;;  %2009 = vmatpush1.bf16.msra.mxu1 %v4454_v27 }
 0x2fd   : > { %1967 = vmatprep.subr.bf16.mxu0 %v4457_v45  ;;  %2010 = vmatprep.subr.bf16.mxu1 %v4460_v30 }
 0x300   : > { %1968 = vmatpush1.bf16.msra.mxu0 %v4463_v17  ;;  %2011 = vmatpush1.bf16.msra.mxu1 %v4466_v36 }
 0x301   : > { %1969 = vmatprep.subr.bf16.mxu0 %v4469_v9  ;;  %2012 = vmatprep.subr.bf16.mxu1 %v4472_v23 }
 0x304   : > { %1970 = vmatpush1.bf16.msra.mxu0 %v4475_v34  ;;  %2013 = vmatpush1.bf16.msra.mxu1 %v4478_v29 }
 0x305   : > { %1971 = vmatprep.subr.bf16.mxu0 %v4481_v63  ;;  %2014 = vmatprep.subr.bf16.mxu1 %v4484_v20 }
 0x308   : > { %1972 = vmatpush1.bf16.msra.mxu0 %v4487_v15  ;;  %2015 = vmatpush1.bf16.msra.mxu1 %v4490_v26 }
 0x309   : > { %1973 = vmatprep.subr.bf16.mxu0 %v4493_v8  ;;  %2016 = vmatprep.subr.bf16.mxu1 %v4496_v37 }
 0x30c   : > { %1974 = vmatpush1.bf16.msra.mxu0 %v4499_v40  ;;  %2017 = vmatpush1.bf16.msra.mxu1 %v4502_v41 }
 0x30d   : > { %2090 = vmatprep.subr.bf16.mxu0 %v4505_v42  ;;  %2133 = vmatprep.subr.bf16.mxu1 %v4508_v44 }
 0x30f   : > { %1992 = vmatmul.mubr.bf16.vlgmr.msra.gmra.mrb[32].mxu0 %v4409_v5  ;;  %2035 = vmatmul.mubr.bf16.vlgmr.msra.gmra.mrb[32].mxu1 %v4409_v5  ;;  %v4564_v5 = vld [vmem:[#allocation9 + $0x88] ss:$16 sps:$4 sm:$0xff]  }
 0x310   : > { %2091 = vmatpush1.bf16.msra.mxu0 %v4513_v47  ;;  %2134 = vmatpush1.bf16.msra.mxu1 %v4516_v48  ;;  %5274 = vst [vmem:[#allocation42_spill] sm:$0xff] %v4564_v5 }
 0x311   : > { %2092 = vmatprep.subr.bf16.mxu0 %v4519_v49  ;;  %2135 = vmatprep.subr.bf16.mxu1 %v4522_v50 }
 0x314   : > { %2093 = vmatpush1.bf16.msra.mxu0 %v4525_v53  ;;  %2136 = vmatpush1.bf16.msra.mxu1 %v4528_v55 }
 0x315   : > { %2094 = vmatprep.subr.bf16.mxu0 %v4531_v56  ;;  %2137 = vmatprep.subr.bf16.mxu1 %v4534_v58 }
 0x318   : > { %2095 = vmatpush1.bf16.msra.mxu0 %v4537_v59  ;;  %2138 = vmatpush1.bf16.msra.mxu1 %v4540_v60 }
 0x319   : > { %2096 = vmatprep.subr.bf16.mxu0 %v4543_v54  ;;  %2139 = vmatprep.subr.bf16.mxu1 %v4546_v61 }
 0x31c   : > { %2097 = vmatpush1.bf16.msra.mxu0 %v4549_v62  ;;  %2140 = vmatpush1.bf16.msra.mxu1 %v4552_v0  ;;  %v4567_v62 = vld [vmem:[#allocation9 + $0xa4] ss:$16 sps:$4 sm:$0xff]   ;;  %v4570_v0 = vld [vmem:[#allocation9 + $0xac] ss:$16 sps:$4 sm:$0xff]  }
 0x31d   : > { %2098 = vmatprep.subr.bf16.mxu0 %v4555_v1  ;;  %2141 = vmatprep.subr.bf16.mxu1 %v4558_v2  ;;  %5275 = vst [vmem:[#allocation43_spill] sm:$0xff] %v4567_v62  ;;  %5276 = vst [vmem:[#allocation44_spill] sm:$0xff] %v4570_v0  ;;  %v4573_v1 = vld [vmem:[#allocation9 + $0xa0] ss:$16 sps:$4 sm:$0xff]   ;;  %v4576_v2 = vld [vmem:[#allocation9 + $0xa8] ss:$16 sps:$4 sm:$0xff]  }
 0x31e   : > { %5277 = vst [vmem:[#allocation45_spill] sm:$0xff] %v4573_v1  ;;  %5278 = vst [vmem:[#allocation46_spill] sm:$0xff] %v4576_v2 }
 0x320   : > { %2099 = vmatpush1.bf16.msra.mxu0 %v4561_v4  ;;  %2142 = vmatpush1.bf16.msra.mxu1 %v4564_v5  ;;  %v4579_v4 = vld [vmem:[#allocation9 + $0xc4] ss:$16 sps:$4 sm:$0xff]   ;;  %v4582_v5 = vld [vmem:[#allocation9 + $0xcc] ss:$16 sps:$4 sm:$0xff]  }
 0x321   : > { %2100 = vmatprep.subr.bf16.mxu0 %v4567_v62  ;;  %2143 = vmatprep.subr.bf16.mxu1 %v4570_v0  ;;  %5279 = vst [vmem:[#allocation47_spill] sm:$0xff] %v4579_v4  ;;  %5280 = vst [vmem:[#allocation48_spill] sm:$0xff] %v4582_v5  ;;  %v4585_v62 = vld [vmem:[#allocation9 + $0xc0] ss:$16 sps:$4 sm:$0xff]   ;;  %v4588_v0 = vld [vmem:[#allocation9 + $0xc8] ss:$16 sps:$4 sm:$0xff]  }
 0x322   : > { %5281 = vst [vmem:[#allocation49_spill] sm:$0xff] %v4585_v62  ;;  %5282 = vst [vmem:[#allocation50_spill] sm:$0xff] %v4588_v0 }
 0x324   : > { %2101 = vmatpush1.bf16.msra.mxu0 %v4573_v1  ;;  %2144 = vmatpush1.bf16.msra.mxu1 %v4576_v2  ;;  %v4591_v1 = vld [vmem:[#allocation9 + $0xe4] ss:$16 sps:$4 sm:$0xff]   ;;  %v4594_v2 = vld [vmem:[#allocation9 + $0xec] ss:$16 sps:$4 sm:$0xff]  }
 0x325   : > { %2102 = vmatprep.subr.bf16.mxu0 %v4579_v4  ;;  %2145 = vmatprep.subr.bf16.mxu1 %v4582_v5  ;;  %5283 = vst [vmem:[#allocation51_spill] sm:$0xff] %v4591_v1  ;;  %5284 = vst [vmem:[#allocation52_spill] sm:$0xff] %v4594_v2  ;;  %v4597_v4 = vld [vmem:[#allocation9 + $0xe0] ss:$16 sps:$4 sm:$0xff]   ;;  %v4600_v5 = vld [vmem:[#allocation9 + $0xe8] ss:$16 sps:$4 sm:$0xff]  }
 0x326   : > { %5285 = vst [vmem:[#allocation53_spill] sm:$0xff] %v4597_v4  ;;  %5286 = vst [vmem:[#allocation54_spill] sm:$0xff] %v4600_v5 }
 0x328   : > { %2103 = vmatpush1.bf16.msra.mxu0 %v4585_v62  ;;  %2146 = vmatpush1.bf16.msra.mxu1 %v4588_v0  ;;  %v4603_v62 = vld [vmem:[#allocation9 + $0x104] ss:$16 sps:$4 sm:$0xff]   ;;  %v4606_v0 = vld [vmem:[#allocation9 + $0x10c] ss:$16 sps:$4 sm:$0xff]  }
 0x329   : > { %2104 = vmatprep.subr.bf16.mxu0 %v4591_v1  ;;  %2147 = vmatprep.subr.bf16.mxu1 %v4594_v2  ;;  %5287 = vst [vmem:[#allocation55_spill] sm:$0xff] %v4603_v62  ;;  %5288 = vst [vmem:[#allocation56_spill] sm:$0xff] %v4606_v0  ;;  %v4609_v1 = vld [vmem:[#allocation9 + $0x100] ss:$16 sps:$4 sm:$0xff]   ;;  %v4612_v2 = vld [vmem:[#allocation9 + $0x108] ss:$16 sps:$4 sm:$0xff]  }
 0x32a   : > { %5289 = vst [vmem:[#allocation57_spill] sm:$0xff] %v4609_v1  ;;  %5290 = vst [vmem:[#allocation58_spill] sm:$0xff] %v4612_v2 }
 0x32c   : > { %2105 = vmatpush1.bf16.msra.mxu0 %v4597_v4  ;;  %2148 = vmatpush1.bf16.msra.mxu1 %v4600_v5  ;;  %v4615_v4 = vld [vmem:[#allocation9 + $0x124] ss:$16 sps:$4 sm:$0xff]   ;;  %v4618_v5 = vld [vmem:[#allocation9 + $0x12c] ss:$16 sps:$4 sm:$0xff]  }
 0x32d   : > { %2106 = vmatprep.subr.bf16.mxu0 %v4603_v62  ;;  %2149 = vmatprep.subr.bf16.mxu1 %v4606_v0  ;;  %5291 = vst [vmem:[#allocation59_spill] sm:$0xff] %v4615_v4  ;;  %5292 = vst [vmem:[#allocation60_spill] sm:$0xff] %v4618_v5  ;;  %v4621_v62 = vld [vmem:[#allocation9 + $0x120] ss:$16 sps:$4 sm:$0xff]   ;;  %v4624_v0 = vld [vmem:[#allocation9 + $0x128] ss:$16 sps:$4 sm:$0xff]  }
 0x32e   : > { %5293 = vst [vmem:[#allocation61_spill] sm:$0xff] %v4621_v62  ;;  %5294 = vst [vmem:[#allocation62_spill] sm:$0xff] %v4624_v0 }
 0x330   : > { %2107 = vmatpush1.bf16.msra.mxu0 %v4609_v1  ;;  %2150 = vmatpush1.bf16.msra.mxu1 %v4612_v2  ;;  %v4627_v1 = vld [vmem:[#allocation9 + $0x144] ss:$16 sps:$4 sm:$0xff]   ;;  %v4630_v2 = vld [vmem:[#allocation9 + $0x14c] ss:$16 sps:$4 sm:$0xff]  }
 0x331   : > { %2108 = vmatprep.subr.bf16.mxu0 %v4615_v4  ;;  %2151 = vmatprep.subr.bf16.mxu1 %v4618_v5  ;;  %5295 = vst [vmem:[#allocation63_spill] sm:$0xff] %v4627_v1  ;;  %5296 = vst [vmem:[#allocation64_spill] sm:$0xff] %v4630_v2  ;;  %v4633_v4 = vld [vmem:[#allocation9 + $0x140] ss:$16 sps:$4 sm:$0xff]   ;;  %v4636_v5 = vld [vmem:[#allocation9 + $0x148] ss:$16 sps:$4 sm:$0xff]  }
 0x332   : > { %5297 = vst [vmem:[#allocation65_spill] sm:$0xff] %v4633_v4  ;;  %5298 = vst [vmem:[#allocation66_spill] sm:$0xff] %v4636_v5 }
 0x334   : > { %2109 = vmatpush1.bf16.msra.mxu0 %v4621_v62  ;;  %2152 = vmatpush1.bf16.msra.mxu1 %v4624_v0  ;;  %v4639_v62 = vld [vmem:[#allocation9 + $0x164] ss:$16 sps:$4 sm:$0xff]   ;;  %v4642_v0 = vld [vmem:[#allocation9 + $0x16c] ss:$16 sps:$4 sm:$0xff]  }
 0x335   : > { %2110 = vmatprep.subr.bf16.mxu0 %v4627_v1  ;;  %2153 = vmatprep.subr.bf16.mxu1 %v4630_v2  ;;  %5299 = vst [vmem:[#allocation67_spill] sm:$0xff] %v4639_v62  ;;  %5300 = vst [vmem:[#allocation68_spill] sm:$0xff] %v4642_v0  ;;  %v4645_v1 = vld [vmem:[#allocation9 + $0x160] ss:$16 sps:$4 sm:$0xff]   ;;  %v4648_v2 = vld [vmem:[#allocation9 + $0x168] ss:$16 sps:$4 sm:$0xff]  }
 0x336   : > { %5301 = vst [vmem:[#allocation69_spill] sm:$0xff] %v4645_v1  ;;  %5302 = vst [vmem:[#allocation70_spill] sm:$0xff] %v4648_v2 }
 0x338   : > { %2111 = vmatpush1.bf16.msra.mxu0 %v4633_v4  ;;  %2154 = vmatpush1.bf16.msra.mxu1 %v4636_v5  ;;  %v4651_v4 = vld [vmem:[#allocation9 + $0x184] ss:$16 sps:$4 sm:$0xff]   ;;  %v4654_v5 = vld [vmem:[#allocation9 + $0x18c] ss:$16 sps:$4 sm:$0xff]  }
 0x339   : > { %2112 = vmatprep.subr.bf16.mxu0 %v4639_v62  ;;  %2155 = vmatprep.subr.bf16.mxu1 %v4642_v0  ;;  %5303 = vst [vmem:[#allocation71_spill] sm:$0xff] %v4651_v4  ;;  %5304 = vst [vmem:[#allocation72_spill] sm:$0xff] %v4654_v5  ;;  %v4657_v62 = vld [vmem:[#allocation9 + $0x180] ss:$16 sps:$4 sm:$0xff]   ;;  %v4660_v0 = vld [vmem:[#allocation9 + $0x188] ss:$16 sps:$4 sm:$0xff]  }
 0x33a   : > { %5305 = vst [vmem:[#allocation73_spill] sm:$0xff] %v4657_v62  ;;  %5306 = vst [vmem:[#allocation74_spill] sm:$0xff] %v4660_v0 }
 0x33c   : > { %2113 = vmatpush1.bf16.msra.mxu0 %v4645_v1  ;;  %2156 = vmatpush1.bf16.msra.mxu1 %v4648_v2  ;;  %v4663_v1 = vld [vmem:[#allocation9 + $0x1a4] ss:$16 sps:$4 sm:$0xff]   ;;  %v4666_v2 = vld [vmem:[#allocation9 + $0x1ac] ss:$16 sps:$4 sm:$0xff]  }
 0x33d   : > { %2114 = vmatprep.subr.bf16.mxu0 %v4651_v4  ;;  %2157 = vmatprep.subr.bf16.mxu1 %v4654_v5  ;;  %5307 = vst [vmem:[#allocation75_spill] sm:$0xff] %v4663_v1  ;;  %5308 = vst [vmem:[#allocation76_spill] sm:$0xff] %v4666_v2  ;;  %v4669_v4 = vld [vmem:[#allocation9 + $0x1a0] ss:$16 sps:$4 sm:$0xff]   ;;  %v4672_v5 = vld [vmem:[#allocation9 + $0x1a8] ss:$16 sps:$4 sm:$0xff]  }
 0x33e   : > { %5309 = vst [vmem:[#allocation77_spill] sm:$0xff] %v4669_v4  ;;  %5310 = vst [vmem:[#allocation78_spill] sm:$0xff] %v4672_v5 }
 0x340   : > { %2115 = vmatpush1.bf16.msra.mxu0 %v4657_v62  ;;  %2158 = vmatpush1.bf16.msra.mxu1 %v4660_v0  ;;  %v4675_v62 = vld [vmem:[#allocation9 + $0x1c4] ss:$16 sps:$4 sm:$0xff]   ;;  %v4678_v0 = vld [vmem:[#allocation9 + $0x1cc] ss:$16 sps:$4 sm:$0xff]  }
 0x341   : > { %2116 = vmatprep.subr.bf16.mxu0 %v4663_v1  ;;  %2159 = vmatprep.subr.bf16.mxu1 %v4666_v2  ;;  %5311 = vst [vmem:[#allocation79_spill] sm:$0xff] %v4675_v62  ;;  %5312 = vst [vmem:[#allocation80_spill] sm:$0xff] %v4678_v0  ;;  %v4681_v1 = vld [vmem:[#allocation9 + $0x1c0] ss:$16 sps:$4 sm:$0xff]   ;;  %v4684_v2 = vld [vmem:[#allocation9 + $0x1c8] ss:$16 sps:$4 sm:$0xff]  }
 0x342   : > { %5313 = vst [vmem:[#allocation81_spill] sm:$0xff] %v4681_v1  ;;  %5314 = vst [vmem:[#allocation82_spill] sm:$0xff] %v4684_v2 }
 0x344   : > { %2117 = vmatpush1.bf16.msra.mxu0 %v4669_v4  ;;  %2160 = vmatpush1.bf16.msra.mxu1 %v4672_v5  ;;  %v4687_v4 = vld [vmem:[#allocation9 + $0x1e4] ss:$16 sps:$4 sm:$0xff]   ;;  %v4690_v5 = vld [vmem:[#allocation9 + $0x1ec] ss:$16 sps:$4 sm:$0xff]  }
 0x345   : > { %2118 = vmatprep.subr.bf16.mxu0 %v4675_v62  ;;  %2161 = vmatprep.subr.bf16.mxu1 %v4678_v0  ;;  %5315 = vst [vmem:[#allocation88_spill] sm:$0xff] %v4687_v4  ;;  %5316 = vst [vmem:[#allocation89_spill] sm:$0xff] %v4690_v5  ;;  %v4693_v62 = vld [vmem:[#allocation9 + $0x1e0] ss:$16 sps:$4 sm:$0xff]   ;;  %v4696_v0 = vld [vmem:[#allocation9 + $0x1e8] ss:$16 sps:$4 sm:$0xff]  }
 0x346   : > { %5317 = vst [vmem:[#allocation90_spill] sm:$0xff] %v4693_v62  ;;  %5318 = vst [vmem:[#allocation91_spill] sm:$0xff] %v4696_v0 }
 0x348   : > { %2119 = vmatpush1.bf16.msra.mxu0 %v4681_v1  ;;  %2162 = vmatpush1.bf16.msra.mxu1 %v4684_v2 }
 0x349   : > { %2120 = vmatprep.subr.bf16.mxu0 %v4687_v4  ;;  %2163 = vmatprep.subr.bf16.mxu1 %v4690_v5 }
 0x34c   : > { %2121 = vmatpush1.bf16.msra.mxu0 %v4693_v62  ;;  %2164 = vmatpush1.bf16.msra.mxu1 %v4696_v0 }
 0x34d   : > { %2228 = vmatprep.subr.bf16.mxu0 %v4354_v38  ;;  %2271 = vmatprep.subr.bf16.mxu1 %v4357_v39 }
 0x3c2   : > { %v1855_v2 = vpop.f32.mrb[28].mxu0  ;;  %v1898_v1 = vpop.f32.mrb[28].mxu1 }
 0x3c3   : > { %v1856_v4 = vadd.f32 %v1855_v2, %v4365_v43  ;;  %v1857_v61 = vpop.f32.mrb[29].mxu0  ;;  %v1900_v54 = vpop.f32.mrb[29].mxu1  ;;  %v1899_v39 = vadd.f32 %v1898_v1, %v4374_v51 }
 0x3c4   : > { %v1858_v5 = vadd.f32 %v1857_v61, %v4369_v46  ;;  %v1859_v60 = vpop.f32.mrb[30].mxu0  ;;  %v1902_v59 = vpop.f32.mrb[30].mxu1  ;;  %v1901_v61 = vadd.f32 %v1900_v54, %v4382_v6 }
 0x3c5   : > { %v1907_v58 = vmul.f32 0.5, %v1856_v4  ;;  %v1860_v62 = vadd.f32 %v1859_v60, %v4365_v43  ;;  %v1861_v56 = vpop.f32.mrb[31].mxu0  ;;  %v1904_v55 = vpop.f32.mrb[31].mxu1  ;;  %v1903_v50 = vadd.f32 %v1902_v59, %v4374_v51 }
 0x3c6   : > { %v1915_v0 = vmul.f32 0.5, %v1858_v5  ;;  %v1862_v38 = vadd.f32 %v1861_v56, %v4369_v46  ;;  %v1905_v60 = vadd.f32 %v1904_v55, %v4382_v6  ;;  %v1925_v56 = vmul.f32 0.5, %v1901_v61 }
 0x3c7   : > { %3151 = vtanh.f32 %v1907_v58  ;;  %v1908_v53 = vmul.f32 0.5, %v1860_v62 }
 0x3c8   : > { %3153 = vtanh.f32 %v1915_v0  ;;  %v1916_v2 = vmul.f32 0.5, %v1862_v38  ;;  %v1926_v46 = vmul.f32 0.5, %v1905_v60 }
 0x3c9   : > { %3155 = vtanh.f32 %v1908_v53 }
 0x3ca   : > { %3157 = vtanh.f32 %v1899_v39 }
 0x3cb   : > { %3159 = vtanh.f32 %v1916_v2 }
 0x3cc   : > { %3161 = vtanh.f32 %v1903_v50 }
 0x3cd   : > { %3163 = vtanh.f32 %v1925_v56 }
 0x3ce   : > { %3165 = vtanh.f32 %v1926_v46 }
 0x3d1   : > { %v3152_v4 = vpop.eup %3151 }
 0x3d2   : > { %v3154_v5 = vpop.eup %3153  ;;  %v1911_v43 = vmul.f32 0.5, %v3152_v4 }
 0x3d3   : > { %v1919_v58 = vmul.f32 0.5, %v3154_v5  ;;  %v3156_v1 = vpop.eup %3155 }
 0x3d4   : > { %v1913_v62 = vadd.f32 0.5, %v1911_v43  ;;  %v3158_v0 = vpop.eup %3157  ;;  %v1912_v53 = vmul.f32 0.5, %v3156_v1  ;;  %v1952_v1 = vunpack.c.l.bf16 %v4224_v31 }
 0x3d5   : > { %v1921_v38 = vadd.f32 0.5, %v1919_v58  ;;  %v3160_v49 = vpop.eup %3159 }
 0x3d6   : > { %v1935_v59 = vmul.f32 %v3158_v0, %v1913_v62  ;;  %v1914_v54 = vadd.f32 0.5, %v1912_v53  ;;  %v1920_v50 = vmul.f32 0.5, %v3160_v49  ;;  %v3162_v55 = vpop.eup %3161  ;;  %v1953_v49 = vunpack.c.l.bf16 %v4222_v18  ;;  %v5321_v62 = vld [vmem:[#allocation83_spill] sm:$0xff] }
 0x3d7   : > { %v1933_v39 = vmul.f32 %v1921_v38, %v4387_v22  ;;  %v3164_v5 = vpop.eup %3163  ;;  %v1951_v22 = vunpack.c.l.bf16 %v4220_v33  ;;  %v1954_v0 = vunpack.c.l.bf16 %v5321_v62  ;;  %v1957_v38 = vunpack.c.h.bf16 %v4222_v18 }
 0x3d8   : > { %v1922_v4 = vadd.f32 0.5, %v1920_v50  ;;  %v1936_v61 = vmul.f32 %v3162_v55, %v1914_v54  ;;  %v3166_v56 = vpop.eup %3165  ;;  %v1956_v50 = vunpack.c.h.bf16 %v4224_v31  ;;  %v1958_v55 = vunpack.c.h.bf16 %v5321_v62 }
 0x3d9   : > { %v4710_v2 = vadd.f32 %v1935_v59, %v1933_v39 }
 0x3da   : > { %v1934_v60 = vmul.f32 %v1922_v4, %v4390_v25  ;;  %v1955_v25 = vunpack.c.h.bf16 %v4220_v33  ;;  %v1929_v4 = vmul.f32 0.5, %v3164_v5 }
 0x3db   : > { %5319 = vst [vmem:[#allocation92_spill] sm:$0xff] %v4710_v2  ;;  %3167 = vtanh.f32 %v4710_v2 }
 0x3dc   : > { %v4714_v43 = vadd.f32 %v1936_v61, %v1934_v60  ;;  %v1930_v61 = vmul.f32 0.5, %v3166_v56  ;;  %v1931_v31 = vadd.f32 0.5, %v1929_v4 }
 0x3de   : > { %5320 = vst [vmem:[#allocation93_spill] sm:$0xff] %v4714_v43  ;;  %3169 = vtanh.f32 %v4714_v43  ;;  %v1932_v42 = vadd.f32 0.5, %v1930_v61 }
 0x3e2   : > { %v1993_v46 = vpop.f32.mrb[32].mxu0  ;;  %v2036_v58 = vpop.f32.mrb[32].mxu1 }
 0x3e3   : > { %v2045_v53 = vadd.f32 %v1993_v46, %v1951_v22  ;;  %v2047_v59 = vadd.f32 %v2036_v58, %v1953_v49  ;;  %v1995_v39 = vpop.f32.mrb[33].mxu0  ;;  %v2038_v54 = vpop.f32.mrb[33].mxu1 }
 0x3e4   : > { %v2046_v60 = vadd.f32 %v1995_v39, %v1952_v1  ;;  %v2048_v43 = vadd.f32 %v2038_v54, %v1954_v0  ;;  %v1997_v2 = vpop.f32.mrb[34].mxu0  ;;  %v2040_v6 = vpop.f32.mrb[34].mxu1 }
 0x3e5   : > { %v2053_v51 = vmul.f32 0.5, %v2045_v53  ;;  %v2049_v48 = vadd.f32 %v1997_v2, %v1955_v25  ;;  %v2051_v47 = vadd.f32 %v2040_v6, %v1957_v38  ;;  %v1999_v33 = vpop.f32.mrb[35].mxu0  ;;  %v2042_v44 = vpop.f32.mrb[35].mxu1 }
 0x3e6   : > { %v2061_v18 = vmul.f32 0.5, %v2046_v60  ;;  %v2050_v22 = vadd.f32 %v1999_v33, %v1956_v50  ;;  %v2052_v49 = vadd.f32 %v2042_v44, %v1958_v55  ;;  %v3168_v46 = vpop.eup %3167  ;;  %v2071_v25 = vmul.f32 0.5, %v2048_v43 }
 0x3e7   : > { %3171 = vtanh.f32 %v2053_v51  ;;  %v2054_v58 = vmul.f32 0.5, %v2049_v48  ;;  %v1941_v1 = vmul.f32 %v3168_v46, %v1931_v31 }
 0x3e8   : > { %3173 = vtanh.f32 %v2061_v18  ;;  %v2062_v5 = vmul.f32 0.5, %v2050_v22  ;;  %v3170_v56 = vpop.eup %3169  ;;  %v2072_v48 = vmul.f32 0.5, %v2052_v49 }
 0x3e9   : > { %3175 = vtanh.f32 %v2054_v58  ;;  %v1942_v62 = vmul.f32 %v3170_v56, %v1932_v42 }
 0x3ea   : > { %3177 = vtanh.f32 %v2047_v59 }
 0x3eb   : > { %3179 = vtanh.f32 %v2062_v5  ;;  %v1943_v2 = vpack.c.bf16 %v1942_v62, %v1941_v1 }
 0x3ec   : > { %3181 = vtanh.f32 %v2051_v47 }
 0x3ed   : > { %2122 = vmatprep.mubr.bf16.mxu0 %v1943_v2  ;;  %2165 = vmatprep.mubr.bf16.mxu1 %v1943_v2  ;;  %3183 = vtanh.f32 %v2071_v25  ;;  %v5356_v25 = vld [vmem:[#allocation57_spill] sm:$0xff] }
 0x3ee   : > { %3185 = vtanh.f32 %v2072_v48  ;;  %v5358_v48 = vld [vmem:[#allocation59_spill] sm:$0xff] }
 0x3f1   : > { %v3172_v6 = vpop.eup %3171 }
 0x3f2   : > { %v3174_v0 = vpop.eup %3173  ;;  %v2057_v44 = vmul.f32 0.5, %v3172_v6 }
 0x3f3   : > { %v2065_v51 = vmul.f32 0.5, %v3174_v0  ;;  %v3176_v38 = vpop.eup %3175  ;;  %v5354_v0 = vld [vmem:[#allocation55_spill] sm:$0xff] }
 0x3f4   : > { %v2059_v53 = vadd.f32 0.5, %v2057_v44  ;;  %v3178_v39 = vpop.eup %3177  ;;  %v2058_v50 = vmul.f32 0.5, %v3176_v38  ;;  %v5355_v44 = vld [vmem:[#allocation56_spill] sm:$0xff] }
 0x3f5   : > { %v2067_v54 = vadd.f32 0.5, %v2065_v51  ;;  %v3180_v55 = vpop.eup %3179  ;;  %v5357_v51 = vld [vmem:[#allocation58_spill] sm:$0xff]  ;;  %v5359_v38 = vld [vmem:[#allocation60_spill] sm:$0xff] }
 0x3f6   : > { %v2081_v4 = vmul.f32 %v3178_v39, %v2059_v53  ;;  %v2060_v59 = vadd.f32 0.5, %v2058_v50  ;;  %v2066_v47 = vmul.f32 0.5, %v3180_v55  ;;  %v3182_v61 = vpop.eup %3181  ;;  %v5360_v53 = vld [vmem:[#allocation61_spill] sm:$0xff]  ;;  %v5361_v39 = vld [vmem:[#allocation62_spill] sm:$0xff]  ;;  %v5363_v50 = vld [vmem:[#allocation64_spill] sm:$0xff] }
 0x3f7   : > { %v2079_v42 = vmul.f32 %v2067_v54, %v4402_v52  ;;  %v3184_v49 = vpop.eup %3183  ;;  %v5362_v54 = vld [vmem:[#allocation63_spill] sm:$0xff]  ;;  %v5364_v55 = vld [vmem:[#allocation65_spill] sm:$0xff] }
 0x3f8   : > { %v2068_v33 = vadd.f32 0.5, %v2066_v47  ;;  %v2082_v43 = vmul.f32 %v3182_v61, %v2060_v59  ;;  %v3186_v46 = vpop.eup %3185  ;;  %v2075_v58 = vmul.f32 0.5, %v3184_v49  ;;  %v5367_v59 = vld [vmem:[#allocation68_spill] sm:$0xff]  ;;  %v5368_v47 = vld [vmem:[#allocation69_spill] sm:$0xff]  ;;  %v5369_v61 = vld [vmem:[#allocation70_spill] sm:$0xff] }
 0x3f9   : > { %v4726_v60 = vadd.f32 %v2081_v4, %v2079_v42  ;;  %v2076_v52 = vmul.f32 0.5, %v3186_v46  ;;  %v5365_v4 = vld [vmem:[#allocation66_spill] sm:$0xff]  ;;  %v5366_v42 = vld [vmem:[#allocation67_spill] sm:$0xff] }
 0x3fa   : > { %v2080_v18 = vmul.f32 %v2068_v33, %v4406_v57  ;;  %v2077_v5 = vadd.f32 0.5, %v2075_v58  ;;  %v5323_v57 = vld [vmem:[#allocation24_spill] sm:$0xff]  ;;  %v5370_v33 = vld [vmem:[#allocation71_spill] sm:$0xff]  ;;  %v5373_v49 = vld [vmem:[#allocation74_spill] sm:$0xff] }
 0x3fb   : > { %3187 = vtanh.f32 %v4726_v60  ;;  %v2078_v56 = vadd.f32 0.5, %v2076_v52  ;;  %v5374_v46 = vld [vmem:[#allocation75_spill] sm:$0xff]  ;;  %v5375_v58 = vld [vmem:[#allocation76_spill] sm:$0xff]  ;;  %v5376_v52 = vld [vmem:[#allocation77_spill] sm:$0xff] }
 0x3fc   : > { %v4730_v22 = vadd.f32 %v2082_v43, %v2080_v18  ;;  %v5371_v43 = vld [vmem:[#allocation72_spill] sm:$0xff]  ;;  %v5372_v18 = vld [vmem:[#allocation73_spill] sm:$0xff] }
 0x3fe   : > { %3189 = vtanh.f32 %v4730_v22 }
 0x405   : > { %v3188_v31 = vpop.eup %3187 }
 0x406   : > { %v2087_v62 = vmul.f32 %v3188_v31, %v2077_v5  ;;  %v5377_v31 = vld [vmem:[#allocation78_spill] sm:$0xff]  ;;  %v5378_v5 = vld [vmem:[#allocation79_spill] sm:$0xff] }
 0x408   : > { %v3190_v1 = vpop.eup %3189 }
 0x409   : > { %v2088_v2 = vmul.f32 %v3190_v1, %v2078_v56  ;;  %v5379_v56 = vld [vmem:[#allocation80_spill] sm:$0xff]  ;;  %v5380_v1 = vld [vmem:[#allocation81_spill] sm:$0xff] }
 0x40b   : > { %v2089_v6 = vpack.c.bf16 %v2088_v2, %v2087_v62  ;;  %v5381_v62 = vld [vmem:[#allocation82_spill] sm:$0xff]  ;;  %v5382_v2 = vld [vmem:[#allocation88_spill] sm:$0xff] }
 0x40d   : > { %2123 = vmatmul.mubr.bf16.vlgmr.msra.gmra.mrb[36].mxu0 %v2089_v6  ;;  %2166 = vmatmul.mubr.bf16.vlgmr.msra.gmra.mrb[36].mxu1 %v2089_v6 }
 0x40e   : > { %2229 = vmatpush1.bf16.msra.mxu0 %v4413_v3  ;;  %2272 = vmatpush1.bf16.msra.mxu1 %v4416_v10  ;;  %v5324_v3 = vld [vmem:[#allocation25_spill] sm:$0xff]  ;;  %v5325_v10 = vld [vmem:[#allocation26_spill] sm:$0xff] }
 0x40f   : > { %2230 = vmatprep.subr.bf16.mxu0 %v4419_v11  ;;  %2273 = vmatprep.subr.bf16.mxu1 %v4422_v12  ;;  %v5326_v11 = vld [vmem:[#allocation27_spill] sm:$0xff]  ;;  %v5327_v12 = vld [vmem:[#allocation28_spill] sm:$0xff] }
 0x410   : > { %2260 = vmatprep.mubr.bf16.mxu0 %v5182_v19  ;;  %2303 = vmatprep.mubr.bf16.mxu1 %v5182_v19  ;;  %v5322_v19 = vld [vmem:[#allocation23_spill] sm:$0xff] }
 0x412   : > { %2231 = vmatpush1.bf16.msra.mxu0 %v4427_v13  ;;  %2274 = vmatpush1.bf16.msra.mxu1 %v4430_v14  ;;  %v5328_v13 = vld [vmem:[#allocation29_spill] sm:$0xff]  ;;  %v5329_v14 = vld [vmem:[#allocation30_spill] sm:$0xff] }
 0x413   : > { %2232 = vmatprep.subr.bf16.mxu0 %v4433_v7  ;;  %2275 = vmatprep.subr.bf16.mxu1 %v4436_v21  ;;  %v5330_v7 = vld [vmem:[#allocation31_spill] sm:$0xff]  ;;  %v5331_v21 = vld [vmem:[#allocation32_spill] sm:$0xff] }
 0x416   : > { %2233 = vmatpush1.bf16.msra.mxu0 %v4439_v32  ;;  %2276 = vmatpush1.bf16.msra.mxu1 %v4442_v16  ;;  %v5332_v32 = vld [vmem:[#allocation33_spill] sm:$0xff]  ;;  %v5333_v16 = vld [vmem:[#allocation34_spill] sm:$0xff] }
 0x417   : > { %2234 = vmatprep.subr.bf16.mxu0 %v4445_v24  ;;  %2277 = vmatprep.subr.bf16.mxu1 %v4448_v28  ;;  %v5334_v24 = vld [vmem:[#allocation35_spill] sm:$0xff]  ;;  %v5335_v28 = vld [vmem:[#allocation36_spill] sm:$0xff] }
 0x41a   : > { %2235 = vmatpush1.bf16.msra.mxu0 %v4451_v35  ;;  %2278 = vmatpush1.bf16.msra.mxu1 %v4454_v27  ;;  %v5336_v35 = vld [vmem:[#allocation37_spill] sm:$0xff]  ;;  %v5337_v27 = vld [vmem:[#allocation38_spill] sm:$0xff] }
 0x41b   : > { %2236 = vmatprep.subr.bf16.mxu0 %v4457_v45  ;;  %2279 = vmatprep.subr.bf16.mxu1 %v4460_v30  ;;  %v5338_v45 = vld [vmem:[#allocation39_spill] sm:$0xff]  ;;  %v5339_v30 = vld [vmem:[#allocation40_spill] sm:$0xff] }
 0x41e   : > { %2237 = vmatpush1.bf16.msra.mxu0 %v4463_v17  ;;  %2280 = vmatpush1.bf16.msra.mxu1 %v4466_v36  ;;  %v5340_v17 = vld [vmem:[#allocation41_spill] sm:$0xff]  ;;  %v5341_v36 = vld [vmem:[#allocation42_spill] sm:$0xff] }
 0x41f   : > { %2238 = vmatprep.subr.bf16.mxu0 %v4469_v9  ;;  %2281 = vmatprep.subr.bf16.mxu1 %v4472_v23  ;;  %v5342_v9 = vld [vmem:[#allocation43_spill] sm:$0xff]  ;;  %v5343_v23 = vld [vmem:[#allocation44_spill] sm:$0xff] }
 0x422   : > { %2239 = vmatpush1.bf16.msra.mxu0 %v4475_v34  ;;  %2282 = vmatpush1.bf16.msra.mxu1 %v4478_v29  ;;  %v5344_v34 = vld [vmem:[#allocation45_spill] sm:$0xff]  ;;  %v5345_v29 = vld [vmem:[#allocation46_spill] sm:$0xff] }
 0x423   : > { %2240 = vmatprep.subr.bf16.mxu0 %v4481_v63  ;;  %2283 = vmatprep.subr.bf16.mxu1 %v4484_v20  ;;  %v5346_v63 = vld [vmem:[#allocation47_spill] sm:$0xff]  ;;  %v5347_v20 = vld [vmem:[#allocation48_spill] sm:$0xff] }
 0x426   : > { %2241 = vmatpush1.bf16.msra.mxu0 %v4487_v15  ;;  %2284 = vmatpush1.bf16.msra.mxu1 %v4490_v26  ;;  %v5348_v15 = vld [vmem:[#allocation49_spill] sm:$0xff]  ;;  %v5349_v26 = vld [vmem:[#allocation50_spill] sm:$0xff] }
 0x427   : > { %2242 = vmatprep.subr.bf16.mxu0 %v4493_v8  ;;  %2285 = vmatprep.subr.bf16.mxu1 %v4496_v37  ;;  %v5350_v8 = vld [vmem:[#allocation51_spill] sm:$0xff]  ;;  %v5351_v37 = vld [vmem:[#allocation52_spill] sm:$0xff] }
 0x42a   : > { %2243 = vmatpush1.bf16.msra.mxu0 %v4499_v40  ;;  %2286 = vmatpush1.bf16.msra.mxu1 %v4502_v41  ;;  %v5352_v40 = vld [vmem:[#allocation53_spill] sm:$0xff]  ;;  %v5353_v41 = vld [vmem:[#allocation54_spill] sm:$0xff] }
 0x42b   : > { %2359 = vmatprep.subr.bf16.mxu0 %v5322_v19  ;;  %2402 = vmatprep.subr.bf16.mxu1 %v5323_v57  ;;  %v5384_v19 = vld [vmem:[#allocation90_spill] sm:$0xff]  ;;  %v5385_v57 = vld [vmem:[#allocation91_spill] sm:$0xff] }
 0x42d   : > { %2261 = vmatmul.mubr.bf16.vlgmr.msra.gmra.mrb[40].mxu0 %v2089_v6  ;;  %2304 = vmatmul.mubr.bf16.vlgmr.msra.gmra.mrb[40].mxu1 %v2089_v6  ;;  %v5383_v6 = vld [vmem:[#allocation89_spill] sm:$0xff] }
 0x42e   : > { %2360 = vmatpush1.bf16.msra.mxu0 %v5324_v3  ;;  %2403 = vmatpush1.bf16.msra.mxu1 %v5325_v10 }
 0x42f   : > { %2361 = vmatprep.subr.bf16.mxu0 %v5326_v11  ;;  %2404 = vmatprep.subr.bf16.mxu1 %v5327_v12  ;;  %v5386_v11 = vld [vmem:[#allocation19_spill] sm:$0xff] }
 0x432   : > { %2362 = vmatpush1.bf16.msra.mxu0 %v5328_v13  ;;  %2405 = vmatpush1.bf16.msra.mxu1 %v5329_v14 }
 0x433   : > { %2363 = vmatprep.subr.bf16.mxu0 %v5330_v7  ;;  %2406 = vmatprep.subr.bf16.mxu1 %v5331_v21  ;;  %v5387_v7 = vld [vmem:[#allocation20_spill] sm:$0xff] }
 0x436   : > { %2364 = vmatpush1.bf16.msra.mxu0 %v5332_v32  ;;  %2407 = vmatpush1.bf16.msra.mxu1 %v5333_v16 }
 0x437   : > { %2365 = vmatprep.subr.bf16.mxu0 %v5334_v24  ;;  %2408 = vmatprep.subr.bf16.mxu1 %v5335_v28 }
 0x43a   : > { %2366 = vmatpush1.bf16.msra.mxu0 %v5336_v35  ;;  %2409 = vmatpush1.bf16.msra.mxu1 %v5337_v27 }
 0x43b   : > { %2367 = vmatprep.subr.bf16.mxu0 %v5338_v45  ;;  %2410 = vmatprep.subr.bf16.mxu1 %v5339_v30 }
 0x43e   : > { %2368 = vmatpush1.bf16.msra.mxu0 %v5340_v17  ;;  %2411 = vmatpush1.bf16.msra.mxu1 %v5341_v36  ;;  %v5388_v17 = vld [vmem:[#allocation21_spill] sm:$0xff] }
 0x43f   : > { %2369 = vmatprep.subr.bf16.mxu0 %v5342_v9  ;;  %2412 = vmatprep.subr.bf16.mxu1 %v5343_v23 }
 0x442   : > { %2370 = vmatpush1.bf16.msra.mxu0 %v5344_v34  ;;  %2413 = vmatpush1.bf16.msra.mxu1 %v5345_v29  ;;  %v5389_v29 = vld [vmem:[#allocation22_spill] sm:$0xff] }
 0x443   : > { %2371 = vmatprep.subr.bf16.mxu0 %v5346_v63  ;;  %2414 = vmatprep.subr.bf16.mxu1 %v5347_v20 }
 0x446   : > { %2372 = vmatpush1.bf16.msra.mxu0 %v5348_v15  ;;  %2415 = vmatpush1.bf16.msra.mxu1 %v5349_v26 }
 0x447   : > { %2373 = vmatprep.subr.bf16.mxu0 %v5350_v8  ;;  %2416 = vmatprep.subr.bf16.mxu1 %v5351_v37 }
 0x44a   : > { %2374 = vmatpush1.bf16.msra.mxu0 %v5352_v40  ;;  %2417 = vmatpush1.bf16.msra.mxu1 %v5353_v41 }
 0x44b   : > { %2375 = vmatprep.subr.bf16.mxu0 %v5354_v0  ;;  %2418 = vmatprep.subr.bf16.mxu1 %v5355_v44 }
 0x44e   : > { %2376 = vmatpush1.bf16.msra.mxu0 %v5356_v25  ;;  %2419 = vmatpush1.bf16.msra.mxu1 %v5357_v51 }
 0x44f   : > { %2377 = vmatprep.subr.bf16.mxu0 %v5358_v48  ;;  %2420 = vmatprep.subr.bf16.mxu1 %v5359_v38 }
 0x452   : > { %2378 = vmatpush1.bf16.msra.mxu0 %v5360_v53  ;;  %2421 = vmatpush1.bf16.msra.mxu1 %v5361_v39  ;;  %v5390_v39 = vld [vmem:[#allocation92_spill] sm:$0xff] }
 0x453   : > { %2379 = vmatprep.subr.bf16.mxu0 %v5362_v54  ;;  %2422 = vmatprep.subr.bf16.mxu1 %v5363_v50 }
 0x456   : > { %2380 = vmatpush1.bf16.msra.mxu0 %v5364_v55  ;;  %2423 = vmatpush1.bf16.msra.mxu1 %v5365_v4 }
 0x457   : > { %2381 = vmatprep.subr.bf16.mxu0 %v5366_v42  ;;  %2424 = vmatprep.subr.bf16.mxu1 %v5367_v59 }
 0x45a   : > { %2382 = vmatpush1.bf16.msra.mxu0 %v5368_v47  ;;  %2425 = vmatpush1.bf16.msra.mxu1 %v5369_v61  ;;  %v5391_v61 = vld [vmem:[#allocation93_spill] sm:$0xff] }
 0x45b   : > { %2383 = vmatprep.subr.bf16.mxu0 %v5370_v33  ;;  %2426 = vmatprep.subr.bf16.mxu1 %v5371_v43 }
 0x45e   : > { %2384 = vmatpush1.bf16.msra.mxu0 %v5372_v18  ;;  %2427 = vmatpush1.bf16.msra.mxu1 %v5373_v49 }
 0x45f   : > { %2385 = vmatprep.subr.bf16.mxu0 %v5374_v46  ;;  %2428 = vmatprep.subr.bf16.mxu1 %v5375_v58  ;;  %v5392_v46 = vld [vmem:[#allocation84_spill] sm:$0xff] }
 0x460   : > { %v2220_v58 = vunpack.c.l.bf16 %v5392_v46 }
 0x462   : > { %2386 = vmatpush1.bf16.msra.mxu0 %v5376_v52  ;;  %2429 = vmatpush1.bf16.msra.mxu1 %v5377_v31  ;;  %v5393_v52 = vld [vmem:[#allocation85_spill] sm:$0xff] }
 0x463   : > { %2387 = vmatprep.subr.bf16.mxu0 %v5378_v5  ;;  %2430 = vmatprep.subr.bf16.mxu1 %v5379_v56  ;;  %v2222_v31 = vunpack.c.l.bf16 %v5393_v52 }
 0x466   : > { %2388 = vmatpush1.bf16.msra.mxu0 %v5380_v1  ;;  %2431 = vmatpush1.bf16.msra.mxu1 %v5381_v62  ;;  %v5394_v1 = vld [vmem:[#allocation86_spill] sm:$0xff] }
 0x467   : > { %2389 = vmatprep.subr.bf16.mxu0 %v5382_v2  ;;  %2432 = vmatprep.subr.bf16.mxu1 %v5383_v6  ;;  %v2221_v62 = vunpack.c.l.bf16 %v5394_v1  ;;  %v5395_v2 = vld [vmem:[#allocation87_spill] sm:$0xff] }
 0x468   : > { %v2223_v6 = vunpack.c.l.bf16 %v5395_v2 }
 0x46a   : > { %2390 = vmatpush1.bf16.msra.mxu0 %v5384_v19  ;;  %2433 = vmatpush1.bf16.msra.mxu1 %v5385_v57  ;;  %v2224_v19 = vunpack.c.h.bf16 %v5392_v46  ;;  %v2226_v57 = vunpack.c.h.bf16 %v5393_v52 }
 0x4e0   : > { %v2124_v3 = vpop.f32.mrb[36].mxu0  ;;  %v2167_v10 = vpop.f32.mrb[36].mxu1 }
 0x4e1   : > { %v2125_v12 = vadd.f32 %v2124_v3, %v5386_v11  ;;  %v2126_v13 = vpop.f32.mrb[37].mxu0  ;;  %v2169_v14 = vpop.f32.mrb[37].mxu1  ;;  %v2168_v36 = vadd.f32 %v2167_v10, %v5388_v17 }
 0x4e2   : > { %v2127_v21 = vadd.f32 %v2126_v13, %v5387_v7  ;;  %v2128_v32 = vpop.f32.mrb[38].mxu0  ;;  %v2171_v16 = vpop.f32.mrb[38].mxu1  ;;  %v2170_v63 = vadd.f32 %v2169_v14, %v5389_v29  ;;  %v2225_v14 = vunpack.c.h.bf16 %v5394_v1 }
 0x4e3   : > { %v2176_v24 = vmul.f32 0.5, %v2125_v12  ;;  %v2129_v28 = vadd.f32 %v2128_v32, %v5386_v11  ;;  %v2130_v35 = vpop.f32.mrb[39].mxu0  ;;  %v2173_v27 = vpop.f32.mrb[39].mxu1  ;;  %v2172_v34 = vadd.f32 %v2171_v16, %v5388_v17 }
 0x4e4   : > { %v2184_v45 = vmul.f32 0.5, %v2127_v21  ;;  %v2131_v30 = vadd.f32 %v2130_v35, %v5387_v7  ;;  %v2174_v20 = vadd.f32 %v2173_v27, %v5389_v29  ;;  %v2194_v37 = vmul.f32 0.5, %v2170_v63 }
 0x4e5   : > { %3191 = vtanh.f32 %v2176_v24  ;;  %v2177_v9 = vmul.f32 0.5, %v2129_v28  ;;  %v2227_v21 = vunpack.c.h.bf16 %v5395_v2 }
 0x4e6   : > { %3193 = vtanh.f32 %v2184_v45  ;;  %v2185_v23 = vmul.f32 0.5, %v2131_v30  ;;  %v2195_v41 = vmul.f32 0.5, %v2174_v20 }
 0x4e7   : > { %3195 = vtanh.f32 %v2177_v9 }
 0x4e8   : > { %3197 = vtanh.f32 %v2168_v36 }
 0x4e9   : > { %3199 = vtanh.f32 %v2185_v23 }
 0x4ea   : > { %3201 = vtanh.f32 %v2172_v34 }
 0x4eb   : > { %3203 = vtanh.f32 %v2194_v37 }
 0x4ec   : > { %3205 = vtanh.f32 %v2195_v41 }
 0x4ef   : > { %v3192_v15 = vpop.eup %3191 }
 0x4f0   : > { %v3194_v26 = vpop.eup %3193  ;;  %v2180_v8 = vmul.f32 0.5, %v3192_v15 }
 0x4f1   : > { %v2188_v40 = vmul.f32 0.5, %v3194_v26  ;;  %v3196_v0 = vpop.eup %3195 }
 0x4f2   : > { %v2182_v44 = vadd.f32 0.5, %v2180_v8  ;;  %v3198_v25 = vpop.eup %3197  ;;  %v2181_v48 = vmul.f32 0.5, %v3196_v0 }
 0x4f3   : > { %v2190_v51 = vadd.f32 0.5, %v2188_v40  ;;  %v3200_v38 = vpop.eup %3199 }
 0x4f4   : > { %v2204_v53 = vmul.f32 %v3198_v25, %v2182_v44  ;;  %v2183_v50 = vadd.f32 0.5, %v2181_v48  ;;  %v2189_v55 = vmul.f32 0.5, %v3200_v38  ;;  %v3202_v4 = vpop.eup %3201 }
 0x4f5   : > { %v2202_v54 = vmul.f32 %v2190_v51, %v5390_v39  ;;  %v3204_v18 = vpop.eup %3203 }
 0x4f6   : > { %v2191_v59 = vadd.f32 0.5, %v2189_v55  ;;  %v2205_v47 = vmul.f32 %v3202_v4, %v2183_v50  ;;  %v3206_v49 = vpop.eup %3205  ;;  %v2198_v32 = vmul.f32 0.5, %v3204_v18 }
 0x4f7   : > { %v4838_v42 = vadd.f32 %v2204_v53, %v2202_v54  ;;  %v2199_v16 = vmul.f32 0.5, %v3206_v49 }
 0x4f8   : > { %v2203_v33 = vmul.f32 %v2191_v59, %v5391_v61  ;;  %v2200_v8 = vadd.f32 0.5, %v2198_v32 }
 0x4f9   : > { %3207 = vtanh.f32 %v4838_v42  ;;  %v2201_v37 = vadd.f32 0.5, %v2199_v16 }
 0x4fa   : > { %v4842_v43 = vadd.f32 %v2205_v47, %v2203_v33 }
 0x4fc   : > { %3209 = vtanh.f32 %v4842_v43 }
 0x500   : > { %v2262_v5 = vpop.f32.mrb[40].mxu0  ;;  %v2305_v56 = vpop.f32.mrb[40].mxu1 }
 0x501   : > { %v2314_v3 = vadd.f32 %v2262_v5, %v2220_v58  ;;  %v2316_v10 = vadd.f32 %v2305_v56, %v2222_v31  ;;  %v2264_v12 = vpop.f32.mrb[41].mxu0  ;;  %v2307_v13 = vpop.f32.mrb[41].mxu1 }
 0x502   : > { %v2315_v24 = vadd.f32 %v2264_v12, %v2221_v62  ;;  %v2317_v28 = vadd.f32 %v2307_v13, %v2223_v6  ;;  %v2266_v35 = vpop.f32.mrb[42].mxu0  ;;  %v2309_v27 = vpop.f32.mrb[42].mxu1 }
 0x503   : > { %v2322_v45 = vmul.f32 0.5, %v2314_v3  ;;  %v2318_v30 = vadd.f32 %v2266_v35, %v2224_v19  ;;  %v2320_v36 = vadd.f32 %v2309_v27, %v2226_v57  ;;  %v2268_v9 = vpop.f32.mrb[43].mxu0  ;;  %v2311_v23 = vpop.f32.mrb[43].mxu1 }
 0x504   : > { %v2330_v34 = vmul.f32 0.5, %v2315_v24  ;;  %v2319_v63 = vadd.f32 %v2268_v9, %v2225_v14  ;;  %v2321_v20 = vadd.f32 %v2311_v23, %v2227_v21  ;;  %v3208_v15 = vpop.eup %3207  ;;  %v2340_v51 = vmul.f32 0.5, %v2317_v28 }
 0x505   : > { %3211 = vtanh.f32 %v2322_v45  ;;  %v2323_v26 = vmul.f32 0.5, %v2318_v30  ;;  %v2210_v0 = vmul.f32 %v3208_v15, %v2200_v8 }
 0x506   : > { %3213 = vtanh.f32 %v2330_v34  ;;  %v2331_v40 = vmul.f32 0.5, %v2319_v63  ;;  %v3210_v41 = vpop.eup %3209  ;;  %v2341_v54 = vmul.f32 0.5, %v2321_v20 }
 0x507   : > { %3215 = vtanh.f32 %v2323_v26  ;;  %v2211_v44 = vmul.f32 %v3210_v41, %v2201_v37 }
 0x508   : > { %3217 = vtanh.f32 %v2316_v10 }
 0x509   : > { %3219 = vtanh.f32 %v2331_v40  ;;  %v2212_v25 = vpack.c.bf16 %v2211_v44, %v2210_v0 }
 0x50a   : > { %3221 = vtanh.f32 %v2320_v36 }
 0x50b   : > { %2391 = vmatprep.mubr.bf16.mxu0 %v2212_v25  ;;  %2434 = vmatprep.mubr.bf16.mxu1 %v2212_v25  ;;  %3223 = vtanh.f32 %v2340_v51 }
 0x50c   : > { %3225 = vtanh.f32 %v2341_v54 }
 0x50f   : > { %v3212_v48 = vpop.eup %3211 }
 0x510   : > { %v3214_v38 = vpop.eup %3213  ;;  %v2326_v53 = vmul.f32 0.5, %v3212_v48 }
 0x511   : > { %v2334_v39 = vmul.f32 0.5, %v3214_v38  ;;  %v3216_v50 = vpop.eup %3215 }
 0x512   : > { %v2328_v55 = vadd.f32 0.5, %v2326_v53  ;;  %v3218_v4 = vpop.eup %3217  ;;  %v2327_v47 = vmul.f32 0.5, %v3216_v50 }
 0x513   : > { %v2336_v59 = vadd.f32 0.5, %v2334_v39  ;;  %v3220_v61 = vpop.eup %3219 }
 0x514   : > { %v2350_v33 = vmul.f32 %v3218_v4, %v2328_v55  ;;  %v2329_v49 = vadd.f32 0.5, %v2327_v47  ;;  %v2335_v46 = vmul.f32 0.5, %v3220_v61  ;;  %v3222_v58 = vpop.eup %3221 }
 0x515   : > { %v2348_v18 = vmul.f32 %v2336_v59, %v4726_v60  ;;  %v3224_v1 = vpop.eup %3223 }
 0x516   : > { %v2337_v31 = vadd.f32 0.5, %v2335_v46  ;;  %v2351_v5 = vmul.f32 %v3222_v58, %v2329_v49  ;;  %v2344_v2 = vmul.f32 0.5, %v3224_v1  ;;  %v3226_v6 = vpop.eup %3225 }
 0x517   : > { %v2352_v52 = vadd.f32 %v2350_v33, %v2348_v18  ;;  %v2345_v57 = vmul.f32 0.5, %v3226_v6 }
 0x518   : > { %v2349_v56 = vmul.f32 %v2337_v31, %v4730_v22  ;;  %v2346_v19 = vadd.f32 0.5, %v2344_v2 }
 0x519   : > { %3227 = vtanh.f32 %v2352_v52  ;;  %2486 = vst [vmem:[#allocation12] sm:$0xff] %v2352_v52  ;;  %v2347_v10 = vadd.f32 0.5, %v2345_v57 }
 0x51a   : > { %v2353_v62 = vadd.f32 %v2351_v5, %v2349_v56 }
 0x51c   : > { %3229 = vtanh.f32 %v2353_v62  ;;  %2487 = vst [vmem:[#allocation12 + $0x8] sm:$0xff] %v2353_v62 }
 0x523   : > { %v3228_v60 = vpop.eup %3227 }
 0x524   : > { %v2356_v3 = vmul.f32 %v3228_v60, %v2346_v19 }
 0x526   : > { %v3230_v12 = vpop.eup %3229 }
 0x527   : > { %v2357_v13 = vmul.f32 %v3230_v12, %v2347_v10 }
 0x529   : > { %v2358_v14 = vpack.c.bf16 %v2357_v13, %v2356_v3 }
 0x52b   : > { %2392 = vmatmul.mubr.bf16.vlgmr.msra.gmra.mrb[44].mxu0 %v2358_v14  ;;  %v2482_v21 = vunpack.c.l.bf16 %v2358_v14  ;;  %v2483_v32 = vunpack.c.h.bf16 %v2358_v14  ;;  %2435 = vmatmul.mubr.bf16.vlgmr.msra.gmra.mrb[44].mxu1 %v2358_v14 }
 0x52d   : > { %2484 = vst [vmem:[#allocation11] sm:$0xff] %v2482_v21  ;;  %2485 = vst [vmem:[#allocation11 + $0x8] sm:$0xff] %v2483_v32 }
 0x5fe   : > { %v2393_v22 = vpop.f32.mrb[44].mxu0  ;;  %v2436_v16 = vpop.f32.mrb[44].mxu1 }
 0x5ff   : > { %v2394_v24 = vadd.f32 %v2393_v22, %v5386_v11  ;;  %v2395_v28 = vpop.f32.mrb[45].mxu0  ;;  %v2438_v35 = vpop.f32.mrb[45].mxu1  ;;  %v2437_v15 = vadd.f32 %v2436_v16, %v5388_v17 }
 0x600   : > { %v2396_v27 = vadd.f32 %v2395_v28, %v5387_v7  ;;  %v2397_v45 = vpop.f32.mrb[46].mxu0  ;;  %v2440_v30 = vpop.f32.mrb[46].mxu1  ;;  %v2439_v40 = vadd.f32 %v2438_v35, %v5389_v29 }
 0x601   : > { %v2445_v36 = vmul.f32 0.5, %v2394_v24  ;;  %v2398_v9 = vadd.f32 %v2397_v45, %v5386_v11  ;;  %v2399_v23 = vpop.f32.mrb[47].mxu0  ;;  %v2442_v34 = vpop.f32.mrb[47].mxu1  ;;  %v2441_v37 = vadd.f32 %v2440_v30, %v5388_v17 }
 0x602   : > { %v2453_v63 = vmul.f32 0.5, %v2396_v27  ;;  %v2400_v20 = vadd.f32 %v2399_v23, %v5387_v7  ;;  %v2463_v11 = vmul.f32 0.5, %v2439_v40  ;;  %v2443_v41 = vadd.f32 %v2442_v34, %v5389_v29 }
 0x603   : > { %3231 = vtanh.f32 %v2445_v36  ;;  %v2446_v26 = vmul.f32 0.5, %v2398_v9 }
 0x604   : > { %3233 = vtanh.f32 %v2453_v63  ;;  %v2454_v8 = vmul.f32 0.5, %v2400_v20  ;;  %v2464_v51 = vmul.f32 0.5, %v2443_v41 }
 0x605   : > { %3235 = vtanh.f32 %v2446_v26 }
 0x606   : > { %3237 = vtanh.f32 %v2437_v15 }
 0x607   : > { %3239 = vtanh.f32 %v2454_v8 }
 0x608   : > { %3241 = vtanh.f32 %v2441_v37 }
 0x609   : > { %3243 = vtanh.f32 %v2463_v11 }
 0x60a   : > { %3245 = vtanh.f32 %v2464_v51 }
 0x60d   : > { %v3232_v0 = vpop.eup %3231 }
 0x60e   : > { %v3234_v44 = vpop.eup %3233  ;;  %v2449_v7 = vmul.f32 0.5, %v3232_v0 }
 0x60f   : > { %v2457_v25 = vmul.f32 0.5, %v3234_v44  ;;  %v3236_v48 = vpop.eup %3235 }
 0x610   : > { %v2451_v38 = vadd.f32 0.5, %v2449_v7  ;;  %v3238_v53 = vpop.eup %3237  ;;  %v2450_v54 = vmul.f32 0.5, %v3236_v48 }
 0x611   : > { %v2459_v39 = vadd.f32 0.5, %v2457_v25  ;;  %v3240_v17 = vpop.eup %3239 }
 0x612   : > { %v2473_v50 = vmul.f32 %v3238_v53, %v2451_v38  ;;  %v2452_v4 = vadd.f32 0.5, %v2450_v54  ;;  %v2458_v59 = vmul.f32 0.5, %v3240_v17  ;;  %v3242_v29 = vpop.eup %3241 }
 0x613   : > { %v2471_v55 = vmul.f32 %v2459_v39, %v4838_v42  ;;  %v3244_v42 = vpop.eup %3243 }
 0x614   : > { %v2460_v61 = vadd.f32 0.5, %v2458_v59  ;;  %v2474_v33 = vmul.f32 %v3242_v29, %v2452_v4  ;;  %v2467_v46 = vmul.f32 0.5, %v3244_v42 }
 0x615   : > { %v2475_v47 = vadd.f32 %v2473_v50, %v2471_v55 }
 0x616   : > { %v2472_v18 = vmul.f32 %v2460_v61, %v4842_v43 }
 0x617   : > { %3247 = vtanh.f32 %v2475_v47  ;;  %2492 = vst [vmem:[#allocation12 + $0x10] sm:$0xff] %v2475_v47 }
 0x618   : > { %v2476_v49 = vadd.f32 %v2474_v33, %v2472_v18 }
 0x61a   : > { %3249 = vtanh.f32 %v2476_v49  ;;  %2493 = vst [vmem:[#allocation12 + $0x18] sm:$0xff] %v2476_v49 }
 0x61b   : > { %3474 = shalt.err (!%p3471_p6)
}
 0x61c   : > { %s3475_s18 = scalar_lea.hbm %s4946_s7, 512 }
 0x61d   : > { %p3476_p10 = scmp.ne.s32.totalorder %s4946_s7, %s3475_s18  ;;  %p3481_p8 = scmp.lt.u32.totalorder %s3475_s18, %s4946_s7 }
 0x61f   : > { %p3477_p1 = pnand %p3476_p10, %p4867_p4 }
 0x621   : > { %p3478_p3 = pneg %p3477_p1 }
 0x623   : > { %p3483_p11 = pnand %p3481_p8, %p3478_p3 }
 0x625   : > { %3486 = shalt.err (!%p3483_p11)
}
 0x626   : > { %s3592_s20 = smov 128   ;;  %s3593_s21 = smov 8   ;;  %v3246_v43 = vpop.eup %3245  ;;  %v2469_v58 = vadd.f32 0.5, %v2467_v46 }
 0x627   : > { %2804 = dma.vmem_to_hbm [thread:$0]  (%p4867_p4), %s2520_s11, 512, %s4946_s7, [#allocation13], %s3592_s20, %s3592_s20, %s3593_s21   ;;  %v2468_v52 = vmul.f32 0.5, %v3246_v43  ;;  %v3248_v31 = vpop.eup %3247 }
 0x628   : > { %v2479_v5 = vmul.f32 %v3248_v31, %v2469_v58  ;;  %v3250_v1 = vpop.eup %3249  ;;  %s3594_s9 = smov [#allocation11]  }
 0x629   : > { %v2470_v56 = vadd.f32 0.5, %v2468_v52  ;;  %s2503_s10 = sshll.u32 %s3594_s9, 4  ;;  %s2504_s10 = int_to_ptr.vmem [resolvable:$true] %s2503_s10 }
 0x62a   : > { %s3487_s24 = scalar_lea.vmem %s2504_s10, 512  ;;  %p3494_p12 = scmp.lt.s32.totalorder %s2504_s10, %s2504_s10 }
 0x62b   : > { %v2480_v62 = vmul.f32 %v3250_v1, %v2470_v56  ;;  %p3488_p7 = scmp.ne.s32.totalorder %s2504_s10, %s3487_s24  ;;  %p3495_p13 = scmp.lt.s32.totalorder %s3487_s24, %s3487_s24 }
 0x62d   : > { %v2481_v2 = vpack.c.bf16 %v2480_v62, %v2479_v5  ;;  %p3489_p5 = pnand %p3488_p7, %p4867_p4  ;;  %p3496_p0 = por %p3495_p13, %p3494_p12 }
 0x62f   : > { %v2488_v6 = vunpack.c.l.bf16 %v2481_v2  ;;  %v2489_v19 = vunpack.c.h.bf16 %v2481_v2  ;;  %p3490_p9 = pneg %p3489_p5 }
 0x631   : > { %2490 = vst [vmem:[#allocation11 + $0x10] sm:$0xff] %v2488_v6  ;;  %2491 = vst [vmem:[#allocation11 + $0x18] sm:$0xff] %v2489_v19  ;;  %p3497_p2 = pnand %p3496_p0, %p3490_p9 }
 0x633   : > { %3500 = shalt.err (!%p3497_p2)
}
 0x634   : > { %s5398_s13 = sld [smem:[#allocation94_spill]] }
 0x63a   : > { %s3501_s22 = scalar_lea.hbm %s5398_s13, 512 }
 0x63b   : > { %p3502_p6 = scmp.ne.s32.totalorder %s5398_s13, %s3501_s22  ;;  %p3507_p3 = scmp.lt.u32.totalorder %s3501_s22, %s5398_s13 }
 0x63d   : > { %p3503_p10 = pnand %p3502_p6, %p4867_p4 }
 0x63f   : > { %p3504_p1 = pneg %p3503_p10 }
 0x641   : > { %p3509_p8 = pnand %p3507_p3, %p3504_p1 }
 0x643   : > { %3512 = shalt.err (!%p3509_p8)
}
 0x644   : > { %2802 = dma.vmem_to_hbm [thread:$0]  (%p4867_p4), %s2504_s10, 512, %s5398_s13, [#allocation5], %s3592_s20, %s3592_s20, %s3593_s21  }
 0x645   : > { %3550 = dma.done.wait (%p4867_p4), [#allocation5], 512  }
 0x646   : > { %3552 = vsyncadd (%p4867_p4), [#allocation5], 4294966784 }
 0x647   : > { %3554 = dma.done.wait (%p4867_p4), [#allocation13], 512  }
 0x648   : > { %3556 = vsyncadd (%p4867_p4), [#allocation13], 4294966784 }
 0x649 PF: > { %s25_s29 = sadd.s32 1, %s3579_s29   ;;  %s5399_s24 = smov %s3563_s25 }
 0x64a   : > { %p22_p11 = scmp.ge.s32.totalorder %s25_s29, 4   ;;  %s5400_s25 = smov %s3567_s26 }
 0x64b   : > { %s5401_s26 = smov %s3790_s17  ;;  %s5402_s27 = smov %s3575_s28 }
 0x64c   : > { %s5403_s28 = smov %s5405_s30  ;;  %24 = sbr.rel (!%p22_p11) target bundleno = 10 (0xa), region = 113 }
 0x653   :  { %2539 = vsyncpa [#allocation4], 1 }
 0x654   :  { %2541 = vsyncpa [#allocation4 + $0x1], 1 }
 0x655   :  { %2542 = vsyncpa [#allocation7], 1 }
 0x656   :  { %2543 = vsyncpa [#allocation10], 1 }
 0x657   :  { %2544 = vsyncpa [#allocation5], 1 }
 0x658   :  { %2546 = vsyncpa [#allocation5 + $0x1], 1 }
 0x659   :  { %2547 = vsyncpa [#allocation13], 1 }

// kernel: tpu_custom_call.1
= control target key start
LH: loop header
LB: loop body
LE: loop exit
PB: predicated region body
PF: predicated region fallthrough
CT: control target
= control target key end

     0   :  { %s4939_s0 = inlined_call_operand.hbm [shape: bf16[8,16,128], index: 0, kind: input, shape index: {}]   ;;  %s4940_s1 = inlined_call_operand.hbm [shape: bf16[128,512], index: 1, kind: input, shape index: {}]   ;;  %s4941_s2 = inlined_call_operand.hbm [shape: bf16[128,512], index: 2, kind: input, shape index: {}]   ;;  %s4942_s3 = inlined_call_operand.vmem [shape: f32[1,512], index: 3, kind: input, shape index: {}]   ;;  %s4943_s4 = inlined_call_operand.hbm [shape: bf16[256,512], index: 4, kind: input, shape index: {}]   ;;  %s4944_s5 = inlined_call_operand.vmem [shape: f32[1,512], index: 5, kind: input, shape index: {}]   ;;  %s4945_s6 = inlined_call_operand.hbm [shape: f32[2,16,128], index: 6, kind: output, shape index: {0}]   ;;  %s4946_s7 = inlined_call_operand.hbm [shape: f32[2,16,128], index: 7, kind: output, shape index: {1}]  }
   0x1   :  { %5103 = sst [smem:[#allocation94_spill]] %s4945_s6 }
   0x2   :  { %13 = vsyncpa [#allocation4], 0 }
   0x3   :  { %15 = vsyncpa [#allocation4 + $0x1], 0 }
   0x4   :  { %16 = vsyncpa [#allocation7], 0 }
   0x5   :  { %17 = vsyncpa [#allocation10], 0 }
   0x6   :  { %18 = vsyncpa [#allocation5], 0 }
   0x7   :  { %19 = vsyncpa [#allocation13], 0  ;;  %s3635_s24 = smov 0   ;;  %s3637_s25 = smov 0  }
   0x8   :  { %s3639_s26 = smov 0   ;;  %s3641_s27 = smov 0  }
   0x9   :  { %s3643_s28 = smov 0   ;;  %s3645_s29 = smov 0  }
   0xa LB: > { %s4949_s30 = sadd.s32 4294967295, %s3579_s29   ;;  %p59_p0 = scmp.ne.s32.totalorder %s3563_s25, %s3559_s24  ;;  %s3579_s29 = sphi %s3645_s29, %s25_s29   ;;  %s3575_s28 = sphi %s3643_s28, %s5403_s28   ;;  %s3571_s27 = sphi %s3641_s27, %s5402_s27   ;;  %s3567_s26 = sphi %s3639_s26, %s5401_s26   ;;  %s3563_s25 = sphi %s3637_s25, %s5400_s25   ;;  %s3559_s24 = sphi %s3635_s24, %s5399_s24  }
   0xb   : > { %p3667_p1 = scmp.eq.s32.totalorder %s4949_s30, 0  ;;  %p2632_p2 = scmp.ge.s32.totalorder %s3579_s29, 1 }
   0xc   : > { %p227_p3 = scmp.lt.s32.totalorder %s3579_s29, 3  ;;  %s3581_s11 = smov [#allocation6]  }
   0xd   : > { %s5104_s8 = scalar_select %p3667_p1, 1, 0 }
   0xe   : > { %p3675_p4 = por %p3667_p1, %p59_p0  ;;  %p3679_p5 = pnand %p2632_p2, %p227_p3 }
   0xf   : > { %s239_s12 = sshll.u32 %s3581_s11, 4  ;;  %s3582_s14 = smov [#allocation8]   ;;  %s3683_s12 = int_to_ptr.vmem [resolvable:$true] %s239_s12 }
  0x10   : > { %s5105_s9 = scalar_select %p3675_p4, 1, 0 }
  0x11   : > { %s5106_s10 = scalar_select %p3679_p5, 1, 0 }
  0x12   : > { %p2809_p6 = pneg %p3679_p5  ;;  %s252_s15 = sshll.u32 %s3582_s14, 4  ;;  %s3693_s15 = int_to_ptr.vmem [resolvable:$true] %s252_s15 }
  0x13   : > { %s3583_s16 = smov [#allocation9]   ;;  %s3347_s20 = scalar_lea.hbm %s4940_s1, 4096 }
  0x14   : > { %p3689_p7 = pnand %p2809_p6, %p3667_p1  ;;  %s3695_s17 = sshll.u32 %s3583_s16, 4  ;;  %s269_s17 = int_to_ptr.vmem [resolvable:$true] %s3695_s17 }
  0x15   : > { %p3348_p8 = scmp.ne.s32.totalorder %s4940_s1, %s3347_s20  ;;  %p3354_p12 = scmp.lt.u32.totalorder %s3347_s20, %s4940_s1 }
  0x16   : > { %p3705_p9 = pneg %p3689_p7 }
  0x18   : > { %p3350_p10 = pnand %p3705_p9, %p3348_p8 }
  0x1a   : > { %p3351_p11 = pneg %p3350_p10 }
  0x1c   : > { %p3356_p13 = pnand %p3354_p12, %p3351_p11 }
  0x1e   : > { %3359 = shalt.err (!%p3356_p13)
}
  0x1f   : > { %s3360_s14 = scalar_lea.vmem %s3683_s12, 4096  ;;  %p3368_p6 = scmp.lt.s32.totalorder %s3683_s12, %s3683_s12 }
  0x20   : > { %p3361_p0 = scmp.ne.s32.totalorder %s3683_s12, %s3360_s14  ;;  %p3369_p1 = scmp.lt.s32.totalorder %s3360_s14, %s3360_s14 }
  0x22   : > { %p3363_p2 = pnand %p3361_p0, %p3705_p9  ;;  %p3370_p8 = por %p3369_p1, %p3368_p6 }
  0x24   : > { %p3364_p3 = pneg %p3363_p2 }
  0x26   : > { %p3371_p10 = pnand %p3370_p8, %p3364_p3 }
  0x28   : > { %3374 = shalt.err (!%p3371_p10)
}
  0x29   : > { %s3584_s16 = smov 256   ;;  %s3585_s18 = smov 16  }
  0x2a   : > { %2812 = dma.hbm_to_vmem [thread:$0]  (!%p3689_p7), %s4940_s1, 4096, %s3683_s12, [#allocation7], %s3584_s16, %s3584_s16, %s3585_s18  }
  0x2b   : > { %s3375_s24 = scalar_lea.hbm %s4941_s2, 4096 }
  0x2c   : > { %p3376_p1 = scmp.ne.s32.totalorder %s4941_s2, %s3375_s24  ;;  %p3382_p13 = scmp.lt.u32.totalorder %s3375_s24, %s4941_s2 }
  0x2e   : > { %p3378_p11 = pnand %p3376_p1, %p3705_p9 }
  0x30   : > { %p3379_p12 = pneg %p3378_p11 }
  0x32   : > { %p3384_p0 = pnand %p3382_p13, %p3379_p12 }
  0x34   : > { %3387 = shalt.err (!%p3384_p0)
}
  0x35   : > { %s3388_s12 = scalar_lea.vmem %s3693_s15, 4096  ;;  %p3396_p8 = scmp.lt.s32.totalorder %s3693_s15, %s3693_s15 }
  0x36   : > { %p3389_p2 = scmp.ne.s32.totalorder %s3693_s15, %s3388_s12  ;;  %p3397_p10 = scmp.lt.s32.totalorder %s3388_s12, %s3388_s12 }
  0x38   : > { %p3391_p3 = pnand %p3389_p2, %p3705_p9  ;;  %p3398_p1 = por %p3397_p10, %p3396_p8 }
  0x3a   : > { %p3392_p6 = pneg %p3391_p3 }
  0x3c   : > { %p3399_p11 = pnand %p3398_p1, %p3392_p6 }
  0x3e   : > { %3402 = shalt.err (!%p3399_p11)
}
  0x3f   : > { %2815 = dma.hbm_to_vmem [thread:$0]  (!%p3689_p7), %s4941_s2, 4096, %s3693_s15, [#allocation7], %s3584_s16, %s3584_s16, %s3585_s18  }
  0x40   : > { %s3403_s21 = scalar_lea.hbm %s4943_s4, 8192 }
  0x41   : > { %p3404_p12 = scmp.ne.s32.totalorder %s4943_s4, %s3403_s21  ;;  %p3410_p2 = scmp.lt.u32.totalorder %s3403_s21, %s4943_s4 }
  0x43   : > { %p3406_p13 = pnand %p3404_p12, %p3705_p9 }
  0x45   : > { %p3407_p0 = pneg %p3406_p13 }
  0x47   : > { %p3412_p3 = pnand %p3410_p2, %p3407_p0 }
  0x49   : > { %3415 = shalt.err (!%p3412_p3)
}
  0x4a   : > { %s3416_s12 = scalar_lea.vmem %s269_s17, 8192  ;;  %p3424_p1 = scmp.lt.s32.totalorder %s269_s17, %s269_s17 }
  0x4b   : > { %p3417_p6 = scmp.ne.s32.totalorder %s269_s17, %s3416_s12  ;;  %p3425_p11 = scmp.lt.s32.totalorder %s3416_s12, %s3416_s12 }
  0x4d   : > { %p3419_p8 = pnand %p3417_p6, %p3705_p9  ;;  %p3426_p4 = por %p3425_p11, %p3424_p1 }
  0x4f   : > { %p3420_p10 = pneg %p3419_p8 }
  0x51   : > { %p3427_p5 = pnand %p3426_p4, %p3420_p10 }
  0x53   : > { %3430 = shalt.err (!%p3427_p5)
}
  0x54   : > { %2818 = dma.hbm_to_vmem [thread:$0]  (!%p3689_p7), %s4943_s4, 8192, %s269_s17, [#allocation10], %s3584_s16, %s3584_s16, %s3585_s18  }
  0x55   : > { %s46_s23 = sadd.s32 1, %s3567_s26  ;;  %s34_s30 = sadd.s32 1, %s3575_s28 }
  0x56   : > { %p53_p4 = scmp.ne.s32.totalorder %s3567_s26, %s3563_s25  ;;  %p35_p5 = scmp.ge.s32.totalorder %s34_s30, 2 }
  0x57   : > { %p54_p9 = scmp.eq.s32.totalorder %s3579_s29, 0  ;;  %p2826_p12 = scmp.lt.s32.totalorder %s3579_s29, 2 }
  0x58   : > { %s285_s13 = sand.u32 1, %s3567_s26   ;;  %s5405_s30 = smov (%p35_p5, %s34_s30), 0 }
  0x59   : > { %p55_p13 = por %p54_p9, %p53_p4  ;;  %s41_s19 = ssub.s32 %s3575_s28, %s5405_s30 }
  0x5a   : > { %s2637_s20 = sshll.u32 %s285_s13, 5  ;;  %p44_p0 = scmp.eq.s32.totalorder %s41_s19, 0 }
  0x5b   : > { %s2786_s21 = sshll.u32 %s3575_s28, 9  ;;  %s289_s22 = scalar_lea.vmem [#allocation3], %s2637_s20 }
  0x5c   : > { %s299_s24 = sshll.u32 %s289_s22, 4  ;;  %s3795_s11 = scalar_lea.hbm %s4939_s0, %s2786_s21  ;;  %s3797_s24 = int_to_ptr.vmem [resolvable:$true] %s299_s24 }
  0x5d   : > { %s3790_s17 = scalar_select %p44_p0, %s3567_s26, %s46_s23  }
  0x5e   : > { %p3801_p7 = pnand %p2826_p12, %p55_p13  ;;  %s3805_s12 = scalar_lea.sflag [#allocation4], %s285_s13 }
  0x5f   : > { %s3431_s15 = scalar_lea.hbm %s3795_s11, 512  ;;  %s3436_s19 = scalar_lea.hbm %s4939_s0, 1024 }
  0x60   : > { %p3432_p2 = scmp.ne.s32.totalorder %s3795_s11, %s3431_s15  ;;  %p3433_p3 = pneg %p3801_p7 }
  0x61   : > { %p3437_p10 = scmp.lt.u32.totalorder %s3795_s11, %s4939_s0  ;;  %p3438_p1 = scmp.lt.u32.totalorder %s3436_s19, %s3431_s15 }
  0x62   : > { %p3434_p6 = pnand %p3433_p3, %p3432_p2  ;;  %p3440_p4 = scmp.lt.u32.totalorder %s3431_s15, %s3795_s11 }
  0x63   : > { %p3439_p11 = por %p3438_p1, %p3437_p10 }
  0x64   : > { %p3435_p8 = pneg %p3434_p6 }
  0x65   : > { %p3441_p5 = por %p3440_p4, %p3439_p11 }
  0x67   : > { %p3442_p9 = pnand %p3441_p5, %p3435_p8 }
  0x69   : > { %3445 = shalt.err (!%p3442_p9)
}
  0x6a   : > { %s3446_s13 = scalar_lea.vmem %s3797_s24, 512  ;;  %s3586_s22 = smov [#allocation3]  }
  0x6b   : > { %p3447_p12 = scmp.ne.s32.totalorder %s3797_s24, %s3446_s13  ;;  %s3451_s16 = sshll.u32 %s3586_s22, 4  ;;  %s3452_s16 = int_to_ptr.vmem [resolvable:$false] %s3451_s16 }
  0x6c   : > { %s3453_s18 = scalar_lea.vmem %s3452_s16, 1024  ;;  %p3454_p2 = scmp.lt.s32.totalorder %s3797_s24, %s3452_s16 }
  0x6d   : > { %p3449_p13 = pnand %p3447_p12, %p3433_p3  ;;  %p3455_p6 = scmp.lt.s32.totalorder %s3453_s18, %s3446_s13 }
  0x6f   : > { %p3450_p0 = pneg %p3449_p13  ;;  %p3456_p10 = por %p3455_p6, %p3454_p2 }
  0x71   : > { %p3457_p1 = pnand %p3456_p10, %p3450_p0 }
  0x73   : > { %3460 = shalt.err (!%p3457_p1)
}
  0x74   : > { %s3587_s15 = smov 64   ;;  %s3588_s6 = smov 4  }
  0x75   : > { %2822 = dma.hbm_to_vmem [thread:$0]  (!%p3801_p7), %s3795_s11, 512, %s3797_s24, %s3805_s12, %s3587_s15, %s3587_s15, %s3588_s6  }
  0x76   : > { %p5110_p3 = scmp.ne.s32.totalorder %s5106_s10, 0 }
  0x78   : > { %311 = sbr.rel (%p5110_p3) target bundleno = 1609 (0x649), region = 44 }
  0x7f   : > { %s313_s23 = sand.u32 1, %s3563_s25   ;;  %p5111_p8 = scmp.ne.s32.totalorder %s5105_s9, 0 }
  0x80   : > { %s2642_s19 = sshll.u32 %s313_s23, 5  ;;  %s314_s20 = scalar_lea.sflag [#allocation4], %s313_s23 }
  0x81   : > { %s3836_s21 = scalar_lea.vmem [#allocation3], %s2642_s19 }
  0x82   : > { %3538 = dma.done.wait (%p5111_p8), %s314_s20, 512  }
  0x83   : > { %3540 = vsyncadd (%p5111_p8), %s314_s20, 4294966784  ;;  %p5112_p11 = scmp.ne.s32.totalorder %s5104_s8, 0 }
  0x85   : > { %3542 = dma.done.wait (%p5112_p11), [#allocation7], 8192  }
  0x86   : > { %3544 = vsyncadd (%p5112_p11), [#allocation7], 4294959104 }
  0x87   : > { %3546 = dma.done.wait (%p5112_p11), [#allocation10], 8192  }
  0x88   : > { %3548 = vsyncadd (%p5112_p11), [#allocation10], 4294959104  ;;  %p2646_p7 = scmp.ne.s32.totalorder %s3571_s27, 0 }
  0x89   : > { %v3589_v0 = vmov (!%p2646_p7), 0.0  }
  0x8a   : > { %363 = sbr.rel (%p2646_p7) target bundleno = 145 (0x91), region = 64  ;;  %364 = vst [vmem:[#allocation11] sm:$0xff] (!%p2646_p7), %v3589_v0  ;;  %365 = vst [vmem:[#allocation11 + $0x8] sm:$0xff] (!%p2646_p7), %v3589_v0 }
  0x8b   : > { %366 = vst [vmem:[#allocation11 + $0x10] sm:$0xff] (!%p2646_p7), %v3589_v0  ;;  %367 = vst [vmem:[#allocation11 + $0x18] sm:$0xff] (!%p2646_p7), %v3589_v0 }
  0x8c   : > { %368 = vst [vmem:[#allocation12] sm:$0xff] (!%p2646_p7), %v3589_v0  ;;  %369 = vst [vmem:[#allocation12 + $0x8] sm:$0xff] (!%p2646_p7), %v3589_v0 }
  0x8d   : > { %370 = vst [vmem:[#allocation12 + $0x10] sm:$0xff] (!%p2646_p7), %v3589_v0  ;;  %371 = vst [vmem:[#allocation12 + $0x18] sm:$0xff] (!%p2646_p7), %v3589_v0 }
  0x91 PF: > { %v2895_v1 = vld [vmem:[#allocation6 + $0x4] ss:$16 sps:$4 sm:$0xff]   ;;  %v2897_v2 = vld [vmem:[#allocation6 + $0xc] ss:$16 sps:$4 sm:$0xff]   ;;  %v4953_v3 = vmov 0   ;;  %s3591_s24 = smov [#allocation12]  }
  0x92   : > { %650 = vmatprep.mubr.bf16.mxu0 %v4953_v3  ;;  %723 = vmatprep.mubr.bf16.mxu1 %v4953_v3  ;;  %v2899_v4 = vld [vmem:[#allocation6] ss:$16 sps:$4 sm:$0xff]   ;;  %v2900_v5 = vld [vmem:[#allocation6 + $0x8] ss:$16 sps:$4 sm:$0xff]   ;;  %v2901_v6 = vld [vmem:[#allocation6 + $0x24] ss:$16 sps:$4 sm:$0xff]  }
  0x93   : > { %618 = vmatprep.subr.bf16.mxu0 %v2895_v1  ;;  %691 = vmatprep.subr.bf16.mxu1 %v2897_v2  ;;  %v2903_v7 = vld [vmem:[#allocation6 + $0x2c] ss:$16 sps:$4 sm:$0xff]   ;;  %v2905_v8 = vld [vmem:[#allocation6 + $0x20] ss:$16 sps:$4 sm:$0xff]   ;;  %v2906_v9 = vld [vmem:[#allocation6 + $0x28] ss:$16 sps:$4 sm:$0xff]  }
  0x94   : > { %619 = vmatpush1.bf16.msra.mxu0 %v2899_v4  ;;  %692 = vmatpush1.bf16.msra.mxu1 %v2900_v5  ;;  %v2907_v10 = vld [vmem:[#allocation6 + $0x44] ss:$16 sps:$4 sm:$0xff]   ;;  %v2909_v11 = vld [vmem:[#allocation6 + $0x4c] ss:$16 sps:$4 sm:$0xff]   ;;  %v2911_v12 = vld [vmem:[#allocation6 + $0x40] ss:$16 sps:$4 sm:$0xff]  }
  0x95   : > { %620 = vmatprep.subr.bf16.mxu0 %v2901_v6  ;;  %693 = vmatprep.subr.bf16.mxu1 %v2903_v7  ;;  %v2912_v13 = vld [vmem:[#allocation6 + $0x48] ss:$16 sps:$4 sm:$0xff]   ;;  %v2913_v14 = vld [vmem:[#allocation6 + $0x64] ss:$16 sps:$4 sm:$0xff]   ;;  %v2915_v15 = vld [vmem:[#allocation6 + $0x6c] ss:$16 sps:$4 sm:$0xff]  }
  0x96   : > { %v2917_v16 = vld [vmem:[#allocation6 + $0x60] ss:$16 sps:$4 sm:$0xff]   ;;  %v2918_v17 = vld [vmem:[#allocation6 + $0x68] ss:$16 sps:$4 sm:$0xff]   ;;  %v2919_v18 = vld [vmem:[#allocation6 + $0x84] ss:$16 sps:$4 sm:$0xff]  }
  0x97   : > { %v2921_v19 = vld [vmem:[#allocation6 + $0x8c] ss:$16 sps:$4 sm:$0xff]   ;;  %v2923_v20 = vld [vmem:[#allocation6 + $0x80] ss:$16 sps:$4 sm:$0xff]   ;;  %v2924_v21 = vld [vmem:[#allocation6 + $0x88] ss:$16 sps:$4 sm:$0xff]  }
  0x98   : > { %621 = vmatpush1.bf16.msra.mxu0 %v2905_v8  ;;  %694 = vmatpush1.bf16.msra.mxu1 %v2906_v9  ;;  %v2925_v22 = vld [vmem:[#allocation6 + $0xa4] ss:$16 sps:$4 sm:$0xff]   ;;  %v2927_v23 = vld [vmem:[#allocation6 + $0xac] ss:$16 sps:$4 sm:$0xff]   ;;  %v2929_v24 = vld [vmem:[#allocation6 + $0xa0] ss:$16 sps:$4 sm:$0xff]  }
  0x99   : > { %622 = vmatprep.subr.bf16.mxu0 %v2907_v10  ;;  %695 = vmatprep.subr.bf16.mxu1 %v2909_v11  ;;  %v2930_v25 = vld [vmem:[#allocation6 + $0xa8] ss:$16 sps:$4 sm:$0xff]   ;;  %v2931_v26 = vld [vmem:[#allocation6 + $0xc4] ss:$16 sps:$4 sm:$0xff]   ;;  %v2933_v27 = vld [vmem:[#allocation6 + $0xcc] ss:$16 sps:$4 sm:$0xff]  }
  0x9a   : > { %v2935_v28 = vld [vmem:[#allocation6 + $0xc0] ss:$16 sps:$4 sm:$0xff]   ;;  %v2936_v29 = vld [vmem:[#allocation6 + $0xc8] ss:$16 sps:$4 sm:$0xff]   ;;  %v2937_v30 = vld [vmem:[#allocation6 + $0xe4] ss:$16 sps:$4 sm:$0xff]  }
  0x9b   : > { %v2939_v31 = vld [vmem:[#allocation6 + $0xec] ss:$16 sps:$4 sm:$0xff]   ;;  %v2941_v32 = vld [vmem:[#allocation6 + $0xe0] ss:$16 sps:$4 sm:$0xff]   ;;  %v2942_v33 = vld [vmem:[#allocation6 + $0xe8] ss:$16 sps:$4 sm:$0xff]  }
  0x9c   : > { %623 = vmatpush1.bf16.msra.mxu0 %v2911_v12  ;;  %696 = vmatpush1.bf16.msra.mxu1 %v2912_v13  ;;  %v3853_v34 = vld [vmem:[#allocation8 + $0x4] ss:$16 sps:$4 sm:$0xff]   ;;  %v3855_v35 = vld [vmem:[#allocation8 + $0xc] ss:$16 sps:$4 sm:$0xff]   ;;  %v3858_v37 = vld [vmem:[#allocation8] ss:$16 sps:$4 sm:$0xff]  }
  0x9d   : > { %624 = vmatprep.subr.bf16.mxu0 %v2913_v14  ;;  %697 = vmatprep.subr.bf16.mxu1 %v2915_v15  ;;  %v2943_v36 = vld [vmem:[%s3836_s21] sm:$0xff]   ;;  %v3860_v38 = vld [vmem:[#allocation8 + $0x8] ss:$16 sps:$4 sm:$0xff]   ;;  %v3866_v40 = vld [vmem:[#allocation8 + $0x2c] ss:$16 sps:$4 sm:$0xff]   ;;  %s2519_s11 = sshll.u32 %s3591_s24, 4  ;;  %s2520_s11 = int_to_ptr.vmem [resolvable:$true] %s2519_s11 }
  0x9e   : > { %v3864_v39 = vld [vmem:[#allocation8 + $0x24] ss:$16 sps:$4 sm:$0xff]   ;;  %v3868_v41 = vld [vmem:[#allocation8 + $0x20] ss:$16 sps:$4 sm:$0xff]   ;;  %v3872_v42 = vld [vmem:[#allocation8 + $0x28] ss:$16 sps:$4 sm:$0xff]   ;;  %p3468_p13 = scmp.lt.s32.totalorder %s2520_s11, %s2520_s11 }
  0x9f   : > { %v3876_v43 = vld [vmem:[#allocation8 + $0x44] ss:$16 sps:$4 sm:$0xff]   ;;  %v3878_v44 = vld [vmem:[#allocation8 + $0x4c] ss:$16 sps:$4 sm:$0xff]   ;;  %v3883_v46 = vld [vmem:[#allocation8 + $0x40] ss:$16 sps:$4 sm:$0xff]  }
  0xa0   : > { %625 = vmatpush1.bf16.msra.mxu0 %v2917_v16  ;;  %698 = vmatpush1.bf16.msra.mxu1 %v2918_v17  ;;  %v2956_v45 = vld [vmem:[%s3836_s21 + $0x8] sm:$0xff]   ;;  %v3889_v48 = vld [vmem:[#allocation8 + $0x64] ss:$16 sps:$4 sm:$0xff]   ;;  %v3895_v50 = vld [vmem:[#allocation8 + $0x60] ss:$16 sps:$4 sm:$0xff]   ;;  %s5396_s14 = sadd.s32 4294967295, %s3579_s29  }
  0xa1   : > { %626 = vmatprep.subr.bf16.mxu0 %v2919_v18  ;;  %699 = vmatprep.subr.bf16.mxu1 %v2921_v19  ;;  %v3885_v47 = vld [vmem:[#allocation8 + $0x48] ss:$16 sps:$4 sm:$0xff]   ;;  %v3893_v49 = vld [vmem:[#allocation8 + $0x6c] ss:$16 sps:$4 sm:$0xff]   ;;  %v3901_v52 = vld [vmem:[#allocation8 + $0x84] ss:$16 sps:$4 sm:$0xff]  }
  0xa2   : > { %v3897_v51 = vld [vmem:[#allocation8 + $0x68] ss:$16 sps:$4 sm:$0xff]   ;;  %v3905_v53 = vld [vmem:[#allocation8 + $0x8c] ss:$16 sps:$4 sm:$0xff]   ;;  %v2969_v54 = vld [vmem:[%s3836_s21 + $0x10] sm:$0xff]   ;;  %p4867_p4 = scmp.eq.s32.totalorder %s5396_s14, 1 }
  0xa3   : > { %v3910_v55 = vld [vmem:[#allocation8 + $0x80] ss:$16 sps:$4 sm:$0xff]   ;;  %v3912_v56 = vld [vmem:[#allocation8 + $0x88] ss:$16 sps:$4 sm:$0xff]   ;;  %v3914_v57 = vld [vmem:[#allocation8 + $0xa4] ss:$16 sps:$4 sm:$0xff]  }
  0xa4   : > { %627 = vmatpush1.bf16.msra.mxu0 %v2923_v20  ;;  %700 = vmatpush1.bf16.msra.mxu1 %v2924_v21  ;;  %v3916_v58 = vld [vmem:[#allocation8 + $0xac] ss:$16 sps:$4 sm:$0xff]   ;;  %v3922_v59 = vld [vmem:[#allocation8 + $0xa0] ss:$16 sps:$4 sm:$0xff]   ;;  %v3924_v60 = vld [vmem:[#allocation8 + $0xa8] ss:$16 sps:$4 sm:$0xff]  }
  0xa5   : > { %628 = vmatprep.subr.bf16.mxu0 %v2925_v22  ;;  %701 = vmatprep.subr.bf16.mxu1 %v2927_v23  ;;  %v3926_v61 = vld [vmem:[#allocation8 + $0xc4] ss:$16 sps:$4 sm:$0xff]   ;;  %v3928_v62 = vld [vmem:[#allocation8 + $0xcc] ss:$16 sps:$4 sm:$0xff]   ;;  %v3937_v0 = vld [vmem:[#allocation8 + $0xc0] ss:$16 sps:$4 sm:$0xff]  }
  0xa6   : > { %v2982_v63 = vld [vmem:[%s3836_s21 + $0x18] sm:$0xff]   ;;  %v3941_v2 = vld [vmem:[#allocation8 + $0xe4] ss:$16 sps:$4 sm:$0xff]   ;;  %v3949_v5 = vld [vmem:[#allocation8 + $0xe0] ss:$16 sps:$4 sm:$0xff]   ;;  %s3461_s13 = scalar_lea.vmem %s2520_s11, 512 }
  0xa7   : > { %v3939_v1 = vld [vmem:[#allocation8 + $0xc8] ss:$16 sps:$4 sm:$0xff]   ;;  %v3943_v4 = vld [vmem:[#allocation8 + $0xec] ss:$16 sps:$4 sm:$0xff]   ;;  %v818_v7 = vld [vmem:[#allocation11] sm:$0xff]  ;;  %p3462_p5 = scmp.ne.s32.totalorder %s2520_s11, %s3461_s13  ;;  %p3469_p0 = scmp.lt.s32.totalorder %s3461_s13, %s3461_s13 }
  0xa8   : > { %629 = vmatpush1.bf16.msra.mxu0 %v2929_v24  ;;  %702 = vmatpush1.bf16.msra.mxu1 %v2930_v25  ;;  %v3951_v6 = vld [vmem:[#allocation8 + $0xe8] ss:$16 sps:$4 sm:$0xff]   ;;  %v3961_v10 = vld [vmem:[#allocation9 + $0x4] ss:$16 sps:$4 sm:$0xff]   ;;  %v3963_v11 = vld [vmem:[#allocation9 + $0xc] ss:$16 sps:$4 sm:$0xff]  }
  0xa9   : > { %630 = vmatprep.subr.bf16.mxu0 %v2931_v26  ;;  %703 = vmatprep.subr.bf16.mxu1 %v2933_v27  ;;  %v819_v8 = vld [vmem:[#allocation11 + $0x8] sm:$0xff]  ;;  %v3965_v12 = vld [vmem:[#allocation9] ss:$16 sps:$4 sm:$0xff]   ;;  %v3973_v14 = vld [vmem:[#allocation9 + $0x24] ss:$16 sps:$4 sm:$0xff]   ;;  %p3463_p9 = pnand %p3462_p5, %p4867_p4  ;;  %p3470_p2 = por %p3469_p0, %p3468_p13 }
  0xaa   : > { %v820_v9 = vpack.c.bf16 %v819_v8, %v818_v7  ;;  %v3967_v13 = vld [vmem:[#allocation9 + $0x8] ss:$16 sps:$4 sm:$0xff]   ;;  %v3975_v15 = vld [vmem:[#allocation9 + $0x2c] ss:$16 sps:$4 sm:$0xff]   ;;  %v3977_v16 = vld [vmem:[#allocation9 + $0x20] ss:$16 sps:$4 sm:$0xff]  }
  0xab   : > { %5113 = vst [vmem:[#allocation19_spill] sm:$0xff] %v3975_v15  ;;  %5114 = vst [vmem:[#allocation20_spill] sm:$0xff] %v3977_v16  ;;  %v3979_v17 = vld [vmem:[#allocation9 + $0x28] ss:$16 sps:$4 sm:$0xff]   ;;  %v3985_v18 = vld [vmem:[#allocation9 + $0x44] ss:$16 sps:$4 sm:$0xff]   ;;  %p3464_p12 = pneg %p3463_p9 }
  0xac   : > { %631 = vmatpush1.bf16.msra.mxu0 %v2935_v28  ;;  %704 = vmatpush1.bf16.msra.mxu1 %v2936_v29  ;;  %5115 = vst [vmem:[#allocation21_spill] sm:$0xff] %v3979_v17  ;;  %5116 = vst [vmem:[#allocation22_spill] sm:$0xff] %v3985_v18  ;;  %v3987_v19 = vld [vmem:[#allocation9 + $0x4c] ss:$16 sps:$4 sm:$0xff]   ;;  %v3989_v20 = vld [vmem:[#allocation9 + $0x40] ss:$16 sps:$4 sm:$0xff]  }
  0xad   : > { %632 = vmatprep.subr.bf16.mxu0 %v2937_v30  ;;  %705 = vmatprep.subr.bf16.mxu1 %v2939_v31  ;;  %5117 = vst [vmem:[#allocation23_spill] sm:$0xff] %v3987_v19  ;;  %5118 = vst [vmem:[#allocation24_spill] sm:$0xff] %v3989_v20  ;;  %v3991_v21 = vld [vmem:[#allocation9 + $0x48] ss:$16 sps:$4 sm:$0xff]   ;;  %v3997_v22 = vld [vmem:[#allocation9 + $0x64] ss:$16 sps:$4 sm:$0xff]   ;;  %p3471_p6 = pnand %p3470_p2, %p3464_p12 }
  0xae   : > { %5119 = vst [vmem:[#allocation25_spill] sm:$0xff] %v3991_v21  ;;  %5120 = vst [vmem:[#allocation26_spill] sm:$0xff] %v3997_v22  ;;  %v3999_v23 = vld [vmem:[#allocation9 + $0x6c] ss:$16 sps:$4 sm:$0xff]   ;;  %v4001_v24 = vld [vmem:[#allocation9 + $0x60] ss:$16 sps:$4 sm:$0xff]  }
  0xaf   : > { %5121 = vst [vmem:[#allocation27_spill] sm:$0xff] %v3999_v23  ;;  %5122 = vst [vmem:[#allocation28_spill] sm:$0xff] %v4001_v24  ;;  %v4003_v25 = vld [vmem:[#allocation9 + $0x68] ss:$16 sps:$4 sm:$0xff]   ;;  %v4009_v26 = vld [vmem:[#allocation9 + $0x84] ss:$16 sps:$4 sm:$0xff]  }
  0xb0   : > { %633 = vmatpush1.bf16.msra.mxu0 %v2941_v32  ;;  %706 = vmatpush1.bf16.msra.mxu1 %v2942_v33  ;;  %5123 = vst [vmem:[#allocation29_spill] sm:$0xff] %v4003_v25  ;;  %5124 = vst [vmem:[#allocation30_spill] sm:$0xff] %v4009_v26  ;;  %v4011_v27 = vld [vmem:[#allocation9 + $0x8c] ss:$16 sps:$4 sm:$0xff]   ;;  %v4013_v28 = vld [vmem:[#allocation9 + $0x80] ss:$16 sps:$4 sm:$0xff]  }
  0xb1   : > { %1037 = vmatprep.subr.bf16.mxu0 %v3853_v34  ;;  %1080 = vmatprep.subr.bf16.mxu1 %v3855_v35  ;;  %5125 = vst [vmem:[#allocation31_spill] sm:$0xff] %v4011_v27  ;;  %5126 = vst [vmem:[#allocation32_spill] sm:$0xff] %v4013_v28  ;;  %v4015_v29 = vld [vmem:[#allocation9 + $0x88] ss:$16 sps:$4 sm:$0xff]   ;;  %v4021_v30 = vld [vmem:[#allocation9 + $0xa4] ss:$16 sps:$4 sm:$0xff]  }
  0xb2   : > { %5127 = vst [vmem:[#allocation33_spill] sm:$0xff] %v4015_v29  ;;  %5128 = vst [vmem:[#allocation34_spill] sm:$0xff] %v4021_v30  ;;  %v4023_v31 = vld [vmem:[#allocation9 + $0xac] ss:$16 sps:$4 sm:$0xff]   ;;  %v4025_v32 = vld [vmem:[#allocation9 + $0xa0] ss:$16 sps:$4 sm:$0xff]  }
  0xb3   : > { %651 = vmatmul.mubr.bf16.vlgmr.msra.gmra.mrb[0].mxu0 %v2943_v36  ;;  %724 = vmatmul.mubr.bf16.vlgmr.msra.gmra.mrb[0].mxu1 %v2943_v36  ;;  %5129 = vst [vmem:[#allocation35_spill] sm:$0xff] %v4023_v31  ;;  %5130 = vst [vmem:[#allocation36_spill] sm:$0xff] %v4025_v32  ;;  %v4027_v33 = vld [vmem:[#allocation9 + $0xa8] ss:$16 sps:$4 sm:$0xff]   ;;  %v4033_v36 = vld [vmem:[#allocation9 + $0xc4] ss:$16 sps:$4 sm:$0xff]  }
  0xb4   : > { %1038 = vmatpush1.bf16.msra.mxu0 %v3858_v37  ;;  %1081 = vmatpush1.bf16.msra.mxu1 %v3860_v38  ;;  %5131 = vst [vmem:[#allocation37_spill] sm:$0xff] %v4027_v33  ;;  %5132 = vst [vmem:[#allocation38_spill] sm:$0xff] %v4033_v36  ;;  %v4045_v7 = vld [vmem:[#allocation9 + $0xe4] ss:$16 sps:$4 sm:$0xff]   ;;  %v4047_v8 = vld [vmem:[#allocation9 + $0xec] ss:$16 sps:$4 sm:$0xff]  }
  0xb5   : > { %1039 = vmatprep.subr.bf16.mxu0 %v3864_v39  ;;  %1082 = vmatprep.subr.bf16.mxu1 %v3866_v40  ;;  %5136 = vst [vmem:[#allocation42_spill] sm:$0xff] %v4045_v7  ;;  %5137 = vst [vmem:[#allocation43_spill] sm:$0xff] %v4047_v8 }
  0xb6   : > { %660 = vmatprep.mubr.bf16.mxu0 %v4953_v3  ;;  %733 = vmatprep.mubr.bf16.mxu1 %v4953_v3 }
  0xb8   : > { %1040 = vmatpush1.bf16.msra.mxu0 %v3868_v41  ;;  %1083 = vmatpush1.bf16.msra.mxu1 %v3872_v42 }
  0xb9   : > { %1041 = vmatprep.subr.bf16.mxu0 %v3876_v43  ;;  %1084 = vmatprep.subr.bf16.mxu1 %v3878_v44 }
  0xbb   : > { %661 = vmatmul.mubr.bf16.gmra.mrb[4].mxu0 %v2956_v45  ;;  %734 = vmatmul.mubr.bf16.gmra.mrb[4].mxu1 %v2956_v45  ;;  %v4035_v45 = vld [vmem:[#allocation9 + $0xcc] ss:$16 sps:$4 sm:$0xff]  }
  0xbc   : > { %1042 = vmatpush1.bf16.msra.mxu0 %v3883_v46  ;;  %1085 = vmatpush1.bf16.msra.mxu1 %v3885_v47  ;;  %5133 = vst [vmem:[#allocation39_spill] sm:$0xff] %v4035_v45 }
  0xbd   : > { %1043 = vmatprep.subr.bf16.mxu0 %v3889_v48  ;;  %1086 = vmatprep.subr.bf16.mxu1 %v3893_v49 }
  0xbe   : > { %670 = vmatprep.mubr.bf16.mxu0 %v4953_v3  ;;  %743 = vmatprep.mubr.bf16.mxu1 %v4953_v3 }
  0xc0   : > { %1044 = vmatpush1.bf16.msra.mxu0 %v3895_v50  ;;  %1087 = vmatpush1.bf16.msra.mxu1 %v3897_v51 }
  0xc1   : > { %1045 = vmatprep.subr.bf16.mxu0 %v3901_v52  ;;  %1088 = vmatprep.subr.bf16.mxu1 %v3905_v53 }
  0xc3   : > { %671 = vmatmul.mubr.bf16.gmra.mrb[8].mxu0 %v2969_v54  ;;  %744 = vmatmul.mubr.bf16.gmra.mrb[8].mxu1 %v2969_v54  ;;  %v4039_v54 = vld [vmem:[#allocation9 + $0xc0] ss:$16 sps:$4 sm:$0xff]  }
  0xc4   : > { %1046 = vmatpush1.bf16.msra.mxu0 %v3910_v55  ;;  %1089 = vmatpush1.bf16.msra.mxu1 %v3912_v56  ;;  %5134 = vst [vmem:[#allocation40_spill] sm:$0xff] %v4039_v54 }
  0xc5   : > { %1047 = vmatprep.subr.bf16.mxu0 %v3914_v57  ;;  %1090 = vmatprep.subr.bf16.mxu1 %v3916_v58 }
  0xc6   : > { %680 = vmatprep.mubr.bf16.mxu0 %v4953_v3  ;;  %753 = vmatprep.mubr.bf16.mxu1 %v4953_v3 }
  0xc8   : > { %1048 = vmatpush1.bf16.msra.mxu0 %v3922_v59  ;;  %1091 = vmatpush1.bf16.msra.mxu1 %v3924_v60 }
  0xc9   : > { %1049 = vmatprep.subr.bf16.mxu0 %v3926_v61  ;;  %1092 = vmatprep.subr.bf16.mxu1 %v3928_v62 }
  0xcb   : > { %681 = vmatmul.mubr.bf16.gmra.mrb[12].mxu0 %v2982_v63  ;;  %754 = vmatmul.mubr.bf16.gmra.mrb[12].mxu1 %v2982_v63  ;;  %v4041_v63 = vld [vmem:[#allocation9 + $0xc8] ss:$16 sps:$4 sm:$0xff]  }
  0xcc   : > { %1050 = vmatpush1.bf16.msra.mxu0 %v3937_v0  ;;  %1093 = vmatpush1.bf16.msra.mxu1 %v3939_v1  ;;  %5135 = vst [vmem:[#allocation41_spill] sm:$0xff] %v4041_v63 }
  0xcd   : > { %1051 = vmatprep.subr.bf16.mxu0 %v3941_v2  ;;  %1094 = vmatprep.subr.bf16.mxu1 %v3943_v4 }
  0xce   : > { %1069 = vmatprep.mubr.bf16.mxu0 %v4953_v3  ;;  %1112 = vmatprep.mubr.bf16.mxu1 %v4953_v3  ;;  %v4051_v3 = vld [vmem:[#allocation9 + $0xe8] ss:$16 sps:$4 sm:$0xff]  }
  0xcf   : > { %5139 = vst [vmem:[#allocation45_spill] sm:$0xff] %v4051_v3 }
  0xd0   : > { %1052 = vmatpush1.bf16.msra.mxu0 %v3949_v5  ;;  %1095 = vmatpush1.bf16.msra.mxu1 %v3951_v6 }
  0xd1   : > { %1552 = vmatprep.subr.bf16.mxu0 %v3961_v10  ;;  %1595 = vmatprep.subr.bf16.mxu1 %v3963_v11 }
  0xd3   : > { %1070 = vmatmul.mubr.bf16.vlgmr.msra.gmra.mrb[16].mxu0 %v820_v9  ;;  %1113 = vmatmul.mubr.bf16.vlgmr.msra.gmra.mrb[16].mxu1 %v820_v9  ;;  %v4049_v9 = vld [vmem:[#allocation9 + $0xe0] ss:$16 sps:$4 sm:$0xff]  }
  0xd4   : > { %1553 = vmatpush1.bf16.msra.mxu0 %v3965_v12  ;;  %1596 = vmatpush1.bf16.msra.mxu1 %v3967_v13  ;;  %5138 = vst [vmem:[#allocation44_spill] sm:$0xff] %v4049_v9 }
  0xd5   : > { %1554 = vmatprep.subr.bf16.mxu0 %v3973_v14  ;;  %1597 = vmatprep.subr.bf16.mxu1 %v3975_v15 }
  0xd8   : > { %1555 = vmatpush1.bf16.msra.mxu0 %v3977_v16  ;;  %1598 = vmatpush1.bf16.msra.mxu1 %v3979_v17 }
  0xd9   : > { %1556 = vmatprep.subr.bf16.mxu0 %v3985_v18  ;;  %1599 = vmatprep.subr.bf16.mxu1 %v3987_v19 }
  0xdc   : > { %1557 = vmatpush1.bf16.msra.mxu0 %v3989_v20  ;;  %1600 = vmatpush1.bf16.msra.mxu1 %v3991_v21 }
  0xdd   : > { %1558 = vmatprep.subr.bf16.mxu0 %v3997_v22  ;;  %1601 = vmatprep.subr.bf16.mxu1 %v3999_v23 }
  0xe0   : > { %1559 = vmatpush1.bf16.msra.mxu0 %v4001_v24  ;;  %1602 = vmatpush1.bf16.msra.mxu1 %v4003_v25 }
  0xe1   : > { %1560 = vmatprep.subr.bf16.mxu0 %v4009_v26  ;;  %1603 = vmatprep.subr.bf16.mxu1 %v4011_v27 }
  0xe4   : > { %1561 = vmatpush1.bf16.msra.mxu0 %v4013_v28  ;;  %1604 = vmatpush1.bf16.msra.mxu1 %v4015_v29 }
  0xe5   : > { %1562 = vmatprep.subr.bf16.mxu0 %v4021_v30  ;;  %1605 = vmatprep.subr.bf16.mxu1 %v4023_v31 }
  0xe8   : > { %1563 = vmatpush1.bf16.msra.mxu0 %v4025_v32  ;;  %1606 = vmatpush1.bf16.msra.mxu1 %v4027_v33  ;;  %v824_v33 = vld [vmem:[#allocation11 + $0x10] sm:$0xff] }
  0xe9   : > { %1564 = vmatprep.subr.bf16.mxu0 %v4033_v36  ;;  %1607 = vmatprep.subr.bf16.mxu1 %v4035_v45  ;;  %v4057_v45 = vld [vmem:[#allocation9 + $0x104] ss:$16 sps:$4 sm:$0xff]   ;;  %v4063_v36 = vld [vmem:[#allocation9 + $0x108] ss:$16 sps:$4 sm:$0xff]  }
  0xea   : > { %5140 = vst [vmem:[#allocation46_spill] sm:$0xff] %v4057_v45  ;;  %5143 = vst [vmem:[#allocation49_spill] sm:$0xff] %v4063_v36 }
  0xec   : > { %1565 = vmatpush1.bf16.msra.mxu0 %v4039_v54  ;;  %1608 = vmatpush1.bf16.msra.mxu1 %v4041_v63  ;;  %v4059_v54 = vld [vmem:[#allocation9 + $0x10c] ss:$16 sps:$4 sm:$0xff]   ;;  %v4061_v63 = vld [vmem:[#allocation9 + $0x100] ss:$16 sps:$4 sm:$0xff]  }
  0xed   : > { %1566 = vmatprep.subr.bf16.mxu0 %v4045_v7  ;;  %1609 = vmatprep.subr.bf16.mxu1 %v4047_v8  ;;  %5141 = vst [vmem:[#allocation47_spill] sm:$0xff] %v4059_v54  ;;  %5142 = vst [vmem:[#allocation48_spill] sm:$0xff] %v4061_v63  ;;  %v4069_v8 = vld [vmem:[#allocation9 + $0x124] ss:$16 sps:$4 sm:$0xff]   ;;  %v4075_v7 = vld [vmem:[#allocation9 + $0x128] ss:$16 sps:$4 sm:$0xff]  }
  0xee   : > { %5144 = vst [vmem:[#allocation50_spill] sm:$0xff] %v4069_v8  ;;  %5147 = vst [vmem:[#allocation53_spill] sm:$0xff] %v4075_v7 }
  0xf0   : > { %1567 = vmatpush1.bf16.msra.mxu0 %v4049_v9  ;;  %1610 = vmatpush1.bf16.msra.mxu1 %v4051_v3  ;;  %v4071_v9 = vld [vmem:[#allocation9 + $0x12c] ss:$16 sps:$4 sm:$0xff]   ;;  %v4073_v3 = vld [vmem:[#allocation9 + $0x120] ss:$16 sps:$4 sm:$0xff]  }
  0xf1   : > { %1568 = vmatprep.subr.bf16.mxu0 %v4057_v45  ;;  %1611 = vmatprep.subr.bf16.mxu1 %v4059_v54  ;;  %5145 = vst [vmem:[#allocation51_spill] sm:$0xff] %v4071_v9  ;;  %5146 = vst [vmem:[#allocation52_spill] sm:$0xff] %v4073_v3  ;;  %v4081_v54 = vld [vmem:[#allocation9 + $0x144] ss:$16 sps:$4 sm:$0xff]   ;;  %v4087_v45 = vld [vmem:[#allocation9 + $0x148] ss:$16 sps:$4 sm:$0xff]  }
  0xf2   : > { %5148 = vst [vmem:[#allocation54_spill] sm:$0xff] %v4081_v54  ;;  %5151 = vst [vmem:[#allocation57_spill] sm:$0xff] %v4087_v45 }
  0xf4   : > { %1569 = vmatpush1.bf16.msra.mxu0 %v4061_v63  ;;  %1612 = vmatpush1.bf16.msra.mxu1 %v4063_v36  ;;  %v4083_v63 = vld [vmem:[#allocation9 + $0x14c] ss:$16 sps:$4 sm:$0xff]   ;;  %v4085_v36 = vld [vmem:[#allocation9 + $0x140] ss:$16 sps:$4 sm:$0xff]  }
  0xf5   : > { %1570 = vmatprep.subr.bf16.mxu0 %v4069_v8  ;;  %1613 = vmatprep.subr.bf16.mxu1 %v4071_v9  ;;  %5149 = vst [vmem:[#allocation55_spill] sm:$0xff] %v4083_v63  ;;  %5150 = vst [vmem:[#allocation56_spill] sm:$0xff] %v4085_v36  ;;  %v4093_v9 = vld [vmem:[#allocation9 + $0x164] ss:$16 sps:$4 sm:$0xff]   ;;  %v4099_v8 = vld [vmem:[#allocation9 + $0x168] ss:$16 sps:$4 sm:$0xff]  }
  0xf6   : > { %5152 = vst [vmem:[#allocation58_spill] sm:$0xff] %v4093_v9  ;;  %5155 = vst [vmem:[#allocation61_spill] sm:$0xff] %v4099_v8 }
  0xf8   : > { %1571 = vmatpush1.bf16.msra.mxu0 %v4073_v3  ;;  %1614 = vmatpush1.bf16.msra.mxu1 %v4075_v7  ;;  %v4095_v3 = vld [vmem:[#allocation9 + $0x16c] ss:$16 sps:$4 sm:$0xff]   ;;  %v4097_v7 = vld [vmem:[#allocation9 + $0x160] ss:$16 sps:$4 sm:$0xff]  }
  0xf9   : > { %1572 = vmatprep.subr.bf16.mxu0 %v4081_v54  ;;  %1615 = vmatprep.subr.bf16.mxu1 %v4083_v63  ;;  %5153 = vst [vmem:[#allocation59_spill] sm:$0xff] %v4095_v3  ;;  %5154 = vst [vmem:[#allocation60_spill] sm:$0xff] %v4097_v7  ;;  %v4105_v63 = vld [vmem:[#allocation9 + $0x184] ss:$16 sps:$4 sm:$0xff]   ;;  %v4111_v54 = vld [vmem:[#allocation9 + $0x188] ss:$16 sps:$4 sm:$0xff]  }
  0xfa   : > { %5156 = vst [vmem:[#allocation62_spill] sm:$0xff] %v4105_v63  ;;  %5159 = vst [vmem:[#allocation65_spill] sm:$0xff] %v4111_v54 }
  0xfc   : > { %1573 = vmatpush1.bf16.msra.mxu0 %v4085_v36  ;;  %1616 = vmatpush1.bf16.msra.mxu1 %v4087_v45  ;;  %v4107_v36 = vld [vmem:[#allocation9 + $0x18c] ss:$16 sps:$4 sm:$0xff]   ;;  %v4109_v45 = vld [vmem:[#allocation9 + $0x180] ss:$16 sps:$4 sm:$0xff]  }
  0xfd   : > { %1574 = vmatprep.subr.bf16.mxu0 %v4093_v9  ;;  %1617 = vmatprep.subr.bf16.mxu1 %v4095_v3  ;;  %5157 = vst [vmem:[#allocation63_spill] sm:$0xff] %v4107_v36  ;;  %5158 = vst [vmem:[#allocation64_spill] sm:$0xff] %v4109_v45  ;;  %v4117_v3 = vld [vmem:[#allocation9 + $0x1a4] ss:$16 sps:$4 sm:$0xff]   ;;  %v4123_v9 = vld [vmem:[#allocation9 + $0x1a8] ss:$16 sps:$4 sm:$0xff]  }
  0xfe   : > { %5160 = vst [vmem:[#allocation66_spill] sm:$0xff] %v4117_v3  ;;  %5163 = vst [vmem:[#allocation69_spill] sm:$0xff] %v4123_v9 }
 0x100   : > { %1575 = vmatpush1.bf16.msra.mxu0 %v4097_v7  ;;  %1618 = vmatpush1.bf16.msra.mxu1 %v4099_v8  ;;  %v4119_v7 = vld [vmem:[#allocation9 + $0x1ac] ss:$16 sps:$4 sm:$0xff]   ;;  %v4121_v8 = vld [vmem:[#allocation9 + $0x1a0] ss:$16 sps:$4 sm:$0xff]  }
 0x101   : > { %1576 = vmatprep.subr.bf16.mxu0 %v4105_v63  ;;  %1619 = vmatprep.subr.bf16.mxu1 %v4107_v36  ;;  %5161 = vst [vmem:[#allocation67_spill] sm:$0xff] %v4119_v7  ;;  %5162 = vst [vmem:[#allocation68_spill] sm:$0xff] %v4121_v8  ;;  %v4129_v36 = vld [vmem:[#allocation9 + $0x1c4] ss:$16 sps:$4 sm:$0xff]   ;;  %v4135_v63 = vld [vmem:[#allocation9 + $0x1c8] ss:$16 sps:$4 sm:$0xff]  }
 0x102   : > { %5164 = vst [vmem:[#allocation70_spill] sm:$0xff] %v4129_v36  ;;  %5167 = vst [vmem:[#allocation73_spill] sm:$0xff] %v4135_v63 }
 0x104   : > { %1577 = vmatpush1.bf16.msra.mxu0 %v4109_v45  ;;  %1620 = vmatpush1.bf16.msra.mxu1 %v4111_v54  ;;  %v4131_v45 = vld [vmem:[#allocation9 + $0x1cc] ss:$16 sps:$4 sm:$0xff]   ;;  %v4133_v54 = vld [vmem:[#allocation9 + $0x1c0] ss:$16 sps:$4 sm:$0xff]  }
 0x105   : > { %1578 = vmatprep.subr.bf16.mxu0 %v4117_v3  ;;  %1621 = vmatprep.subr.bf16.mxu1 %v4119_v7  ;;  %5165 = vst [vmem:[#allocation71_spill] sm:$0xff] %v4131_v45  ;;  %5166 = vst [vmem:[#allocation72_spill] sm:$0xff] %v4133_v54  ;;  %v4141_v7 = vld [vmem:[#allocation9 + $0x1e4] ss:$16 sps:$4 sm:$0xff]   ;;  %v4147_v3 = vld [vmem:[#allocation9 + $0x1e8] ss:$16 sps:$4 sm:$0xff]  }
 0x106   : > { %5168 = vst [vmem:[#allocation74_spill] sm:$0xff] %v4141_v7  ;;  %5171 = vst [vmem:[#allocation77_spill] sm:$0xff] %v4147_v3 }
 0x108   : > { %1579 = vmatpush1.bf16.msra.mxu0 %v4121_v8  ;;  %1622 = vmatpush1.bf16.msra.mxu1 %v4123_v9  ;;  %v4143_v8 = vld [vmem:[#allocation9 + $0x1ec] ss:$16 sps:$4 sm:$0xff]   ;;  %v4145_v9 = vld [vmem:[#allocation9 + $0x1e0] ss:$16 sps:$4 sm:$0xff]  }
 0x109   : > { %1580 = vmatprep.subr.bf16.mxu0 %v4129_v36  ;;  %1623 = vmatprep.subr.bf16.mxu1 %v4131_v45  ;;  %5169 = vst [vmem:[#allocation75_spill] sm:$0xff] %v4143_v8  ;;  %5170 = vst [vmem:[#allocation76_spill] sm:$0xff] %v4145_v9  ;;  %v825_v36 = vld [vmem:[#allocation11 + $0x18] sm:$0xff] }
 0x10c   : > { %1581 = vmatpush1.bf16.msra.mxu0 %v4133_v54  ;;  %1624 = vmatpush1.bf16.msra.mxu1 %v4135_v63  ;;  %v826_v54 = vpack.c.bf16 %v825_v36, %v824_v33  ;;  %v414_v63 = vlaneseq }
 0x10d   : > { %1582 = vmatprep.subr.bf16.mxu0 %v4141_v7  ;;  %1625 = vmatprep.subr.bf16.mxu1 %v4143_v8 }
 0x10e   : > { %1584 = vmatprep.mubr.bf16.mxu0 %v826_v54  ;;  %1627 = vmatprep.mubr.bf16.mxu1 %v826_v54  ;;  %v4155_v45 = vshrl.u32 %v414_v63, 7 }
 0x110   : > { %1583 = vmatpush1.bf16.msra.mxu0 %v4145_v9  ;;  %1626 = vmatpush1.bf16.msra.mxu1 %v4147_v3  ;;  %5172 = vst [vmem:[#allocation78_spill] sm:$0xff] %v4155_v45  ;;  %v5000_v32 = vsub.s32 2, %v4155_v45  ;;  %v5003_v7 = vsub.s32 3, %v4155_v45  ;;  %v5005_v8 = vsub.s32 0, %v4155_v45  ;;  %v412_v3 = vld [vmem:[%s4942_s3] sm:$0xf] }
 0x111   : > { %1690 = vmatprep.subr.bf16.mxu0 %v3853_v34  ;;  %1733 = vmatprep.subr.bf16.mxu1 %v3855_v35  ;;  %v5008_v33 = vsub.s32 1, %v4155_v45 }
 0x112   : > { %v4166_v34 = vrot.slane %v412_v3, %v5000_v32  ;;  %v4170_v35 = vrot.slane %v412_v3, %v5003_v7  ;;  %v4174_v36 = vrot.slane %v412_v3, %v5005_v8 }
 0x113   : > { %v4178_v63 = vrot.slane %v412_v3, %v5008_v33 }
 0x186   : > { %v652_v54 = vpop.f32.mrb[0].mxu0  ;;  %v725_v9 = vpop.f32.mrb[0].mxu1 }
 0x187   : > { %v654_v31 = vpop.f32.mrb[1].mxu0  ;;  %v726_v30 = vadd.f32 %v725_v9, %v4166_v34  ;;  %v727_v29 = vpop.f32.mrb[1].mxu1  ;;  %v653_v7 = vadd.f32 %v652_v54, %v4174_v36 }
 0x188   : > { %v656_v32 = vpop.f32.mrb[2].mxu0  ;;  %v728_v28 = vadd.f32 %v727_v29, %v4170_v35  ;;  %v729_v27 = vpop.f32.mrb[2].mxu1  ;;  %v655_v3 = vadd.f32 %v654_v31, %v4178_v63 }
 0x189   : > { %v657_v26 = vadd.f32 %v656_v32, %v4174_v36  ;;  %v658_v8 = vpop.f32.mrb[3].mxu0  ;;  %v730_v25 = vadd.f32 %v729_v27, %v4166_v34  ;;  %v731_v24 = vpop.f32.mrb[3].mxu1 }
 0x18a   : > { %v659_v33 = vadd.f32 %v658_v8, %v4178_v63  ;;  %v732_v45 = vadd.f32 %v731_v24, %v4170_v35 }
 0x18b   : > { %v4188_v9 = vpack.c.bf16 %v657_v26, %v653_v7  ;;  %v4190_v23 = vpack.c.bf16 %v730_v25, %v726_v30 }
 0x18c   : > { %v4192_v29 = vpack.c.bf16 %v659_v33, %v655_v3  ;;  %v4194_v22 = vpack.c.bf16 %v732_v45, %v728_v28 }
 0x18e   : > { %v662_v54 = vpop.f32.mrb[4].mxu0  ;;  %v735_v32 = vpop.f32.mrb[4].mxu1 }
 0x18f   : > { %v663_v21 = vadd.f32 %v662_v54, %v4174_v36  ;;  %v664_v27 = vpop.f32.mrb[5].mxu0  ;;  %v736_v20 = vadd.f32 %v735_v32, %v4166_v34  ;;  %v737_v31 = vpop.f32.mrb[5].mxu1 }
 0x190   : > { %v665_v8 = vadd.f32 %v664_v27, %v4178_v63  ;;  %v666_v19 = vpop.f32.mrb[6].mxu0  ;;  %v738_v24 = vadd.f32 %v737_v31, %v4170_v35  ;;  %v739_v26 = vpop.f32.mrb[6].mxu1 }
 0x191   : > { %v667_v25 = vadd.f32 %v666_v19, %v4174_v36  ;;  %v668_v30 = vpop.f32.mrb[7].mxu0  ;;  %v740_v28 = vadd.f32 %v739_v26, %v4166_v34  ;;  %v741_v45 = vpop.f32.mrb[7].mxu1 }
 0x192   : > { %v669_v7 = vadd.f32 %v668_v30, %v4178_v63  ;;  %v742_v33 = vadd.f32 %v741_v45, %v4170_v35 }
 0x193   : > { %v4204_v3 = vpack.c.bf16 %v667_v25, %v663_v21  ;;  %v4206_v54 = vpack.c.bf16 %v740_v28, %v736_v20 }
 0x194   : > { %v4208_v32 = vpack.c.bf16 %v669_v7, %v665_v8  ;;  %v4210_v27 = vpack.c.bf16 %v742_v33, %v738_v24 }
 0x195   : > { %5173 = vst [vmem:[#allocation79_spill] sm:$0xff] %v4204_v3  ;;  %5174 = vst [vmem:[#allocation80_spill] sm:$0xff] %v4206_v54 }
 0x196   : > { %5175 = vst [vmem:[#allocation81_spill] sm:$0xff] %v4208_v32  ;;  %5176 = vst [vmem:[#allocation82_spill] sm:$0xff] %v4210_v27  ;;  %v672_v31 = vpop.f32.mrb[8].mxu0  ;;  %v745_v18 = vpop.f32.mrb[8].mxu1 }
 0x197   : > { %v673_v19 = vadd.f32 %v672_v31, %v4174_v36  ;;  %v674_v17 = vpop.f32.mrb[9].mxu0  ;;  %v746_v26 = vadd.f32 %v745_v18, %v4166_v34  ;;  %v747_v16 = vpop.f32.mrb[9].mxu1 }
 0x198   : > { %v675_v30 = vadd.f32 %v674_v17, %v4178_v63  ;;  %v676_v15 = vpop.f32.mrb[10].mxu0  ;;  %v748_v21 = vadd.f32 %v747_v16, %v4170_v35  ;;  %v749_v25 = vpop.f32.mrb[10].mxu1 }
 0x199   : > { %v677_v20 = vadd.f32 %v676_v15, %v4174_v36  ;;  %v678_v8 = vpop.f32.mrb[11].mxu0  ;;  %v750_v24 = vadd.f32 %v749_v25, %v4166_v34  ;;  %v751_v28 = vpop.f32.mrb[11].mxu1 }
 0x19a   : > { %v679_v45 = vadd.f32 %v678_v8, %v4178_v63  ;;  %v752_v7 = vadd.f32 %v751_v28, %v4170_v35 }
 0x19b   : > { %v4220_v33 = vpack.c.bf16 %v677_v20, %v673_v19  ;;  %v4222_v18 = vpack.c.bf16 %v750_v24, %v746_v26 }
 0x19c   : > { %v4224_v31 = vpack.c.bf16 %v679_v45, %v675_v30  ;;  %v4226_v17 = vpack.c.bf16 %v752_v7, %v748_v21 }
 0x19e   : > { %5177 = vst [vmem:[#allocation83_spill] sm:$0xff] %v4226_v17  ;;  %v682_v16 = vpop.f32.mrb[12].mxu0  ;;  %v755_v27 = vpop.f32.mrb[12].mxu1 }
 0x19f   : > { %v683_v15 = vadd.f32 %v682_v16, %v4174_v36  ;;  %v684_v32 = vpop.f32.mrb[13].mxu0  ;;  %v756_v25 = vadd.f32 %v755_v27, %v4166_v34  ;;  %v757_v54 = vpop.f32.mrb[13].mxu1 }
 0x1a0   : > { %v685_v8 = vadd.f32 %v684_v32, %v4178_v63  ;;  %v686_v3 = vpop.f32.mrb[14].mxu0  ;;  %v758_v19 = vadd.f32 %v757_v54, %v4170_v35  ;;  %v759_v20 = vpop.f32.mrb[14].mxu1  ;;  %v837_v54 = vunpack.c.l.bf16 %v4188_v9 }
 0x1a1   : > { %v687_v26 = vadd.f32 %v686_v3, %v4174_v36  ;;  %v688_v30 = vpop.f32.mrb[15].mxu0  ;;  %v760_v21 = vadd.f32 %v759_v20, %v4166_v34  ;;  %v761_v24 = vpop.f32.mrb[15].mxu1  ;;  %v839_v36 = vunpack.c.l.bf16 %v4190_v23  ;;  %v838_v34 = vunpack.c.l.bf16 %v4192_v29 }
 0x1a2   : > { %v689_v28 = vadd.f32 %v688_v30, %v4178_v63  ;;  %v762_v45 = vadd.f32 %v761_v24, %v4170_v35  ;;  %v840_v63 = vunpack.c.l.bf16 %v4194_v22 }
 0x1a3   : > { %v4236_v7 = vpack.c.bf16 %v687_v26, %v683_v15  ;;  %v4238_v27 = vpack.c.bf16 %v760_v21, %v756_v25  ;;  %v841_v25 = vunpack.c.h.bf16 %v4188_v9 }
 0x1a4   : > { %v4240_v16 = vpack.c.bf16 %v689_v28, %v685_v8  ;;  %v4242_v32 = vpack.c.bf16 %v762_v45, %v758_v19  ;;  %v843_v8 = vunpack.c.h.bf16 %v4190_v23  ;;  %v842_v28 = vunpack.c.h.bf16 %v4192_v29 }
 0x1a5   : > { %5178 = vst [vmem:[#allocation84_spill] sm:$0xff] %v4236_v7  ;;  %5179 = vst [vmem:[#allocation85_spill] sm:$0xff] %v4238_v27  ;;  %v844_v45 = vunpack.c.h.bf16 %v4194_v22 }
 0x1a6   : > { %5180 = vst [vmem:[#allocation86_spill] sm:$0xff] %v4240_v16  ;;  %5181 = vst [vmem:[#allocation87_spill] sm:$0xff] %v4242_v32  ;;  %v1071_v3 = vpop.f32.mrb[16].mxu0  ;;  %v1114_v17 = vpop.f32.mrb[16].mxu1 }
 0x1a7   : > { %v1123_v20 = vadd.f32 %v1071_v3, %v837_v54  ;;  %v1125_v35 = vadd.f32 %v1114_v17, %v839_v36  ;;  %v1073_v15 = vpop.f32.mrb[17].mxu0  ;;  %v1116_v26 = vpop.f32.mrb[17].mxu1 }
 0x1a8   : > { %v1124_v19 = vadd.f32 %v1073_v15, %v838_v34  ;;  %v1126_v30 = vadd.f32 %v1116_v26, %v840_v63  ;;  %v1075_v21 = vpop.f32.mrb[18].mxu0  ;;  %v1118_v24 = vpop.f32.mrb[18].mxu1 }
 0x1a9   : > { %v1131_v32 = vmul.f32 0.5, %v1123_v20  ;;  %v1127_v16 = vadd.f32 %v1075_v21, %v841_v25  ;;  %v1129_v27 = vadd.f32 %v1118_v24, %v843_v8  ;;  %v1077_v7 = vpop.f32.mrb[19].mxu0  ;;  %v1120_v54 = vpop.f32.mrb[19].mxu1  ;;  %v821_v8 = vld [vmem:[#allocation12] sm:$0xff] }
 0x1aa   : > { %v1139_v17 = vmul.f32 0.5, %v1124_v19  ;;  %v1128_v36 = vadd.f32 %v1077_v7, %v842_v28  ;;  %v1130_v3 = vadd.f32 %v1120_v54, %v844_v45  ;;  %v1149_v22 = vmul.f32 0.5, %v1126_v30  ;;  %v822_v45 = vld [vmem:[#allocation12 + $0x8] sm:$0xff] }
 0x1ab   : > { %3091 = vtanh.f32 %v1131_v32  ;;  %v1132_v9 = vmul.f32 0.5, %v1127_v16 }
 0x1ac   : > { %3093 = vtanh.f32 %v1139_v17  ;;  %v1140_v23 = vmul.f32 0.5, %v1128_v36  ;;  %v1150_v15 = vmul.f32 0.5, %v1130_v3 }
 0x1ad   : > { %3095 = vtanh.f32 %v1132_v9 }
 0x1ae   : > { %3097 = vtanh.f32 %v1125_v35 }
 0x1af   : > { %3099 = vtanh.f32 %v1140_v23 }
 0x1b0   : > { %3101 = vtanh.f32 %v1129_v27 }
 0x1b1   : > { %3103 = vtanh.f32 %v1149_v22 }
 0x1b2   : > { %3105 = vtanh.f32 %v1150_v15 }
 0x1b5   : > { %v3092_v34 = vpop.eup %3091 }
 0x1b6   : > { %v3094_v29 = vpop.eup %3093  ;;  %v1135_v63 = vmul.f32 0.5, %v3092_v34 }
 0x1b7   : > { %v1143_v20 = vmul.f32 0.5, %v3094_v29  ;;  %v3096_v26 = vpop.eup %3095 }
 0x1b8   : > { %v1137_v25 = vadd.f32 0.5, %v1135_v63  ;;  %v3098_v19 = vpop.eup %3097  ;;  %v1136_v21 = vmul.f32 0.5, %v3096_v26 }
 0x1b9   : > { %v1145_v7 = vadd.f32 0.5, %v1143_v20  ;;  %v3100_v32 = vpop.eup %3099 }
 0x1ba   : > { %v1159_v16 = vmul.f32 %v3098_v19, %v1137_v25  ;;  %v1138_v28 = vadd.f32 0.5, %v1136_v21  ;;  %v1144_v35 = vmul.f32 0.5, %v3100_v32  ;;  %v3102_v27 = vpop.eup %3101  ;;  %v5182_v19 = vmov 0   ;;  %v5219_v21 = vld [vmem:[#allocation55_spill] sm:$0xff]  ;;  %v5220_v32 = vld [vmem:[#allocation56_spill] sm:$0xff] }
 0x1bb   : > { %v1157_v24 = vmul.f32 %v1145_v7, %v821_v8  ;;  %v3104_v9 = vpop.eup %3103  ;;  %v5218_v7 = vld [vmem:[#allocation54_spill] sm:$0xff] }
 0x1bc   : > { %v1146_v30 = vadd.f32 0.5, %v1144_v35  ;;  %v1160_v17 = vmul.f32 %v3102_v27, %v1138_v28  ;;  %v3106_v23 = vpop.eup %3105  ;;  %v1153_v34 = vmul.f32 0.5, %v3104_v9  ;;  %v5223_v28 = vld [vmem:[#allocation59_spill] sm:$0xff]  ;;  %v5224_v35 = vld [vmem:[#allocation60_spill] sm:$0xff]  ;;  %v5225_v27 = vld [vmem:[#allocation61_spill] sm:$0xff] }
 0x1bd   : > { %v4252_v54 = vadd.f32 %v1159_v16, %v1157_v24  ;;  %v1154_v29 = vmul.f32 0.5, %v3106_v23  ;;  %v5221_v16 = vld [vmem:[#allocation57_spill] sm:$0xff]  ;;  %v5222_v24 = vld [vmem:[#allocation58_spill] sm:$0xff]  ;;  %v5231_v23 = vld [vmem:[#allocation67_spill] sm:$0xff] }
 0x1be   : > { %v1158_v36 = vmul.f32 %v1146_v30, %v822_v45  ;;  %v1155_v22 = vadd.f32 0.5, %v1153_v34  ;;  %v5226_v45 = vld [vmem:[#allocation62_spill] sm:$0xff]  ;;  %v5227_v30 = vld [vmem:[#allocation63_spill] sm:$0xff]  ;;  %v5232_v34 = vld [vmem:[#allocation68_spill] sm:$0xff] }
 0x1bf   : > { %3107 = vtanh.f32 %v4252_v54  ;;  %v1156_v20 = vadd.f32 0.5, %v1154_v29  ;;  %v5230_v9 = vld [vmem:[#allocation66_spill] sm:$0xff]  ;;  %v5233_v29 = vld [vmem:[#allocation69_spill] sm:$0xff] }
 0x1c0   : > { %v4255_v3 = vadd.f32 %v1160_v17, %v1158_v36  ;;  %v5228_v17 = vld [vmem:[#allocation64_spill] sm:$0xff]  ;;  %v5229_v36 = vld [vmem:[#allocation65_spill] sm:$0xff] }
 0x1c2   : > { %3109 = vtanh.f32 %v4255_v3 }
 0x1c9   : > { %v3108_v63 = vpop.eup %3107 }
 0x1ca   : > { %v1165_v26 = vmul.f32 %v3108_v63, %v1155_v22  ;;  %v5234_v63 = vld [vmem:[#allocation70_spill] sm:$0xff]  ;;  %v5235_v22 = vld [vmem:[#allocation71_spill] sm:$0xff] }
 0x1cc   : > { %v3110_v15 = vpop.eup %3109 }
 0x1cd   : > { %v1166_v25 = vmul.f32 %v3110_v15, %v1156_v20  ;;  %v5236_v20 = vld [vmem:[#allocation72_spill] sm:$0xff]  ;;  %v5237_v15 = vld [vmem:[#allocation73_spill] sm:$0xff] }
 0x1cf   : > { %v1167_v8 = vpack.c.bf16 %v1166_v25, %v1165_v26  ;;  %v5238_v26 = vld [vmem:[#allocation74_spill] sm:$0xff]  ;;  %v5239_v25 = vld [vmem:[#allocation75_spill] sm:$0xff] }
 0x1d1   : > { %1585 = vmatmul.mubr.bf16.vlgmr.msra.gmra.mrb[20].mxu0 %v1167_v8  ;;  %1628 = vmatmul.mubr.bf16.vlgmr.msra.gmra.mrb[20].mxu1 %v1167_v8 }
 0x1d2   : > { %1691 = vmatpush1.bf16.msra.mxu0 %v3858_v37  ;;  %1734 = vmatpush1.bf16.msra.mxu1 %v3860_v38  ;;  %v5183_v37 = vld [vmem:[#allocation19_spill] sm:$0xff]  ;;  %v5184_v38 = vld [vmem:[#allocation20_spill] sm:$0xff] }
 0x1d3   : > { %1692 = vmatprep.subr.bf16.mxu0 %v3864_v39  ;;  %1735 = vmatprep.subr.bf16.mxu1 %v3866_v40  ;;  %v5185_v39 = vld [vmem:[#allocation21_spill] sm:$0xff]  ;;  %v5186_v40 = vld [vmem:[#allocation22_spill] sm:$0xff] }
 0x1d4   : > { %1722 = vmatprep.mubr.bf16.mxu0 %v5182_v19  ;;  %1765 = vmatprep.mubr.bf16.mxu1 %v5182_v19 }
 0x1d6   : > { %1693 = vmatpush1.bf16.msra.mxu0 %v3868_v41  ;;  %1736 = vmatpush1.bf16.msra.mxu1 %v3872_v42  ;;  %v5187_v41 = vld [vmem:[#allocation23_spill] sm:$0xff]  ;;  %v5188_v42 = vld [vmem:[#allocation24_spill] sm:$0xff] }
 0x1d7   : > { %1694 = vmatprep.subr.bf16.mxu0 %v3876_v43  ;;  %1737 = vmatprep.subr.bf16.mxu1 %v3878_v44  ;;  %v5189_v43 = vld [vmem:[#allocation25_spill] sm:$0xff]  ;;  %v5190_v44 = vld [vmem:[#allocation26_spill] sm:$0xff] }
 0x1da   : > { %1695 = vmatpush1.bf16.msra.mxu0 %v3883_v46  ;;  %1738 = vmatpush1.bf16.msra.mxu1 %v3885_v47  ;;  %v5191_v46 = vld [vmem:[#allocation27_spill] sm:$0xff]  ;;  %v5192_v47 = vld [vmem:[#allocation28_spill] sm:$0xff] }
 0x1db   : > { %1696 = vmatprep.subr.bf16.mxu0 %v3889_v48  ;;  %1739 = vmatprep.subr.bf16.mxu1 %v3893_v49  ;;  %v5193_v48 = vld [vmem:[#allocation29_spill] sm:$0xff]  ;;  %v5194_v49 = vld [vmem:[#allocation30_spill] sm:$0xff] }
 0x1de   : > { %1697 = vmatpush1.bf16.msra.mxu0 %v3895_v50  ;;  %1740 = vmatpush1.bf16.msra.mxu1 %v3897_v51  ;;  %v5195_v50 = vld [vmem:[#allocation31_spill] sm:$0xff]  ;;  %v5196_v51 = vld [vmem:[#allocation32_spill] sm:$0xff] }
 0x1df   : > { %1698 = vmatprep.subr.bf16.mxu0 %v3901_v52  ;;  %1741 = vmatprep.subr.bf16.mxu1 %v3905_v53  ;;  %v5197_v52 = vld [vmem:[#allocation33_spill] sm:$0xff]  ;;  %v5198_v53 = vld [vmem:[#allocation34_spill] sm:$0xff] }
 0x1e2   : > { %1699 = vmatpush1.bf16.msra.mxu0 %v3910_v55  ;;  %1742 = vmatpush1.bf16.msra.mxu1 %v3912_v56  ;;  %v5199_v55 = vld [vmem:[#allocation35_spill] sm:$0xff]  ;;  %v5200_v56 = vld [vmem:[#allocation36_spill] sm:$0xff] }
 0x1e3   : > { %1700 = vmatprep.subr.bf16.mxu0 %v3914_v57  ;;  %1743 = vmatprep.subr.bf16.mxu1 %v3916_v58  ;;  %v5201_v57 = vld [vmem:[#allocation37_spill] sm:$0xff]  ;;  %v5202_v58 = vld [vmem:[#allocation38_spill] sm:$0xff] }
 0x1e6   : > { %1701 = vmatpush1.bf16.msra.mxu0 %v3922_v59  ;;  %1744 = vmatpush1.bf16.msra.mxu1 %v3924_v60  ;;  %v5203_v59 = vld [vmem:[#allocation39_spill] sm:$0xff]  ;;  %v5204_v60 = vld [vmem:[#allocation40_spill] sm:$0xff] }
 0x1e7   : > { %1702 = vmatprep.subr.bf16.mxu0 %v3926_v61  ;;  %1745 = vmatprep.subr.bf16.mxu1 %v3928_v62  ;;  %v5205_v61 = vld [vmem:[#allocation41_spill] sm:$0xff]  ;;  %v5206_v62 = vld [vmem:[#allocation42_spill] sm:$0xff] }
 0x1ea   : > { %1703 = vmatpush1.bf16.msra.mxu0 %v3937_v0  ;;  %1746 = vmatpush1.bf16.msra.mxu1 %v3939_v1  ;;  %v5207_v0 = vld [vmem:[#allocation43_spill] sm:$0xff]  ;;  %v5208_v1 = vld [vmem:[#allocation44_spill] sm:$0xff] }
 0x1eb   : > { %1704 = vmatprep.subr.bf16.mxu0 %v3941_v2  ;;  %1747 = vmatprep.subr.bf16.mxu1 %v3943_v4  ;;  %v5209_v2 = vld [vmem:[#allocation45_spill] sm:$0xff]  ;;  %v5210_v4 = vld [vmem:[#allocation46_spill] sm:$0xff] }
 0x1ee   : > { %1705 = vmatpush1.bf16.msra.mxu0 %v3949_v5  ;;  %1748 = vmatpush1.bf16.msra.mxu1 %v3951_v6  ;;  %v5211_v5 = vld [vmem:[#allocation47_spill] sm:$0xff]  ;;  %v5212_v6 = vld [vmem:[#allocation48_spill] sm:$0xff] }
 0x1ef   : > { %1821 = vmatprep.subr.bf16.mxu0 %v3961_v10  ;;  %1864 = vmatprep.subr.bf16.mxu1 %v3963_v11  ;;  %v5213_v10 = vld [vmem:[#allocation49_spill] sm:$0xff]  ;;  %v5214_v11 = vld [vmem:[#allocation50_spill] sm:$0xff] }
 0x1f1   : > { %1723 = vmatmul.mubr.bf16.vlgmr.msra.gmra.mrb[24].mxu0 %v1167_v8  ;;  %1766 = vmatmul.mubr.bf16.vlgmr.msra.gmra.mrb[24].mxu1 %v1167_v8  ;;  %v5240_v8 = vld [vmem:[#allocation76_spill] sm:$0xff] }
 0x1f2   : > { %1822 = vmatpush1.bf16.msra.mxu0 %v3965_v12  ;;  %1865 = vmatpush1.bf16.msra.mxu1 %v3967_v13  ;;  %v5215_v12 = vld [vmem:[#allocation51_spill] sm:$0xff]  ;;  %v5216_v13 = vld [vmem:[#allocation52_spill] sm:$0xff] }
 0x1f3   : > { %1823 = vmatprep.subr.bf16.mxu0 %v3973_v14  ;;  %1866 = vmatprep.subr.bf16.mxu1 %v5183_v37  ;;  %v5217_v14 = vld [vmem:[#allocation53_spill] sm:$0xff] }
 0x1f4   : > { %v5241_v37 = vld [vmem:[#allocation77_spill] sm:$0xff] }
 0x1f6   : > { %1824 = vmatpush1.bf16.msra.mxu0 %v5184_v38  ;;  %1867 = vmatpush1.bf16.msra.mxu1 %v5185_v39  ;;  %v4354_v38 = vld [vmem:[#allocation8 + $0x4] ss:$16 sps:$4 sm:$0xff]   ;;  %v4357_v39 = vld [vmem:[#allocation8 + $0xc] ss:$16 sps:$4 sm:$0xff]  }
 0x1f7   : > { %1825 = vmatprep.subr.bf16.mxu0 %v5186_v40  ;;  %1868 = vmatprep.subr.bf16.mxu1 %v5187_v41  ;;  %v796_v40 = vld [vmem:[%s4944_s5] sm:$0xf]  ;;  %v5242_v41 = vld [vmem:[#allocation78_spill] sm:$0xff] }
 0x1fa   : > { %1826 = vmatpush1.bf16.msra.mxu0 %v5188_v42  ;;  %1869 = vmatpush1.bf16.msra.mxu1 %v5189_v43  ;;  %v5243_v42 = vsub.s32 0, %v5242_v41 }
 0x1fb   : > { %1827 = vmatprep.subr.bf16.mxu0 %v5190_v44  ;;  %1870 = vmatprep.subr.bf16.mxu1 %v5191_v46  ;;  %v5245_v44 = vsub.s32 1, %v5242_v41 }
 0x1fc   : > { %v4365_v43 = vrot.slane %v796_v40, %v5243_v42  ;;  %v5252_v42 = vld [vmem:[#allocation80_spill] sm:$0xff] }
 0x1fd   : > { %v4369_v46 = vrot.slane %v796_v40, %v5245_v44  ;;  %v1684_v44 = vunpack.c.l.bf16 %v5252_v42 }
 0x1fe   : > { %1828 = vmatpush1.bf16.msra.mxu0 %v5192_v47  ;;  %1871 = vmatpush1.bf16.msra.mxu1 %v5193_v48  ;;  %5244 = vst [vmem:[#allocation19_spill] sm:$0xff] %v4365_v43 }
 0x1ff   : > { %1829 = vmatprep.subr.bf16.mxu0 %v5194_v49  ;;  %1872 = vmatprep.subr.bf16.mxu1 %v5195_v50  ;;  %5246 = vst [vmem:[#allocation20_spill] sm:$0xff] %v4369_v46  ;;  %v5247_v50 = vsub.s32 2, %v5242_v41 }
 0x202   : > { %1830 = vmatpush1.bf16.msra.mxu0 %v5196_v51  ;;  %1873 = vmatpush1.bf16.msra.mxu1 %v5197_v52  ;;  %v4374_v51 = vrot.slane %v796_v40, %v5247_v50 }
 0x203   : > { %1831 = vmatprep.subr.bf16.mxu0 %v5198_v53  ;;  %1874 = vmatprep.subr.bf16.mxu1 %v5199_v55 }
 0x204   : > { %5248 = vst [vmem:[#allocation21_spill] sm:$0xff] %v4374_v51 }
 0x206   : > { %1832 = vmatpush1.bf16.msra.mxu0 %v5200_v56  ;;  %1875 = vmatpush1.bf16.msra.mxu1 %v5201_v57 }
 0x207   : > { %1833 = vmatprep.subr.bf16.mxu0 %v5202_v58  ;;  %1876 = vmatprep.subr.bf16.mxu1 %v5203_v59 }
 0x20a   : > { %1834 = vmatpush1.bf16.msra.mxu0 %v5204_v60  ;;  %1877 = vmatpush1.bf16.msra.mxu1 %v5205_v61 }
 0x20b   : > { %1835 = vmatprep.subr.bf16.mxu0 %v5206_v62  ;;  %1878 = vmatprep.subr.bf16.mxu1 %v5207_v0 }
 0x20e   : > { %1836 = vmatpush1.bf16.msra.mxu0 %v5208_v1  ;;  %1879 = vmatpush1.bf16.msra.mxu1 %v5209_v2 }
 0x20f   : > { %1837 = vmatprep.subr.bf16.mxu0 %v5210_v4  ;;  %1880 = vmatprep.subr.bf16.mxu1 %v5211_v5  ;;  %v5249_v5 = vsub.s32 3, %v5242_v41 }
 0x212   : > { %1838 = vmatpush1.bf16.msra.mxu0 %v5212_v6  ;;  %1881 = vmatpush1.bf16.msra.mxu1 %v5213_v10  ;;  %v4382_v6 = vrot.slane %v796_v40, %v5249_v5  ;;  %v5251_v40 = vld [vmem:[#allocation79_spill] sm:$0xff] }
 0x213   : > { %1839 = vmatprep.subr.bf16.mxu0 %v5214_v11  ;;  %1882 = vmatprep.subr.bf16.mxu1 %v5215_v12  ;;  %v1682_v41 = vunpack.c.l.bf16 %v5251_v40 }
 0x214   : > { %5250 = vst [vmem:[#allocation22_spill] sm:$0xff] %v4382_v6 }
 0x216   : > { %1840 = vmatpush1.bf16.msra.mxu0 %v5216_v13  ;;  %1883 = vmatpush1.bf16.msra.mxu1 %v5217_v14 }
 0x217   : > { %1841 = vmatprep.subr.bf16.mxu0 %v5218_v7  ;;  %1884 = vmatprep.subr.bf16.mxu1 %v5219_v21 }
 0x21a   : > { %1842 = vmatpush1.bf16.msra.mxu0 %v5220_v32  ;;  %1885 = vmatpush1.bf16.msra.mxu1 %v5221_v16 }
 0x21b   : > { %1843 = vmatprep.subr.bf16.mxu0 %v5222_v24  ;;  %1886 = vmatprep.subr.bf16.mxu1 %v5223_v28 }
 0x21e   : > { %1844 = vmatpush1.bf16.msra.mxu0 %v5224_v35  ;;  %1887 = vmatpush1.bf16.msra.mxu1 %v5225_v27  ;;  %v828_v35 = vld [vmem:[#allocation12 + $0x10] sm:$0xff] }
 0x21f   : > { %1845 = vmatprep.subr.bf16.mxu0 %v5226_v45  ;;  %1888 = vmatprep.subr.bf16.mxu1 %v5227_v30 }
 0x222   : > { %1846 = vmatpush1.bf16.msra.mxu0 %v5228_v17  ;;  %1889 = vmatpush1.bf16.msra.mxu1 %v5229_v36 }
 0x223   : > { %1847 = vmatprep.subr.bf16.mxu0 %v5230_v9  ;;  %1890 = vmatprep.subr.bf16.mxu1 %v5231_v23 }
 0x226   : > { %1848 = vmatpush1.bf16.msra.mxu0 %v5232_v34  ;;  %1891 = vmatpush1.bf16.msra.mxu1 %v5233_v29 }
 0x227   : > { %1849 = vmatprep.subr.bf16.mxu0 %v5234_v63  ;;  %1892 = vmatprep.subr.bf16.mxu1 %v5235_v22  ;;  %v829_v63 = vld [vmem:[#allocation12 + $0x18] sm:$0xff] }
 0x22a   : > { %1850 = vmatpush1.bf16.msra.mxu0 %v5236_v20  ;;  %1893 = vmatpush1.bf16.msra.mxu1 %v5237_v15 }
 0x22b   : > { %1851 = vmatprep.subr.bf16.mxu0 %v5238_v26  ;;  %1894 = vmatprep.subr.bf16.mxu1 %v5239_v25 }
 0x22e   : > { %1852 = vmatpush1.bf16.msra.mxu0 %v5240_v8  ;;  %1895 = vmatpush1.bf16.msra.mxu1 %v5241_v37 }
 0x22f   : > { %1959 = vmatprep.subr.bf16.mxu0 %v4354_v38  ;;  %2002 = vmatprep.subr.bf16.mxu1 %v4357_v39 }
 0x2a4   : > { %v1586_v47 = vpop.f32.mrb[20].mxu0  ;;  %v1629_v48 = vpop.f32.mrb[20].mxu1 }
 0x2a5   : > { %v1587_v49 = vadd.f32 %v1586_v47, %v4365_v43  ;;  %v1588_v52 = vpop.f32.mrb[21].mxu0  ;;  %v1631_v53 = vpop.f32.mrb[21].mxu1  ;;  %v1630_v1 = vadd.f32 %v1629_v48, %v4374_v51 }
 0x2a6   : > { %v1589_v55 = vadd.f32 %v1588_v52, %v4369_v46  ;;  %v1590_v56 = vpop.f32.mrb[22].mxu0  ;;  %v1633_v57 = vpop.f32.mrb[22].mxu1  ;;  %v1632_v11 = vadd.f32 %v1631_v53, %v4382_v6  ;;  %v5254_v52 = vld [vmem:[#allocation82_spill] sm:$0xff] }
 0x2a7   : > { %v1638_v58 = vmul.f32 0.5, %v1587_v49  ;;  %v1591_v59 = vadd.f32 %v1590_v56, %v4365_v43  ;;  %v1592_v60 = vpop.f32.mrb[23].mxu0  ;;  %v1635_v61 = vpop.f32.mrb[23].mxu1  ;;  %v1634_v10 = vadd.f32 %v1633_v57, %v4374_v51  ;;  %v5253_v49 = vld [vmem:[#allocation81_spill] sm:$0xff]  ;;  %v1685_v53 = vunpack.c.l.bf16 %v5254_v52 }
 0x2a8   : > { %v1646_v62 = vmul.f32 0.5, %v1589_v55  ;;  %v1593_v0 = vadd.f32 %v1592_v60, %v4369_v46  ;;  %v1636_v12 = vadd.f32 %v1635_v61, %v4382_v6  ;;  %v1656_v21 = vmul.f32 0.5, %v1632_v11 }
 0x2a9   : > { %3111 = vtanh.f32 %v1638_v58  ;;  %v1639_v2 = vmul.f32 0.5, %v1591_v59  ;;  %v1683_v50 = vunpack.c.l.bf16 %v5253_v49  ;;  %v1686_v55 = vunpack.c.h.bf16 %v5251_v40 }
 0x2aa   : > { %3113 = vtanh.f32 %v1646_v62  ;;  %v1647_v4 = vmul.f32 0.5, %v1593_v0  ;;  %v1657_v16 = vmul.f32 0.5, %v1636_v12  ;;  %v1688_v56 = vunpack.c.h.bf16 %v5252_v42 }
 0x2ab   : > { %3115 = vtanh.f32 %v1639_v2  ;;  %v1687_v61 = vunpack.c.h.bf16 %v5253_v49  ;;  %v1689_v62 = vunpack.c.h.bf16 %v5254_v52 }
 0x2ac   : > { %3117 = vtanh.f32 %v1630_v1 }
 0x2ad   : > { %3119 = vtanh.f32 %v1647_v4 }
 0x2ae   : > { %3121 = vtanh.f32 %v1634_v10 }
 0x2af   : > { %3123 = vtanh.f32 %v1656_v21 }
 0x2b0   : > { %3125 = vtanh.f32 %v1657_v16 }
 0x2b3   : > { %v3112_v13 = vpop.eup %3111 }
 0x2b4   : > { %v3114_v14 = vpop.eup %3113  ;;  %v1642_v7 = vmul.f32 0.5, %v3112_v13 }
 0x2b5   : > { %v1650_v32 = vmul.f32 0.5, %v3114_v14  ;;  %v3116_v24 = vpop.eup %3115 }
 0x2b6   : > { %v1644_v28 = vadd.f32 0.5, %v1642_v7  ;;  %v3118_v27 = vpop.eup %3117  ;;  %v1643_v30 = vmul.f32 0.5, %v3116_v24 }
 0x2b7   : > { %v1652_v45 = vadd.f32 0.5, %v1650_v32  ;;  %v3120_v17 = vpop.eup %3119 }
 0x2b8   : > { %v1666_v36 = vmul.f32 %v3118_v27, %v1644_v28  ;;  %v1645_v23 = vadd.f32 0.5, %v1643_v30  ;;  %v1651_v34 = vmul.f32 0.5, %v3120_v17  ;;  %v3122_v29 = vpop.eup %3121 }
 0x2b9   : > { %v1664_v9 = vmul.f32 %v1652_v45, %v828_v35  ;;  %v3124_v8 = vpop.eup %3123 }
 0x2ba   : > { %v1653_v20 = vadd.f32 0.5, %v1651_v34  ;;  %v1667_v15 = vmul.f32 %v3122_v29, %v1645_v23  ;;  %v3126_v37 = vpop.eup %3125  ;;  %v1660_v0 = vmul.f32 0.5, %v3124_v8 }
 0x2bb   : > { %v4387_v22 = vadd.f32 %v1666_v36, %v1664_v9  ;;  %v1661_v1 = vmul.f32 0.5, %v3126_v37 }
 0x2bc   : > { %v1665_v26 = vmul.f32 %v1653_v20, %v829_v63  ;;  %v1662_v35 = vadd.f32 0.5, %v1660_v0 }
 0x2bd   : > { %3127 = vtanh.f32 %v4387_v22  ;;  %v1663_v27 = vadd.f32 0.5, %v1661_v1 }
 0x2be   : > { %v4390_v25 = vadd.f32 %v1667_v15, %v1665_v26 }
 0x2c0   : > { %3129 = vtanh.f32 %v4390_v25 }
 0x2c4   : > { %v1724_v47 = vpop.f32.mrb[24].mxu0  ;;  %v1767_v48 = vpop.f32.mrb[24].mxu1 }
 0x2c5   : > { %v1776_v57 = vadd.f32 %v1724_v47, %v1682_v41  ;;  %v1778_v58 = vadd.f32 %v1767_v48, %v1684_v44  ;;  %v1726_v59 = vpop.f32.mrb[25].mxu0  ;;  %v1769_v60 = vpop.f32.mrb[25].mxu1 }
 0x2c6   : > { %v1777_v2 = vadd.f32 %v1726_v59, %v1683_v50  ;;  %v1779_v4 = vadd.f32 %v1769_v60, %v1685_v53  ;;  %v1728_v5 = vpop.f32.mrb[26].mxu0  ;;  %v1771_v10 = vpop.f32.mrb[26].mxu1 }
 0x2c7   : > { %v1784_v11 = vmul.f32 0.5, %v1776_v57  ;;  %v1780_v12 = vadd.f32 %v1728_v5, %v1686_v55  ;;  %v1782_v13 = vadd.f32 %v1771_v10, %v1688_v56  ;;  %v1730_v14 = vpop.f32.mrb[27].mxu0  ;;  %v1773_v7 = vpop.f32.mrb[27].mxu1  ;;  %v4416_v10 = vld [vmem:[#allocation8 + $0x8] ss:$16 sps:$4 sm:$0xff]  }
 0x2c8   : > { %v1792_v21 = vmul.f32 0.5, %v1777_v2  ;;  %v1781_v32 = vadd.f32 %v1730_v14, %v1687_v61  ;;  %v1783_v16 = vadd.f32 %v1773_v7, %v1689_v62  ;;  %v3128_v24 = vpop.eup %3127  ;;  %v1802_v63 = vmul.f32 0.5, %v1779_v4  ;;  %v4430_v14 = vld [vmem:[#allocation8 + $0x28] ss:$16 sps:$4 sm:$0xff]   ;;  %v4433_v7 = vld [vmem:[#allocation8 + $0x44] ss:$16 sps:$4 sm:$0xff]  }
 0x2c9   : > { %3131 = vtanh.f32 %v1784_v11  ;;  %v1785_v28 = vmul.f32 0.5, %v1780_v12  ;;  %v1672_v17 = vmul.f32 %v3128_v24, %v1662_v35  ;;  %v4419_v11 = vld [vmem:[#allocation8 + $0x24] ss:$16 sps:$4 sm:$0xff]   ;;  %v4422_v12 = vld [vmem:[#allocation8 + $0x2c] ss:$16 sps:$4 sm:$0xff]  }
 0x2ca   : > { %3133 = vtanh.f32 %v1792_v21  ;;  %v1793_v45 = vmul.f32 0.5, %v1781_v32  ;;  %v3130_v30 = vpop.eup %3129  ;;  %v1803_v15 = vmul.f32 0.5, %v1783_v16  ;;  %v4436_v21 = vld [vmem:[#allocation8 + $0x4c] ss:$16 sps:$4 sm:$0xff]   ;;  %v4439_v32 = vld [vmem:[#allocation8 + $0x40] ss:$16 sps:$4 sm:$0xff]  }
 0x2cb   : > { %3135 = vtanh.f32 %v1785_v28  ;;  %v1673_v36 = vmul.f32 %v3130_v30, %v1663_v27  ;;  %v4442_v16 = vld [vmem:[#allocation8 + $0x48] ss:$16 sps:$4 sm:$0xff]   ;;  %v4445_v24 = vld [vmem:[#allocation8 + $0x64] ss:$16 sps:$4 sm:$0xff]   ;;  %v4448_v28 = vld [vmem:[#allocation8 + $0x6c] ss:$16 sps:$4 sm:$0xff]  }
 0x2cc   : > { %3137 = vtanh.f32 %v1778_v58  ;;  %v4451_v35 = vld [vmem:[#allocation8 + $0x60] ss:$16 sps:$4 sm:$0xff]   ;;  %v4454_v27 = vld [vmem:[#allocation8 + $0x68] ss:$16 sps:$4 sm:$0xff]   ;;  %v4460_v30 = vld [vmem:[#allocation8 + $0x8c] ss:$16 sps:$4 sm:$0xff]  }
 0x2cd   : > { %3139 = vtanh.f32 %v1793_v45  ;;  %v1674_v9 = vpack.c.bf16 %v1673_v36, %v1672_v17  ;;  %v4457_v45 = vld [vmem:[#allocation8 + $0x84] ss:$16 sps:$4 sm:$0xff]   ;;  %v4463_v17 = vld [vmem:[#allocation8 + $0x80] ss:$16 sps:$4 sm:$0xff]   ;;  %v4466_v36 = vld [vmem:[#allocation8 + $0x88] ss:$16 sps:$4 sm:$0xff]  }
 0x2ce   : > { %3141 = vtanh.f32 %v1782_v13  ;;  %v4427_v13 = vld [vmem:[#allocation8 + $0x20] ss:$16 sps:$4 sm:$0xff]  }
 0x2cf   : > { %1853 = vmatprep.mubr.bf16.mxu0 %v1674_v9  ;;  %1896 = vmatprep.mubr.bf16.mxu1 %v1674_v9  ;;  %3143 = vtanh.f32 %v1802_v63  ;;  %v4469_v9 = vld [vmem:[#allocation8 + $0xa4] ss:$16 sps:$4 sm:$0xff]  }
 0x2d0   : > { %3145 = vtanh.f32 %v1803_v15  ;;  %v4481_v63 = vld [vmem:[#allocation8 + $0xc4] ss:$16 sps:$4 sm:$0xff]   ;;  %v4487_v15 = vld [vmem:[#allocation8 + $0xc0] ss:$16 sps:$4 sm:$0xff]  }
 0x2d3   : > { %v3132_v23 = vpop.eup %3131 }
 0x2d4   : > { %v3134_v34 = vpop.eup %3133  ;;  %v1788_v29 = vmul.f32 0.5, %v3132_v23  ;;  %v4472_v23 = vld [vmem:[#allocation8 + $0xac] ss:$16 sps:$4 sm:$0xff]  }
 0x2d5   : > { %v1796_v20 = vmul.f32 0.5, %v3134_v34  ;;  %v3136_v26 = vpop.eup %3135  ;;  %v4475_v34 = vld [vmem:[#allocation8 + $0xa0] ss:$16 sps:$4 sm:$0xff]  }
 0x2d6   : > { %v1790_v8 = vadd.f32 0.5, %v1788_v29  ;;  %v3138_v37 = vpop.eup %3137  ;;  %v1789_v41 = vmul.f32 0.5, %v3136_v26  ;;  %v4478_v29 = vld [vmem:[#allocation8 + $0xa8] ss:$16 sps:$4 sm:$0xff]  }
 0x2d7   : > { %v1798_v40 = vadd.f32 0.5, %v1796_v20  ;;  %v3140_v42 = vpop.eup %3139  ;;  %v4484_v20 = vld [vmem:[#allocation8 + $0xcc] ss:$16 sps:$4 sm:$0xff]   ;;  %v4490_v26 = vld [vmem:[#allocation8 + $0xc8] ss:$16 sps:$4 sm:$0xff]  }
 0x2d8   : > { %v1812_v44 = vmul.f32 %v3138_v37, %v1790_v8  ;;  %v1791_v48 = vadd.f32 0.5, %v1789_v41  ;;  %v1797_v49 = vmul.f32 0.5, %v3140_v42  ;;  %v3142_v50 = vpop.eup %3141  ;;  %v4493_v8 = vld [vmem:[#allocation8 + $0xe4] ss:$16 sps:$4 sm:$0xff]   ;;  %v4496_v37 = vld [vmem:[#allocation8 + $0xec] ss:$16 sps:$4 sm:$0xff]  }
 0x2d9   : > { %v1810_v47 = vmul.f32 %v1798_v40, %v4252_v54  ;;  %v3144_v58 = vpop.eup %3143  ;;  %v4499_v40 = vld [vmem:[#allocation8 + $0xe0] ss:$16 sps:$4 sm:$0xff]   ;;  %v4502_v41 = vld [vmem:[#allocation8 + $0xe8] ss:$16 sps:$4 sm:$0xff]   ;;  %v4505_v42 = vld [vmem:[#allocation9 + $0x4] ss:$16 sps:$4 sm:$0xff]  }
 0x2da   : > { %v1799_v53 = vadd.f32 0.5, %v1797_v49  ;;  %v1813_v55 = vmul.f32 %v3142_v50, %v1791_v48  ;;  %v3146_v59 = vpop.eup %3145  ;;  %v1806_v60 = vmul.f32 0.5, %v3144_v58  ;;  %5255 = vst [vmem:[#allocation23_spill] sm:$0xff] %v4505_v42  ;;  %v4516_v48 = vld [vmem:[#allocation9 + $0x8] ss:$16 sps:$4 sm:$0xff]  }
 0x2db   : > { %v4402_v52 = vadd.f32 %v1812_v44, %v1810_v47  ;;  %v1807_v54 = vmul.f32 0.5, %v3146_v59  ;;  %v4508_v44 = vld [vmem:[#allocation9 + $0xc] ss:$16 sps:$4 sm:$0xff]   ;;  %v4513_v47 = vld [vmem:[#allocation9] ss:$16 sps:$4 sm:$0xff]   ;;  %5258 = vst [vmem:[#allocation26_spill] sm:$0xff] %v4516_v48 }
 0x2dc   : > { %v1811_v56 = vmul.f32 %v1799_v53, %v4255_v3  ;;  %v1808_v62 = vadd.f32 0.5, %v1806_v60  ;;  %v4413_v3 = vld [vmem:[#allocation8] ss:$16 sps:$4 sm:$0xff]   ;;  %5256 = vst [vmem:[#allocation24_spill] sm:$0xff] %v4508_v44  ;;  %5257 = vst [vmem:[#allocation25_spill] sm:$0xff] %v4513_v47 }
 0x2dd   : > { %3147 = vtanh.f32 %v4402_v52  ;;  %v1809_v0 = vadd.f32 0.5, %v1807_v54  ;;  %v4519_v49 = vld [vmem:[#allocation9 + $0x24] ss:$16 sps:$4 sm:$0xff]   ;;  %v4522_v50 = vld [vmem:[#allocation9 + $0x2c] ss:$16 sps:$4 sm:$0xff]  }
 0x2de   : > { %v4406_v57 = vadd.f32 %v1813_v55, %v1811_v56  ;;  %5259 = vst [vmem:[#allocation27_spill] sm:$0xff] %v4519_v49  ;;  %5260 = vst [vmem:[#allocation28_spill] sm:$0xff] %v4522_v50  ;;  %v4525_v53 = vld [vmem:[#allocation9 + $0x20] ss:$16 sps:$4 sm:$0xff]   ;;  %v4528_v55 = vld [vmem:[#allocation9 + $0x28] ss:$16 sps:$4 sm:$0xff]  }
 0x2df   : > { %5261 = vst [vmem:[#allocation29_spill] sm:$0xff] %v4525_v53  ;;  %5262 = vst [vmem:[#allocation30_spill] sm:$0xff] %v4528_v55  ;;  %v4531_v56 = vld [vmem:[#allocation9 + $0x44] ss:$16 sps:$4 sm:$0xff]   ;;  %v4534_v58 = vld [vmem:[#allocation9 + $0x4c] ss:$16 sps:$4 sm:$0xff]  }
 0x2e0   : > { %3149 = vtanh.f32 %v4406_v57  ;;  %5263 = vst [vmem:[#allocation31_spill] sm:$0xff] %v4531_v56  ;;  %5264 = vst [vmem:[#allocation32_spill] sm:$0xff] %v4534_v58  ;;  %v4537_v59 = vld [vmem:[#allocation9 + $0x40] ss:$16 sps:$4 sm:$0xff]   ;;  %v4540_v60 = vld [vmem:[#allocation9 + $0x48] ss:$16 sps:$4 sm:$0xff]  }
 0x2e1   : > { %5265 = vst [vmem:[#allocation33_spill] sm:$0xff] %v4537_v59  ;;  %5266 = vst [vmem:[#allocation34_spill] sm:$0xff] %v4540_v60  ;;  %v4543_v54 = vld [vmem:[#allocation9 + $0x64] ss:$16 sps:$4 sm:$0xff]  }
 0x2e2   : > { %5267 = vst [vmem:[#allocation35_spill] sm:$0xff] %v4543_v54 }
 0x2e7   : > { %v3148_v61 = vpop.eup %3147 }
 0x2e8   : > { %v1818_v2 = vmul.f32 %v3148_v61, %v1808_v62  ;;  %v4546_v61 = vld [vmem:[#allocation9 + $0x6c] ss:$16 sps:$4 sm:$0xff]   ;;  %v4549_v62 = vld [vmem:[#allocation9 + $0x60] ss:$16 sps:$4 sm:$0xff]  }
 0x2e9   : > { %5268 = vst [vmem:[#allocation36_spill] sm:$0xff] %v4546_v61  ;;  %5269 = vst [vmem:[#allocation37_spill] sm:$0xff] %v4549_v62 }
 0x2ea   : > { %v3150_v1 = vpop.eup %3149 }
 0x2eb   : > { %v1819_v4 = vmul.f32 %v3150_v1, %v1809_v0  ;;  %v4552_v0 = vld [vmem:[#allocation9 + $0x68] ss:$16 sps:$4 sm:$0xff]   ;;  %v4555_v1 = vld [vmem:[#allocation9 + $0x84] ss:$16 sps:$4 sm:$0xff]  }
 0x2ec   : > { %5270 = vst [vmem:[#allocation38_spill] sm:$0xff] %v4552_v0  ;;  %5271 = vst [vmem:[#allocation39_spill] sm:$0xff] %v4555_v1 }
 0x2ed   : > { %v4409_v5 = vpack.c.bf16 %v1819_v4, %v1818_v2  ;;  %v4558_v2 = vld [vmem:[#allocation9 + $0x8c] ss:$16 sps:$4 sm:$0xff]   ;;  %v4561_v4 = vld [vmem:[#allocation9 + $0x80] ss:$16 sps:$4 sm:$0xff]  }
 0x2ee   : > { %5272 = vst [vmem:[#allocation40_spill] sm:$0xff] %v4558_v2  ;;  %5273 = vst [vmem:[#allocation41_spill] sm:$0xff] %v4561_v4 }
 0x2ef   : > { %1854 = vmatmul.mubr.bf16.vlgmr.msra.gmra.mrb[28].mxu0 %v4409_v5  ;;  %1897 = vmatmul.mubr.bf16.vlgmr.msra.gmra.mrb[28].mxu1 %v4409_v5 }
 0x2f0   : > { %1960 = vmatpush1.bf16.msra.mxu0 %v4413_v3  ;;  %2003 = vmatpush1.bf16.msra.mxu1 %v4416_v10 }
 0x2f1   : > { %1961 = vmatprep.subr.bf16.mxu0 %v4419_v11  ;;  %2004 = vmatprep.subr.bf16.mxu1 %v4422_v12 }
 0x2f2   : > { %1991 = vmatprep.mubr.bf16.mxu0 %v5182_v19  ;;  %2034 = vmatprep.mubr.bf16.mxu1 %v5182_v19 }
 0x2f4   : > { %1962 = vmatpush1.bf16.msra.mxu0 %v4427_v13  ;;  %2005 = vmatpush1.bf16.msra.mxu1 %v4430_v14 }
 0x2f5   : > { %1963 = vmatprep.subr.bf16.mxu0 %v4433_v7  ;;  %2006 = vmatprep.subr.bf16.mxu1 %v4436_v21 }
 0x2f8   : > { %1964 = vmatpush1.bf16.msra.mxu0 %v4439_v32  ;;  %2007 = vmatpush1.bf16.msra.mxu1 %v4442_v16 }
 0x2f9   : > { %1965 = vmatprep.subr.bf16.mxu0 %v4445_v24  ;;  %2008 = vmatprep.subr.bf16.mxu1 %v4448_v28 }
 0x2fc   : > { %1966 = vmatpush1.bf16.msra.mxu0 %v4451_v35  ;;  %2009 = vmatpush1.bf16.msra.mxu1 %v4454_v27 }
 0x2fd   : > { %1967 = vmatprep.subr.bf16.mxu0 %v4457_v45  ;;  %2010 = vmatprep.subr.bf16.mxu1 %v4460_v30 }
 0x300   : > { %1968 = vmatpush1.bf16.msra.mxu0 %v4463_v17  ;;  %2011 = vmatpush1.bf16.msra.mxu1 %v4466_v36 }
 0x301   : > { %1969 = vmatprep.subr.bf16.mxu0 %v4469_v9  ;;  %2012 = vmatprep.subr.bf16.mxu1 %v4472_v23 }
 0x304   : > { %1970 = vmatpush1.bf16.msra.mxu0 %v4475_v34  ;;  %2013 = vmatpush1.bf16.msra.mxu1 %v4478_v29 }
 0x305   : > { %1971 = vmatprep.subr.bf16.mxu0 %v4481_v63  ;;  %2014 = vmatprep.subr.bf16.mxu1 %v4484_v20 }
 0x308   : > { %1972 = vmatpush1.bf16.msra.mxu0 %v4487_v15  ;;  %2015 = vmatpush1.bf16.msra.mxu1 %v4490_v26 }
 0x309   : > { %1973 = vmatprep.subr.bf16.mxu0 %v4493_v8  ;;  %2016 = vmatprep.subr.bf16.mxu1 %v4496_v37 }
 0x30c   : > { %1974 = vmatpush1.bf16.msra.mxu0 %v4499_v40  ;;  %2017 = vmatpush1.bf16.msra.mxu1 %v4502_v41 }
 0x30d   : > { %2090 = vmatprep.subr.bf16.mxu0 %v4505_v42  ;;  %2133 = vmatprep.subr.bf16.mxu1 %v4508_v44 }
 0x30f   : > { %1992 = vmatmul.mubr.bf16.vlgmr.msra.gmra.mrb[32].mxu0 %v4409_v5  ;;  %2035 = vmatmul.mubr.bf16.vlgmr.msra.gmra.mrb[32].mxu1 %v4409_v5  ;;  %v4564_v5 = vld [vmem:[#allocation9 + $0x88] ss:$16 sps:$4 sm:$0xff]  }
 0x310   : > { %2091 = vmatpush1.bf16.msra.mxu0 %v4513_v47  ;;  %2134 = vmatpush1.bf16.msra.mxu1 %v4516_v48  ;;  %5274 = vst [vmem:[#allocation42_spill] sm:$0xff] %v4564_v5 }
 0x311   : > { %2092 = vmatprep.subr.bf16.mxu0 %v4519_v49  ;;  %2135 = vmatprep.subr.bf16.mxu1 %v4522_v50 }
 0x314   : > { %2093 = vmatpush1.bf16.msra.mxu0 %v4525_v53  ;;  %2136 = vmatpush1.bf16.msra.mxu1 %v4528_v55 }
 0x315   : > { %2094 = vmatprep.subr.bf16.mxu0 %v4531_v56  ;;  %2137 = vmatprep.subr.bf16.mxu1 %v4534_v58 }
 0x318   : > { %2095 = vmatpush1.bf16.msra.mxu0 %v4537_v59  ;;  %2138 = vmatpush1.bf16.msra.mxu1 %v4540_v60 }
 0x319   : > { %2096 = vmatprep.subr.bf16.mxu0 %v4543_v54  ;;  %2139 = vmatprep.subr.bf16.mxu1 %v4546_v61 }
 0x31c   : > { %2097 = vmatpush1.bf16.msra.mxu0 %v4549_v62  ;;  %2140 = vmatpush1.bf16.msra.mxu1 %v4552_v0  ;;  %v4567_v62 = vld [vmem:[#allocation9 + $0xa4] ss:$16 sps:$4 sm:$0xff]   ;;  %v4570_v0 = vld [vmem:[#allocation9 + $0xac] ss:$16 sps:$4 sm:$0xff]  }
 0x31d   : > { %2098 = vmatprep.subr.bf16.mxu0 %v4555_v1  ;;  %2141 = vmatprep.subr.bf16.mxu1 %v4558_v2  ;;  %5275 = vst [vmem:[#allocation43_spill] sm:$0xff] %v4567_v62  ;;  %5276 = vst [vmem:[#allocation44_spill] sm:$0xff] %v4570_v0  ;;  %v4573_v1 = vld [vmem:[#allocation9 + $0xa0] ss:$16 sps:$4 sm:$0xff]   ;;  %v4576_v2 = vld [vmem:[#allocation9 + $0xa8] ss:$16 sps:$4 sm:$0xff]  }
 0x31e   : > { %5277 = vst [vmem:[#allocation45_spill] sm:$0xff] %v4573_v1  ;;  %5278 = vst [vmem:[#allocation46_spill] sm:$0xff] %v4576_v2 }
 0x320   : > { %2099 = vmatpush1.bf16.msra.mxu0 %v4561_v4  ;;  %2142 = vmatpush1.bf16.msra.mxu1 %v4564_v5  ;;  %v4579_v4 = vld [vmem:[#allocation9 + $0xc4] ss:$16 sps:$4 sm:$0xff]   ;;  %v4582_v5 = vld [vmem:[#allocation9 + $0xcc] ss:$16 sps:$4 sm:$0xff]  }
 0x321   : > { %2100 = vmatprep.subr.bf16.mxu0 %v4567_v62  ;;  %2143 = vmatprep.subr.bf16.mxu1 %v4570_v0  ;;  %5279 = vst [vmem:[#allocation47_spill] sm:$0xff] %v4579_v4  ;;  %5280 = vst [vmem:[#allocation48_spill] sm:$0xff] %v4582_v5  ;;  %v4585_v62 = vld [vmem:[#allocation9 + $0xc0] ss:$16 sps:$4 sm:$0xff]   ;;  %v4588_v0 = vld [vmem:[#allocation9 + $0xc8] ss:$16 sps:$4 sm:$0xff]  }
 0x322   : > { %5281 = vst [vmem:[#allocation49_spill] sm:$0xff] %v4585_v62  ;;  %5282 = vst [vmem:[#allocation50_spill] sm:$0xff] %v4588_v0 }
 0x324   : > { %2101 = vmatpush1.bf16.msra.mxu0 %v4573_v1  ;;  %2144 = vmatpush1.bf16.msra.mxu1 %v4576_v2  ;;  %v4591_v1 = vld [vmem:[#allocation9 + $0xe4] ss:$16 sps:$4 sm:$0xff]   ;;  %v4594_v2 = vld [vmem:[#allocation9 + $0xec] ss:$16 sps:$4 sm:$0xff]  }
 0x325   : > { %2102 = vmatprep.subr.bf16.mxu0 %v4579_v4  ;;  %2145 = vmatprep.subr.bf16.mxu1 %v4582_v5  ;;  %5283 = vst [vmem:[#allocation51_spill] sm:$0xff] %v4591_v1  ;;  %5284 = vst [vmem:[#allocation52_spill] sm:$0xff] %v4594_v2  ;;  %v4597_v4 = vld [vmem:[#allocation9 + $0xe0] ss:$16 sps:$4 sm:$0xff]   ;;  %v4600_v5 = vld [vmem:[#allocation9 + $0xe8] ss:$16 sps:$4 sm:$0xff]  }
 0x326   : > { %5285 = vst [vmem:[#allocation53_spill] sm:$0xff] %v4597_v4  ;;  %5286 = vst [vmem:[#allocation54_spill] sm:$0xff] %v4600_v5 }
 0x328   : > { %2103 = vmatpush1.bf16.msra.mxu0 %v4585_v62  ;;  %2146 = vmatpush1.bf16.msra.mxu1 %v4588_v0  ;;  %v4603_v62 = vld [vmem:[#allocation9 + $0x104] ss:$16 sps:$4 sm:$0xff]   ;;  %v4606_v0 = vld [vmem:[#allocation9 + $0x10c] ss:$16 sps:$4 sm:$0xff]  }
 0x329   : > { %2104 = vmatprep.subr.bf16.mxu0 %v4591_v1  ;;  %2147 = vmatprep.subr.bf16.mxu1 %v4594_v2  ;;  %5287 = vst [vmem:[#allocation55_spill] sm:$0xff] %v4603_v62  ;;  %5288 = vst [vmem:[#allocation56_spill] sm:$0xff] %v4606_v0  ;;  %v4609_v1 = vld [vmem:[#allocation9 + $0x100] ss:$16 sps:$4 sm:$0xff]   ;;  %v4612_v2 = vld [vmem:[#allocation9 + $0x108] ss:$16 sps:$4 sm:$0xff]  }
 0x32a   : > { %5289 = vst [vmem:[#allocation57_spill] sm:$0xff] %v4609_v1  ;;  %5290 = vst [vmem:[#allocation58_spill] sm:$0xff] %v4612_v2 }
 0x32c   : > { %2105 = vmatpush1.bf16.msra.mxu0 %v4597_v4  ;;  %2148 = vmatpush1.bf16.msra.mxu1 %v4600_v5  ;;  %v4615_v4 = vld [vmem:[#allocation9 + $0x124] ss:$16 sps:$4 sm:$0xff]   ;;  %v4618_v5 = vld [vmem:[#allocation9 + $0x12c] ss:$16 sps:$4 sm:$0xff]  }
 0x32d   : > { %2106 = vmatprep.subr.bf16.mxu0 %v4603_v62  ;;  %2149 = vmatprep.subr.bf16.mxu1 %v4606_v0  ;;  %5291 = vst [vmem:[#allocation59_spill] sm:$0xff] %v4615_v4  ;;  %5292 = vst [vmem:[#allocation60_spill] sm:$0xff] %v4618_v5  ;;  %v4621_v62 = vld [vmem:[#allocation9 + $0x120] ss:$16 sps:$4 sm:$0xff]   ;;  %v4624_v0 = vld [vmem:[#allocation9 + $0x128] ss:$16 sps:$4 sm:$0xff]  }
 0x32e   : > { %5293 = vst [vmem:[#allocation61_spill] sm:$0xff] %v4621_v62  ;;  %5294 = vst [vmem:[#allocation62_spill] sm:$0xff] %v4624_v0 }
 0x330   : > { %2107 = vmatpush1.bf16.msra.mxu0 %v4609_v1  ;;  %2150 = vmatpush1.bf16.msra.mxu1 %v4612_v2  ;;  %v4627_v1 = vld [vmem:[#allocation9 + $0x144] ss:$16 sps:$4 sm:$0xff]   ;;  %v4630_v2 = vld [vmem:[#allocation9 + $0x14c] ss:$16 sps:$4 sm:$0xff]  }
 0x331   : > { %2108 = vmatprep.subr.bf16.mxu0 %v4615_v4  ;;  %2151 = vmatprep.subr.bf16.mxu1 %v4618_v5  ;;  %5295 = vst [vmem:[#allocation63_spill] sm:$0xff] %v4627_v1  ;;  %5296 = vst [vmem:[#allocation64_spill] sm:$0xff] %v4630_v2  ;;  %v4633_v4 = vld [vmem:[#allocation9 + $0x140] ss:$16 sps:$4 sm:$0xff]   ;;  %v4636_v5 = vld [vmem:[#allocation9 + $0x148] ss:$16 sps:$4 sm:$0xff]  }
 0x332   : > { %5297 = vst [vmem:[#allocation65_spill] sm:$0xff] %v4633_v4  ;;  %5298 = vst [vmem:[#allocation66_spill] sm:$0xff] %v4636_v5 }
 0x334   : > { %2109 = vmatpush1.bf16.msra.mxu0 %v4621_v62  ;;  %2152 = vmatpush1.bf16.msra.mxu1 %v4624_v0  ;;  %v4639_v62 = vld [vmem:[#allocation9 + $0x164] ss:$16 sps:$4 sm:$0xff]   ;;  %v4642_v0 = vld [vmem:[#allocation9 + $0x16c] ss:$16 sps:$4 sm:$0xff]  }
 0x335   : > { %2110 = vmatprep.subr.bf16.mxu0 %v4627_v1  ;;  %2153 = vmatprep.subr.bf16.mxu1 %v4630_v2  ;;  %5299 = vst [vmem:[#allocation67_spill] sm:$0xff] %v4639_v62  ;;  %5300 = vst [vmem:[#allocation68_spill] sm:$0xff] %v4642_v0  ;;  %v4645_v1 = vld [vmem:[#allocation9 + $0x160] ss:$16 sps:$4 sm:$0xff]   ;;  %v4648_v2 = vld [vmem:[#allocation9 + $0x168] ss:$16 sps:$4 sm:$0xff]  }
 0x336   : > { %5301 = vst [vmem:[#allocation69_spill] sm:$0xff] %v4645_v1  ;;  %5302 = vst [vmem:[#allocation70_spill] sm:$0xff] %v4648_v2 }
 0x338   : > { %2111 = vmatpush1.bf16.msra.mxu0 %v4633_v4  ;;  %2154 = vmatpush1.bf16.msra.mxu1 %v4636_v5  ;;  %v4651_v4 = vld [vmem:[#allocation9 + $0x184] ss:$16 sps:$4 sm:$0xff]   ;;  %v4654_v5 = vld [vmem:[#allocation9 + $0x18c] ss:$16 sps:$4 sm:$0xff]  }
 0x339   : > { %2112 = vmatprep.subr.bf16.mxu0 %v4639_v62  ;;  %2155 = vmatprep.subr.bf16.mxu1 %v4642_v0  ;;  %5303 = vst [vmem:[#allocation71_spill] sm:$0xff] %v4651_v4  ;;  %5304 = vst [vmem:[#allocation72_spill] sm:$0xff] %v4654_v5  ;;  %v4657_v62 = vld [vmem:[#allocation9 + $0x180] ss:$16 sps:$4 sm:$0xff]   ;;  %v4660_v0 = vld [vmem:[#allocation9 + $0x188] ss:$16 sps:$4 sm:$0xff]  }
 0x33a   : > { %5305 = vst [vmem:[#allocation73_spill] sm:$0xff] %v4657_v62  ;;  %5306 = vst [vmem:[#allocation74_spill] sm:$0xff] %v4660_v0 }
 0x33c   : > { %2113 = vmatpush1.bf16.msra.mxu0 %v4645_v1  ;;  %2156 = vmatpush1.bf16.msra.mxu1 %v4648_v2  ;;  %v4663_v1 = vld [vmem:[#allocation9 + $0x1a4] ss:$16 sps:$4 sm:$0xff]   ;;  %v4666_v2 = vld [vmem:[#allocation9 + $0x1ac] ss:$16 sps:$4 sm:$0xff]  }
 0x33d   : > { %2114 = vmatprep.subr.bf16.mxu0 %v4651_v4  ;;  %2157 = vmatprep.subr.bf16.mxu1 %v4654_v5  ;;  %5307 = vst [vmem:[#allocation75_spill] sm:$0xff] %v4663_v1  ;;  %5308 = vst [vmem:[#allocation76_spill] sm:$0xff] %v4666_v2  ;;  %v4669_v4 = vld [vmem:[#allocation9 + $0x1a0] ss:$16 sps:$4 sm:$0xff]   ;;  %v4672_v5 = vld [vmem:[#allocation9 + $0x1a8] ss:$16 sps:$4 sm:$0xff]  }
 0x33e   : > { %5309 = vst [vmem:[#allocation77_spill] sm:$0xff] %v4669_v4  ;;  %5310 = vst [vmem:[#allocation78_spill] sm:$0xff] %v4672_v5 }
 0x340   : > { %2115 = vmatpush1.bf16.msra.mxu0 %v4657_v62  ;;  %2158 = vmatpush1.bf16.msra.mxu1 %v4660_v0  ;;  %v4675_v62 = vld [vmem:[#allocation9 + $0x1c4] ss:$16 sps:$4 sm:$0xff]   ;;  %v4678_v0 = vld [vmem:[#allocation9 + $0x1cc] ss:$16 sps:$4 sm:$0xff]  }
 0x341   : > { %2116 = vmatprep.subr.bf16.mxu0 %v4663_v1  ;;  %2159 = vmatprep.subr.bf16.mxu1 %v4666_v2  ;;  %5311 = vst [vmem:[#allocation79_spill] sm:$0xff] %v4675_v62  ;;  %5312 = vst [vmem:[#allocation80_spill] sm:$0xff] %v4678_v0  ;;  %v4681_v1 = vld [vmem:[#allocation9 + $0x1c0] ss:$16 sps:$4 sm:$0xff]   ;;  %v4684_v2 = vld [vmem:[#allocation9 + $0x1c8] ss:$16 sps:$4 sm:$0xff]  }
 0x342   : > { %5313 = vst [vmem:[#allocation81_spill] sm:$0xff] %v4681_v1  ;;  %5314 = vst [vmem:[#allocation82_spill] sm:$0xff] %v4684_v2 }
 0x344   : > { %2117 = vmatpush1.bf16.msra.mxu0 %v4669_v4  ;;  %2160 = vmatpush1.bf16.msra.mxu1 %v4672_v5  ;;  %v4687_v4 = vld [vmem:[#allocation9 + $0x1e4] ss:$16 sps:$4 sm:$0xff]   ;;  %v4690_v5 = vld [vmem:[#allocation9 + $0x1ec] ss:$16 sps:$4 sm:$0xff]  }
 0x345   : > { %2118 = vmatprep.subr.bf16.mxu0 %v4675_v62  ;;  %2161 = vmatprep.subr.bf16.mxu1 %v4678_v0  ;;  %5315 = vst [vmem:[#allocation88_spill] sm:$0xff] %v4687_v4  ;;  %5316 = vst [vmem:[#allocation89_spill] sm:$0xff] %v4690_v5  ;;  %v4693_v62 = vld [vmem:[#allocation9 + $0x1e0] ss:$16 sps:$4 sm:$0xff]   ;;  %v4696_v0 = vld [vmem:[#allocation9 + $0x1e8] ss:$16 sps:$4 sm:$0xff]  }
 0x346   : > { %5317 = vst [vmem:[#allocation90_spill] sm:$0xff] %v4693_v62  ;;  %5318 = vst [vmem:[#allocation91_spill] sm:$0xff] %v4696_v0 }
 0x348   : > { %2119 = vmatpush1.bf16.msra.mxu0 %v4681_v1  ;;  %2162 = vmatpush1.bf16.msra.mxu1 %v4684_v2 }
 0x349   : > { %2120 = vmatprep.subr.bf16.mxu0 %v4687_v4  ;;  %2163 = vmatprep.subr.bf16.mxu1 %v4690_v5 }
 0x34c   : > { %2121 = vmatpush1.bf16.msra.mxu0 %v4693_v62  ;;  %2164 = vmatpush1.bf16.msra.mxu1 %v4696_v0 }
 0x34d   : > { %2228 = vmatprep.subr.bf16.mxu0 %v4354_v38  ;;  %2271 = vmatprep.subr.bf16.mxu1 %v4357_v39 }
 0x3c2   : > { %v1855_v2 = vpop.f32.mrb[28].mxu0  ;;  %v1898_v1 = vpop.f32.mrb[28].mxu1 }
 0x3c3   : > { %v1856_v4 = vadd.f32 %v1855_v2, %v4365_v43  ;;  %v1857_v61 = vpop.f32.mrb[29].mxu0  ;;  %v1900_v54 = vpop.f32.mrb[29].mxu1  ;;  %v1899_v39 = vadd.f32 %v1898_v1, %v4374_v51 }
 0x3c4   : > { %v1858_v5 = vadd.f32 %v1857_v61, %v4369_v46  ;;  %v1859_v60 = vpop.f32.mrb[30].mxu0  ;;  %v1902_v59 = vpop.f32.mrb[30].mxu1  ;;  %v1901_v61 = vadd.f32 %v1900_v54, %v4382_v6 }
 0x3c5   : > { %v1907_v58 = vmul.f32 0.5, %v1856_v4  ;;  %v1860_v62 = vadd.f32 %v1859_v60, %v4365_v43  ;;  %v1861_v56 = vpop.f32.mrb[31].mxu0  ;;  %v1904_v55 = vpop.f32.mrb[31].mxu1  ;;  %v1903_v50 = vadd.f32 %v1902_v59, %v4374_v51 }
 0x3c6   : > { %v1915_v0 = vmul.f32 0.5, %v1858_v5  ;;  %v1862_v38 = vadd.f32 %v1861_v56, %v4369_v46  ;;  %v1905_v60 = vadd.f32 %v1904_v55, %v4382_v6  ;;  %v1925_v56 = vmul.f32 0.5, %v1901_v61 }
 0x3c7   : > { %3151 = vtanh.f32 %v1907_v58  ;;  %v1908_v53 = vmul.f32 0.5, %v1860_v62 }
 0x3c8   : > { %3153 = vtanh.f32 %v1915_v0  ;;  %v1916_v2 = vmul.f32 0.5, %v1862_v38  ;;  %v1926_v46 = vmul.f32 0.5, %v1905_v60 }
 0x3c9   : > { %3155 = vtanh.f32 %v1908_v53 }
 0x3ca   : > { %3157 = vtanh.f32 %v1899_v39 }
 0x3cb   : > { %3159 = vtanh.f32 %v1916_v2 }
 0x3cc   : > { %3161 = vtanh.f32 %v1903_v50 }
 0x3cd   : > { %3163 = vtanh.f32 %v1925_v56 }
 0x3ce   : > { %3165 = vtanh.f32 %v1926_v46 }
 0x3d1   : > { %v3152_v4 = vpop.eup %3151 }
 0x3d2   : > { %v3154_v5 = vpop.eup %3153  ;;  %v1911_v43 = vmul.f32 0.5, %v3152_v4 }
 0x3d3   : > { %v1919_v58 = vmul.f32 0.5, %v3154_v5  ;;  %v3156_v1 = vpop.eup %3155 }
 0x3d4   : > { %v1913_v62 = vadd.f32 0.5, %v1911_v43  ;;  %v3158_v0 = vpop.eup %3157  ;;  %v1912_v53 = vmul.f32 0.5, %v3156_v1  ;;  %v1952_v1 = vunpack.c.l.bf16 %v4224_v31 }
 0x3d5   : > { %v1921_v38 = vadd.f32 0.5, %v1919_v58  ;;  %v3160_v49 = vpop.eup %3159 }
 0x3d6   : > { %v1935_v59 = vmul.f32 %v3158_v0, %v1913_v62  ;;  %v1914_v54 = vadd.f32 0.5, %v1912_v53  ;;  %v1920_v50 = vmul.f32 0.5, %v3160_v49  ;;  %v3162_v55 = vpop.eup %3161  ;;  %v1953_v49 = vunpack.c.l.bf16 %v4222_v18  ;;  %v5321_v62 = vld [vmem:[#allocation83_spill] sm:$0xff] }
 0x3d7   : > { %v1933_v39 = vmul.f32 %v1921_v38, %v4387_v22  ;;  %v3164_v5 = vpop.eup %3163  ;;  %v1951_v22 = vunpack.c.l.bf16 %v4220_v33  ;;  %v1954_v0 = vunpack.c.l.bf16 %v5321_v62  ;;  %v1957_v38 = vunpack.c.h.bf16 %v4222_v18 }
 0x3d8   : > { %v1922_v4 = vadd.f32 0.5, %v1920_v50  ;;  %v1936_v61 = vmul.f32 %v3162_v55, %v1914_v54  ;;  %v3166_v56 = vpop.eup %3165  ;;  %v1956_v50 = vunpack.c.h.bf16 %v4224_v31  ;;  %v1958_v55 = vunpack.c.h.bf16 %v5321_v62 }
 0x3d9   : > { %v4710_v2 = vadd.f32 %v1935_v59, %v1933_v39 }
 0x3da   : > { %v1934_v60 = vmul.f32 %v1922_v4, %v4390_v25  ;;  %v1955_v25 = vunpack.c.h.bf16 %v4220_v33  ;;  %v1929_v4 = vmul.f32 0.5, %v3164_v5 }
 0x3db   : > { %5319 = vst [vmem:[#allocation92_spill] sm:$0xff] %v4710_v2  ;;  %3167 = vtanh.f32 %v4710_v2 }
 0x3dc   : > { %v4714_v43 = vadd.f32 %v1936_v61, %v1934_v60  ;;  %v1930_v61 = vmul.f32 0.5, %v3166_v56  ;;  %v1931_v31 = vadd.f32 0.5, %v1929_v4 }
 0x3de   : > { %5320 = vst [vmem:[#allocation93_spill] sm:$0xff] %v4714_v43  ;;  %3169 = vtanh.f32 %v4714_v43  ;;  %v1932_v42 = vadd.f32 0.5, %v1930_v61 }
 0x3e2   : > { %v1993_v46 = vpop.f32.mrb[32].mxu0  ;;  %v2036_v58 = vpop.f32.mrb[32].mxu1 }
 0x3e3   : > { %v2045_v53 = vadd.f32 %v1993_v46, %v1951_v22  ;;  %v2047_v59 = vadd.f32 %v2036_v58, %v1953_v49  ;;  %v1995_v39 = vpop.f32.mrb[33].mxu0  ;;  %v2038_v54 = vpop.f32.mrb[33].mxu1 }
 0x3e4   : > { %v2046_v60 = vadd.f32 %v1995_v39, %v1952_v1  ;;  %v2048_v43 = vadd.f32 %v2038_v54, %v1954_v0  ;;  %v1997_v2 = vpop.f32.mrb[34].mxu0  ;;  %v2040_v6 = vpop.f32.mrb[34].mxu1 }
 0x3e5   : > { %v2053_v51 = vmul.f32 0.5, %v2045_v53  ;;  %v2049_v48 = vadd.f32 %v1997_v2, %v1955_v25  ;;  %v2051_v47 = vadd.f32 %v2040_v6, %v1957_v38  ;;  %v1999_v33 = vpop.f32.mrb[35].mxu0  ;;  %v2042_v44 = vpop.f32.mrb[35].mxu1 }
 0x3e6   : > { %v2061_v18 = vmul.f32 0.5, %v2046_v60  ;;  %v2050_v22 = vadd.f32 %v1999_v33, %v1956_v50  ;;  %v2052_v49 = vadd.f32 %v2042_v44, %v1958_v55  ;;  %v3168_v46 = vpop.eup %3167  ;;  %v2071_v25 = vmul.f32 0.5, %v2048_v43 }
 0x3e7   : > { %3171 = vtanh.f32 %v2053_v51  ;;  %v2054_v58 = vmul.f32 0.5, %v2049_v48  ;;  %v1941_v1 = vmul.f32 %v3168_v46, %v1931_v31 }
 0x3e8   : > { %3173 = vtanh.f32 %v2061_v18  ;;  %v2062_v5 = vmul.f32 0.5, %v2050_v22  ;;  %v3170_v56 = vpop.eup %3169  ;;  %v2072_v48 = vmul.f32 0.5, %v2052_v49 }
 0x3e9   : > { %3175 = vtanh.f32 %v2054_v58  ;;  %v1942_v62 = vmul.f32 %v3170_v56, %v1932_v42 }
 0x3ea   : > { %3177 = vtanh.f32 %v2047_v59 }
 0x3eb   : > { %3179 = vtanh.f32 %v2062_v5  ;;  %v1943_v2 = vpack.c.bf16 %v1942_v62, %v1941_v1 }
 0x3ec   : > { %3181 = vtanh.f32 %v2051_v47 }
 0x3ed   : > { %2122 = vmatprep.mubr.bf16.mxu0 %v1943_v2  ;;  %2165 = vmatprep.mubr.bf16.mxu1 %v1943_v2  ;;  %3183 = vtanh.f32 %v2071_v25  ;;  %v5356_v25 = vld [vmem:[#allocation57_spill] sm:$0xff] }
 0x3ee   : > { %3185 = vtanh.f32 %v2072_v48  ;;  %v5358_v48 = vld [vmem:[#allocation59_spill] sm:$0xff] }
 0x3f1   : > { %v3172_v6 = vpop.eup %3171 }
 0x3f2   : > { %v3174_v0 = vpop.eup %3173  ;;  %v2057_v44 = vmul.f32 0.5, %v3172_v6 }
 0x3f3   : > { %v2065_v51 = vmul.f32 0.5, %v3174_v0  ;;  %v3176_v38 = vpop.eup %3175  ;;  %v5354_v0 = vld [vmem:[#allocation55_spill] sm:$0xff] }
 0x3f4   : > { %v2059_v53 = vadd.f32 0.5, %v2057_v44  ;;  %v3178_v39 = vpop.eup %3177  ;;  %v2058_v50 = vmul.f32 0.5, %v3176_v38  ;;  %v5355_v44 = vld [vmem:[#allocation56_spill] sm:$0xff] }
 0x3f5   : > { %v2067_v54 = vadd.f32 0.5, %v2065_v51  ;;  %v3180_v55 = vpop.eup %3179  ;;  %v5357_v51 = vld [vmem:[#allocation58_spill] sm:$0xff]  ;;  %v5359_v38 = vld [vmem:[#allocation60_spill] sm:$0xff] }
 0x3f6   : > { %v2081_v4 = vmul.f32 %v3178_v39, %v2059_v53  ;;  %v2060_v59 = vadd.f32 0.5, %v2058_v50  ;;  %v2066_v47 = vmul.f32 0.5, %v3180_v55  ;;  %v3182_v61 = vpop.eup %3181  ;;  %v5360_v53 = vld [vmem:[#allocation61_spill] sm:$0xff]  ;;  %v5361_v39 = vld [vmem:[#allocation62_spill] sm:$0xff]  ;;  %v5363_v50 = vld [vmem:[#allocation64_spill] sm:$0xff] }
 0x3f7   : > { %v2079_v42 = vmul.f32 %v2067_v54, %v4402_v52  ;;  %v3184_v49 = vpop.eup %3183  ;;  %v5362_v54 = vld [vmem:[#allocation63_spill] sm:$0xff]  ;;  %v5364_v55 = vld [vmem:[#allocation65_spill] sm:$0xff] }
 0x3f8   : > { %v2068_v33 = vadd.f32 0.5, %v2066_v47  ;;  %v2082_v43 = vmul.f32 %v3182_v61, %v2060_v59  ;;  %v3186_v46 = vpop.eup %3185  ;;  %v2075_v58 = vmul.f32 0.5, %v3184_v49  ;;  %v5367_v59 = vld [vmem:[#allocation68_spill] sm:$0xff]  ;;  %v5368_v47 = vld [vmem:[#allocation69_spill] sm:$0xff]  ;;  %v5369_v61 = vld [vmem:[#allocation70_spill] sm:$0xff] }
 0x3f9   : > { %v4726_v60 = vadd.f32 %v2081_v4, %v2079_v42  ;;  %v2076_v52 = vmul.f32 0.5, %v3186_v46  ;;  %v5365_v4 = vld [vmem:[#allocation66_spill] sm:$0xff]  ;;  %v5366_v42 = vld [vmem:[#allocation67_spill] sm:$0xff] }
 0x3fa   : > { %v2080_v18 = vmul.f32 %v2068_v33, %v4406_v57  ;;  %v2077_v5 = vadd.f32 0.5, %v2075_v58  ;;  %v5323_v57 = vld [vmem:[#allocation24_spill] sm:$0xff]  ;;  %v5370_v33 = vld [vmem:[#allocation71_spill] sm:$0xff]  ;;  %v5373_v49 = vld [vmem:[#allocation74_spill] sm:$0xff] }
 0x3fb   : > { %3187 = vtanh.f32 %v4726_v60  ;;  %v2078_v56 = vadd.f32 0.5, %v2076_v52  ;;  %v5374_v46 = vld [vmem:[#allocation75_spill] sm:$0xff]  ;;  %v5375_v58 = vld [vmem:[#allocation76_spill] sm:$0xff]  ;;  %v5376_v52 = vld [vmem:[#allocation77_spill] sm:$0xff] }
 0x3fc   : > { %v4730_v22 = vadd.f32 %v2082_v43, %v2080_v18  ;;  %v5371_v43 = vld [vmem:[#allocation72_spill] sm:$0xff]  ;;  %v5372_v18 = vld [vmem:[#allocation73_spill] sm:$0xff] }
 0x3fe   : > { %3189 = vtanh.f32 %v4730_v22 }
 0x405   : > { %v3188_v31 = vpop.eup %3187 }
 0x406   : > { %v2087_v62 = vmul.f32 %v3188_v31, %v2077_v5  ;;  %v5377_v31 = vld [vmem:[#allocation78_spill] sm:$0xff]  ;;  %v5378_v5 = vld [vmem:[#allocation79_spill] sm:$0xff] }
 0x408   : > { %v3190_v1 = vpop.eup %3189 }
 0x409   : > { %v2088_v2 = vmul.f32 %v3190_v1, %v2078_v56  ;;  %v5379_v56 = vld [vmem:[#allocation80_spill] sm:$0xff]  ;;  %v5380_v1 = vld [vmem:[#allocation81_spill] sm:$0xff] }
 0x40b   : > { %v2089_v6 = vpack.c.bf16 %v2088_v2, %v2087_v62  ;;  %v5381_v62 = vld [vmem:[#allocation82_spill] sm:$0xff]  ;;  %v5382_v2 = vld [vmem:[#allocation88_spill] sm:$0xff] }
 0x40d   : > { %2123 = vmatmul.mubr.bf16.vlgmr.msra.gmra.mrb[36].mxu0 %v2089_v6  ;;  %2166 = vmatmul.mubr.bf16.vlgmr.msra.gmra.mrb[36].mxu1 %v2089_v6 }
 0x40e   : > { %2229 = vmatpush1.bf16.msra.mxu0 %v4413_v3  ;;  %2272 = vmatpush1.bf16.msra.mxu1 %v4416_v10  ;;  %v5324_v3 = vld [vmem:[#allocation25_spill] sm:$0xff]  ;;  %v5325_v10 = vld [vmem:[#allocation26_spill] sm:$0xff] }
 0x40f   : > { %2230 = vmatprep.subr.bf16.mxu0 %v4419_v11  ;;  %2273 = vmatprep.subr.bf16.mxu1 %v4422_v12  ;;  %v5326_v11 = vld [vmem:[#allocation27_spill] sm:$0xff]  ;;  %v5327_v12 = vld [vmem:[#allocation28_spill] sm:$0xff] }
 0x410   : > { %2260 = vmatprep.mubr.bf16.mxu0 %v5182_v19  ;;  %2303 = vmatprep.mubr.bf16.mxu1 %v5182_v19  ;;  %v5322_v19 = vld [vmem:[#allocation23_spill] sm:$0xff] }
 0x412   : > { %2231 = vmatpush1.bf16.msra.mxu0 %v4427_v13  ;;  %2274 = vmatpush1.bf16.msra.mxu1 %v4430_v14  ;;  %v5328_v13 = vld [vmem:[#allocation29_spill] sm:$0xff]  ;;  %v5329_v14 = vld [vmem:[#allocation30_spill] sm:$0xff] }
 0x413   : > { %2232 = vmatprep.subr.bf16.mxu0 %v4433_v7  ;;  %2275 = vmatprep.subr.bf16.mxu1 %v4436_v21  ;;  %v5330_v7 = vld [vmem:[#allocation31_spill] sm:$0xff]  ;;  %v5331_v21 = vld [vmem:[#allocation32_spill] sm:$0xff] }
 0x416   : > { %2233 = vmatpush1.bf16.msra.mxu0 %v4439_v32  ;;  %2276 = vmatpush1.bf16.msra.mxu1 %v4442_v16  ;;  %v5332_v32 = vld [vmem:[#allocation33_spill] sm:$0xff]  ;;  %v5333_v16 = vld [vmem:[#allocation34_spill] sm:$0xff] }
 0x417   : > { %2234 = vmatprep.subr.bf16.mxu0 %v4445_v24  ;;  %2277 = vmatprep.subr.bf16.mxu1 %v4448_v28  ;;  %v5334_v24 = vld [vmem:[#allocation35_spill] sm:$0xff]  ;;  %v5335_v28 = vld [vmem:[#allocation36_spill] sm:$0xff] }
 0x41a   : > { %2235 = vmatpush1.bf16.msra.mxu0 %v4451_v35  ;;  %2278 = vmatpush1.bf16.msra.mxu1 %v4454_v27  ;;  %v5336_v35 = vld [vmem:[#allocation37_spill] sm:$0xff]  ;;  %v5337_v27 = vld [vmem:[#allocation38_spill] sm:$0xff] }
 0x41b   : > { %2236 = vmatprep.subr.bf16.mxu0 %v4457_v45  ;;  %2279 = vmatprep.subr.bf16.mxu1 %v4460_v30  ;;  %v5338_v45 = vld [vmem:[#allocation39_spill] sm:$0xff]  ;;  %v5339_v30 = vld [vmem:[#allocation40_spill] sm:$0xff] }
 0x41e   : > { %2237 = vmatpush1.bf16.msra.mxu0 %v4463_v17  ;;  %2280 = vmatpush1.bf16.msra.mxu1 %v4466_v36  ;;  %v5340_v17 = vld [vmem:[#allocation41_spill] sm:$0xff]  ;;  %v5341_v36 = vld [vmem:[#allocation42_spill] sm:$0xff] }
 0x41f   : > { %2238 = vmatprep.subr.bf16.mxu0 %v4469_v9  ;;  %2281 = vmatprep.subr.bf16.mxu1 %v4472_v23  ;;  %v5342_v9 = vld [vmem:[#allocation43_spill] sm:$0xff]  ;;  %v5343_v23 = vld [vmem:[#allocation44_spill] sm:$0xff] }
 0x422   : > { %2239 = vmatpush1.bf16.msra.mxu0 %v4475_v34  ;;  %2282 = vmatpush1.bf16.msra.mxu1 %v4478_v29  ;;  %v5344_v34 = vld [vmem:[#allocation45_spill] sm:$0xff]  ;;  %v5345_v29 = vld [vmem:[#allocation46_spill] sm:$0xff] }
 0x423   : > { %2240 = vmatprep.subr.bf16.mxu0 %v4481_v63  ;;  %2283 = vmatprep.subr.bf16.mxu1 %v4484_v20  ;;  %v5346_v63 = vld [vmem:[#allocation47_spill] sm:$0xff]  ;;  %v5347_v20 = vld [vmem:[#allocation48_spill] sm:$0xff] }
 0x426   : > { %2241 = vmatpush1.bf16.msra.mxu0 %v4487_v15  ;;  %2284 = vmatpush1.bf16.msra.mxu1 %v4490_v26  ;;  %v5348_v15 = vld [vmem:[#allocation49_spill] sm:$0xff]  ;;  %v5349_v26 = vld [vmem:[#allocation50_spill] sm:$0xff] }
 0x427   : > { %2242 = vmatprep.subr.bf16.mxu0 %v4493_v8  ;;  %2285 = vmatprep.subr.bf16.mxu1 %v4496_v37  ;;  %v5350_v8 = vld [vmem:[#allocation51_spill] sm:$0xff]  ;;  %v5351_v37 = vld [vmem:[#allocation52_spill] sm:$0xff] }
 0x42a   : > { %2243 = vmatpush1.bf16.msra.mxu0 %v4499_v40  ;;  %2286 = vmatpush1.bf16.msra.mxu1 %v4502_v41  ;;  %v5352_v40 = vld [vmem:[#allocation53_spill] sm:$0xff]  ;;  %v5353_v41 = vld [vmem:[#allocation54_spill] sm:$0xff] }
 0x42b   : > { %2359 = vmatprep.subr.bf16.mxu0 %v5322_v19  ;;  %2402 = vmatprep.subr.bf16.mxu1 %v5323_v57  ;;  %v5384_v19 = vld [vmem:[#allocation90_spill] sm:$0xff]  ;;  %v5385_v57 = vld [vmem:[#allocation91_spill] sm:$0xff] }
 0x42d   : > { %2261 = vmatmul.mubr.bf16.vlgmr.msra.gmra.mrb[40].mxu0 %v2089_v6  ;;  %2304 = vmatmul.mubr.bf16.vlgmr.msra.gmra.mrb[40].mxu1 %v2089_v6  ;;  %v5383_v6 = vld [vmem:[#allocation89_spill] sm:$0xff] }
 0x42e   : > { %2360 = vmatpush1.bf16.msra.mxu0 %v5324_v3  ;;  %2403 = vmatpush1.bf16.msra.mxu1 %v5325_v10 }
 0x42f   : > { %2361 = vmatprep.subr.bf16.mxu0 %v5326_v11  ;;  %2404 = vmatprep.subr.bf16.mxu1 %v5327_v12  ;;  %v5386_v11 = vld [vmem:[#allocation19_spill] sm:$0xff] }
 0x432   : > { %2362 = vmatpush1.bf16.msra.mxu0 %v5328_v13  ;;  %2405 = vmatpush1.bf16.msra.mxu1 %v5329_v14 }
 0x433   : > { %2363 = vmatprep.subr.bf16.mxu0 %v5330_v7  ;;  %2406 = vmatprep.subr.bf16.mxu1 %v5331_v21  ;;  %v5387_v7 = vld [vmem:[#allocation20_spill] sm:$0xff] }
 0x436   : > { %2364 = vmatpush1.bf16.msra.mxu0 %v5332_v32  ;;  %2407 = vmatpush1.bf16.msra.mxu1 %v5333_v16 }
 0x437   : > { %2365 = vmatprep.subr.bf16.mxu0 %v5334_v24  ;;  %2408 = vmatprep.subr.bf16.mxu1 %v5335_v28 }
 0x43a   : > { %2366 = vmatpush1.bf16.msra.mxu0 %v5336_v35  ;;  %2409 = vmatpush1.bf16.msra.mxu1 %v5337_v27 }
 0x43b   : > { %2367 = vmatprep.subr.bf16.mxu0 %v5338_v45  ;;  %2410 = vmatprep.subr.bf16.mxu1 %v5339_v30 }
 0x43e   : > { %2368 = vmatpush1.bf16.msra.mxu0 %v5340_v17  ;;  %2411 = vmatpush1.bf16.msra.mxu1 %v5341_v36  ;;  %v5388_v17 = vld [vmem:[#allocation21_spill] sm:$0xff] }
 0x43f   : > { %2369 = vmatprep.subr.bf16.mxu0 %v5342_v9  ;;  %2412 = vmatprep.subr.bf16.mxu1 %v5343_v23 }
 0x442   : > { %2370 = vmatpush1.bf16.msra.mxu0 %v5344_v34  ;;  %2413 = vmatpush1.bf16.msra.mxu1 %v5345_v29  ;;  %v5389_v29 = vld [vmem:[#allocation22_spill] sm:$0xff] }
 0x443   : > { %2371 = vmatprep.subr.bf16.mxu0 %v5346_v63  ;;  %2414 = vmatprep.subr.bf16.mxu1 %v5347_v20 }
 0x446   : > { %2372 = vmatpush1.bf16.msra.mxu0 %v5348_v15  ;;  %2415 = vmatpush1.bf16.msra.mxu1 %v5349_v26 }
 0x447   : > { %2373 = vmatprep.subr.bf16.mxu0 %v5350_v8  ;;  %2416 = vmatprep.subr.bf16.mxu1 %v5351_v37 }
 0x44a   : > { %2374 = vmatpush1.bf16.msra.mxu0 %v5352_v40  ;;  %2417 = vmatpush1.bf16.msra.mxu1 %v5353_v41 }
 0x44b   : > { %2375 = vmatprep.subr.bf16.mxu0 %v5354_v0  ;;  %2418 = vmatprep.subr.bf16.mxu1 %v5355_v44 }
 0x44e   : > { %2376 = vmatpush1.bf16.msra.mxu0 %v5356_v25  ;;  %2419 = vmatpush1.bf16.msra.mxu1 %v5357_v51 }
 0x44f   : > { %2377 = vmatprep.subr.bf16.mxu0 %v5358_v48  ;;  %2420 = vmatprep.subr.bf16.mxu1 %v5359_v38 }
 0x452   : > { %2378 = vmatpush1.bf16.msra.mxu0 %v5360_v53  ;;  %2421 = vmatpush1.bf16.msra.mxu1 %v5361_v39  ;;  %v5390_v39 = vld [vmem:[#allocation92_spill] sm:$0xff] }
 0x453   : > { %2379 = vmatprep.subr.bf16.mxu0 %v5362_v54  ;;  %2422 = vmatprep.subr.bf16.mxu1 %v5363_v50 }
 0x456   : > { %2380 = vmatpush1.bf16.msra.mxu0 %v5364_v55  ;;  %2423 = vmatpush1.bf16.msra.mxu1 %v5365_v4 }
 0x457   : > { %2381 = vmatprep.subr.bf16.mxu0 %v5366_v42  ;;  %2424 = vmatprep.subr.bf16.mxu1 %v5367_v59 }
 0x45a   : > { %2382 = vmatpush1.bf16.msra.mxu0 %v5368_v47  ;;  %2425 = vmatpush1.bf16.msra.mxu1 %v5369_v61  ;;  %v5391_v61 = vld [vmem:[#allocation93_spill] sm:$0xff] }
 0x45b   : > { %2383 = vmatprep.subr.bf16.mxu0 %v5370_v33  ;;  %2426 = vmatprep.subr.bf16.mxu1 %v5371_v43 }
 0x45e   : > { %2384 = vmatpush1.bf16.msra.mxu0 %v5372_v18  ;;  %2427 = vmatpush1.bf16.msra.mxu1 %v5373_v49 }
 0x45f   : > { %2385 = vmatprep.subr.bf16.mxu0 %v5374_v46  ;;  %2428 = vmatprep.subr.bf16.mxu1 %v5375_v58  ;;  %v5392_v46 = vld [vmem:[#allocation84_spill] sm:$0xff] }
 0x460   : > { %v2220_v58 = vunpack.c.l.bf16 %v5392_v46 }
 0x462   : > { %2386 = vmatpush1.bf16.msra.mxu0 %v5376_v52  ;;  %2429 = vmatpush1.bf16.msra.mxu1 %v5377_v31  ;;  %v5393_v52 = vld [vmem:[#allocation85_spill] sm:$0xff] }
 0x463   : > { %2387 = vmatprep.subr.bf16.mxu0 %v5378_v5  ;;  %2430 = vmatprep.subr.bf16.mxu1 %v5379_v56  ;;  %v2222_v31 = vunpack.c.l.bf16 %v5393_v52 }
 0x466   : > { %2388 = vmatpush1.bf16.msra.mxu0 %v5380_v1  ;;  %2431 = vmatpush1.bf16.msra.mxu1 %v5381_v62  ;;  %v5394_v1 = vld [vmem:[#allocation86_spill] sm:$0xff] }
 0x467   : > { %2389 = vmatprep.subr.bf16.mxu0 %v5382_v2  ;;  %2432 = vmatprep.subr.bf16.mxu1 %v5383_v6  ;;  %v2221_v62 = vunpack.c.l.bf16 %v5394_v1  ;;  %v5395_v2 = vld [vmem:[#allocation87_spill] sm:$0xff] }
 0x468   : > { %v2223_v6 = vunpack.c.l.bf16 %v5395_v2 }
 0x46a   : > { %2390 = vmatpush1.bf16.msra.mxu0 %v5384_v19  ;;  %2433 = vmatpush1.bf16.msra.mxu1 %v5385_v57  ;;  %v2224_v19 = vunpack.c.h.bf16 %v5392_v46  ;;  %v2226_v57 = vunpack.c.h.bf16 %v5393_v52 }
 0x4e0   : > { %v2124_v3 = vpop.f32.mrb[36].mxu0  ;;  %v2167_v10 = vpop.f32.mrb[36].mxu1 }
 0x4e1   : > { %v2125_v12 = vadd.f32 %v2124_v3, %v5386_v11  ;;  %v2126_v13 = vpop.f32.mrb[37].mxu0  ;;  %v2169_v14 = vpop.f32.mrb[37].mxu1  ;;  %v2168_v36 = vadd.f32 %v2167_v10, %v5388_v17 }
 0x4e2   : > { %v2127_v21 = vadd.f32 %v2126_v13, %v5387_v7  ;;  %v2128_v32 = vpop.f32.mrb[38].mxu0  ;;  %v2171_v16 = vpop.f32.mrb[38].mxu1  ;;  %v2170_v63 = vadd.f32 %v2169_v14, %v5389_v29  ;;  %v2225_v14 = vunpack.c.h.bf16 %v5394_v1 }
 0x4e3   : > { %v2176_v24 = vmul.f32 0.5, %v2125_v12  ;;  %v2129_v28 = vadd.f32 %v2128_v32, %v5386_v11  ;;  %v2130_v35 = vpop.f32.mrb[39].mxu0  ;;  %v2173_v27 = vpop.f32.mrb[39].mxu1  ;;  %v2172_v34 = vadd.f32 %v2171_v16, %v5388_v17 }
 0x4e4   : > { %v2184_v45 = vmul.f32 0.5, %v2127_v21  ;;  %v2131_v30 = vadd.f32 %v2130_v35, %v5387_v7  ;;  %v2174_v20 = vadd.f32 %v2173_v27, %v5389_v29  ;;  %v2194_v37 = vmul.f32 0.5, %v2170_v63 }
 0x4e5   : > { %3191 = vtanh.f32 %v2176_v24  ;;  %v2177_v9 = vmul.f32 0.5, %v2129_v28  ;;  %v2227_v21 = vunpack.c.h.bf16 %v5395_v2 }
 0x4e6   : > { %3193 = vtanh.f32 %v2184_v45  ;;  %v2185_v23 = vmul.f32 0.5, %v2131_v30  ;;  %v2195_v41 = vmul.f32 0.5, %v2174_v20 }
 0x4e7   : > { %3195 = vtanh.f32 %v2177_v9 }
 0x4e8   : > { %3197 = vtanh.f32 %v2168_v36 }
 0x4e9   : > { %3199 = vtanh.f32 %v2185_v23 }
 0x4ea   : > { %3201 = vtanh.f32 %v2172_v34 }
 0x4eb   : > { %3203 = vtanh.f32 %v2194_v37 }
 0x4ec   : > { %3205 = vtanh.f32 %v2195_v41 }
 0x4ef   : > { %v3192_v15 = vpop.eup %3191 }
 0x4f0   : > { %v3194_v26 = vpop.eup %3193  ;;  %v2180_v8 = vmul.f32 0.5, %v3192_v15 }
 0x4f1   : > { %v2188_v40 = vmul.f32 0.5, %v3194_v26  ;;  %v3196_v0 = vpop.eup %3195 }
 0x4f2   : > { %v2182_v44 = vadd.f32 0.5, %v2180_v8  ;;  %v3198_v25 = vpop.eup %3197  ;;  %v2181_v48 = vmul.f32 0.5, %v3196_v0 }
 0x4f3   : > { %v2190_v51 = vadd.f32 0.5, %v2188_v40  ;;  %v3200_v38 = vpop.eup %3199 }
 0x4f4   : > { %v2204_v53 = vmul.f32 %v3198_v25, %v2182_v44  ;;  %v2183_v50 = vadd.f32 0.5, %v2181_v48  ;;  %v2189_v55 = vmul.f32 0.5, %v3200_v38  ;;  %v3202_v4 = vpop.eup %3201 }
 0x4f5   : > { %v2202_v54 = vmul.f32 %v2190_v51, %v5390_v39  ;;  %v3204_v18 = vpop.eup %3203 }
 0x4f6   : > { %v2191_v59 = vadd.f32 0.5, %v2189_v55  ;;  %v2205_v47 = vmul.f32 %v3202_v4, %v2183_v50  ;;  %v3206_v49 = vpop.eup %3205  ;;  %v2198_v32 = vmul.f32 0.5, %v3204_v18 }
 0x4f7   : > { %v4838_v42 = vadd.f32 %v2204_v53, %v2202_v54  ;;  %v2199_v16 = vmul.f32 0.5, %v3206_v49 }
 0x4f8   : > { %v2203_v33 = vmul.f32 %v2191_v59, %v5391_v61  ;;  %v2200_v8 = vadd.f32 0.5, %v2198_v32 }
 0x4f9   : > { %3207 = vtanh.f32 %v4838_v42  ;;  %v2201_v37 = vadd.f32 0.5, %v2199_v16 }
 0x4fa   : > { %v4842_v43 = vadd.f32 %v2205_v47, %v2203_v33 }
 0x4fc   : > { %3209 = vtanh.f32 %v4842_v43 }
 0x500   : > { %v2262_v5 = vpop.f32.mrb[40].mxu0  ;;  %v2305_v56 = vpop.f32.mrb[40].mxu1 }
 0x501   : > { %v2314_v3 = vadd.f32 %v2262_v5, %v2220_v58  ;;  %v2316_v10 = vadd.f32 %v2305_v56, %v2222_v31  ;;  %v2264_v12 = vpop.f32.mrb[41].mxu0  ;;  %v2307_v13 = vpop.f32.mrb[41].mxu1 }
 0x502   : > { %v2315_v24 = vadd.f32 %v2264_v12, %v2221_v62  ;;  %v2317_v28 = vadd.f32 %v2307_v13, %v2223_v6  ;;  %v2266_v35 = vpop.f32.mrb[42].mxu0  ;;  %v2309_v27 = vpop.f32.mrb[42].mxu1 }
 0x503   : > { %v2322_v45 = vmul.f32 0.5, %v2314_v3  ;;  %v2318_v30 = vadd.f32 %v2266_v35, %v2224_v19  ;;  %v2320_v36 = vadd.f32 %v2309_v27, %v2226_v57  ;;  %v2268_v9 = vpop.f32.mrb[43].mxu0  ;;  %v2311_v23 = vpop.f32.mrb[43].mxu1 }
 0x504   : > { %v2330_v34 = vmul.f32 0.5, %v2315_v24  ;;  %v2319_v63 = vadd.f32 %v2268_v9, %v2225_v14  ;;  %v2321_v20 = vadd.f32 %v2311_v23, %v2227_v21  ;;  %v3208_v15 = vpop.eup %3207  ;;  %v2340_v51 = vmul.f32 0.5, %v2317_v28 }
 0x505   : > { %3211 = vtanh.f32 %v2322_v45  ;;  %v2323_v26 = vmul.f32 0.5, %v2318_v30  ;;  %v2210_v0 = vmul.f32 %v3208_v15, %v2200_v8 }
 0x506   : > { %3213 = vtanh.f32 %v2330_v34  ;;  %v2331_v40 = vmul.f32 0.5, %v2319_v63  ;;  %v3210_v41 = vpop.eup %3209  ;;  %v2341_v54 = vmul.f32 0.5, %v2321_v20 }
 0x507   : > { %3215 = vtanh.f32 %v2323_v26  ;;  %v2211_v44 = vmul.f32 %v3210_v41, %v2201_v37 }
 0x508   : > { %3217 = vtanh.f32 %v2316_v10 }
 0x509   : > { %3219 = vtanh.f32 %v2331_v40  ;;  %v2212_v25 = vpack.c.bf16 %v2211_v44, %v2210_v0 }
 0x50a   : > { %3221 = vtanh.f32 %v2320_v36 }
 0x50b   : > { %2391 = vmatprep.mubr.bf16.mxu0 %v2212_v25  ;;  %2434 = vmatprep.mubr.bf16.mxu1 %v2212_v25  ;;  %3223 = vtanh.f32 %v2340_v51 }
 0x50c   : > { %3225 = vtanh.f32 %v2341_v54 }
 0x50f   : > { %v3212_v48 = vpop.eup %3211 }
 0x510   : > { %v3214_v38 = vpop.eup %3213  ;;  %v2326_v53 = vmul.f32 0.5, %v3212_v48 }
 0x511   : > { %v2334_v39 = vmul.f32 0.5, %v3214_v38  ;;  %v3216_v50 = vpop.eup %3215 }
 0x512   : > { %v2328_v55 = vadd.f32 0.5, %v2326_v53  ;;  %v3218_v4 = vpop.eup %3217  ;;  %v2327_v47 = vmul.f32 0.5, %v3216_v50 }
 0x513   : > { %v2336_v59 = vadd.f32 0.5, %v2334_v39  ;;  %v3220_v61 = vpop.eup %3219 }
 0x514   : > { %v2350_v33 = vmul.f32 %v3218_v4, %v2328_v55  ;;  %v2329_v49 = vadd.f32 0.5, %v2327_v47  ;;  %v2335_v46 = vmul.f32 0.5, %v3220_v61  ;;  %v3222_v58 = vpop.eup %3221 }
 0x515   : > { %v2348_v18 = vmul.f32 %v2336_v59, %v4726_v60  ;;  %v3224_v1 = vpop.eup %3223 }
 0x516   : > { %v2337_v31 = vadd.f32 0.5, %v2335_v46  ;;  %v2351_v5 = vmul.f32 %v3222_v58, %v2329_v49  ;;  %v2344_v2 = vmul.f32 0.5, %v3224_v1  ;;  %v3226_v6 = vpop.eup %3225 }
 0x517   : > { %v2352_v52 = vadd.f32 %v2350_v33, %v2348_v18  ;;  %v2345_v57 = vmul.f32 0.5, %v3226_v6 }
 0x518   : > { %v2349_v56 = vmul.f32 %v2337_v31, %v4730_v22  ;;  %v2346_v19 = vadd.f32 0.5, %v2344_v2 }
 0x519   : > { %3227 = vtanh.f32 %v2352_v52  ;;  %2486 = vst [vmem:[#allocation12] sm:$0xff] %v2352_v52  ;;  %v2347_v10 = vadd.f32 0.5, %v2345_v57 }
 0x51a   : > { %v2353_v62 = vadd.f32 %v2351_v5, %v2349_v56 }
 0x51c   : > { %3229 = vtanh.f32 %v2353_v62  ;;  %2487 = vst [vmem:[#allocation12 + $0x8] sm:$0xff] %v2353_v62 }
 0x523   : > { %v3228_v60 = vpop.eup %3227 }
 0x524   : > { %v2356_v3 = vmul.f32 %v3228_v60, %v2346_v19 }
 0x526   : > { %v3230_v12 = vpop.eup %3229 }
 0x527   : > { %v2357_v13 = vmul.f32 %v3230_v12, %v2347_v10 }
 0x529   : > { %v2358_v14 = vpack.c.bf16 %v2357_v13, %v2356_v3 }
 0x52b   : > { %2392 = vmatmul.mubr.bf16.vlgmr.msra.gmra.mrb[44].mxu0 %v2358_v14  ;;  %v2482_v21 = vunpack.c.l.bf16 %v2358_v14  ;;  %v2483_v32 = vunpack.c.h.bf16 %v2358_v14  ;;  %2435 = vmatmul.mubr.bf16.vlgmr.msra.gmra.mrb[44].mxu1 %v2358_v14 }
 0x52d   : > { %2484 = vst [vmem:[#allocation11] sm:$0xff] %v2482_v21  ;;  %2485 = vst [vmem:[#allocation11 + $0x8] sm:$0xff] %v2483_v32 }
 0x5fe   : > { %v2393_v22 = vpop.f32.mrb[44].mxu0  ;;  %v2436_v16 = vpop.f32.mrb[44].mxu1 }
 0x5ff   : > { %v2394_v24 = vadd.f32 %v2393_v22, %v5386_v11  ;;  %v2395_v28 = vpop.f32.mrb[45].mxu0  ;;  %v2438_v35 = vpop.f32.mrb[45].mxu1  ;;  %v2437_v15 = vadd.f32 %v2436_v16, %v5388_v17 }
 0x600   : > { %v2396_v27 = vadd.f32 %v2395_v28, %v5387_v7  ;;  %v2397_v45 = vpop.f32.mrb[46].mxu0  ;;  %v2440_v30 = vpop.f32.mrb[46].mxu1  ;;  %v2439_v40 = vadd.f32 %v2438_v35, %v5389_v29 }
 0x601   : > { %v2445_v36 = vmul.f32 0.5, %v2394_v24  ;;  %v2398_v9 = vadd.f32 %v2397_v45, %v5386_v11  ;;  %v2399_v23 = vpop.f32.mrb[47].mxu0  ;;  %v2442_v34 = vpop.f32.mrb[47].mxu1  ;;  %v2441_v37 = vadd.f32 %v2440_v30, %v5388_v17 }
 0x602   : > { %v2453_v63 = vmul.f32 0.5, %v2396_v27  ;;  %v2400_v20 = vadd.f32 %v2399_v23, %v5387_v7  ;;  %v2463_v11 = vmul.f32 0.5, %v2439_v40  ;;  %v2443_v41 = vadd.f32 %v2442_v34, %v5389_v29 }
 0x603   : > { %3231 = vtanh.f32 %v2445_v36  ;;  %v2446_v26 = vmul.f32 0.5, %v2398_v9 }
 0x604   : > { %3233 = vtanh.f32 %v2453_v63  ;;  %v2454_v8 = vmul.f32 0.5, %v2400_v20  ;;  %v2464_v51 = vmul.f32 0.5, %v2443_v41 }
 0x605   : > { %3235 = vtanh.f32 %v2446_v26 }
 0x606   : > { %3237 = vtanh.f32 %v2437_v15 }
 0x607   : > { %3239 = vtanh.f32 %v2454_v8 }
 0x608   : > { %3241 = vtanh.f32 %v2441_v37 }
 0x609   : > { %3243 = vtanh.f32 %v2463_v11 }
 0x60a   : > { %3245 = vtanh.f32 %v2464_v51 }
 0x60d   : > { %v3232_v0 = vpop.eup %3231 }
 0x60e   : > { %v3234_v44 = vpop.eup %3233  ;;  %v2449_v7 = vmul.f32 0.5, %v3232_v0 }
 0x60f   : > { %v2457_v25 = vmul.f32 0.5, %v3234_v44  ;;  %v3236_v48 = vpop.eup %3235 }
 0x610   : > { %v2451_v38 = vadd.f32 0.5, %v2449_v7  ;;  %v3238_v53 = vpop.eup %3237  ;;  %v2450_v54 = vmul.f32 0.5, %v3236_v48 }
 0x611   : > { %v2459_v39 = vadd.f32 0.5, %v2457_v25  ;;  %v3240_v17 = vpop.eup %3239 }
 0x612   : > { %v2473_v50 = vmul.f32 %v3238_v53, %v2451_v38  ;;  %v2452_v4 = vadd.f32 0.5, %v2450_v54  ;;  %v2458_v59 = vmul.f32 0.5, %v3240_v17  ;;  %v3242_v29 = vpop.eup %3241 }
 0x613   : > { %v2471_v55 = vmul.f32 %v2459_v39, %v4838_v42  ;;  %v3244_v42 = vpop.eup %3243 }
 0x614   : > { %v2460_v61 = vadd.f32 0.5, %v2458_v59  ;;  %v2474_v33 = vmul.f32 %v3242_v29, %v2452_v4  ;;  %v2467_v46 = vmul.f32 0.5, %v3244_v42 }
 0x615   : > { %v2475_v47 = vadd.f32 %v2473_v50, %v2471_v55 }
 0x616   : > { %v2472_v18 = vmul.f32 %v2460_v61, %v4842_v43 }
 0x617   : > { %3247 = vtanh.f32 %v2475_v47  ;;  %2492 = vst [vmem:[#allocation12 + $0x10] sm:$0xff] %v2475_v47 }
 0x618   : > { %v2476_v49 = vadd.f32 %v2474_v33, %v2472_v18 }
 0x61a   : > { %3249 = vtanh.f32 %v2476_v49  ;;  %2493 = vst [vmem:[#allocation12 + $0x18] sm:$0xff] %v2476_v49 }
 0x61b   : > { %3474 = shalt.err (!%p3471_p6)
}
 0x61c   : > { %s3475_s18 = scalar_lea.hbm %s4946_s7, 512 }
 0x61d   : > { %p3476_p10 = scmp.ne.s32.totalorder %s4946_s7, %s3475_s18  ;;  %p3481_p8 = scmp.lt.u32.totalorder %s3475_s18, %s4946_s7 }
 0x61f   : > { %p3477_p1 = pnand %p3476_p10, %p4867_p4 }
 0x621   : > { %p3478_p3 = pneg %p3477_p1 }
 0x623   : > { %p3483_p11 = pnand %p3481_p8, %p3478_p3 }
 0x625   : > { %3486 = shalt.err (!%p3483_p11)
}
 0x626   : > { %s3592_s20 = smov 128   ;;  %s3593_s21 = smov 8   ;;  %v3246_v43 = vpop.eup %3245  ;;  %v2469_v58 = vadd.f32 0.5, %v2467_v46 }
 0x627   : > { %2804 = dma.vmem_to_hbm [thread:$0]  (%p4867_p4), %s2520_s11, 512, %s4946_s7, [#allocation13], %s3592_s20, %s3592_s20, %s3593_s21   ;;  %v2468_v52 = vmul.f32 0.5, %v3246_v43  ;;  %v3248_v31 = vpop.eup %3247 }
 0x628   : > { %v2479_v5 = vmul.f32 %v3248_v31, %v2469_v58  ;;  %v3250_v1 = vpop.eup %3249  ;;  %s3594_s9 = smov [#allocation11]  }
 0x629   : > { %v2470_v56 = vadd.f32 0.5, %v2468_v52  ;;  %s2503_s10 = sshll.u32 %s3594_s9, 4  ;;  %s2504_s10 = int_to_ptr.vmem [resolvable:$true] %s2503_s10 }
 0x62a   : > { %s3487_s24 = scalar_lea.vmem %s2504_s10, 512  ;;  %p3494_p12 = scmp.lt.s32.totalorder %s2504_s10, %s2504_s10 }
 0x62b   : > { %v2480_v62 = vmul.f32 %v3250_v1, %v2470_v56  ;;  %p3488_p7 = scmp.ne.s32.totalorder %s2504_s10, %s3487_s24  ;;  %p3495_p13 = scmp.lt.s32.totalorder %s3487_s24, %s3487_s24 }
 0x62d   : > { %v2481_v2 = vpack.c.bf16 %v2480_v62, %v2479_v5  ;;  %p3489_p5 = pnand %p3488_p7, %p4867_p4  ;;  %p3496_p0 = por %p3495_p13, %p3494_p12 }
 0x62f   : > { %v2488_v6 = vunpack.c.l.bf16 %v2481_v2  ;;  %v2489_v19 = vunpack.c.h.bf16 %v2481_v2  ;;  %p3490_p9 = pneg %p3489_p5 }
 0x631   : > { %2490 = vst [vmem:[#allocation11 + $0x10] sm:$0xff] %v2488_v6  ;;  %2491 = vst [vmem:[#allocation11 + $0x18] sm:$0xff] %v2489_v19  ;;  %p3497_p2 = pnand %p3496_p0, %p3490_p9 }
 0x633   : > { %3500 = shalt.err (!%p3497_p2)
}
 0x634   : > { %s5398_s13 = sld [smem:[#allocation94_spill]] }
 0x63a   : > { %s3501_s22 = scalar_lea.hbm %s5398_s13, 512 }
 0x63b   : > { %p3502_p6 = scmp.ne.s32.totalorder %s5398_s13, %s3501_s22  ;;  %p3507_p3 = scmp.lt.u32.totalorder %s3501_s22, %s5398_s13 }
 0x63d   : > { %p3503_p10 = pnand %p3502_p6, %p4867_p4 }
 0x63f   : > { %p3504_p1 = pneg %p3503_p10 }
 0x641   : > { %p3509_p8 = pnand %p3507_p3, %p3504_p1 }
 0x643   : > { %3512 = shalt.err (!%p3509_p8)
}
 0x644   : > { %2802 = dma.vmem_to_hbm [thread:$0]  (%p4867_p4), %s2504_s10, 512, %s5398_s13, [#allocation5], %s3592_s20, %s3592_s20, %s3593_s21  }
 0x645   : > { %3550 = dma.done.wait (%p4867_p4), [#allocation5], 512  }
 0x646   : > { %3552 = vsyncadd (%p4867_p4), [#allocation5], 4294966784 }
 0x647   : > { %3554 = dma.done.wait (%p4867_p4), [#allocation13], 512  }
 0x648   : > { %3556 = vsyncadd (%p4867_p4), [#allocation13], 4294966784 }
 0x649 PF: > { %s25_s29 = sadd.s32 1, %s3579_s29   ;;  %s5399_s24 = smov %s3563_s25 }
 0x64a   : > { %p22_p11 = scmp.ge.s32.totalorder %s25_s29, 4   ;;  %s5400_s25 = smov %s3567_s26 }
 0x64b   : > { %s5401_s26 = smov %s3790_s17  ;;  %s5402_s27 = smov %s3575_s28 }
 0x64c   : > { %s5403_s28 = smov %s5405_s30  ;;  %24 = sbr.rel (!%p22_p11) target bundleno = 10 (0xa), region = 113 }
 0x653   :  { %2539 = vsyncpa [#allocation4], 1 }
 0x654   :  { %2541 = vsyncpa [#allocation4 + $0x1], 1 }
 0x655   :  { %2542 = vsyncpa [#allocation7], 1 }
 0x656   :  { %2543 = vsyncpa [#allocation10], 1 }
 0x657   :  { %2544 = vsyncpa [#allocation5], 1 }
 0x658   :  { %2546 = vsyncpa [#allocation5 + $0x1], 1 }
 0x659   :  { %2547 = vsyncpa [#allocation13], 1 }

</bundles_post_ra>
